<compile_context>
chip_gen: v5e
topology: v5e:2x2
jax: 0.10.0
libtpu: 0.0.40
codegen_flags: <defaults>
</compile_context>

<pallas_src>
import math

import jax
import jax.numpy as jnp
from jax.experimental import pallas as pl
from jax.experimental.pallas import tpu as pltpu

D_REAL = 3 * 28 * 28        # 2352 = 18*128 + 48 (only the tail lane-group store is masked)


def _round_up(x, m):
    return (x + m - 1) // m * m


def vae_kernel(x_ref, eps_ref,
               we1_ref, be1_ref, we2_ref, be2_ref,
               wmu_ref, bmu_ref, wlv_ref, blv_ref,
               wd1_ref, bd1_ref, wd2_ref, bd2_ref, wd3_ref, bd3_ref,
               out_ref, kl_ref):
    """One batch-tile of the full VAE forward. Activations are f32; matmul inputs are
    cast to the weight dtype (bf16 for the big matrices) so the MXU runs bf16xbf16->f32."""

    def linear(a, w_ref, b_ref):
        y = jnp.dot(a.astype(w_ref.dtype), w_ref[...],
                    preferred_element_type=jnp.float32)
        return y + b_ref[...]

    # ---------------- Encoder ----------------
    x = x_ref[...]                                            # [TM, 2352] bf16
    h = jnp.maximum(linear(x, we1_ref, be1_ref), 0.0)         # [TM, 512]
    h = jnp.maximum(linear(h, we2_ref, be2_ref), 0.0)         # [TM, 256]
    mu = linear(h, wmu_ref, bmu_ref)                          # [TM, latent]
    log_var = linear(h, wlv_ref, blv_ref)                     # [TM, latent]

    # Per-row KL contribution: -0.5 * sum(1 + log_var - mu^2 - exp(log_var))
    kl_ref[...] = -0.5 * jnp.sum(1.0 + log_var - mu * mu - jnp.exp(log_var),
                                 axis=-1, keepdims=True)

    # Reparametrization trick: z = mu + exp(log_var / 2) * eps
    z = mu + jnp.exp(0.5 * log_var) * eps_ref[...]            # [TM, latent] f32

    # ---------------- Decoder ----------------
    # K=latent (=2) matmul is MXU fill/drain overhead -> VPU outer product instead.
    latent = eps_ref.shape[-1]
    acc = z[:, 0:1] * wd1_ref[0:1, :]                         # [TM, 256]
    for d in range(1, latent):
        acc = acc + z[:, d:d + 1] * wd1_ref[d:d + 1, :]
    h = jnp.maximum(acc + bd1_ref[...], 0.0)                  # [TM, 256]
    h = jnp.maximum(linear(h, wd2_ref, bd2_ref), 0.0)         # [TM, 512]
    logits = linear(h, wd3_ref, bd3_ref)                      # [TM, 2352]
    out_ref[...] = jax.nn.sigmoid(logits)                     # sigmoid on EUP, f32


def init_params(key, latent_dims):
    """nn.Linear default init (uniform +/- 1/sqrt(fan_in)); weights stored [in, out]
    (transpose of torch's [out, in]) so the kernel computes y = a @ W + b directly."""
    assert latent_dims == 2, "torch.split(..., 2, dim=-1) half-split only matches latent_dims == 2"

    def linear(k, fan_in, fan_out):
        kw, kb = jax.random.split(k)
        bound = 1.0 / math.sqrt(fan_in)
        w = jax.random.uniform(kw, (fan_in, fan_out), jnp.float32, -bound, bound)
        b = jax.random.uniform(kb, (1, fan_out), jnp.float32, -bound, bound)
        return w, b

    keys = jax.random.split(key, 6)
    # Encoder
    we1, be1 = linear(keys[0], D_REAL, 512)
    we2, be2 = linear(keys[1], 512, 256)
    we3, be3 = linear(keys[2], 256, 2 * latent_dims)
    # to_mean_logvar split into separate mu / log_var matrices (matches
    # torch.split(..., 2, dim=-1) when latent_dims == 2).
    wmu, wlv = we3[:, :latent_dims], we3[:, latent_dims:]
    bmu, blv = be3[:, :latent_dims], be3[:, latent_dims:]
    # Decoder
    wd1, bd1 = linear(keys[3], latent_dims, 256)
    wd2, bd2 = linear(keys[4], 256, 512)
    wd3, bd3 = linear(keys[5], 512, D_REAL)

    # bf16 for the bandwidth-dominant matrices (~5 MiB of ~5.3 MiB of weights);
    # biases and the tiny latent-side matrices stay f32.
    we1 = we1.astype(jnp.bfloat16)
    we2 = we2.astype(jnp.bfloat16)
    wd2 = wd2.astype(jnp.bfloat16)
    wd3 = wd3.astype(jnp.bfloat16)

    return (we1, be1, we2, be2, wmu, bmu, wlv, blv, wd1, bd1, wd2, bd2, wd3, bd3)


def vae_forward(x, eps, params):
    """x: [B, 3, 28, 28] f32, eps: [B, latent] f32 -> (recon [B,3,28,28] f32, kl scalar f32)."""
    (we1, be1, we2, be2, wmu, bmu, wlv, blv,
     wd1, bd1, wd2, bd2, wd3, bd3) = params
    B = x.shape[0]
    latent_dims = eps.shape[1]

    # torch.flatten(x, start_dim=1) on NCHW == row-major reshape; cast the streamed
    # input to bf16 (halves x DMA bytes; the kernel casts to we1.dtype anyway).
    x_flat = x.reshape(B, -1).astype(jnp.bfloat16)            # [B, 2352] bf16, no feature pad

    # Batch tiling:
    #  * B >= 512 : tm=256 (fills MXU M, big DMA granules, >=2 tiles for v7x's 2 TCs)
    #  * B >= 256 : tm=128 (keep >=2 "parallel" tiles so both TensorCores are used)
    #  * small B  : one tile, rounded to 16 rows (bf16 sublane packing)
    if B >= 512:
        tm = 256
    elif B >= 256:
        tm = 128
    else:
        tm = _round_up(B, 16)
    b_pad = _round_up(B, tm)
    if b_pad != B:
        x_flat = jnp.pad(x_flat, ((0, b_pad - B), (0, 0)))
        eps = jnp.pad(eps, ((0, b_pad - B), (0, 0)))
    grid = (b_pad // tm,)

    # Advisory cost estimate (matmul FLOPs, exp/sigmoid transcendentals, real bytes moved).
    flops = 2 * b_pad * (D_REAL * 512 + 512 * 256 + 256 * 2 * latent_dims
                         + latent_dims * 256 + 256 * 512 + 512 * D_REAL)
    transcendentals = b_pad * (D_REAL + 2 * latent_dims)
    bytes_accessed = (sum(int(p.size) * p.dtype.itemsize for p in params)
                      + int(x_flat.size) * 2 + int(eps.size) * 4
                      + b_pad * D_REAL * 4 + b_pad * 4)

    weight_args = (we1, be1, we2, be2, wmu, bmu, wlv, blv, wd1, bd1, wd2, bd2, wd3, bd3)
    # Constant-index weight/bias blocks stay resident in VMEM across the batch grid.
    # (On v7x one could additionally try pipeline_mode=pl.Buffered(1) on these specs
    #  to halve their resident footprint; left at the default for portability.)
    weight_specs = [pl.BlockSpec(w.shape, lambda i: (0, 0)) for w in weight_args]

    out_recon, kl_rows = pl.pallas_call(
        vae_kernel,
        out_shape=(jax.ShapeDtypeStruct((b_pad, D_REAL), jnp.float32),
                   jax.ShapeDtypeStruct((b_pad, 1), jnp.float32)),
        grid=grid,
        in_specs=[
            # Per-tile activations (pipelined across the batch grid).
            pl.BlockSpec((tm, D_REAL), lambda i: (i, 0)),        # x, bf16, natural width
            pl.BlockSpec((tm, latent_dims), lambda i: (i, 0)),   # eps, f32
            *weight_specs,
        ],
        out_specs=(
            pl.BlockSpec((tm, D_REAL), lambda i: (i, 0)),        # recon written at 2352 cols
            pl.BlockSpec((tm, 1), lambda i: (i, 0)),
        ),
        compiler_params=pltpu.CompilerParams(
            dimension_semantics=("parallel",),   # batch tiles shard across v7x's 2 TCs
            vmem_limit_bytes=48 << 20,           # room for tm=256 tiles; < 64 MiB v7x VMEM
        ),
        cost_estimate=pl.CostEstimate(
            flops=flops,
            transcendentals=transcendentals,
            bytes_accessed=bytes_accessed,
        ),
    )(x_flat, eps, *weight_args)

    # Metadata-only when b_pad == B: no extra HBM pass over the recon tensor.
    recon = out_recon[:B].reshape(-1, 3, 28, 28)   # == torch z.reshape(-1, 3, 28, 28)
    kl = jnp.sum(kl_rows[:B])
    return recon, kl


if __name__ == "__main__":
    # NOTE: the reference's `torch.split(..., 2, dim=-1)` splits into size-2 chunks, so the
    # `mu, log_var = ...` unpacking only works for latent_dims == 2; the kernel implements
    # exactly that half-split (asserted in init_params).
    latent_dims = 2
    batch = 8

    key = jax.random.PRNGKey(0)
    k_params, k_x, k_eps = jax.random.split(key, 3)
    params = init_params(k_params, latent_dims)
    x = jax.random.uniform(k_x, (batch, 3, 28, 28), jnp.float32)       # image-like input
    eps = jax.random.normal(k_eps, (batch, latent_dims), jnp.float32)  # reparam noise

    fwd = jax.jit(vae_forward)   # lets XLA fuse the reshape/bf16-cast feeding the kernel
    recon, kl = fwd(x, eps, params)
    recon = jax.block_until_ready(recon)
    kl = jax.block_until_ready(kl)

    assert recon.shape == (batch, 3, 28, 28), recon.shape
    assert recon.dtype == jnp.float32
    assert bool(jnp.all(recon >= 0.0)) and bool(jnp.all(recon <= 1.0))
    assert bool(jnp.isfinite(kl))

    print("KERNEL_OK")
</pallas_src>

<mosaic_0001>
module attributes {stable_mosaic.version = 11 : i64} {
  func.func @vae_kernel(%arg0: i32, %arg1: memref<16x2352xbf16, #tpu.memory_space<vmem>>, %arg2: memref<16x2xf32, #tpu.memory_space<vmem>>, %arg3: memref<2352x512xbf16, #tpu.memory_space<vmem>>, %arg4: memref<1x512xf32, #tpu.memory_space<vmem>>, %arg5: memref<512x256xbf16, #tpu.memory_space<vmem>>, %arg6: memref<1x256xf32, #tpu.memory_space<vmem>>, %arg7: memref<256x2xf32, #tpu.memory_space<vmem>>, %arg8: memref<1x2xf32, #tpu.memory_space<vmem>>, %arg9: memref<256x2xf32, #tpu.memory_space<vmem>>, %arg10: memref<1x2xf32, #tpu.memory_space<vmem>>, %arg11: memref<2x256xf32, #tpu.memory_space<vmem>>, %arg12: memref<1x256xf32, #tpu.memory_space<vmem>>, %arg13: memref<256x512xbf16, #tpu.memory_space<vmem>>, %arg14: memref<1x512xf32, #tpu.memory_space<vmem>>, %arg15: memref<512x2352xbf16, #tpu.memory_space<vmem>>, %arg16: memref<1x2352xf32, #tpu.memory_space<vmem>>, %arg17: memref<16x2352xf32, #tpu.memory_space<vmem>>, %arg18: memref<16x1xf32, #tpu.memory_space<vmem>>) attributes {dimension_semantics = [#tpu.dimension_semantics<parallel>], iteration_bounds = array<i64: 1>, scalar_prefetch = 0 : i64, scratch_operands = 0 : i64, tpu.core_type = #tpu.core_type<tc>, window_params = [{transform_indices = @transform_0, window_bounds = array<i64: 16, 2352>}, {transform_indices = @transform_1, window_bounds = array<i64: 16, 2>}, {pipeline_mode = #tpu.pipeline_mode<synchronous>, transform_indices = @transform_2, window_bounds = array<i64: 2352, 512>}, {pipeline_mode = #tpu.pipeline_mode<synchronous>, transform_indices = @transform_3, window_bounds = array<i64: 1, 512>}, {pipeline_mode = #tpu.pipeline_mode<synchronous>, transform_indices = @transform_4, window_bounds = array<i64: 512, 256>}, {pipeline_mode = #tpu.pipeline_mode<synchronous>, transform_indices = @transform_5, window_bounds = array<i64: 1, 256>}, {pipeline_mode = #tpu.pipeline_mode<synchronous>, transform_indices = @transform_6, window_bounds = array<i64: 256, 2>}, {pipeline_mode = #tpu.pipeline_mode<synchronous>, transform_indices = @transform_7, window_bounds = array<i64: 1, 2>}, {pipeline_mode = #tpu.pipeline_mode<synchronous>, transform_indices = @transform_8, window_bounds = array<i64: 256, 2>}, {pipeline_mode = #tpu.pipeline_mode<synchronous>, transform_indices = @transform_9, window_bounds = array<i64: 1, 2>}, {pipeline_mode = #tpu.pipeline_mode<synchronous>, transform_indices = @transform_10, window_bounds = array<i64: 2, 256>}, {pipeline_mode = #tpu.pipeline_mode<synchronous>, transform_indices = @transform_11, window_bounds = array<i64: 1, 256>}, {pipeline_mode = #tpu.pipeline_mode<synchronous>, transform_indices = @transform_12, window_bounds = array<i64: 256, 512>}, {pipeline_mode = #tpu.pipeline_mode<synchronous>, transform_indices = @transform_13, window_bounds = array<i64: 1, 512>}, {pipeline_mode = #tpu.pipeline_mode<synchronous>, transform_indices = @transform_14, window_bounds = array<i64: 512, 2352>}, {pipeline_mode = #tpu.pipeline_mode<synchronous>, transform_indices = @transform_15, window_bounds = array<i64: 1, 2352>}, {transform_indices = @transform_16, window_bounds = array<i64: 16, 2352>}, {transform_indices = @transform_17, window_bounds = array<i64: 16, 1>}]} {
    %c0 = arith.constant 0 : index
    %c0_0 = arith.constant 0 : index
    %0 = vector.load %arg1[%c0, %c0_0] : memref<16x2352xbf16, #tpu.memory_space<vmem>>, vector<16x2352xbf16>
    %c0_1 = arith.constant 0 : index
    %c0_2 = arith.constant 0 : index
    %1 = vector.load %arg3[%c0_1, %c0_2] : memref<2352x512xbf16, #tpu.memory_space<vmem>>, vector<2352x512xbf16>
    %cst = arith.constant dense<0.000000e+00> : vector<16x512xf32>
    %2 = tpu.matmul %0, %1, %cst {dimension_numbers = #tpu.dot_dimension_numbers<[1], [0], [0], [1], [0, 0, 1, 1], [], []>} : vector<16x2352xbf16>, vector<2352x512xbf16>, vector<16x512xf32> -> vector<16x512xf32>
    %c0_3 = arith.constant 0 : index
    %c0_4 = arith.constant 0 : index
    %3 = vector.load %arg4[%c0_3, %c0_4] : memref<1x512xf32, #tpu.memory_space<vmem>>, vector<1x512xf32>
    %4 = vector.broadcast %3 : vector<1x512xf32> to vector<16x512xf32>
    %5 = arith.addf %2, %4 : vector<16x512xf32>
    %cst_5 = arith.constant 0.000000e+00 : f32
    %6 = vector.broadcast %cst_5 : f32 to vector<16x512xf32>
    %7 = arith.maximumf %5, %6 : vector<16x512xf32>
    %8 = arith.truncf %7 : vector<16x512xf32> to vector<16x512xbf16>
    %c0_6 = arith.constant 0 : index
    %c0_7 = arith.constant 0 : index
    %9 = vector.load %arg5[%c0_6, %c0_7] : memref<512x256xbf16, #tpu.memory_space<vmem>>, vector<512x256xbf16>
    %cst_8 = arith.constant dense<0.000000e+00> : vector<16x256xf32>
    %10 = tpu.matmul %8, %9, %cst_8 {dimension_numbers = #tpu.dot_dimension_numbers<[1], [0], [0], [1], [0, 0, 1, 1], [], []>} : vector<16x512xbf16>, vector<512x256xbf16>, vector<16x256xf32> -> vector<16x256xf32>
    %c0_9 = arith.constant 0 : index
    %c0_10 = arith.constant 0 : index
    %11 = vector.load %arg6[%c0_9, %c0_10] : memref<1x256xf32, #tpu.memory_space<vmem>>, vector<1x256xf32>
    %12 = vector.broadcast %11 : vector<1x256xf32> to vector<16x256xf32>
    %13 = arith.addf %10, %12 : vector<16x256xf32>
    %cst_11 = arith.constant 0.000000e+00 : f32
    %14 = vector.broadcast %cst_11 : f32 to vector<16x256xf32>
    %15 = arith.maximumf %13, %14 : vector<16x256xf32>
    %c0_12 = arith.constant 0 : index
    %c0_13 = arith.constant 0 : index
    %16 = vector.load %arg7[%c0_12, %c0_13] : memref<256x2xf32, #tpu.memory_space<vmem>>, vector<256x2xf32>
    %cst_14 = arith.constant dense<0.000000e+00> : vector<16x2xf32>
    %17 = tpu.matmul %15, %16, %cst_14 {dimension_numbers = #tpu.dot_dimension_numbers<[1], [0], [0], [1], [0, 0, 1, 1], [], []>} : vector<16x256xf32>, vector<256x2xf32>, vector<16x2xf32> -> vector<16x2xf32>
    %c0_15 = arith.constant 0 : index
    %c0_16 = arith.constant 0 : index
    %18 = vector.load %arg8[%c0_15, %c0_16] : memref<1x2xf32, #tpu.memory_space<vmem>>, vector<1x2xf32>
    %19 = vector.broadcast %18 : vector<1x2xf32> to vector<16x2xf32>
    %20 = arith.addf %17, %19 : vector<16x2xf32>
    %c0_17 = arith.constant 0 : index
    %c0_18 = arith.constant 0 : index
    %21 = vector.load %arg9[%c0_17, %c0_18] : memref<256x2xf32, #tpu.memory_space<vmem>>, vector<256x2xf32>
    %cst_19 = arith.constant dense<0.000000e+00> : vector<16x2xf32>
    %22 = tpu.matmul %15, %21, %cst_19 {dimension_numbers = #tpu.dot_dimension_numbers<[1], [0], [0], [1], [0, 0, 1, 1], [], []>} : vector<16x256xf32>, vector<256x2xf32>, vector<16x2xf32> -> vector<16x2xf32>
    %c0_20 = arith.constant 0 : index
    %c0_21 = arith.constant 0 : index
    %23 = vector.load %arg10[%c0_20, %c0_21] : memref<1x2xf32, #tpu.memory_space<vmem>>, vector<1x2xf32>
    %24 = vector.broadcast %23 : vector<1x2xf32> to vector<16x2xf32>
    %25 = arith.addf %22, %24 : vector<16x2xf32>
    %cst_22 = arith.constant 1.000000e+00 : f32
    %26 = vector.broadcast %cst_22 : f32 to vector<16x2xf32>
    %27 = arith.addf %26, %25 : vector<16x2xf32>
    %28 = arith.mulf %20, %20 : vector<16x2xf32>
    %29 = arith.subf %27, %28 : vector<16x2xf32>
    %30 = math.exp %25 : vector<16x2xf32>
    %31 = arith.subf %29, %30 : vector<16x2xf32>
    %cst_23 = arith.constant dense<0.000000e+00> : vector<16xf32>
    %32 = vector.multi_reduction <add>, %31, %cst_23 [1] : vector<16x2xf32> to vector<16xf32>
    %33 = vector.shape_cast %32 : vector<16xf32> to vector<16x1xf32>
    %cst_24 = arith.constant -5.000000e-01 : f32
    %34 = vector.broadcast %cst_24 : f32 to vector<16x1xf32>
    %35 = arith.mulf %34, %33 : vector<16x1xf32>
    %c0_25 = arith.constant 0 : index
    %c0_26 = arith.constant 0 : index
    %36 = vector.load %arg18[%c0_25, %c0_26] : memref<16x1xf32, #tpu.memory_space<vmem>>, vector<16x1xf32>
    tpu.vector_store %arg18[%c0_25, %c0_26], %35 {strides = array<i32>} : memref<16x1xf32, #tpu.memory_space<vmem>>, vector<16x1xf32>,
    %cst_27 = arith.constant 5.000000e-01 : f32
    %37 = vector.broadcast %cst_27 : f32 to vector<16x2xf32>
    %38 = arith.mulf %37, %25 : vector<16x2xf32>
    %39 = math.exp %38 : vector<16x2xf32>
    %c0_28 = arith.constant 0 : index
    %c0_29 = arith.constant 0 : index
    %40 = vector.load %arg2[%c0_28, %c0_29] : memref<16x2xf32, #tpu.memory_space<vmem>>, vector<16x2xf32>
    %41 = arith.mulf %39, %40 : vector<16x2xf32>
    %42 = arith.addf %20, %41 : vector<16x2xf32>
    %43 = vector.extract_strided_slice %42 {offsets = [0, 0], sizes = [16, 1], strides = [1, 1]} : vector<16x2xf32> to vector<16x1xf32>
    %c0_30 = arith.constant 0 : index
    %c0_31 = arith.constant 0 : index
    %44 = vector.load %arg11[%c0_30, %c0_31] : memref<2x256xf32, #tpu.memory_space<vmem>>, vector<1x256xf32>
    %45 = vector.broadcast %43 : vector<16x1xf32> to vector<16x256xf32>
    %46 = vector.broadcast %44 : vector<1x256xf32> to vector<16x256xf32>
    %47 = arith.mulf %45, %46 : vector<16x256xf32>
    %48 = vector.extract_strided_slice %42 {offsets = [0, 1], sizes = [16, 1], strides = [1, 1]} : vector<16x2xf32> to vector<16x1xf32>
    %c1 = arith.constant 1 : index
    %c0_32 = arith.constant 0 : index
    %49 = vector.load %arg11[%c1, %c0_32] : memref<2x256xf32, #tpu.memory_space<vmem>>, vector<1x256xf32>
    %50 = vector.broadcast %48 : vector<16x1xf32> to vector<16x256xf32>
    %51 = vector.broadcast %49 : vector<1x256xf32> to vector<16x256xf32>
    %52 = arith.mulf %50, %51 : vector<16x256xf32>
    %53 = arith.addf %47, %52 : vector<16x256xf32>
    %c0_33 = arith.constant 0 : index
    %c0_34 = arith.constant 0 : index
    %54 = vector.load %arg12[%c0_33, %c0_34] : memref<1x256xf32, #tpu.memory_space<vmem>>, vector<1x256xf32>
    %55 = vector.broadcast %54 : vector<1x256xf32> to vector<16x256xf32>
    %56 = arith.addf %53, %55 : vector<16x256xf32>
    %cst_35 = arith.constant 0.000000e+00 : f32
    %57 = vector.broadcast %cst_35 : f32 to vector<16x256xf32>
    %58 = arith.maximumf %56, %57 : vector<16x256xf32>
    %59 = arith.truncf %58 : vector<16x256xf32> to vector<16x256xbf16>
    %c0_36 = arith.constant 0 : index
    %c0_37 = arith.constant 0 : index
    %60 = vector.load %arg13[%c0_36, %c0_37] : memref<256x512xbf16, #tpu.memory_space<vmem>>, vector<256x512xbf16>
    %cst_38 = arith.constant dense<0.000000e+00> : vector<16x512xf32>
    %61 = tpu.matmul %59, %60, %cst_38 {dimension_numbers = #tpu.dot_dimension_numbers<[1], [0], [0], [1], [0, 0, 1, 1], [], []>} : vector<16x256xbf16>, vector<256x512xbf16>, vector<16x512xf32> -> vector<16x512xf32>
    %c0_39 = arith.constant 0 : index
    %c0_40 = arith.constant 0 : index
    %62 = vector.load %arg14[%c0_39, %c0_40] : memref<1x512xf32, #tpu.memory_space<vmem>>, vector<1x512xf32>
    %63 = vector.broadcast %62 : vector<1x512xf32> to vector<16x512xf32>
    %64 = arith.addf %61, %63 : vector<16x512xf32>
    %cst_41 = arith.constant 0.000000e+00 : f32
    %65 = vector.broadcast %cst_41 : f32 to vector<16x512xf32>
    %66 = arith.maximumf %64, %65 : vector<16x512xf32>
    %67 = arith.truncf %66 : vector<16x512xf32> to vector<16x512xbf16>
    %c0_42 = arith.constant 0 : index
    %c0_43 = arith.constant 0 : index
    %68 = vector.load %arg15[%c0_42, %c0_43] : memref<512x2352xbf16, #tpu.memory_space<vmem>>, vector<512x2352xbf16>
    %cst_44 = arith.constant dense<0.000000e+00> : vector<16x2352xf32>
    %69 = tpu.matmul %67, %68, %cst_44 {dimension_numbers = #tpu.dot_dimension_numbers<[1], [0], [0], [1], [0, 0, 1, 1], [], []>} : vector<16x512xbf16>, vector<512x2352xbf16>, vector<16x2352xf32> -> vector<16x2352xf32>
    %c0_45 = arith.constant 0 : index
    %c0_46 = arith.constant 0 : index
    %70 = vector.load %arg16[%c0_45, %c0_46] : memref<1x2352xf32, #tpu.memory_space<vmem>>, vector<1x2352xf32>
    %71 = vector.broadcast %70 : vector<1x2352xf32> to vector<16x2352xf32>
    %72 = arith.addf %69, %71 : vector<16x2352xf32>
    %73 = arith.negf %72 : vector<16x2352xf32>
    %74 = math.exp %73 : vector<16x2352xf32>
    %cst_47 = arith.constant 1.000000e+00 : f32
    %75 = vector.broadcast %cst_47 : f32 to vector<16x2352xf32>
    %76 = arith.addf %75, %74 : vector<16x2352xf32>
    %77 = arith.divf %75, %76 : vector<16x2352xf32>
    %c0_48 = arith.constant 0 : index
    %c0_49 = arith.constant 0 : index
    %78 = vector.load %arg17[%c0_48, %c0_49] : memref<16x2352xf32, #tpu.memory_space<vmem>>, vector<16x2352xf32>
    tpu.vector_store %arg17[%c0_48, %c0_49], %77 {strides = array<i32>} : memref<16x2352xf32, #tpu.memory_space<vmem>>, vector<16x2352xf32>,
    return
  }
  func.func @transform_0(%arg0: i32) -> (i32, i32) {
    %c0_i32 = arith.constant 0 : i32
    %c0_i32_0 = arith.constant 0 : i32
    return %arg0, %c0_i32 : i32, i32
  }
  func.func @transform_1(%arg0: i32) -> (i32, i32) {
    %c0_i32 = arith.constant 0 : i32
    %c0_i32_0 = arith.constant 0 : i32
    return %arg0, %c0_i32 : i32, i32
  }
  func.func @transform_2(%arg0: i32) -> (i32, i32) {
    %c0_i32 = arith.constant 0 : i32
    %c0_i32_0 = arith.constant 0 : i32
    %c0_i32_1 = arith.constant 0 : i32
    return %c0_i32, %c0_i32_0 : i32, i32
  }
  func.func @transform_3(%arg0: i32) -> (i32, i32) {
    %c0_i32 = arith.constant 0 : i32
    %c0_i32_0 = arith.constant 0 : i32
    %c0_i32_1 = arith.constant 0 : i32
    return %c0_i32, %c0_i32_0 : i32, i32
  }
  func.func @transform_4(%arg0: i32) -> (i32, i32) {
    %c0_i32 = arith.constant 0 : i32
    %c0_i32_0 = arith.constant 0 : i32
    %c0_i32_1 = arith.constant 0 : i32
    return %c0_i32, %c0_i32_0 : i32, i32
  }
  func.func @transform_5(%arg0: i32) -> (i32, i32) {
    %c0_i32 = arith.constant 0 : i32
    %c0_i32_0 = arith.constant 0 : i32
    %c0_i32_1 = arith.constant 0 : i32
    return %c0_i32, %c0_i32_0 : i32, i32
  }
  func.func @transform_6(%arg0: i32) -> (i32, i32) {
    %c0_i32 = arith.constant 0 : i32
    %c0_i32_0 = arith.constant 0 : i32
    %c0_i32_1 = arith.constant 0 : i32
    return %c0_i32, %c0_i32_0 : i32, i32
  }
  func.func @transform_7(%arg0: i32) -> (i32, i32) {
    %c0_i32 = arith.constant 0 : i32
    %c0_i32_0 = arith.constant 0 : i32
    %c0_i32_1 = arith.constant 0 : i32
    return %c0_i32, %c0_i32_0 : i32, i32
  }
  func.func @transform_8(%arg0: i32) -> (i32, i32) {
    %c0_i32 = arith.constant 0 : i32
    %c0_i32_0 = arith.constant 0 : i32
    %c0_i32_1 = arith.constant 0 : i32
    return %c0_i32, %c0_i32_0 : i32, i32
  }
  func.func @transform_9(%arg0: i32) -> (i32, i32) {
    %c0_i32 = arith.constant 0 : i32
    %c0_i32_0 = arith.constant 0 : i32
    %c0_i32_1 = arith.constant 0 : i32
    return %c0_i32, %c0_i32_0 : i32, i32
  }
  func.func @transform_10(%arg0: i32) -> (i32, i32) {
    %c0_i32 = arith.constant 0 : i32
    %c0_i32_0 = arith.constant 0 : i32
    %c0_i32_1 = arith.constant 0 : i32
    return %c0_i32, %c0_i32_0 : i32, i32
  }
  func.func @transform_11(%arg0: i32) -> (i32, i32) {
    %c0_i32 = arith.constant 0 : i32
    %c0_i32_0 = arith.constant 0 : i32
    %c0_i32_1 = arith.constant 0 : i32
    return %c0_i32, %c0_i32_0 : i32, i32
  }
  func.func @transform_12(%arg0: i32) -> (i32, i32) {
    %c0_i32 = arith.constant 0 : i32
    %c0_i32_0 = arith.constant 0 : i32
    %c0_i32_1 = arith.constant 0 : i32
    return %c0_i32, %c0_i32_0 : i32, i32
  }
  func.func @transform_13(%arg0: i32) -> (i32, i32) {
    %c0_i32 = arith.constant 0 : i32
    %c0_i32_0 = arith.constant 0 : i32
    %c0_i32_1 = arith.constant 0 : i32
    return %c0_i32, %c0_i32_0 : i32, i32
  }
  func.func @transform_14(%arg0: i32) -> (i32, i32) {
    %c0_i32 = arith.constant 0 : i32
    %c0_i32_0 = arith.constant 0 : i32
    %c0_i32_1 = arith.constant 0 : i32
    return %c0_i32, %c0_i32_0 : i32, i32
  }
  func.func @transform_15(%arg0: i32) -> (i32, i32) {
    %c0_i32 = arith.constant 0 : i32
    %c0_i32_0 = arith.constant 0 : i32
    %c0_i32_1 = arith.constant 0 : i32
    return %c0_i32, %c0_i32_0 : i32, i32
  }
  func.func @transform_16(%arg0: i32) -> (i32, i32) {
    %c0_i32 = arith.constant 0 : i32
    %c0_i32_0 = arith.constant 0 : i32
    return %arg0, %c0_i32 : i32, i32
  }
  func.func @transform_17(%arg0: i32) -> (i32, i32) {
    %c0_i32 = arith.constant 0 : i32
    %c0_i32_0 = arith.constant 0 : i32
    return %arg0, %c0_i32 : i32, i32
  }
}

</mosaic_0001>

<bundles_post_ra>
// kernel: vae_forward.1
= control target key start
LH: loop header
LB: loop body
LE: loop exit
PB: predicated region body
PF: predicated region fallthrough
CT: control target
= control target key end

     0   :  { %vm3709_vm0 = vcmask 392192   ;;  %vm5471_vm1 = vcmask 15360   ;;  %vm5480_vm2 = vcmask 7168   ;;  %s28413_s2 = inlined_call_operand.vmem [shape: bf16[2352,512], index: 2, kind: input, shape index: {}]   ;;  %s28414_s0 = inlined_call_operand.vmem [shape: bf16[16,2352], index: 0, kind: input, shape index: {}]   ;;  %s28415_s3 = inlined_call_operand.vmem [shape: f32[1,512], index: 3, kind: input, shape index: {}]   ;;  %s28416_s4 = inlined_call_operand.vmem [shape: bf16[512,256], index: 4, kind: input, shape index: {}]   ;;  %s28417_s6 = inlined_call_operand.vmem [shape: f32[256,2], index: 6, kind: input, shape index: {}]   ;;  %s28418_s8 = inlined_call_operand.vmem [shape: f32[256,2], index: 8, kind: input, shape index: {}]   ;;  %s28419_s7 = inlined_call_operand.vmem [shape: f32[1,2], index: 7, kind: input, shape index: {}]   ;;  %s28420_s5 = inlined_call_operand.vmem [shape: f32[1,256], index: 5, kind: input, shape index: {}]   ;;  %s28421_s9 = inlined_call_operand.vmem [shape: f32[1,2], index: 9, kind: input, shape index: {}]   ;;  %s28422_s12 = inlined_call_operand.vmem [shape: bf16[256,512], index: 12, kind: input, shape index: {}]   ;;  %s28423_s1 = inlined_call_operand.vmem [shape: f32[16,2], index: 1, kind: input, shape index: {}]   ;;  %s28424_s10 = inlined_call_operand.vmem [shape: f32[2,256], index: 10, kind: input, shape index: {}]   ;;  %s28425_s17 = inlined_call_operand.vmem [shape: f32[16,1], index: 17, kind: output, shape index: {1}]   ;;  %s28426_s11 = inlined_call_operand.vmem [shape: f32[1,256], index: 11, kind: input, shape index: {}]   ;;  %s28427_s14 = inlined_call_operand.vmem [shape: bf16[512,2352], index: 14, kind: input, shape index: {}]   ;;  %s28428_s13 = inlined_call_operand.vmem [shape: f32[1,512], index: 13, kind: input, shape index: {}]   ;;  %s28429_s15 = inlined_call_operand.vmem [shape: f32[1,2352], index: 15, kind: input, shape index: {}]   ;;  %s28430_s16 = inlined_call_operand.vmem [shape: f32[16,2352], index: 16, kind: output, shape index: {0}]  }
   0x1   :  { %28436 = sst [smem:[#allocation25_spill]] %s28413_s2 }
   0x2   :  { %28437 = sst [smem:[#allocation26_spill]] %s28414_s0 }
   0x3   :  { %s28438_s26 = sld [smem:[#allocation25_spill]] }
   0x4   :  { %s28439_s19 = sld [smem:[#allocation26_spill]] }
   0x9   :  { %v11850_v0 = vld [vmem:[%s28438_s26 + $0xe0] sm:$0xf]  ;;  %v17124_v1 = vld [vmem:[%s28438_s26 + $0xec] sm:$0xf0] }
   0xa   :  { %v11978_v2 = vld [vmem:[%s28438_s26 + $0x1e0] sm:$0xf]  ;;  %v11851_v3 = vor.u32 %v17124_v1, %v11850_v0  ;;  %v17156_v4 = vld [vmem:[%s28438_s26 + $0x1ec] sm:$0xf0] }
   0xb   :  { %v12106_v5 = vld [vmem:[%s28438_s26 + $0x2e0] sm:$0xf]  ;;  %v17188_v6 = vld [vmem:[%s28438_s26 + $0x2ec] sm:$0xf0]  ;;  %v11979_v7 = vor.u32 %v17156_v4, %v11978_v2 }
   0xc   :  { %v12107_v8 = vor.u32 %v17188_v6, %v12106_v5  ;;  %v12234_v9 = vld [vmem:[%s28438_s26 + $0x3e0] sm:$0xf]  ;;  %v17220_v10 = vld [vmem:[%s28438_s26 + $0x3ec] sm:$0xf0]  ;;  %3713 = vmatpush.bf16.msra.mxu0 %v11851_v3 }
   0xd   :  { %v11834_v11 = vld [vmem:[%s28438_s26 + $0xc0] sm:$0xf]  ;;  %v12235_v12 = vor.u32 %v17220_v10, %v12234_v9  ;;  %v17120_v13 = vld [vmem:[%s28438_s26 + $0xcc] sm:$0xf0]  ;;  %3727 = vmatpush.bf16.msra.mxu1 %v11979_v7 }
   0xe   :  { %v11962_v14 = vld [vmem:[%s28438_s26 + $0x1c0] sm:$0xf]  ;;  %v17152_v15 = vld [vmem:[%s28438_s26 + $0x1cc] sm:$0xf0]  ;;  %3741 = vmatpush.bf16.msra.mxu2 %v12107_v8  ;;  %v11835_v16 = vor.u32 %v17120_v13, %v11834_v11 }
   0xf   :  { %v11963_v17 = vor.u32 %v17152_v15, %v11962_v14  ;;  %v12090_v18 = vld [vmem:[%s28438_s26 + $0x2c0] sm:$0xf]  ;;  %v17184_v19 = vld [vmem:[%s28438_s26 + $0x2cc] sm:$0xf0]  ;;  %3755 = vmatpush.bf16.msra.mxu3 %v12235_v12 }
  0x10   :  { %v12218_v20 = vld [vmem:[%s28438_s26 + $0x3c0] sm:$0xf]  ;;  %v12091_v21 = vor.u32 %v17184_v19, %v12090_v18  ;;  %v17216_v22 = vld [vmem:[%s28438_s26 + $0x3cc] sm:$0xf0]  ;;  %3714 = vmatpush.bf16.msra.mxu0 %v11835_v16 }
  0x11   :  { %v11818_v23 = vld [vmem:[%s28438_s26 + $0xa0] sm:$0xf]  ;;  %v17116_v24 = vld [vmem:[%s28438_s26 + $0xac] sm:$0xf0]  ;;  %v12219_v25 = vor.u32 %v17216_v22, %v12218_v20  ;;  %3728 = vmatpush.bf16.msra.mxu1 %v11963_v17 }
  0x12   :  { %v11946_v26 = vld [vmem:[%s28438_s26 + $0x1a0] sm:$0xf]  ;;  %v17148_v27 = vld [vmem:[%s28438_s26 + $0x1ac] sm:$0xf0]  ;;  %v11819_v29 = vor.u32 %v17116_v24, %v11818_v23  ;;  %3742 = vmatpush.bf16.msra.mxu2 %v12091_v21 }
  0x13   :  { %v12074_v28 = vld [vmem:[%s28438_s26 + $0x2a0] sm:$0xf]  ;;  %v17180_v30 = vld [vmem:[%s28438_s26 + $0x2ac] sm:$0xf0]  ;;  %v11947_v33 = vor.u32 %v17148_v27, %v11946_v26  ;;  %3756 = vmatpush.bf16.msra.mxu3 %v12219_v25 }
  0x14   :  { %v12202_v31 = vld [vmem:[%s28438_s26 + $0x3a0] sm:$0xf]  ;;  %v17212_v32 = vld [vmem:[%s28438_s26 + $0x3ac] sm:$0xf0]  ;;  %v12075_v34 = vor.u32 %v17180_v30, %v12074_v28  ;;  %3715 = vmatpush.bf16.msra.mxu0 %v11819_v29 }
  0x15   :  { %v11802_v35 = vld [vmem:[%s28438_s26 + $0x80] sm:$0xf]  ;;  %v17112_v36 = vld [vmem:[%s28438_s26 + $0x8c] sm:$0xf0]  ;;  %v12203_v38 = vor.u32 %v17212_v32, %v12202_v31  ;;  %3729 = vmatpush.bf16.msra.mxu1 %v11947_v33 }
  0x16   :  { %v11930_v37 = vld [vmem:[%s28438_s26 + $0x180] sm:$0xf]  ;;  %v17144_v39 = vld [vmem:[%s28438_s26 + $0x18c] sm:$0xf0]  ;;  %v11803_v44 = vor.u32 %v17112_v36, %v11802_v35  ;;  %3743 = vmatpush.bf16.msra.mxu2 %v12075_v34 }
  0x17   :  { %v12058_v40 = vld [vmem:[%s28438_s26 + $0x280] sm:$0xf]  ;;  %v17176_v41 = vld [vmem:[%s28438_s26 + $0x28c] sm:$0xf0]  ;;  %v11931_v45 = vor.u32 %v17144_v39, %v11930_v37  ;;  %3757 = vmatpush.bf16.msra.mxu3 %v12203_v38 }
  0x18   :  { %v12186_v42 = vld [vmem:[%s28438_s26 + $0x380] sm:$0xf]  ;;  %v17208_v43 = vld [vmem:[%s28438_s26 + $0x38c] sm:$0xf0]  ;;  %v12059_v46 = vor.u32 %v17176_v41, %v12058_v40  ;;  %3716 = vmatpush.bf16.msra.mxu0 %v11803_v44 }
  0x19   :  { %v11786_v47 = vld [vmem:[%s28438_s26 + $0x60] sm:$0xf]  ;;  %v17108_v48 = vld [vmem:[%s28438_s26 + $0x6c] sm:$0xf0]  ;;  %v12187_v50 = vor.u32 %v17208_v43, %v12186_v42  ;;  %3730 = vmatpush.bf16.msra.mxu1 %v11931_v45 }
  0x1a   :  { %v11914_v49 = vld [vmem:[%s28438_s26 + $0x160] sm:$0xf]  ;;  %v17140_v51 = vld [vmem:[%s28438_s26 + $0x16c] sm:$0xf0]  ;;  %v11787_v56 = vor.u32 %v17108_v48, %v11786_v47  ;;  %3744 = vmatpush.bf16.msra.mxu2 %v12059_v46 }
  0x1b   :  { %v12042_v52 = vld [vmem:[%s28438_s26 + $0x260] sm:$0xf]  ;;  %v17172_v53 = vld [vmem:[%s28438_s26 + $0x26c] sm:$0xf0]  ;;  %v11915_v57 = vor.u32 %v17140_v51, %v11914_v49  ;;  %3758 = vmatpush.bf16.msra.mxu3 %v12187_v50 }
  0x1c   :  { %v12170_v54 = vld [vmem:[%s28438_s26 + $0x360] sm:$0xf]  ;;  %v17204_v55 = vld [vmem:[%s28438_s26 + $0x36c] sm:$0xf0]  ;;  %v12043_v58 = vor.u32 %v17172_v53, %v12042_v52  ;;  %3717 = vmatpush.bf16.msra.mxu0 %v11787_v56  ;;  %v17084_v53 = vld [vmem:[%s28439_s19 + $0x48] sm:$0xf0] }
  0x1d   :  { %v11770_v59 = vld [vmem:[%s28438_s26 + $0x40] sm:$0xf]  ;;  %v17104_v60 = vld [vmem:[%s28438_s26 + $0x4c] sm:$0xf0]  ;;  %v12171_v62 = vor.u32 %v17204_v55, %v12170_v54  ;;  %3731 = vmatpush.bf16.msra.mxu1 %v11915_v57  ;;  %v11670_v54 = vld [vmem:[%s28439_s19 + $0x8] sm:$0xf] }
  0x1e   :  { %v11898_v61 = vld [vmem:[%s28438_s26 + $0x140] sm:$0xf]  ;;  %v17136_v63 = vld [vmem:[%s28438_s26 + $0x14c] sm:$0xf0]  ;;  %v11771_v4 = vor.u32 %v17104_v60, %v11770_v59  ;;  %3745 = vmatpush.bf16.msra.mxu2 %v12043_v58  ;;  %v17085_v59 = vld [vmem:[%s28439_s19 + $0x50] sm:$0xf0] }
  0x1f   :  { %v12026_v0 = vld [vmem:[%s28438_s26 + $0x240] sm:$0xf]  ;;  %v17168_v1 = vld [vmem:[%s28438_s26 + $0x24c] sm:$0xf0]  ;;  %v11899_v5 = vor.u32 %v17136_v63, %v11898_v61  ;;  %3759 = vmatpush.bf16.msra.mxu3 %v12171_v62 }
  0x20   :  { %v12154_v2 = vld [vmem:[%s28438_s26 + $0x340] sm:$0xf]  ;;  %v17200_v3 = vld [vmem:[%s28438_s26 + $0x34c] sm:$0xf0]  ;;  %v12027_v6 = vor.u32 %v17168_v1, %v12026_v0  ;;  %3718 = vmatpush.bf16.msra.mxu0 %v11771_v4  ;;  %v18952_v1 = vor.u32 %v17085_v59, %v11670_v54 }
  0x21   :  { %v11754_v7 = vld [vmem:[%s28438_s26 + $0x20] sm:$0xf]  ;;  %v17100_v8 = vld [vmem:[%s28438_s26 + $0x2c] sm:$0xf0]  ;;  %v12155_v10 = vor.u32 %v17200_v3, %v12154_v2  ;;  %3732 = vmatpush.bf16.msra.mxu1 %v11899_v5 }
  0x22   :  { %v11882_v9 = vld [vmem:[%s28438_s26 + $0x120] sm:$0xf]  ;;  %v17132_v11 = vld [vmem:[%s28438_s26 + $0x12c] sm:$0xf0]  ;;  %v11755_v16 = vor.u32 %v17100_v8, %v11754_v7  ;;  %3746 = vmatpush.bf16.msra.mxu2 %v12027_v6  ;;  %v17075_v6 = vld [vmem:[%s28439_s19 + $0x4] sm:$0xf] }
  0x23   :  { %v12010_v12 = vld [vmem:[%s28438_s26 + $0x220] sm:$0xf]  ;;  %v17164_v13 = vld [vmem:[%s28438_s26 + $0x22c] sm:$0xf0]  ;;  %v11883_v19 = vor.u32 %v17132_v11, %v11882_v9  ;;  %3760 = vmatpush.bf16.msra.mxu3 %v12155_v10  ;;  %v17076_v8 = vld [vmem:[%s28439_s19 + $0xc] sm:$0xf] }
  0x24   :  { %v12138_v14 = vld [vmem:[%s28438_s26 + $0x320] sm:$0xf]  ;;  %v17196_v15 = vld [vmem:[%s28438_s26 + $0x32c] sm:$0xf0]  ;;  %v12011_v20 = vor.u32 %v17164_v13, %v12010_v12  ;;  %3719 = vmatpush.bf16.msra.mxu0 %v11755_v16  ;;  %v11672_v11 = vld [vmem:[%s28439_s19 + $0x54] sm:$0xf0] }
  0x25   :  { %v11738_v17 = vld [vmem:[%s28438_s26] sm:$0xf]  ;;  %v17096_v18 = vld [vmem:[%s28438_s26 + $0xc] sm:$0xf0]  ;;  %v12139_v24 = vor.u32 %v17196_v15, %v12138_v14  ;;  %3733 = vmatpush.bf16.msra.mxu1 %v11883_v19 }
  0x26   :  { %v11866_v21 = vld [vmem:[%s28438_s26 + $0x100] sm:$0xf]  ;;  %v17128_v22 = vld [vmem:[%s28438_s26 + $0x10c] sm:$0xf0]  ;;  %v11739_v31 = vor.u32 %v17096_v18, %v11738_v17  ;;  %3747 = vmatpush.bf16.msra.mxu2 %v12011_v20  ;;  %v18988_v17 = vor.u32 %v17076_v8, %v11672_v11 }
  0x27   :  { %v11994_v23 = vld [vmem:[%s28438_s26 + $0x200] sm:$0xf]  ;;  %v17160_v25 = vld [vmem:[%s28438_s26 + $0x20c] sm:$0xf0]  ;;  %v11867_v35 = vor.u32 %v17128_v22, %v11866_v21  ;;  %3761 = vmatpush.bf16.msra.mxu3 %v12139_v24 }
  0x28   :  { %v12122_v26 = vld [vmem:[%s28438_s26 + $0x300] sm:$0xf]  ;;  %v17192_v27 = vld [vmem:[%s28438_s26 + $0x30c] sm:$0xf0]  ;;  %v11995_v36 = vor.u32 %v17160_v25, %v11994_v23  ;;  %3720 = vmatpush.bf16.msra.mxu0 %v11739_v31 }
  0x29   :  { %v12362_v28 = vld [vmem:[%s28438_s26 + $0x4e0] sm:$0xf]  ;;  %v17252_v29 = vld [vmem:[%s28438_s26 + $0x4ec] sm:$0xf0]  ;;  %v12123_v39 = vor.u32 %v17192_v27, %v12122_v26  ;;  %3734 = vmatpush.bf16.msra.mxu1 %v11867_v35 }
  0x2a   :  { %v12490_v30 = vld [vmem:[%s28438_s26 + $0x5e0] sm:$0xf]  ;;  %v17284_v32 = vld [vmem:[%s28438_s26 + $0x5ec] sm:$0xf0]  ;;  %v12363_v40 = vor.u32 %v17252_v29, %v12362_v28  ;;  %3748 = vmatpush.bf16.msra.mxu2 %v11995_v36 }
  0x2b   :  { %v12618_v33 = vld [vmem:[%s28438_s26 + $0x6e0] sm:$0xf]  ;;  %v17316_v34 = vld [vmem:[%s28438_s26 + $0x6ec] sm:$0xf0]  ;;  %v12491_v43 = vor.u32 %v17284_v32, %v12490_v30  ;;  %3762 = vmatpush.bf16.msra.mxu3 %v12123_v39 }
  0x2c   :  { %v12746_v37 = vld [vmem:[%s28438_s26 + $0x7e0] sm:$0xf]  ;;  %v17348_v38 = vld [vmem:[%s28438_s26 + $0x7ec] sm:$0xf0]  ;;  %v12619_v44 = vor.u32 %v17316_v34, %v12618_v33  ;;  %3769 = vmatpush.bf16.msrb.mxu0 %v12363_v40 }
  0x2d   :  { %v12346_v41 = vld [vmem:[%s28438_s26 + $0x4c0] sm:$0xf]  ;;  %v17248_v42 = vld [vmem:[%s28438_s26 + $0x4cc] sm:$0xf0]  ;;  %v12747_v48 = vor.u32 %v17348_v38, %v12746_v37  ;;  %3783 = vmatpush.bf16.msrb.mxu1 %v12491_v43  ;;  %3749 = vmatmul.bf16.vlgmr.msra.gmra.mxu2 %v18952_v1 }
  0x2e   :  { %v12474_v45 = vld [vmem:[%s28438_s26 + $0x5c0] sm:$0xf]  ;;  %v17280_v46 = vld [vmem:[%s28438_s26 + $0x5cc] sm:$0xf0]  ;;  %v12347_v55 = vor.u32 %v17248_v42, %v12346_v41  ;;  %3797 = vmatpush.bf16.msrb.mxu2 %v12619_v44  ;;  %3763 = vmatmul.bf16.vlgmr.msra.gmra.mxu3 %v18988_v17 }
  0x2f   :  { %v12602_v47 = vld [vmem:[%s28438_s26 + $0x6c0] sm:$0xf]  ;;  %v17312_v49 = vld [vmem:[%s28438_s26 + $0x6cc] sm:$0xf0]  ;;  %v12475_v60 = vor.u32 %v17280_v46, %v12474_v45  ;;  %3811 = vmatpush.bf16.msrb.mxu3 %v12747_v48 }
  0x30   :  { %v12730_v50 = vld [vmem:[%s28438_s26 + $0x7c0] sm:$0xf]  ;;  %v17344_v51 = vld [vmem:[%s28438_s26 + $0x7cc] sm:$0xf0]  ;;  %v12603_v61 = vor.u32 %v17312_v49, %v12602_v47  ;;  %3770 = vmatpush.bf16.msrb.mxu0 %v12347_v55 }
  0x31   :  { %v11662_v52 = vld [vmem:[%s28439_s19] sm:$0xf]  ;;  %v17244_v57 = vld [vmem:[%s28438_s26 + $0x4ac] sm:$0xf0]  ;;  %v12731_v2 = vor.u32 %v17344_v51, %v12730_v50  ;;  %3784 = vmatpush.bf16.msrb.mxu1 %v12475_v60 }
  0x32   :  { %v12330_v56 = vld [vmem:[%s28438_s26 + $0x4a0] sm:$0xf]  ;;  %v18938_v58 = vor.u32 %v17084_v53, %v11662_v52  ;;  %v17276_v63 = vld [vmem:[%s28438_s26 + $0x5ac] sm:$0xf0]  ;;  %3798 = vmatpush.bf16.msrb.mxu2 %v12603_v61 }
  0x33   :  { %v12458_v62 = vld [vmem:[%s28438_s26 + $0x5a0] sm:$0xf]  ;;  %v17308_v3 = vld [vmem:[%s28438_s26 + $0x6ac] sm:$0xf0]  ;;  %v12331_v9 = vor.u32 %v17244_v57, %v12330_v56  ;;  %3812 = vmatpush.bf16.msrb.mxu3 %v12731_v2 }
  0x34   :  { %v12586_v0 = vld [vmem:[%s28438_s26 + $0x6a0] sm:$0xf]  ;;  %v17340_v5 = vld [vmem:[%s28438_s26 + $0x7ac] sm:$0xf0]  ;;  %3721 = vmatmul.bf16.vlgmr.msra.gmra.mxu0 %v18938_v58  ;;  %v12459_v12 = vor.u32 %v17276_v63, %v12458_v62 }
  0x35   :  { %v12714_v4 = vld [vmem:[%s28438_s26 + $0x7a0] sm:$0xf]  ;;  %v11664_v7 = vld [vmem:[%s28439_s19 + $0x4c] sm:$0xf0]  ;;  %v12587_v13 = vor.u32 %v17308_v3, %v12586_v0  ;;  %3771 = vmatpush.bf16.msrb.mxu0 %v12331_v9 }
  0x36   :  { %v18974_v10 = vor.u32 %v17075_v6, %v11664_v7  ;;  %v12314_v14 = vld [vmem:[%s28438_s26 + $0x480] sm:$0xf]  ;;  %v17240_v15 = vld [vmem:[%s28438_s26 + $0x48c] sm:$0xf0]  ;;  %v12715_v18 = vor.u32 %v17340_v5, %v12714_v4  ;;  %3785 = vmatpush.bf16.msrb.mxu1 %v12459_v12 }
  0x37   :  { %v12442_v16 = vld [vmem:[%s28438_s26 + $0x580] sm:$0xf]  ;;  %v17272_v19 = vld [vmem:[%s28438_s26 + $0x58c] sm:$0xf0]  ;;  %v12315_v24 = vor.u32 %v17240_v15, %v12314_v14  ;;  %3799 = vmatpush.bf16.msrb.mxu2 %v12587_v13 }
  0x38   :  { %v12570_v20 = vld [vmem:[%s28438_s26 + $0x680] sm:$0xf]  ;;  %v17304_v21 = vld [vmem:[%s28438_s26 + $0x68c] sm:$0xf0]  ;;  %3735 = vmatmul.bf16.vlgmr.msra.gmra.mxu1 %v18974_v10  ;;  %v12443_v25 = vor.u32 %v17272_v19, %v12442_v16  ;;  %3813 = vmatpush.bf16.msrb.mxu3 %v12715_v18 }
  0x39   :  { %v12698_v22 = vld [vmem:[%s28438_s26 + $0x780] sm:$0xf]  ;;  %v17336_v23 = vld [vmem:[%s28438_s26 + $0x78c] sm:$0xf0]  ;;  %v12571_v26 = vor.u32 %v17304_v21, %v12570_v20  ;;  %3772 = vmatpush.bf16.msrb.mxu0 %v12315_v24 }
  0x3a   :  { %v12298_v27 = vld [vmem:[%s28438_s26 + $0x460] sm:$0xf]  ;;  %v17236_v28 = vld [vmem:[%s28438_s26 + $0x46c] sm:$0xf0]  ;;  %v12699_v30 = vor.u32 %v17336_v23, %v12698_v22  ;;  %3786 = vmatpush.bf16.msrb.mxu1 %v12443_v25  ;;  %v17086_v22 = vld [vmem:[%s28439_s19 + $0x58] sm:$0xf0] }
  0x3b   :  { %v12426_v29 = vld [vmem:[%s28438_s26 + $0x560] sm:$0xf]  ;;  %v17268_v31 = vld [vmem:[%s28438_s26 + $0x56c] sm:$0xf0]  ;;  %v12299_v36 = vor.u32 %v17236_v28, %v12298_v27  ;;  %3800 = vmatpush.bf16.msrb.mxu2 %v12571_v26  ;;  %v11686_v25 = vld [vmem:[%s28439_s19 + $0x18] sm:$0xf] }
  0x3c   :  { %v12554_v32 = vld [vmem:[%s28438_s26 + $0x660] sm:$0xf]  ;;  %v17300_v33 = vld [vmem:[%s28438_s26 + $0x66c] sm:$0xf0]  ;;  %v12427_v37 = vor.u32 %v17268_v31, %v12426_v29  ;;  %3814 = vmatpush.bf16.msrb.mxu3 %v12699_v30  ;;  %v17087_v26 = vld [vmem:[%s28439_s19 + $0x60] sm:$0xf0] }
  0x3d   :  { %v12682_v34 = vld [vmem:[%s28438_s26 + $0x760] sm:$0xf]  ;;  %v17332_v35 = vld [vmem:[%s28438_s26 + $0x76c] sm:$0xf0]  ;;  %v12555_v38 = vor.u32 %v17300_v33, %v12554_v32  ;;  %3773 = vmatpush.bf16.msrb.mxu0 %v12299_v36  ;;  %v17077_v27 = vld [vmem:[%s28439_s19 + $0x14] sm:$0xf] }
  0x3e   :  { %v12282_v39 = vld [vmem:[%s28438_s26 + $0x440] sm:$0xf]  ;;  %v17232_v40 = vld [vmem:[%s28438_s26 + $0x44c] sm:$0xf0]  ;;  %v12683_v42 = vor.u32 %v17332_v35, %v12682_v34  ;;  %3787 = vmatpush.bf16.msrb.mxu1 %v12427_v37  ;;  %v17078_v31 = vld [vmem:[%s28439_s19 + $0x1c] sm:$0xf] }
  0x3f   :  { %v12410_v41 = vld [vmem:[%s28438_s26 + $0x540] sm:$0xf]  ;;  %v17264_v43 = vld [vmem:[%s28438_s26 + $0x54c] sm:$0xf0]  ;;  %v12283_v48 = vor.u32 %v17232_v40, %v12282_v39  ;;  %3801 = vmatpush.bf16.msrb.mxu2 %v12555_v38  ;;  %v11688_v32 = vld [vmem:[%s28439_s19 + $0x64] sm:$0xf0] }
  0x40   :  { %v12538_v44 = vld [vmem:[%s28438_s26 + $0x640] sm:$0xf]  ;;  %v17296_v45 = vld [vmem:[%s28438_s26 + $0x64c] sm:$0xf0]  ;;  %v12411_v50 = vor.u32 %v17264_v43, %v12410_v41  ;;  %3815 = vmatpush.bf16.msrb.mxu3 %v12683_v42  ;;  %v19171_v43 = vor.u32 %v17087_v26, %v11686_v25 }
  0x41   :  { %v12666_v46 = vld [vmem:[%s28438_s26 + $0x740] sm:$0xf]  ;;  %v17328_v47 = vld [vmem:[%s28438_s26 + $0x74c] sm:$0xf0]  ;;  %v12539_v51 = vor.u32 %v17296_v45, %v12538_v44  ;;  %3774 = vmatpush.bf16.msrb.mxu0 %v12283_v48 }
  0x42   :  { %v12266_v49 = vld [vmem:[%s28438_s26 + $0x420] sm:$0xf]  ;;  %v17228_v52 = vld [vmem:[%s28438_s26 + $0x42c] sm:$0xf0]  ;;  %v12667_v55 = vor.u32 %v17328_v47, %v12666_v46  ;;  %3788 = vmatpush.bf16.msrb.mxu1 %v12411_v50  ;;  %v19181_v47 = vor.u32 %v17078_v31, %v11688_v32 }
  0x43   :  { %v12394_v53 = vld [vmem:[%s28438_s26 + $0x520] sm:$0xf]  ;;  %v17260_v54 = vld [vmem:[%s28438_s26 + $0x52c] sm:$0xf0]  ;;  %v12267_v63 = vor.u32 %v17228_v52, %v12266_v49  ;;  %3802 = vmatpush.bf16.msrb.mxu2 %v12539_v51 }
  0x44   :  { %v12522_v56 = vld [vmem:[%s28438_s26 + $0x620] sm:$0xf]  ;;  %v17292_v57 = vld [vmem:[%s28438_s26 + $0x62c] sm:$0xf0]  ;;  %v12395_v5 = vor.u32 %v17260_v54, %v12394_v53  ;;  %3816 = vmatpush.bf16.msrb.mxu3 %v12667_v55 }
  0x45   :  { %v12650_v59 = vld [vmem:[%s28438_s26 + $0x720] sm:$0xf]  ;;  %v17324_v60 = vld [vmem:[%s28438_s26 + $0x72c] sm:$0xf0]  ;;  %v12523_v6 = vor.u32 %v17292_v57, %v12522_v56  ;;  %3775 = vmatpush.bf16.msrb.mxu0 %v12267_v63 }
  0x46   :  { %v12250_v61 = vld [vmem:[%s28438_s26 + $0x400] sm:$0xf]  ;;  %v17224_v62 = vld [vmem:[%s28438_s26 + $0x40c] sm:$0xf0]  ;;  %v12651_v11 = vor.u32 %v17324_v60, %v12650_v59  ;;  %3789 = vmatpush.bf16.msrb.mxu1 %v12395_v5 }
  0x47   :  { %v12378_v0 = vld [vmem:[%s28438_s26 + $0x500] sm:$0xf]  ;;  %v17256_v2 = vld [vmem:[%s28438_s26 + $0x50c] sm:$0xf0]  ;;  %v12251_v19 = vor.u32 %v17224_v62, %v12250_v61  ;;  %3803 = vmatpush.bf16.msrb.mxu2 %v12523_v6 }
  0x48   :  { %v12506_v3 = vld [vmem:[%s28438_s26 + $0x600] sm:$0xf]  ;;  %v17288_v4 = vld [vmem:[%s28438_s26 + $0x60c] sm:$0xf0]  ;;  %v12379_v23 = vor.u32 %v17256_v2, %v12378_v0  ;;  %3817 = vmatpush.bf16.msrb.mxu3 %v12651_v11 }
  0x49   :  { %v12634_v7 = vld [vmem:[%s28438_s26 + $0x700] sm:$0xf]  ;;  %v17320_v8 = vld [vmem:[%s28438_s26 + $0x70c] sm:$0xf0]  ;;  %v12507_v24 = vor.u32 %v17288_v4, %v12506_v3  ;;  %3776 = vmatpush.bf16.msrb.mxu0 %v12251_v19 }
  0x4a   :  { %v12874_v9 = vld [vmem:[%s28438_s26 + $0x8e0] sm:$0xf]  ;;  %v17380_v12 = vld [vmem:[%s28438_s26 + $0x8ec] sm:$0xf0]  ;;  %v12635_v28 = vor.u32 %v17320_v8, %v12634_v7  ;;  %3790 = vmatpush.bf16.msrb.mxu1 %v12379_v23 }
  0x4b   :  { %v13002_v13 = vld [vmem:[%s28438_s26 + $0x9e0] sm:$0xf]  ;;  %v17412_v14 = vld [vmem:[%s28438_s26 + $0x9ec] sm:$0xf0]  ;;  %v12875_v29 = vor.u32 %v17380_v12, %v12874_v9  ;;  %3804 = vmatpush.bf16.msrb.mxu2 %v12507_v24 }
  0x4c   :  { %v13130_v15 = vld [vmem:[%s28438_s26 + $0xae0] sm:$0xf]  ;;  %v17444_v16 = vld [vmem:[%s28438_s26 + $0xaec] sm:$0xf0]  ;;  %v13003_v33 = vor.u32 %v17412_v14, %v13002_v13  ;;  %3818 = vmatpush.bf16.msrb.mxu3 %v12635_v28 }
  0x4d   :  { %v13258_v18 = vld [vmem:[%s28438_s26 + $0xbe0] sm:$0xf]  ;;  %v17476_v20 = vld [vmem:[%s28438_s26 + $0xbec] sm:$0xf0]  ;;  %v13131_v34 = vor.u32 %v17444_v16, %v13130_v15  ;;  %3825 = vmatpush.bf16.msra.mxu0 %v12875_v29 }
  0x4e   :  { %v11678_v21 = vld [vmem:[%s28439_s19 + $0x10] sm:$0xf]  ;;  %v11680_v30 = vld [vmem:[%s28439_s19 + $0x5c] sm:$0xf0]  ;;  %v13259_v38 = vor.u32 %v17476_v20, %v13258_v18  ;;  %3839 = vmatpush.bf16.msra.mxu1 %v13003_v33  ;;  %3805 = vmatmul.bf16.vlgmr.msrb.gmra.mxu2 %v19171_v43 }
  0x4f   :  { %v12858_v35 = vld [vmem:[%s28438_s26 + $0x8c0] sm:$0xf]  ;;  %v17376_v36 = vld [vmem:[%s28438_s26 + $0x8cc] sm:$0xf0]  ;;  %v19160_v39 = vor.u32 %v17086_v22, %v11678_v21  ;;  %v19173_v44 = vor.u32 %v17077_v27, %v11680_v30  ;;  %3853 = vmatpush.bf16.msra.mxu2 %v13131_v34  ;;  %3819 = vmatmul.bf16.vlgmr.msrb.gmra.mxu3 %v19181_v47 }
  0x50   :  { %v12986_v37 = vld [vmem:[%s28438_s26 + $0x9c0] sm:$0xf]  ;;  %v17408_v40 = vld [vmem:[%s28438_s26 + $0x9cc] sm:$0xf0]  ;;  %v12859_v48 = vor.u32 %v17376_v36, %v12858_v35  ;;  %3867 = vmatpush.bf16.msra.mxu3 %v13259_v38 }
  0x51   :  { %v13114_v41 = vld [vmem:[%s28438_s26 + $0xac0] sm:$0xf]  ;;  %v17440_v42 = vld [vmem:[%s28438_s26 + $0xacc] sm:$0xf0]  ;;  %v12987_v49 = vor.u32 %v17408_v40, %v12986_v37  ;;  %3777 = vmatmul.bf16.vlgmr.msrb.gmra.mxu0 %v19160_v39  ;;  %3791 = vmatmul.bf16.vlgmr.msrb.gmra.mxu1 %v19173_v44 }
  0x52   :  { %v13242_v45 = vld [vmem:[%s28438_s26 + $0xbc0] sm:$0xf]  ;;  %v17472_v46 = vld [vmem:[%s28438_s26 + $0xbcc] sm:$0xf0]  ;;  %v13115_v50 = vor.u32 %v17440_v42, %v13114_v41  ;;  %3826 = vmatpush.bf16.msra.mxu0 %v12859_v48 }
  0x53   :  { %v12842_v51 = vld [vmem:[%s28438_s26 + $0x8a0] sm:$0xf]  ;;  %v17372_v52 = vld [vmem:[%s28438_s26 + $0x8ac] sm:$0xf0]  ;;  %v13243_v54 = vor.u32 %v17472_v46, %v13242_v45  ;;  %3840 = vmatpush.bf16.msra.mxu1 %v12987_v49 }
  0x54   :  { %v12970_v53 = vld [vmem:[%s28438_s26 + $0x9a0] sm:$0xf]  ;;  %v17404_v55 = vld [vmem:[%s28438_s26 + $0x9ac] sm:$0xf0]  ;;  %v12843_v61 = vor.u32 %v17372_v52, %v12842_v51  ;;  %3854 = vmatpush.bf16.msra.mxu2 %v13115_v50 }
  0x55   :  { %v13098_v56 = vld [vmem:[%s28438_s26 + $0xaa0] sm:$0xf]  ;;  %v17436_v57 = vld [vmem:[%s28438_s26 + $0xaac] sm:$0xf0]  ;;  %v12971_v62 = vor.u32 %v17404_v55, %v12970_v53  ;;  %3868 = vmatpush.bf16.msra.mxu3 %v13243_v54 }
  0x56   :  { %v13226_v59 = vld [vmem:[%s28438_s26 + $0xba0] sm:$0xf]  ;;  %v17468_v60 = vld [vmem:[%s28438_s26 + $0xbac] sm:$0xf0]  ;;  %v13099_v63 = vor.u32 %v17436_v57, %v13098_v56  ;;  %3827 = vmatpush.bf16.msra.mxu0 %v12843_v61 }
  0x57   :  { %v12826_v0 = vld [vmem:[%s28438_s26 + $0x880] sm:$0xf]  ;;  %v17368_v2 = vld [vmem:[%s28438_s26 + $0x88c] sm:$0xf0]  ;;  %v13227_v4 = vor.u32 %v17468_v60, %v13226_v59  ;;  %3841 = vmatpush.bf16.msra.mxu1 %v12971_v62 }
  0x58   :  { %v12954_v3 = vld [vmem:[%s28438_s26 + $0x980] sm:$0xf]  ;;  %v17400_v5 = vld [vmem:[%s28438_s26 + $0x98c] sm:$0xf0]  ;;  %v12827_v11 = vor.u32 %v17368_v2, %v12826_v0  ;;  %3855 = vmatpush.bf16.msra.mxu2 %v13099_v63 }
  0x59   :  { %v13082_v6 = vld [vmem:[%s28438_s26 + $0xa80] sm:$0xf]  ;;  %v17432_v7 = vld [vmem:[%s28438_s26 + $0xa8c] sm:$0xf0]  ;;  %v12955_v12 = vor.u32 %v17400_v5, %v12954_v3  ;;  %3869 = vmatpush.bf16.msra.mxu3 %v13227_v4 }
  0x5a   :  { %v13210_v8 = vld [vmem:[%s28438_s26 + $0xb80] sm:$0xf]  ;;  %v17464_v9 = vld [vmem:[%s28438_s26 + $0xb8c] sm:$0xf0]  ;;  %v13083_v13 = vor.u32 %v17432_v7, %v13082_v6  ;;  %3828 = vmatpush.bf16.msra.mxu0 %v12827_v11 }
  0x5b   :  { %v12810_v14 = vld [vmem:[%s28438_s26 + $0x860] sm:$0xf]  ;;  %v17364_v15 = vld [vmem:[%s28438_s26 + $0x86c] sm:$0xf0]  ;;  %v13211_v18 = vor.u32 %v17464_v9, %v13210_v8  ;;  %3842 = vmatpush.bf16.msra.mxu1 %v12955_v12 }
  0x5c   :  { %v12938_v16 = vld [vmem:[%s28438_s26 + $0x960] sm:$0xf]  ;;  %v17396_v19 = vld [vmem:[%s28438_s26 + $0x96c] sm:$0xf0]  ;;  %v12811_v24 = vor.u32 %v17364_v15, %v12810_v14  ;;  %3856 = vmatpush.bf16.msra.mxu2 %v13083_v13  ;;  %v17088_v13 = vld [vmem:[%s28439_s19 + $0x68] sm:$0xf0] }
  0x5d   :  { %v13066_v20 = vld [vmem:[%s28438_s26 + $0xa60] sm:$0xf]  ;;  %v17428_v21 = vld [vmem:[%s28438_s26 + $0xa6c] sm:$0xf0]  ;;  %v12939_v25 = vor.u32 %v17396_v19, %v12938_v16  ;;  %3870 = vmatpush.bf16.msra.mxu3 %v13211_v18  ;;  %v11702_v16 = vld [vmem:[%s28439_s19 + $0x28] sm:$0xf] }
  0x5e   :  { %v13194_v22 = vld [vmem:[%s28438_s26 + $0xb60] sm:$0xf]  ;;  %v17460_v23 = vld [vmem:[%s28438_s26 + $0xb6c] sm:$0xf0]  ;;  %v13067_v26 = vor.u32 %v17428_v21, %v13066_v20  ;;  %3829 = vmatpush.bf16.msra.mxu0 %v12811_v24  ;;  %v17089_v18 = vld [vmem:[%s28439_s19 + $0x70] sm:$0xf0] }
  0x5f   :  { %v12794_v27 = vld [vmem:[%s28438_s26 + $0x840] sm:$0xf]  ;;  %v17360_v28 = vld [vmem:[%s28438_s26 + $0x84c] sm:$0xf0]  ;;  %v13195_v30 = vor.u32 %v17460_v23, %v13194_v22  ;;  %3843 = vmatpush.bf16.msra.mxu1 %v12939_v25  ;;  %v17079_v19 = vld [vmem:[%s28439_s19 + $0x24] sm:$0xf] }
  0x60   :  { %v12922_v29 = vld [vmem:[%s28438_s26 + $0x940] sm:$0xf]  ;;  %v17392_v31 = vld [vmem:[%s28438_s26 + $0x94c] sm:$0xf0]  ;;  %v12795_v36 = vor.u32 %v17360_v28, %v12794_v27  ;;  %3857 = vmatpush.bf16.msra.mxu2 %v13067_v26  ;;  %v17080_v23 = vld [vmem:[%s28439_s19 + $0x2c] sm:$0xf] }
  0x61   :  { %v13050_v32 = vld [vmem:[%s28438_s26 + $0xa40] sm:$0xf]  ;;  %v17424_v33 = vld [vmem:[%s28438_s26 + $0xa4c] sm:$0xf0]  ;;  %v12923_v38 = vor.u32 %v17392_v31, %v12922_v29  ;;  %3871 = vmatpush.bf16.msra.mxu3 %v13195_v30  ;;  %v11704_v24 = vld [vmem:[%s28439_s19 + $0x74] sm:$0xf0] }
  0x62   :  { %v13178_v34 = vld [vmem:[%s28438_s26 + $0xb40] sm:$0xf]  ;;  %v17456_v35 = vld [vmem:[%s28438_s26 + $0xb4c] sm:$0xf0]  ;;  %v13051_v40 = vor.u32 %v17424_v33, %v13050_v32  ;;  %3830 = vmatpush.bf16.msra.mxu0 %v12795_v36 }
  0x63   :  { %v12778_v37 = vld [vmem:[%s28438_s26 + $0x820] sm:$0xf]  ;;  %v17356_v41 = vld [vmem:[%s28438_s26 + $0x82c] sm:$0xf0]  ;;  %v13179_v46 = vor.u32 %v17456_v35, %v13178_v34  ;;  %3844 = vmatpush.bf16.msra.mxu1 %v12923_v38  ;;  %v19399_v35 = vor.u32 %v17089_v18, %v11702_v16 }
  0x64   :  { %v12906_v42 = vld [vmem:[%s28438_s26 + $0x920] sm:$0xf]  ;;  %v17388_v45 = vld [vmem:[%s28438_s26 + $0x92c] sm:$0xf0]  ;;  %v12779_v54 = vor.u32 %v17356_v41, %v12778_v37  ;;  %3858 = vmatpush.bf16.msra.mxu2 %v13051_v40  ;;  %v19409_v40 = vor.u32 %v17080_v23, %v11704_v24 }
  0x65   :  { %v13034_v48 = vld [vmem:[%s28438_s26 + $0xa20] sm:$0xf]  ;;  %v17420_v49 = vld [vmem:[%s28438_s26 + $0xa2c] sm:$0xf0]  ;;  %v12907_v60 = vor.u32 %v17388_v45, %v12906_v42  ;;  %3872 = vmatpush.bf16.msra.mxu3 %v13179_v46 }
  0x66   :  { %v13162_v50 = vld [vmem:[%s28438_s26 + $0xb20] sm:$0xf]  ;;  %v17452_v51 = vld [vmem:[%s28438_s26 + $0xb2c] sm:$0xf0]  ;;  %v13035_v61 = vor.u32 %v17420_v49, %v13034_v48  ;;  %3831 = vmatpush.bf16.msra.mxu0 %v12779_v54 }
  0x67   :  { %v12762_v52 = vld [vmem:[%s28438_s26 + $0x800] sm:$0xf]  ;;  %v17352_v53 = vld [vmem:[%s28438_s26 + $0x80c] sm:$0xf0]  ;;  %v13163_v2 = vor.u32 %v17452_v51, %v13162_v50  ;;  %3845 = vmatpush.bf16.msra.mxu1 %v12907_v60 }
  0x68   :  { %v12890_v55 = vld [vmem:[%s28438_s26 + $0x900] sm:$0xf]  ;;  %v17384_v56 = vld [vmem:[%s28438_s26 + $0x90c] sm:$0xf0]  ;;  %v12763_v9 = vor.u32 %v17352_v53, %v12762_v52  ;;  %3859 = vmatpush.bf16.msra.mxu2 %v13035_v61 }
  0x69   :  { %v13018_v57 = vld [vmem:[%s28438_s26 + $0xa00] sm:$0xf]  ;;  %v17416_v59 = vld [vmem:[%s28438_s26 + $0xa0c] sm:$0xf0]  ;;  %v12891_v14 = vor.u32 %v17384_v56, %v12890_v55  ;;  %3873 = vmatpush.bf16.msra.mxu3 %v13163_v2 }
  0x6a   :  { %v13146_v62 = vld [vmem:[%s28438_s26 + $0xb00] sm:$0xf]  ;;  %v17448_v63 = vld [vmem:[%s28438_s26 + $0xb0c] sm:$0xf0]  ;;  %v13019_v15 = vor.u32 %v17416_v59, %v13018_v57  ;;  %3832 = vmatpush.bf16.msra.mxu0 %v12763_v9 }
  0x6b   :  { %v13386_v0 = vld [vmem:[%s28438_s26 + $0xce0] sm:$0xf]  ;;  %v17508_v3 = vld [vmem:[%s28438_s26 + $0xcec] sm:$0xf0]  ;;  %v13147_v20 = vor.u32 %v17448_v63, %v13146_v62  ;;  %3846 = vmatpush.bf16.msra.mxu1 %v12891_v14 }
  0x6c   :  { %v13514_v4 = vld [vmem:[%s28438_s26 + $0xde0] sm:$0xf]  ;;  %v17540_v5 = vld [vmem:[%s28438_s26 + $0xdec] sm:$0xf0]  ;;  %v13387_v21 = vor.u32 %v17508_v3, %v13386_v0  ;;  %3860 = vmatpush.bf16.msra.mxu2 %v13019_v15 }
  0x6d   :  { %v13642_v6 = vld [vmem:[%s28438_s26 + $0xee0] sm:$0xf]  ;;  %v17572_v7 = vld [vmem:[%s28438_s26 + $0xeec] sm:$0xf0]  ;;  %v13515_v25 = vor.u32 %v17540_v5, %v13514_v4  ;;  %3874 = vmatpush.bf16.msra.mxu3 %v13147_v20 }
  0x6e   :  { %v13770_v8 = vld [vmem:[%s28438_s26 + $0xfe0] sm:$0xf]  ;;  %v17604_v11 = vld [vmem:[%s28438_s26 + $0xfec] sm:$0xf0]  ;;  %v13643_v26 = vor.u32 %v17572_v7, %v13642_v6  ;;  %3881 = vmatpush.bf16.msrb.mxu0 %v13387_v21 }
  0x6f   :  { %v11694_v12 = vld [vmem:[%s28439_s19 + $0x20] sm:$0xf]  ;;  %v11696_v22 = vld [vmem:[%s28439_s19 + $0x6c] sm:$0xf0]  ;;  %v13771_v30 = vor.u32 %v17604_v11, %v13770_v8  ;;  %3895 = vmatpush.bf16.msrb.mxu1 %v13515_v25  ;;  %3861 = vmatmul.bf16.vlgmr.msra.gmra.mxu2 %v19399_v35 }
  0x70   :  { %v13370_v27 = vld [vmem:[%s28438_s26 + $0xcc0] sm:$0xf]  ;;  %v17504_v28 = vld [vmem:[%s28438_s26 + $0xccc] sm:$0xf0]  ;;  %v19388_v31 = vor.u32 %v17088_v13, %v11694_v12  ;;  %v19401_v36 = vor.u32 %v17079_v19, %v11696_v22  ;;  %3909 = vmatpush.bf16.msrb.mxu2 %v13643_v26  ;;  %3875 = vmatmul.bf16.vlgmr.msra.gmra.mxu3 %v19409_v40 }
  0x71   :  { %v13498_v29 = vld [vmem:[%s28438_s26 + $0xdc0] sm:$0xf]  ;;  %v17536_v32 = vld [vmem:[%s28438_s26 + $0xdcc] sm:$0xf0]  ;;  %v13371_v41 = vor.u32 %v17504_v28, %v13370_v27  ;;  %3923 = vmatpush.bf16.msrb.mxu3 %v13771_v30 }
  0x72   :  { %v13626_v33 = vld [vmem:[%s28438_s26 + $0xec0] sm:$0xf]  ;;  %v17568_v34 = vld [vmem:[%s28438_s26 + $0xecc] sm:$0xf0]  ;;  %v13499_v42 = vor.u32 %v17536_v32, %v13498_v29  ;;  %3833 = vmatmul.bf16.vlgmr.msra.gmra.mxu0 %v19388_v31  ;;  %3847 = vmatmul.bf16.vlgmr.msra.gmra.mxu1 %v19401_v36 }
  0x73   :  { %v13754_v37 = vld [vmem:[%s28438_s26 + $0xfc0] sm:$0xf]  ;;  %v17600_v38 = vld [vmem:[%s28438_s26 + $0xfcc] sm:$0xf0]  ;;  %v13627_v45 = vor.u32 %v17568_v34, %v13626_v33  ;;  %3882 = vmatpush.bf16.msrb.mxu0 %v13371_v41 }
  0x74   :  { %v13354_v46 = vld [vmem:[%s28438_s26 + $0xca0] sm:$0xf]  ;;  %v17500_v48 = vld [vmem:[%s28438_s26 + $0xcac] sm:$0xf0]  ;;  %v13755_v50 = vor.u32 %v17600_v38, %v13754_v37  ;;  %3896 = vmatpush.bf16.msrb.mxu1 %v13499_v42 }
  0x75   :  { %v13482_v49 = vld [vmem:[%s28438_s26 + $0xda0] sm:$0xf]  ;;  %v17532_v51 = vld [vmem:[%s28438_s26 + $0xdac] sm:$0xf0]  ;;  %v13355_v56 = vor.u32 %v17500_v48, %v13354_v46  ;;  %3910 = vmatpush.bf16.msrb.mxu2 %v13627_v45 }
  0x76   :  { %v13610_v52 = vld [vmem:[%s28438_s26 + $0xea0] sm:$0xf]  ;;  %v17564_v53 = vld [vmem:[%s28438_s26 + $0xeac] sm:$0xf0]  ;;  %v13483_v57 = vor.u32 %v17532_v51, %v13482_v49  ;;  %3924 = vmatpush.bf16.msrb.mxu3 %v13755_v50 }
  0x77   :  { %v13738_v54 = vld [vmem:[%s28438_s26 + $0xfa0] sm:$0xf]  ;;  %v17596_v55 = vld [vmem:[%s28438_s26 + $0xfac] sm:$0xf0]  ;;  %v13611_v59 = vor.u32 %v17564_v53, %v13610_v52  ;;  %3883 = vmatpush.bf16.msrb.mxu0 %v13355_v56 }
  0x78   :  { %v13338_v60 = vld [vmem:[%s28438_s26 + $0xc80] sm:$0xf]  ;;  %v17496_v61 = vld [vmem:[%s28438_s26 + $0xc8c] sm:$0xf0]  ;;  %v13739_v63 = vor.u32 %v17596_v55, %v13738_v54  ;;  %3897 = vmatpush.bf16.msrb.mxu1 %v13483_v57 }
  0x79   :  { %v13466_v62 = vld [vmem:[%s28438_s26 + $0xd80] sm:$0xf]  ;;  %v17528_v0 = vld [vmem:[%s28438_s26 + $0xd8c] sm:$0xf0]  ;;  %v13339_v6 = vor.u32 %v17496_v61, %v13338_v60  ;;  %3911 = vmatpush.bf16.msrb.mxu2 %v13611_v59 }
  0x7a   :  { %v13594_v2 = vld [vmem:[%s28438_s26 + $0xe80] sm:$0xf]  ;;  %v17560_v3 = vld [vmem:[%s28438_s26 + $0xe8c] sm:$0xf0]  ;;  %v13467_v7 = vor.u32 %v17528_v0, %v13466_v62  ;;  %3925 = vmatpush.bf16.msrb.mxu3 %v13739_v63 }
  0x7b   :  { %v13722_v4 = vld [vmem:[%s28438_s26 + $0xf80] sm:$0xf]  ;;  %v17592_v5 = vld [vmem:[%s28438_s26 + $0xf8c] sm:$0xf0]  ;;  %v13595_v8 = vor.u32 %v17560_v3, %v13594_v2  ;;  %3884 = vmatpush.bf16.msrb.mxu0 %v13339_v6 }
  0x7c   :  { %v13322_v9 = vld [vmem:[%s28438_s26 + $0xc60] sm:$0xf]  ;;  %v17492_v11 = vld [vmem:[%s28438_s26 + $0xc6c] sm:$0xf0]  ;;  %v13723_v13 = vor.u32 %v17592_v5, %v13722_v4  ;;  %3898 = vmatpush.bf16.msrb.mxu1 %v13467_v7 }
  0x7d   :  { %v13450_v12 = vld [vmem:[%s28438_s26 + $0xd60] sm:$0xf]  ;;  %v17524_v14 = vld [vmem:[%s28438_s26 + $0xd6c] sm:$0xf0]  ;;  %v13323_v20 = vor.u32 %v17492_v11, %v13322_v9  ;;  %3912 = vmatpush.bf16.msrb.mxu2 %v13595_v8  ;;  %v17122_v8 = vld [vmem:[%s28438_s26 + $0xe4] sm:$0xf] }
  0x7e   :  { %v13578_v15 = vld [vmem:[%s28438_s26 + $0xe60] sm:$0xf]  ;;  %v17556_v16 = vld [vmem:[%s28438_s26 + $0xe6c] sm:$0xf0]  ;;  %v13451_v21 = vor.u32 %v17524_v14, %v13450_v12  ;;  %3926 = vmatpush.bf16.msrb.mxu3 %v13723_v13  ;;  %v11852_v11 = vld [vmem:[%s28438_s26 + $0xf0] sm:$0xf0] }
  0x7f   :  { %v13706_v18 = vld [vmem:[%s28438_s26 + $0xf60] sm:$0xf]  ;;  %v17588_v19 = vld [vmem:[%s28438_s26 + $0xf6c] sm:$0xf0]  ;;  %v13579_v22 = vor.u32 %v17556_v16, %v13578_v15  ;;  %3885 = vmatpush.bf16.msrb.mxu0 %v13323_v20  ;;  %v17090_v13 = vld [vmem:[%s28439_s19 + $0x78] sm:$0xf0] }
  0x80   :  { %v13306_v23 = vld [vmem:[%s28438_s26 + $0xc40] sm:$0xf]  ;;  %v17488_v24 = vld [vmem:[%s28438_s26 + $0xc4c] sm:$0xf0]  ;;  %v13707_v26 = vor.u32 %v17588_v19, %v13706_v18  ;;  %3899 = vmatpush.bf16.msrb.mxu1 %v13451_v21  ;;  %v11718_v16 = vld [vmem:[%s28439_s19 + $0x38] sm:$0xf] }
  0x81   :  { %v13434_v25 = vld [vmem:[%s28438_s26 + $0xd40] sm:$0xf]  ;;  %v17520_v27 = vld [vmem:[%s28438_s26 + $0xd4c] sm:$0xf0]  ;;  %v13307_v33 = vor.u32 %v17488_v24, %v13306_v23  ;;  %3913 = vmatpush.bf16.msrb.mxu2 %v13579_v22  ;;  %v17091_v18 = vld [vmem:[%s28439_s19 + $0x80] sm:$0xf0] }
  0x82   :  { %v13562_v28 = vld [vmem:[%s28438_s26 + $0xe40] sm:$0xf]  ;;  %v17552_v29 = vld [vmem:[%s28438_s26 + $0xe4c] sm:$0xf0]  ;;  %v13435_v37 = vor.u32 %v17520_v27, %v13434_v25  ;;  %3927 = vmatpush.bf16.msrb.mxu3 %v13707_v26  ;;  %v17081_v19 = vld [vmem:[%s28439_s19 + $0x34] sm:$0xf] }
  0x83   :  { %v13690_v30 = vld [vmem:[%s28438_s26 + $0xf40] sm:$0xf]  ;;  %v17584_v32 = vld [vmem:[%s28438_s26 + $0xf4c] sm:$0xf0]  ;;  %v13563_v38 = vor.u32 %v17552_v29, %v13562_v28  ;;  %3886 = vmatpush.bf16.msrb.mxu0 %v13307_v33  ;;  %v17082_v23 = vld [vmem:[%s28439_s19 + $0x3c] sm:$0xf] }
  0x84   :  { %v13290_v34 = vld [vmem:[%s28438_s26 + $0xc20] sm:$0xf]  ;;  %v17484_v41 = vld [vmem:[%s28438_s26 + $0xc2c] sm:$0xf0]  ;;  %v13691_v46 = vor.u32 %v17584_v32, %v13690_v30  ;;  %3900 = vmatpush.bf16.msrb.mxu1 %v13435_v37  ;;  %v11720_v24 = vld [vmem:[%s28439_s19 + $0x84] sm:$0xf0]  ;;  %v11855_v30 = vor.u32 %v17122_v8, %v11852_v11 }
  0x85   :  { %v13418_v42 = vld [vmem:[%s28438_s26 + $0xd20] sm:$0xf]  ;;  %v17516_v45 = vld [vmem:[%s28438_s26 + $0xd2c] sm:$0xf0]  ;;  %v13291_v54 = vor.u32 %v17484_v41, %v13290_v34  ;;  %3914 = vmatpush.bf16.msrb.mxu2 %v13563_v38  ;;  %v19627_v38 = vor.u32 %v17091_v18, %v11718_v16  ;;  %v11804_v11 = vld [vmem:[%s28438_s26 + $0x90] sm:$0xf0] }
  0x86   :  { %v13546_v48 = vld [vmem:[%s28438_s26 + $0xe20] sm:$0xf]  ;;  %v17548_v49 = vld [vmem:[%s28438_s26 + $0xe2c] sm:$0xf0]  ;;  %v13419_v60 = vor.u32 %v17516_v45, %v13418_v42  ;;  %3928 = vmatpush.bf16.msrb.mxu3 %v13691_v46  ;;  %v17118_v42 = vld [vmem:[%s28438_s26 + $0xc4] sm:$0xf]  ;;  %v19637_v46 = vor.u32 %v17082_v23, %v11720_v24 }
  0x87   :  { %v13674_v50 = vld [vmem:[%s28438_s26 + $0xf20] sm:$0xf]  ;;  %v17580_v51 = vld [vmem:[%s28438_s26 + $0xf2c] sm:$0xf0]  ;;  %v13547_v61 = vor.u32 %v17548_v49, %v13546_v48  ;;  %3887 = vmatpush.bf16.msrb.mxu0 %v13291_v54  ;;  %v11836_v45 = vld [vmem:[%s28438_s26 + $0xd0] sm:$0xf0] }
  0x88   :  { %v13274_v52 = vld [vmem:[%s28438_s26 + $0xc00] sm:$0xf]  ;;  %v17480_v53 = vld [vmem:[%s28438_s26 + $0xc0c] sm:$0xf0]  ;;  %v13675_v2 = vor.u32 %v17580_v51, %v13674_v50  ;;  %3901 = vmatpush.bf16.msrb.mxu1 %v13419_v60  ;;  %v11820_v60 = vld [vmem:[%s28438_s26 + $0xb0] sm:$0xf0] }
  0x89   :  { %v13402_v55 = vld [vmem:[%s28438_s26 + $0xd00] sm:$0xf]  ;;  %v17512_v56 = vld [vmem:[%s28438_s26 + $0xd0c] sm:$0xf0]  ;;  %v13275_v9 = vor.u32 %v17480_v53, %v13274_v52  ;;  %3915 = vmatpush.bf16.msrb.mxu2 %v13547_v61  ;;  %v17154_v61 = vld [vmem:[%s28438_s26 + $0x1e4] sm:$0xf] }
  0x8a   :  { %v13530_v57 = vld [vmem:[%s28438_s26 + $0xe00] sm:$0xf]  ;;  %v17544_v59 = vld [vmem:[%s28438_s26 + $0xe0c] sm:$0xf0]  ;;  %v13403_v14 = vor.u32 %v17512_v56, %v13402_v55  ;;  %3929 = vmatpush.bf16.msrb.mxu3 %v13675_v2  ;;  %v11839_v55 = vor.u32 %v17118_v42, %v11836_v45  ;;  %v17106_v23 = vld [vmem:[%s28438_s26 + $0x64] sm:$0xf] }
  0x8b   :  { %v13658_v62 = vld [vmem:[%s28438_s26 + $0xf00] sm:$0xf]  ;;  %v17576_v63 = vld [vmem:[%s28438_s26 + $0xf0c] sm:$0xf0]  ;;  %v13531_v15 = vor.u32 %v17544_v59, %v13530_v57  ;;  %3888 = vmatpush.bf16.msrb.mxu0 %v13275_v9  ;;  %v17114_v59 = vld [vmem:[%s28438_s26 + $0xa4] sm:$0xf] }
  0x8c   :  { %v13898_v0 = vld [vmem:[%s28438_s26 + $0x10e0] sm:$0xf]  ;;  %v17636_v3 = vld [vmem:[%s28438_s26 + $0x10ec] sm:$0xf0]  ;;  %v13659_v20 = vor.u32 %v17576_v63, %v13658_v62  ;;  %3902 = vmatpush.bf16.msrb.mxu1 %v13403_v14  ;;  %v11980_v62 = vld [vmem:[%s28438_s26 + $0x1f0] sm:$0xf0] }
  0x8d   :  { %v14026_v4 = vld [vmem:[%s28438_s26 + $0x11e0] sm:$0xf]  ;;  %v17668_v5 = vld [vmem:[%s28438_s26 + $0x11ec] sm:$0xf0]  ;;  %v13899_v21 = vor.u32 %v17636_v3, %v13898_v0  ;;  %3916 = vmatpush.bf16.msrb.mxu2 %v13531_v15  ;;  %v17110_v9 = vld [vmem:[%s28438_s26 + $0x84] sm:$0xf] }
  0x8e   :  { %v14074_v6 = vld [vmem:[%s28438_s26 + $0x1240] sm:$0xf]  ;;  %v17680_v7 = vld [vmem:[%s28438_s26 + $0x124c] sm:$0xf0]  ;;  %v14027_v25 = vor.u32 %v17668_v5, %v14026_v4  ;;  %3930 = vmatpush.bf16.msrb.mxu3 %v13659_v20  ;;  %v11823_v5 = vor.u32 %v17114_v59, %v11820_v60  ;;  %v11788_v24 = vld [vmem:[%s28438_s26 + $0x70] sm:$0xf0] }
  0x8f   :  { %v11710_v12 = vld [vmem:[%s28439_s19 + $0x30] sm:$0xf]  ;;  %v11712_v22 = vld [vmem:[%s28439_s19 + $0x7c] sm:$0xf0]  ;;  %v14075_v26 = vor.u32 %v17680_v7, %v14074_v6  ;;  %3937 = vmatpush.bf16.msra.mxu0 %v13899_v21  ;;  %v11983_v6 = vor.u32 %v17154_v61, %v11980_v62 }
  0x90   :  { %v13882_v27 = vld [vmem:[%s28438_s26 + $0x10c0] sm:$0xf]  ;;  %v17632_v28 = vld [vmem:[%s28438_s26 + $0x10cc] sm:$0xf0]  ;;  %v19616_v32 = vor.u32 %v17090_v13, %v11710_v12  ;;  %v19629_v41 = vor.u32 %v17081_v19, %v11712_v22  ;;  %3951 = vmatpush.bf16.msra.mxu1 %v14027_v25  ;;  %3917 = vmatmul.bf16.vlgmr.msrb.gmra.mxu2 %v19627_v38  ;;  %v17150_v12 = vld [vmem:[%s28438_s26 + $0x1c4] sm:$0xf]  ;;  %v11807_v19 = vor.u32 %v17110_v9, %v11804_v11 }
  0x91   :  { %v14010_v29 = vld [vmem:[%s28438_s26 + $0x11c0] sm:$0xf]  ;;  %v17664_v33 = vld [vmem:[%s28438_s26 + $0x11cc] sm:$0xf0]  ;;  %v13883_v48 = vor.u32 %v17632_v28, %v13882_v27  ;;  %3970 = vmatpush.bf16.msra.mxu2 %v14075_v26  ;;  %3931 = vmatmul.bf16.vlgmr.msrb.gmra.mxu3 %v19637_v46  ;;  %v11964_v13 = vld [vmem:[%s28438_s26 + $0x1d0] sm:$0xf0] }
  0x92   :  { %v14058_v34 = vld [vmem:[%s28438_s26 + $0x1220] sm:$0xf]  ;;  %v17676_v37 = vld [vmem:[%s28438_s26 + $0x122c] sm:$0xf0]  ;;  %v14011_v50 = vor.u32 %v17664_v33, %v14010_v29  ;;  %3979 = vmatpush.bf16.msra.mxu3 %v11855_v30  ;;  %3889 = vmatmul.bf16.vlgmr.msrb.gmra.mxu0 %v19616_v32  ;;  %v11967_v20 = vor.u32 %v17150_v12, %v11964_v13  ;;  %v17146_v25 = vld [vmem:[%s28438_s26 + $0x1a4] sm:$0xf] }
  0x93   :  { %v13866_v49 = vld [vmem:[%s28438_s26 + $0x10a0] sm:$0xf]  ;;  %v14059_v51 = vor.u32 %v17676_v37, %v14058_v34  ;;  %v17628_v52 = vld [vmem:[%s28438_s26 + $0x10ac] sm:$0xf0]  ;;  %3903 = vmatmul.bf16.vlgmr.msrb.gmra.mxu1 %v19629_v41  ;;  %3938 = vmatpush.bf16.msra.mxu0 %v13883_v48  ;;  %v11948_v26 = vld [vmem:[%s28438_s26 + $0x1b0] sm:$0xf0]  ;;  %v11791_v37 = vor.u32 %v17106_v23, %v11788_v24 }
  0x94   :  { %v13994_v53 = vld [vmem:[%s28438_s26 + $0x11a0] sm:$0xf]  ;;  %v17660_v54 = vld [vmem:[%s28438_s26 + $0x11ac] sm:$0xf0]  ;;  %v13867_v63 = vor.u32 %v17628_v52, %v13866_v49  ;;  %3952 = vmatpush.bf16.msra.mxu1 %v14011_v50  ;;  %v11734_v28 = vld [vmem:[%s28439_s19 + $0x48] sm:$0xf]  ;;  %v11951_v42 = vor.u32 %v17146_v25, %v11948_v26 }
  0x95   :  { %v14042_v56 = vld [vmem:[%s28438_s26 + $0x1200] sm:$0xf]  ;;  %v17672_v57 = vld [vmem:[%s28438_s26 + $0x120c] sm:$0xf0]  ;;  %3971 = vmatpush.bf16.msra.mxu2 %v14059_v51  ;;  %v13995_v0 = vor.u32 %v17660_v54, %v13994_v53  ;;  %v17093_v29 = vld [vmem:[%s28439_s19 + $0x90] sm:$0xf0] }
  0x96   :  { %v14043_v2 = vor.u32 %v17672_v57, %v14042_v56  ;;  %v13850_v3 = vld [vmem:[%s28438_s26 + $0x1080] sm:$0xf]  ;;  %v17624_v4 = vld [vmem:[%s28438_s26 + $0x108c] sm:$0xf0]  ;;  %3980 = vmatpush.bf16.msra.mxu3 %v11839_v55  ;;  %v17102_v49 = vld [vmem:[%s28438_s26 + $0x44] sm:$0xf]  ;;  %v19751_v53 = vor.u32 %v17093_v29, %v11734_v28 }
  0x97   :  { %v13978_v7 = vld [vmem:[%s28438_s26 + $0x1180] sm:$0xf]  ;;  %v17656_v8 = vld [vmem:[%s28438_s26 + $0x118c] sm:$0xf0]  ;;  %3939 = vmatpush.bf16.msra.mxu0 %v13867_v63  ;;  %v13851_v14 = vor.u32 %v17624_v4, %v13850_v3  ;;  %v11772_v50 = vld [vmem:[%s28438_s26 + $0x50] sm:$0xf0] }
  0x98   :  { %3953 = vmatpush.bf16.msra.mxu1 %v13995_v0  ;;  %v13979_v15 = vor.u32 %v17656_v8, %v13978_v7  ;;  %v13834_v16 = vld [vmem:[%s28438_s26 + $0x1060] sm:$0xf]  ;;  %v17620_v18 = vld [vmem:[%s28438_s26 + $0x106c] sm:$0xf0]  ;;  %v17142_v51 = vld [vmem:[%s28438_s26 + $0x184] sm:$0xf]  ;;  %v11775_v59 = vor.u32 %v17102_v49, %v11772_v50 }
  0x99   :  { %3972 = vmatpush.bf16.msra.mxu2 %v14043_v2  ;;  %v13962_v21 = vld [vmem:[%s28438_s26 + $0x1160] sm:$0xf]  ;;  %v17652_v22 = vld [vmem:[%s28438_s26 + $0x116c] sm:$0xf0]  ;;  %v13835_v27 = vor.u32 %v17620_v18, %v13834_v16  ;;  %v11932_v52 = vld [vmem:[%s28438_s26 + $0x190] sm:$0xf0] }
  0x9a   :  { %3981 = vmatpush.bf16.msra.mxu3 %v11823_v5  ;;  %v13963_v30 = vor.u32 %v17652_v22, %v13962_v21  ;;  %v13818_v33 = vld [vmem:[%s28438_s26 + $0x1040] sm:$0xf]  ;;  %v17616_v34 = vld [vmem:[%s28438_s26 + $0x104c] sm:$0xf0]  ;;  %v11935_v60 = vor.u32 %v17142_v51, %v11932_v52  ;;  %v17098_v63 = vld [vmem:[%s28438_s26 + $0x24] sm:$0xf] }
  0x9b   :  { %3940 = vmatpush.bf16.msra.mxu0 %v13851_v14  ;;  %v13946_v45 = vld [vmem:[%s28438_s26 + $0x1140] sm:$0xf]  ;;  %v17648_v48 = vld [vmem:[%s28438_s26 + $0x114c] sm:$0xf0]  ;;  %v13819_v54 = vor.u32 %v17616_v34, %v13818_v33  ;;  %v11756_v0 = vld [vmem:[%s28438_s26 + $0x30] sm:$0xf0] }
  0x9c   :  { %3954 = vmatpush.bf16.msra.mxu1 %v13979_v15  ;;  %v13947_v55 = vor.u32 %v17648_v48, %v13946_v45  ;;  %v13802_v56 = vld [vmem:[%s28438_s26 + $0x1020] sm:$0xf]  ;;  %v17612_v57 = vld [vmem:[%s28438_s26 + $0x102c] sm:$0xf0]  ;;  %v17138_v2 = vld [vmem:[%s28438_s26 + $0x164] sm:$0xf]  ;;  %v11759_v13 = vor.u32 %v17098_v63, %v11756_v0 }
  0x9d   :  { %3993 = vmatpush.bf16.msrb.mxu2 %v11983_v6  ;;  %v13930_v61 = vld [vmem:[%s28438_s26 + $0x1120] sm:$0xf]  ;;  %v17644_v62 = vld [vmem:[%s28438_s26 + $0x112c] sm:$0xf0]  ;;  %v11916_v3 = vld [vmem:[%s28438_s26 + $0x170] sm:$0xf0]  ;;  %v13803_v4 = vor.u32 %v17612_v57, %v13802_v56 }
  0x9e   :  { %3982 = vmatpush.bf16.msra.mxu3 %v11807_v19  ;;  %v13786_v5 = vld [vmem:[%s28438_s26 + $0x1000] sm:$0xf]  ;;  %v17608_v6 = vld [vmem:[%s28438_s26 + $0x100c] sm:$0xf0]  ;;  %v13931_v8 = vor.u32 %v17644_v62, %v13930_v61  ;;  %v17094_v11 = vld [vmem:[%s28438_s26 + $0x4] sm:$0xf]  ;;  %v11919_v14 = vor.u32 %v17138_v2, %v11916_v3 }
  0x9f   :  { %3941 = vmatpush.bf16.msra.mxu0 %v13835_v27  ;;  %v13914_v7 = vld [vmem:[%s28438_s26 + $0x1100] sm:$0xf]  ;;  %v17640_v9 = vld [vmem:[%s28438_s26 + $0x110c] sm:$0xf0]  ;;  %v11740_v12 = vld [vmem:[%s28438_s26 + $0x10] sm:$0xf0]  ;;  %v13787_v22 = vor.u32 %v17608_v6, %v13786_v5 }
  0xa0   :  { %3955 = vmatpush.bf16.msra.mxu1 %v13963_v30  ;;  %14088 = vmatmul.msk.bf16.vlgmr.msra.gmra.mxu2 %vm3709_vm0, %v19751_v53  ;;  %v17134_v15 = vld [vmem:[%s28438_s26 + $0x144] sm:$0xf]  ;;  %v12108_v18 = vld [vmem:[%s28438_s26 + $0x2f0] sm:$0xf0]  ;;  %v11726_v25 = vld [vmem:[%s28439_s19 + $0x40] sm:$0xf]  ;;  %v13915_v26 = vor.u32 %v17640_v9, %v13914_v7  ;;  %v11743_v33 = vor.u32 %v17094_v11, %v11740_v12 }
  0xa1   :  { %3994 = vmatpush.bf16.msrb.mxu2 %v11967_v20  ;;  %v17186_v16 = vld [vmem:[%s28438_s26 + $0x2e4] sm:$0xf]  ;;  %v11900_v19 = vld [vmem:[%s28438_s26 + $0x150] sm:$0xf0]  ;;  %v17092_v28 = vld [vmem:[%s28439_s19 + $0x88] sm:$0xf0] }
  0xa2   :  { %3983 = vmatpush.bf16.msra.mxu3 %v11791_v37  ;;  %v17218_v20 = vld [vmem:[%s28438_s26 + $0x3e4] sm:$0xf]  ;;  %v12236_v21 = vld [vmem:[%s28438_s26 + $0x3f0] sm:$0xf0]  ;;  %v12111_v27 = vor.u32 %v17186_v16, %v12108_v18  ;;  %v11728_v30 = vld [vmem:[%s28439_s19 + $0x8c] sm:$0xf0]  ;;  %v11903_v34 = vor.u32 %v17134_v15, %v11900_v19  ;;  %v19848_v52 = vor.u32 %v17092_v28, %v11726_v25 }
  0xa3   :  { %3942 = vmatpush.bf16.msra.mxu0 %v13819_v54  ;;  %v17250_v23 = vld [vmem:[%s28438_s26 + $0x4e4] sm:$0xf]  ;;  %v12364_v24 = vld [vmem:[%s28438_s26 + $0x4f0] sm:$0xf0]  ;;  %v12239_v45 = vor.u32 %v17218_v20, %v12236_v21  ;;  %v19879_v5 = vld [vmem:[%s28415_s3] sm:$0xf] }
  0xa4   :  { %3956 = vmatpush.bf16.msra.mxu1 %v13947_v55  ;;  %v17083_v29 = vld [vmem:[%s28439_s19 + $0x44] sm:$0xf]  ;;  %v12367_v48 = vor.u32 %v17250_v23, %v12364_v24  ;;  %v11884_v50 = vld [vmem:[%s28438_s26 + $0x130] sm:$0xf0]  ;;  %v28434_v16 = vperm.slane %v19879_v5, 0 }
  0xa5   :  { %3995 = vmatpush.bf16.msrb.mxu2 %v11951_v42  ;;  %v17182_v37 = vld [vmem:[%s28438_s26 + $0x2c4] sm:$0xf]  ;;  %v12092_v42 = vld [vmem:[%s28438_s26 + $0x2d0] sm:$0xf0]  ;;  %v19850_v54 = vor.u32 %v17083_v29, %v11728_v30 }
  0xa6   :  { %3984 = vmatpush.bf16.msra.mxu3 %v11775_v59  ;;  %v17130_v49 = vld [vmem:[%s28438_s26 + $0x124] sm:$0xf]  ;;  %v12220_v55 = vld [vmem:[%s28438_s26 + $0x3d0] sm:$0xf0]  ;;  %v12095_v59 = vor.u32 %v17182_v37, %v12092_v42 }
  0xa7   :  { %3943 = vmatpush.bf16.msra.mxu0 %v13803_v4  ;;  %v17214_v51 = vld [vmem:[%s28438_s26 + $0x3c4] sm:$0xf]  ;;  %v12348_v57 = vld [vmem:[%s28438_s26 + $0x4d0] sm:$0xf0] }
  0xa8   :  { %3957 = vmatpush.bf16.msra.mxu1 %v13931_v8  ;;  %v17246_v56 = vld [vmem:[%s28438_s26 + $0x4c4] sm:$0xf]  ;;  %v12076_v63 = vld [vmem:[%s28438_s26 + $0x2b0] sm:$0xf0]  ;;  %v12223_v0 = vor.u32 %v17214_v51, %v12220_v55 }
  0xa9   :  { %3996 = vmatpush.bf16.msrb.mxu2 %v11935_v60  ;;  %v11887_v60 = vor.u32 %v17130_v49, %v11884_v50  ;;  %v17126_v61 = vld [vmem:[%s28438_s26 + $0x104] sm:$0xf]  ;;  %v12351_v2 = vor.u32 %v17246_v56, %v12348_v57  ;;  %v11868_v3 = vld [vmem:[%s28438_s26 + $0x110] sm:$0xf0] }
  0xaa   :  { %3985 = vmatpush.bf16.msra.mxu3 %v11759_v13  ;;  %v17178_v62 = vld [vmem:[%s28438_s26 + $0x2a4] sm:$0xf]  ;;  %v12204_v6 = vld [vmem:[%s28438_s26 + $0x3b0] sm:$0xf0]  ;;  %v11871_v13 = vor.u32 %v17126_v61, %v11868_v3 }
  0xab   :  { %3944 = vmatpush.bf16.msra.mxu0 %v13787_v22  ;;  %v17210_v4 = vld [vmem:[%s28438_s26 + $0x3a4] sm:$0xf]  ;;  %v12332_v8 = vld [vmem:[%s28438_s26 + $0x4b0] sm:$0xf0]  ;;  %v12079_v9 = vor.u32 %v17178_v62, %v12076_v63 }
  0xac   :  { %3958 = vmatpush.bf16.msra.mxu1 %v13915_v26  ;;  %v17242_v7 = vld [vmem:[%s28438_s26 + $0x4a4] sm:$0xf]  ;;  %v12492_v12 = vld [vmem:[%s28438_s26 + $0x5f0] sm:$0xf0]  ;;  %v12207_v18 = vor.u32 %v17210_v4, %v12204_v6 }
  0xad   :  { %3997 = vmatpush.bf16.msrb.mxu2 %v11919_v14  ;;  %v17282_v11 = vld [vmem:[%s28438_s26 + $0x5e4] sm:$0xf]  ;;  %v12060_v15 = vld [vmem:[%s28438_s26 + $0x290] sm:$0xf0]  ;;  %v12335_v19 = vor.u32 %v17242_v7, %v12332_v8 }
  0xae   :  { %3986 = vmatpush.bf16.msra.mxu3 %v11743_v33  ;;  %3945 = vmatmul.bf16.vlgmr.msra.gmra.mxu0 %v19848_v52  ;;  %v17174_v14 = vld [vmem:[%s28438_s26 + $0x284] sm:$0xf]  ;;  %v12495_v21 = vor.u32 %v17282_v11, %v12492_v12  ;;  %v12188_v22 = vld [vmem:[%s28438_s26 + $0x390] sm:$0xf0] }
  0xaf   :  { %4007 = vmatpush.bf16.msrb.mxu0 %v12111_v27  ;;  %3959 = vmatmul.bf16.vlgmr.msra.gmra.mxu1 %v19850_v54  ;;  %v17206_v20 = vld [vmem:[%s28438_s26 + $0x384] sm:$0xf]  ;;  %v12316_v24 = vld [vmem:[%s28438_s26 + $0x490] sm:$0xf0]  ;;  %v12063_v25 = vor.u32 %v17174_v14, %v12060_v15 }
  0xb0   :  { %4021 = vmatpush.bf16.msrb.mxu1 %v12239_v45  ;;  %v17238_v23 = vld [vmem:[%s28438_s26 + $0x484] sm:$0xf]  ;;  %v12476_v27 = vld [vmem:[%s28438_s26 + $0x5d0] sm:$0xf0]  ;;  %v3750_v7 = vpop.f32.mrf.mxu2 }
  0xb1   :  { %3998 = vmatpush.bf16.msrb.mxu2 %v11903_v34  ;;  %3987 = vmatmul.bf16.vlgmr.msra.gmra.mxu3 %v18938_v58  ;;  %v17278_v26 = vld [vmem:[%s28438_s26 + $0x5c4] sm:$0xf]  ;;  %v3722_v28 = vpop.f32.mrf.mxu0  ;;  %v12044_v30 = vld [vmem:[%s28438_s26 + $0x270] sm:$0xf0]  ;;  %v12191_v34 = vor.u32 %v17206_v20, %v12188_v22  ;;  %v12319_v37 = vor.u32 %v17238_v23, %v12316_v24  ;;  %v3764_v24 = vpop.f32.mrf.mxu3 }
  0xb2   :  { %4035 = vmatpush.bf16.msrb.mxu3 %v12367_v48  ;;  %v17170_v29 = vld [vmem:[%s28438_s26 + $0x264] sm:$0xf]  ;;  %v3723_v33 = vadd.f32 %v3722_v28, %v28434_v16  ;;  %v12479_v45 = vor.u32 %v17278_v26, %v12476_v27  ;;  %v12172_v48 = vld [vmem:[%s28438_s26 + $0x370] sm:$0xf0]  ;;  %v12322_v16 = vld [vmem:[%s28438_s26 + $0x488] sm:$0xf] }
  0xb3   :  { %4008 = vmatpush.bf16.msrb.mxu0 %v12095_v59  ;;  %v17202_v42 = vld [vmem:[%s28438_s26 + $0x364] sm:$0xf]  ;;  %v12300_v50 = vld [vmem:[%s28438_s26 + $0x470] sm:$0xf0]  ;;  %v12047_v51 = vor.u32 %v17170_v29, %v12044_v30 }
  0xb4   :  { %4022 = vmatpush.bf16.msrb.mxu1 %v12223_v0  ;;  %v17234_v49 = vld [vmem:[%s28438_s26 + $0x464] sm:$0xf]  ;;  %v12460_v56 = vld [vmem:[%s28438_s26 + $0x5b0] sm:$0xf0]  ;;  %v12175_v62 = vor.u32 %v17202_v42, %v12172_v48 }
  0xb5   :  { %3999 = vmatpush.bf16.msrb.mxu2 %v11887_v60  ;;  %v17274_v55 = vld [vmem:[%s28438_s26 + $0x5a4] sm:$0xf]  ;;  %v3736_v57 = vpop.f32.mrf.mxu1  ;;  %v12028_v60 = vld [vmem:[%s28438_s26 + $0x250] sm:$0xf0]  ;;  %v12303_v63 = vor.u32 %v17234_v49, %v12300_v50 }
  0xb6   :  { %4036 = vmatpush.bf16.msrb.mxu3 %v12351_v2  ;;  %v17166_v59 = vld [vmem:[%s28438_s26 + $0x244] sm:$0xf]  ;;  %v3737_v61 = vadd.f32 %v3736_v57, %v3723_v33  ;;  %v12463_v2 = vor.u32 %v17274_v55, %v12460_v56  ;;  %v12156_v3 = vld [vmem:[%s28438_s26 + $0x350] sm:$0xf0] }
  0xb7   :  { %4009 = vmatpush.bf16.msrb.mxu0 %v12079_v9  ;;  %v17198_v0 = vld [vmem:[%s28438_s26 + $0x344] sm:$0xf]  ;;  %v12284_v6 = vld [vmem:[%s28438_s26 + $0x450] sm:$0xf0]  ;;  %v12031_v8 = vor.u32 %v17166_v59, %v12028_v60 }
  0xb8   :  { %4023 = vmatpush.bf16.msrb.mxu1 %v12207_v18  ;;  %v17230_v4 = vld [vmem:[%s28438_s26 + $0x444] sm:$0xf]  ;;  %v12444_v11 = vld [vmem:[%s28438_s26 + $0x590] sm:$0xf0]  ;;  %v3751_v12 = vadd.f32 %v3750_v7, %v3737_v61  ;;  %v12159_v15 = vor.u32 %v17198_v0, %v12156_v3 }
  0xb9   :  { %4000 = vmatpush.bf16.msrb.mxu2 %v11871_v13  ;;  %v17270_v9 = vld [vmem:[%s28438_s26 + $0x584] sm:$0xf]  ;;  %v12012_v14 = vld [vmem:[%s28438_s26 + $0x230] sm:$0xf0]  ;;  %v12287_v18 = vor.u32 %v17230_v4, %v12284_v6 }
  0xba   :  { %4037 = vmatpush.bf16.msrb.mxu3 %v12335_v19  ;;  %v17162_v13 = vld [vmem:[%s28438_s26 + $0x224] sm:$0xf]  ;;  %v12447_v20 = vor.u32 %v17270_v9, %v12444_v11  ;;  %v12268_v23 = vld [vmem:[%s28438_s26 + $0x430] sm:$0xf0]  ;;  %v19999_v28 = vadd.f32 %v3764_v24, %v3751_v12  ;;  %v20052_v11 = vpop.f32.mrf.mxu0 }
  0xbb   :  { %4010 = vmatpush.bf16.msrb.mxu0 %v12063_v25  ;;  %v17194_v19 = vld [vmem:[%s28438_s26 + $0x324] sm:$0xf]  ;;  %v12015_v25 = vor.u32 %v17162_v13, %v12012_v14  ;;  %v12428_v27 = vld [vmem:[%s28438_s26 + $0x570] sm:$0xf0] }
  0xbc   :  { %4001 = vmatmul.bf16.vlgmr.msrb.gmra.mxu2 %v18974_v10  ;;  %4024 = vmatpush.bf16.msrb.mxu1 %v12191_v34  ;;  %v17226_v22 = vld [vmem:[%s28438_s26 + $0x424] sm:$0xf]  ;;  %v11996_v30 = vld [vmem:[%s28438_s26 + $0x210] sm:$0xf0] }
  0xbd   :  { %4049 = vmatpush.bf16.msra.mxu2 %v12495_v21  ;;  %v12140_v21 = vld [vmem:[%s28438_s26 + $0x330] sm:$0xf0]  ;;  %v17266_v26 = vld [vmem:[%s28438_s26 + $0x564] sm:$0xf] }
  0xbe   :  { %4038 = vmatpush.bf16.msrb.mxu3 %v12319_v37  ;;  %v17158_v29 = vld [vmem:[%s28438_s26 + $0x204] sm:$0xf]  ;;  %v12143_v34 = vor.u32 %v17194_v19, %v12140_v21  ;;  %v12271_v37 = vor.u32 %v17226_v22, %v12268_v23  ;;  %v12124_v42 = vld [vmem:[%s28438_s26 + $0x310] sm:$0xf0]  ;;  %v12431_v49 = vor.u32 %v17266_v26, %v12428_v27 }
  0xbf   :  { %4011 = vmatpush.bf16.msrb.mxu0 %v12047_v51  ;;  %v17190_v33 = vld [vmem:[%s28438_s26 + $0x304] sm:$0xf]  ;;  %v12620_v48 = vld [vmem:[%s28438_s26 + $0x6f0] sm:$0xf0]  ;;  %v11999_v56 = vor.u32 %v17158_v29, %v11996_v30 }
  0xc0   :  { %4025 = vmatpush.bf16.msrb.mxu1 %v12175_v62  ;;  %v17222_v50 = vld [vmem:[%s28438_s26 + $0x404] sm:$0xf]  ;;  %v12252_v51 = vld [vmem:[%s28438_s26 + $0x410] sm:$0xf0]  ;;  %v12127_v0 = vor.u32 %v17190_v33, %v12124_v42 }
  0xc1   :  { %4050 = vmatpush.bf16.msra.mxu2 %v12479_v45  ;;  %v17314_v45 = vld [vmem:[%s28438_s26 + $0x6e4] sm:$0xf]  ;;  %v12412_v57 = vld [vmem:[%s28438_s26 + $0x550] sm:$0xf0] }
  0xc2   :  { %4039 = vmatpush.bf16.msrb.mxu3 %v12303_v63  ;;  %v17262_v55 = vld [vmem:[%s28438_s26 + $0x544] sm:$0xf]  ;;  %v12748_v60 = vld [vmem:[%s28438_s26 + $0x7f0] sm:$0xf0]  ;;  %v12623_v61 = vor.u32 %v17314_v45, %v12620_v48 }
  0xc3   :  { %4012 = vmatpush.bf16.msrb.mxu0 %v12031_v8  ;;  %v17346_v59 = vld [vmem:[%s28438_s26 + $0x7e4] sm:$0xf]  ;;  %v12876_v63 = vld [vmem:[%s28438_s26 + $0x8f0] sm:$0xf0]  ;;  %v12415_v3 = vor.u32 %v17262_v55, %v12412_v57 }
  0xc4   :  { %4026 = vmatpush.bf16.msrb.mxu1 %v12159_v15  ;;  %v17378_v62 = vld [vmem:[%s28438_s26 + $0x8e4] sm:$0xf]  ;;  %v12751_v4 = vor.u32 %v17346_v59, %v12748_v60  ;;  %v12604_v8 = vld [vmem:[%s28438_s26 + $0x6d0] sm:$0xf0] }
  0xc5   :  { %4051 = vmatpush.bf16.msra.mxu2 %v12463_v2  ;;  %v12255_v2 = vor.u32 %v17222_v50, %v12252_v51  ;;  %v17258_v6 = vld [vmem:[%s28438_s26 + $0x524] sm:$0xf]  ;;  %v12879_v9 = vor.u32 %v17378_v62, %v12876_v63  ;;  %v12396_v12 = vld [vmem:[%s28438_s26 + $0x530] sm:$0xf0]  ;;  %v20104_v50 = vpop.f32.mrf.mxu2  ;;  %v20121_v62 = vpop.f32.mrf.mxu3 }
  0xc6   :  { %4040 = vmatpush.bf16.msrb.mxu3 %v12287_v18  ;;  %v17310_v7 = vld [vmem:[%s28438_s26 + $0x6c4] sm:$0xf]  ;;  %v12732_v14 = vld [vmem:[%s28438_s26 + $0x7d0] sm:$0xf0]  ;;  %v12399_v22 = vor.u32 %v17258_v6, %v12396_v12 }
  0xc7   :  { %4013 = vmatpush.bf16.msrb.mxu0 %v12015_v25  ;;  %v17342_v13 = vld [vmem:[%s28438_s26 + $0x7c4] sm:$0xf]  ;;  %v12860_v18 = vld [vmem:[%s28438_s26 + $0x8d0] sm:$0xf0]  ;;  %v12607_v19 = vor.u32 %v17310_v7, %v12604_v8 }
  0xc8   :  { %4027 = vmatpush.bf16.msrb.mxu1 %v12143_v34  ;;  %v17374_v15 = vld [vmem:[%s28438_s26 + $0x8c4] sm:$0xf]  ;;  %v12735_v23 = vor.u32 %v17342_v13, %v12732_v14  ;;  %v12380_v24 = vld [vmem:[%s28438_s26 + $0x510] sm:$0xf0] }
  0xc9   :  { %4052 = vmatpush.bf16.msra.mxu2 %v12447_v20  ;;  %v20069_v20 = vpop.f32.mrf.mxu1  ;;  %v17254_v21 = vld [vmem:[%s28438_s26 + $0x504] sm:$0xf]  ;;  %v12588_v26 = vld [vmem:[%s28438_s26 + $0x6b0] sm:$0xf0]  ;;  %v12863_v27 = vor.u32 %v17374_v15, %v12860_v18 }
  0xca   :  { %4041 = vmatpush.bf16.msrb.mxu3 %v12271_v37  ;;  %v17306_v25 = vld [vmem:[%s28438_s26 + $0x6a4] sm:$0xf]  ;;  %v12716_v30 = vld [vmem:[%s28438_s26 + $0x7b0] sm:$0xf0]  ;;  %v12383_v48 = vor.u32 %v17254_v21, %v12380_v24 }
  0xcb   :  { %4014 = vmatpush.bf16.msrb.mxu0 %v11999_v56  ;;  %v17338_v29 = vld [vmem:[%s28438_s26 + $0x7a4] sm:$0xf]  ;;  %v12844_v34 = vld [vmem:[%s28438_s26 + $0x8b0] sm:$0xf0]  ;;  %v12591_v45 = vor.u32 %v17306_v25, %v12588_v26 }
  0xcc   :  { %4028 = vmatpush.bf16.msrb.mxu1 %v12127_v0  ;;  %v17370_v33 = vld [vmem:[%s28438_s26 + $0x8a4] sm:$0xf]  ;;  %v13004_v42 = vld [vmem:[%s28438_s26 + $0x9f0] sm:$0xf0] }
  0xcd   :  { %4053 = vmatpush.bf16.msra.mxu2 %v12431_v49  ;;  %v17410_v37 = vld [vmem:[%s28438_s26 + $0x9e4] sm:$0xf]  ;;  %v12719_v49 = vor.u32 %v17338_v29, %v12716_v30  ;;  %v12572_v55 = vld [vmem:[%s28438_s26 + $0x690] sm:$0xf0]  ;;  %v12847_v56 = vor.u32 %v17370_v33, %v12844_v34 }
  0xce   :  { %4042 = vmatpush.bf16.msrb.mxu3 %v12255_v2  ;;  %4015 = vmatmul.bf16.vlgmr.msrb.gmra.mxu0 %v18952_v1  ;;  %v17302_v51 = vld [vmem:[%s28438_s26 + $0x684] sm:$0xf]  ;;  %v13007_v57 = vor.u32 %v17410_v37, %v13004_v42  ;;  %v12700_v60 = vld [vmem:[%s28438_s26 + $0x790] sm:$0xf0] }
  0xcf   :  { %4063 = vmatpush.bf16.msra.mxu0 %v12623_v61  ;;  %4029 = vmatmul.bf16.vlgmr.msrb.gmra.mxu1 %v18988_v17  ;;  %v17334_v59 = vld [vmem:[%s28438_s26 + $0x784] sm:$0xf]  ;;  %v12828_v63 = vld [vmem:[%s28438_s26 + $0x890] sm:$0xf0] }
  0xd0   :  { %4077 = vmatpush.bf16.msra.mxu1 %v12751_v4  ;;  %v17366_v61 = vld [vmem:[%s28438_s26 + $0x884] sm:$0xf]  ;;  %v12988_v2 = vld [vmem:[%s28438_s26 + $0x9d0] sm:$0xf0]  ;;  %v12575_v4 = vor.u32 %v17302_v51, %v12572_v55  ;;  %v12703_v7 = vor.u32 %v17334_v59, %v12700_v60 }
  0xd1   :  { %4054 = vmatpush.bf16.msra.mxu2 %v12415_v3  ;;  %4043 = vmatmul.bf16.vlgmr.msrb.gmra.mxu3 %v19160_v39  ;;  %v17406_v0 = vld [vmem:[%s28438_s26 + $0x9c4] sm:$0xf]  ;;  %v3778_v3 = vpop.f32.mrf.mxu0  ;;  %v12831_v12 = vor.u32 %v17366_v61, %v12828_v63  ;;  %v3792_v13 = vpop.f32.mrf.mxu1  ;;  %v12812_v21 = vld [vmem:[%s28438_s26 + $0x870] sm:$0xf0] }
  0xd2   :  { %4091 = vmatpush.bf16.msra.mxu3 %v12879_v9  ;;  %v3779_v6 = vadd.f32 %v3778_v3, %v19999_v28  ;;  %v17298_v8 = vld [vmem:[%s28438_s26 + $0x664] sm:$0xf]  ;;  %v12556_v9 = vld [vmem:[%s28438_s26 + $0x670] sm:$0xf0]  ;;  %v12991_v14 = vor.u32 %v17406_v0, %v12988_v2  ;;  %v3806_v42 = vpop.f32.mrf.mxu2 }
  0xd3   :  { %4064 = vmatpush.bf16.msra.mxu0 %v12607_v19  ;;  %v17330_v15 = vld [vmem:[%s28438_s26 + $0x764] sm:$0xf]  ;;  %v12684_v28 = vld [vmem:[%s28438_s26 + $0x770] sm:$0xf0]  ;;  %v12559_v24 = vor.u32 %v17298_v8, %v12556_v9 }
  0xd4   :  { %4078 = vmatpush.bf16.msra.mxu1 %v12735_v23  ;;  %v17362_v18 = vld [vmem:[%s28438_s26 + $0x864] sm:$0xf]  ;;  %v3793_v19 = vadd.f32 %v3792_v13, %v3779_v6  ;;  %v12972_v23 = vld [vmem:[%s28438_s26 + $0x9b0] sm:$0xf0]  ;;  %v12687_v25 = vor.u32 %v17330_v15, %v12684_v28 }
  0xd5   :  { %4055 = vmatpush.bf16.msra.mxu2 %v12399_v22  ;;  %v17402_v22 = vld [vmem:[%s28438_s26 + $0x9a4] sm:$0xf]  ;;  %v12815_v29 = vor.u32 %v17362_v18, %v12812_v21  ;;  %v12668_v34 = vld [vmem:[%s28438_s26 + $0x750] sm:$0xf0] }
  0xd6   :  { %4092 = vmatpush.bf16.msra.mxu3 %v12863_v27  ;;  %v17294_v26 = vld [vmem:[%s28438_s26 + $0x644] sm:$0xf]  ;;  %v12540_v27 = vld [vmem:[%s28438_s26 + $0x650] sm:$0xf0]  ;;  %v12975_v30 = vor.u32 %v17402_v22, %v12972_v23  ;;  %v3807_v51 = vadd.f32 %v3806_v42, %v3793_v19 }
  0xd7   :  { %4065 = vmatpush.bf16.msra.mxu0 %v12591_v45  ;;  %v17326_v33 = vld [vmem:[%s28438_s26 + $0x744] sm:$0xf]  ;;  %v12796_v45 = vld [vmem:[%s28438_s26 + $0x850] sm:$0xf0]  ;;  %v12543_v55 = vor.u32 %v17294_v26, %v12540_v27 }
  0xd8   :  { %4079 = vmatpush.bf16.msra.mxu1 %v12719_v49  ;;  %v17358_v37 = vld [vmem:[%s28438_s26 + $0x844] sm:$0xf]  ;;  %v12956_v49 = vld [vmem:[%s28438_s26 + $0x990] sm:$0xf0] }
  0xd9   :  { %4056 = vmatpush.bf16.msra.mxu2 %v12383_v48  ;;  %v17398_v48 = vld [vmem:[%s28438_s26 + $0x984] sm:$0xf]  ;;  %v12524_v60 = vld [vmem:[%s28438_s26 + $0x630] sm:$0xf0]  ;;  %v12799_v63 = vor.u32 %v17358_v37, %v12796_v45 }
  0xda   :  { %4093 = vmatpush.bf16.msra.mxu3 %v12847_v56  ;;  %v3820_v56 = vpop.f32.mrf.mxu3  ;;  %v17290_v59 = vld [vmem:[%s28438_s26 + $0x624] sm:$0xf]  ;;  %v12959_v0 = vor.u32 %v17398_v48, %v12956_v49  ;;  %v12652_v3 = vld [vmem:[%s28438_s26 + $0x730] sm:$0xf0] }
  0xdb   :  { %4066 = vmatpush.bf16.msra.mxu0 %v12575_v4  ;;  %v20188_v61 = vadd.f32 %v3820_v56, %v3807_v51  ;;  %v17322_v2 = vld [vmem:[%s28438_s26 + $0x724] sm:$0xf]  ;;  %v12780_v6 = vld [vmem:[%s28438_s26 + $0x830] sm:$0xf0]  ;;  %v12527_v9 = vor.u32 %v17290_v59, %v12524_v60 }
  0xdc   :  { %4057 = vmatmul.bf16.vlgmr.msra.gmra.mxu2 %v19173_v44  ;;  %4080 = vmatpush.bf16.msra.mxu1 %v12703_v7  ;;  %v17354_v4 = vld [vmem:[%s28438_s26 + $0x824] sm:$0xf]  ;;  %v12940_v8 = vld [vmem:[%s28438_s26 + $0x970] sm:$0xf0] }
  0xdd   :  { %4105 = vmatpush.bf16.msrb.mxu2 %v13007_v57  ;;  %v12671_v57 = vor.u32 %v17326_v33, %v12668_v34  ;;  %v17394_v7 = vld [vmem:[%s28438_s26 + $0x964] sm:$0xf]  ;;  %v12508_v13 = vld [vmem:[%s28438_s26 + $0x610] sm:$0xf0]  ;;  %v12783_v19 = vor.u32 %v17354_v4, %v12780_v6  ;;  %v20274_v4 = vpop.f32.mrf.mxu0 }
  0xde   :  { %4094 = vmatpush.bf16.msra.mxu3 %v12831_v12  ;;  %v17286_v12 = vld [vmem:[%s28438_s26 + $0x604] sm:$0xf]  ;;  %v12636_v28 = vld [vmem:[%s28438_s26 + $0x710] sm:$0xf0]  ;;  %v12943_v21 = vor.u32 %v17394_v7, %v12940_v8 }
  0xdf   :  { %4067 = vmatpush.bf16.msra.mxu0 %v12559_v24  ;;  %v17318_v15 = vld [vmem:[%s28438_s26 + $0x704] sm:$0xf]  ;;  %v12764_v22 = vld [vmem:[%s28438_s26 + $0x810] sm:$0xf0] }
  0xe0   :  { %4081 = vmatpush.bf16.msra.mxu1 %v12687_v25  ;;  %v17350_v18 = vld [vmem:[%s28438_s26 + $0x804] sm:$0xf]  ;;  %v13132_v24 = vld [vmem:[%s28438_s26 + $0xaf0] sm:$0xf0]  ;;  %v12639_v37 = vor.u32 %v17318_v15, %v12636_v28 }
  0xe1   :  { %4106 = vmatpush.bf16.msrb.mxu2 %v12991_v14  ;;  %v12655_v14 = vor.u32 %v17322_v2, %v12652_v3  ;;  %v17442_v23 = vld [vmem:[%s28438_s26 + $0xae4] sm:$0xf]  ;;  %v12924_v26 = vld [vmem:[%s28438_s26 + $0x950] sm:$0xf0]  ;;  %v12767_v45 = vor.u32 %v17350_v18, %v12764_v22 }
  0xe2   :  { %4095 = vmatpush.bf16.msra.mxu3 %v12815_v29  ;;  %v17390_v25 = vld [vmem:[%s28438_s26 + $0x944] sm:$0xf]  ;;  %v12511_v29 = vor.u32 %v17286_v12, %v12508_v13  ;;  %v13388_v34 = vld [vmem:[%s28438_s26 + $0xcf0] sm:$0xf0]  ;;  %v13135_v42 = vor.u32 %v17442_v23, %v13132_v24 }
  0xe3   :  { %4068 = vmatpush.bf16.msra.mxu0 %v12543_v55  ;;  %v17474_v27 = vld [vmem:[%s28438_s26 + $0xbe4] sm:$0xf]  ;;  %v12927_v48 = vor.u32 %v17390_v25, %v12924_v26  ;;  %v13116_v51 = vld [vmem:[%s28438_s26 + $0xad0] sm:$0xf0] }
  0xe4   :  { %4082 = vmatpush.bf16.msra.mxu1 %v12671_v57  ;;  %v17506_v33 = vld [vmem:[%s28438_s26 + $0xce4] sm:$0xf]  ;;  %v12908_v59 = vld [vmem:[%s28438_s26 + $0x930] sm:$0xf0] }
  0xe5   :  { %4107 = vmatpush.bf16.msrb.mxu2 %v12975_v30  ;;  %v13260_v30 = vld [vmem:[%s28438_s26 + $0xbf0] sm:$0xf0]  ;;  %v17438_v49 = vld [vmem:[%s28438_s26 + $0xac4] sm:$0xf]  ;;  %v13391_v56 = vor.u32 %v17506_v33, %v13388_v34 }
  0xe6   :  { %4096 = vmatpush.bf16.msra.mxu3 %v12799_v63  ;;  %v13263_v55 = vor.u32 %v17474_v27, %v13260_v30  ;;  %v17386_v57 = vld [vmem:[%s28438_s26 + $0x924] sm:$0xf]  ;;  %v13244_v63 = vld [vmem:[%s28438_s26 + $0xbd0] sm:$0xf0]  ;;  %v13119_v3 = vor.u32 %v17438_v49, %v13116_v51 }
  0xe7   :  { %4069 = vmatpush.bf16.msra.mxu0 %v12527_v9  ;;  %v17470_v60 = vld [vmem:[%s28438_s26 + $0xbc4] sm:$0xf]  ;;  %v13372_v2 = vld [vmem:[%s28438_s26 + $0xcd0] sm:$0xf0]  ;;  %v12911_v6 = vor.u32 %v17386_v57, %v12908_v59  ;;  %v20282_v9 = vpop.f32.mrf.mxu1 }
  0xe8   :  { %4083 = vmatpush.bf16.msra.mxu1 %v12655_v14  ;;  %v17434_v7 = vld [vmem:[%s28438_s26 + $0xaa4] sm:$0xf]  ;;  %v13100_v8 = vld [vmem:[%s28438_s26 + $0xab0] sm:$0xf0]  ;;  %v13247_v12 = vor.u32 %v17470_v60, %v13244_v63 }
  0xe9   :  { %4108 = vmatpush.bf16.msrb.mxu2 %v12959_v0  ;;  %v17502_v0 = vld [vmem:[%s28438_s26 + $0xcc4] sm:$0xf]  ;;  %v12892_v15 = vld [vmem:[%s28438_s26 + $0x910] sm:$0xf0]  ;;  %v13103_v22 = vor.u32 %v17434_v7, %v13100_v8 }
  0xea   :  { %4097 = vmatpush.bf16.msra.mxu3 %v12783_v19  ;;  %v13375_v13 = vor.u32 %v17502_v0, %v13372_v2  ;;  %v17382_v14 = vld [vmem:[%s28438_s26 + $0x904] sm:$0xf]  ;;  %v13228_v18 = vld [vmem:[%s28438_s26 + $0xbb0] sm:$0xf0] }
  0xeb   :  { %4070 = vmatpush.bf16.msra.mxu0 %v12511_v29  ;;  %v17466_v28 = vld [vmem:[%s28438_s26 + $0xba4] sm:$0xf]  ;;  %v13516_v24 = vld [vmem:[%s28438_s26 + $0xdf0] sm:$0xf0]  ;;  %v12895_v25 = vor.u32 %v17382_v14, %v12892_v15 }
  0xec   :  { %4084 = vmatpush.bf16.msra.mxu1 %v12639_v37  ;;  %v17498_v19 = vld [vmem:[%s28438_s26 + $0xca4] sm:$0xf]  ;;  %v13084_v27 = vld [vmem:[%s28438_s26 + $0xa90] sm:$0xf0]  ;;  %v13231_v29 = vor.u32 %v17466_v28, %v13228_v18 }
  0xed   :  { %4109 = vmatpush.bf16.msrb.mxu2 %v12943_v21  ;;  %v13356_v21 = vld [vmem:[%s28438_s26 + $0xcb0] sm:$0xf0]  ;;  %v17538_v23 = vld [vmem:[%s28438_s26 + $0xde4] sm:$0xf] }
  0xee   :  { %4098 = vmatpush.bf16.msra.mxu3 %v12767_v45  ;;  %4071 = vmatmul.bf16.vlgmr.msra.gmra.mxu0 %v19171_v43  ;;  %v17430_v26 = vld [vmem:[%s28438_s26 + $0xa84] sm:$0xf]  ;;  %v13359_v30 = vor.u32 %v17498_v19, %v13356_v21  ;;  %v13519_v34 = vor.u32 %v17538_v23, %v13516_v24  ;;  %v13212_v37 = vld [vmem:[%s28438_s26 + $0xb90] sm:$0xf0] }
  0xef   :  { %4119 = vmatpush.bf16.msrb.mxu0 %v13135_v42  ;;  %4085 = vmatmul.bf16.vlgmr.msra.gmra.mxu1 %v19181_v47  ;;  %v17462_v33 = vld [vmem:[%s28438_s26 + $0xb84] sm:$0xf]  ;;  %v13340_v45 = vld [vmem:[%s28438_s26 + $0xc90] sm:$0xf0]  ;;  %v13087_v49 = vor.u32 %v17430_v26, %v13084_v27  ;;  %v3834_v57 = vpop.f32.mrf.mxu0 }
  0xf0   :  { %4133 = vmatpush.bf16.msrb.mxu1 %v13263_v55  ;;  %v17494_v42 = vld [vmem:[%s28438_s26 + $0xc84] sm:$0xf]  ;;  %v13500_v55 = vld [vmem:[%s28438_s26 + $0xdd0] sm:$0xf0]  ;;  %v3835_v63 = vadd.f32 %v3834_v57, %v20188_v61  ;;  %v13215_v0 = vor.u32 %v17462_v33, %v13212_v37 }
  0xf1   :  { %4110 = vmatpush.bf16.msrb.mxu2 %v12927_v48  ;;  %4099 = vmatmul.bf16.vlgmr.msra.gmra.mxu3 %v19388_v31  ;;  %v20329_v48 = vpop.f32.mrf.mxu2  ;;  %v17534_v51 = vld [vmem:[%s28438_s26 + $0xdc4] sm:$0xf]  ;;  %v13068_v60 = vld [vmem:[%s28438_s26 + $0xa70] sm:$0xf0]  ;;  %v13343_v2 = vor.u32 %v17494_v42, %v13340_v45 }
  0xf2   :  { %4147 = vmatpush.bf16.msrb.mxu3 %v13391_v56  ;;  %v20337_v56 = vpop.f32.mrf.mxu3  ;;  %v17426_v59 = vld [vmem:[%s28438_s26 + $0xa64] sm:$0xf]  ;;  %v13503_v7 = vor.u32 %v17534_v51, %v13500_v55  ;;  %v13196_v8 = vld [vmem:[%s28438_s26 + $0xb70] sm:$0xf0] }
  0xf3   :  { %4120 = vmatpush.bf16.msrb.mxu0 %v13119_v3  ;;  %v3848_v3 = vpop.f32.mrf.mxu1  ;;  %v13324_v61 = vld [vmem:[%s28438_s26 + $0xc70] sm:$0xf0]  ;;  %v13071_v14 = vor.u32 %v17426_v59, %v13068_v60  ;;  %v17530_v15 = vld [vmem:[%s28438_s26 + $0xda4] sm:$0xf] }
  0xf4   :  { %4134 = vmatpush.bf16.msrb.mxu1 %v13247_v12  ;;  %v17490_v12 = vld [vmem:[%s28438_s26 + $0xc64] sm:$0xf]  ;;  %v13484_v28 = vld [vmem:[%s28438_s26 + $0xdb0] sm:$0xf0] }
  0xf5   :  { %4111 = vmatpush.bf16.msrb.mxu2 %v12911_v6  ;;  %v17458_v6 = vld [vmem:[%s28438_s26 + $0xb64] sm:$0xf]  ;;  %v13052_v19 = vld [vmem:[%s28438_s26 + $0xa50] sm:$0xf0]  ;;  %v13487_v24 = vor.u32 %v17530_v15, %v13484_v28 }
  0xf6   :  { %4148 = vmatpush.bf16.msrb.mxu3 %v13375_v13  ;;  %v3849_v13 = vadd.f32 %v3848_v3, %v3835_v63  ;;  %v17422_v18 = vld [vmem:[%s28438_s26 + $0xa44] sm:$0xf]  ;;  %v13199_v21 = vor.u32 %v17458_v6, %v13196_v8  ;;  %v13308_v27 = vld [vmem:[%s28438_s26 + $0xc50] sm:$0xf0] }
  0xf7   :  { %4121 = vmatpush.bf16.msrb.mxu0 %v13103_v22  ;;  %v13327_v22 = vor.u32 %v17490_v12, %v13324_v61  ;;  %v17454_v23 = vld [vmem:[%s28438_s26 + $0xb44] sm:$0xf]  ;;  %v13164_v63 = vld [vmem:[%s28438_s26 + $0xb30] sm:$0xf0] }
  0xf8   :  { %4135 = vmatpush.bf16.msrb.mxu1 %v13231_v29  ;;  %v17486_v26 = vld [vmem:[%s28438_s26 + $0xc44] sm:$0xf]  ;;  %v13020_v12 = vld [vmem:[%s28438_s26 + $0xa10] sm:$0xf0] }
  0xf9   :  { %4112 = vmatpush.bf16.msrb.mxu2 %v12895_v25  ;;  %v13180_v25 = vld [vmem:[%s28438_s26 + $0xb50] sm:$0xf0]  ;;  %v3862_v29 = vpop.f32.mrf.mxu2  ;;  %v17526_v33 = vld [vmem:[%s28438_s26 + $0xd84] sm:$0xf]  ;;  %v13311_v55 = vor.u32 %v17486_v26, %v13308_v27 }
  0xfa   :  { %4149 = vmatpush.bf16.msrb.mxu3 %v13359_v30  ;;  %v13055_v30 = vor.u32 %v17422_v18, %v13052_v19  ;;  %v3863_v37 = vadd.f32 %v3862_v29, %v3849_v13  ;;  %v3876_v42 = vpop.f32.mrf.mxu3  ;;  %v17418_v45 = vld [vmem:[%s28438_s26 + $0xa24] sm:$0xf]  ;;  %v13183_v51 = vor.u32 %v17454_v23, %v13180_v25  ;;  %v13148_v15 = vld [vmem:[%s28438_s26 + $0xb10] sm:$0xf0] }
  0xfb   :  { %4122 = vmatpush.bf16.msrb.mxu0 %v13087_v49  ;;  %v13036_v49 = vld [vmem:[%s28438_s26 + $0xa30] sm:$0xf0]  ;;  %v17450_v57 = vld [vmem:[%s28438_s26 + $0xb24] sm:$0xf] }
  0xfc   :  { %4113 = vmatmul.bf16.vlgmr.msrb.gmra.mxu2 %v19401_v36  ;;  %4136 = vmatpush.bf16.msrb.mxu1 %v13215_v0  ;;  %v20398_v59 = vadd.f32 %v3876_v42, %v3863_v37  ;;  %v17482_v0 = vld [vmem:[%s28438_s26 + $0xc24] sm:$0xf]  ;;  %v13039_v3 = vor.u32 %v17418_v45, %v13036_v49  ;;  %v13167_v13 = vor.u32 %v17450_v57, %v13164_v63  ;;  %v13644_v18 = vld [vmem:[%s28438_s26 + $0xef0] sm:$0xf0] }
  0xfd   :  { %4161 = vmatpush.bf16.msra.mxu2 %v13519_v34  ;;  %v13468_v34 = vld [vmem:[%s28438_s26 + $0xd90] sm:$0xf0]  ;;  %v17522_v6 = vld [vmem:[%s28438_s26 + $0xd64] sm:$0xf] }
  0xfe   :  { %4150 = vmatpush.bf16.msrb.mxu3 %v13343_v2  ;;  %v13471_v60 = vor.u32 %v17526_v33, %v13468_v34  ;;  %v13292_v2 = vld [vmem:[%s28438_s26 + $0xc30] sm:$0xf0]  ;;  %v17414_v8 = vld [vmem:[%s28438_s26 + $0xa04] sm:$0xf] }
  0xff   :  { %4123 = vmatpush.bf16.msrb.mxu0 %v13071_v14  ;;  %v17446_v61 = vld [vmem:[%s28438_s26 + $0xb04] sm:$0xf]  ;;  %v13295_v14 = vor.u32 %v17482_v0, %v13292_v2  ;;  %v13436_v25 = vld [vmem:[%s28438_s26 + $0xd50] sm:$0xf0] }
 0x100   :  { %4137 = vmatpush.bf16.msrb.mxu1 %v13199_v21  ;;  %v17570_v28 = vld [vmem:[%s28438_s26 + $0xee4] sm:$0xf]  ;;  %v13772_v27 = vld [vmem:[%s28438_s26 + $0xff0] sm:$0xf0]  ;;  %v13151_v34 = vor.u32 %v17446_v61, %v13148_v15 }
 0x101   :  { %4162 = vmatpush.bf16.msra.mxu2 %v13503_v7  ;;  %v13452_v7 = vld [vmem:[%s28438_s26 + $0xd70] sm:$0xf0]  ;;  %v17478_v21 = vld [vmem:[%s28438_s26 + $0xc04] sm:$0xf]  ;;  %v13647_v29 = vor.u32 %v17570_v28, %v13644_v18  ;;  %v20495_v28 = vpop.f32.mrf.mxu1 }
 0x102   :  { %4151 = vmatpush.bf16.msrb.mxu3 %v13327_v22  ;;  %v13455_v19 = vor.u32 %v17522_v6, %v13452_v7  ;;  %v13276_v22 = vld [vmem:[%s28438_s26 + $0xc10] sm:$0xf0]  ;;  %v17518_v23 = vld [vmem:[%s28438_s26 + $0xd44] sm:$0xf] }
 0x103   :  { %4124 = vmatpush.bf16.msrb.mxu0 %v13055_v30  ;;  %v17602_v26 = vld [vmem:[%s28438_s26 + $0xfe4] sm:$0xf]  ;;  %v13900_v33 = vld [vmem:[%s28438_s26 + $0x10f0] sm:$0xf0]  ;;  %v13279_v37 = vor.u32 %v17478_v21, %v13276_v22  ;;  %v13439_v42 = vor.u32 %v17518_v23, %v13436_v25 }
 0x104   :  { %4138 = vmatpush.bf16.msrb.mxu1 %v13183_v51  ;;  %v17634_v30 = vld [vmem:[%s28438_s26 + $0x10e4] sm:$0xf]  ;;  %v13775_v45 = vor.u32 %v17602_v26, %v13772_v27  ;;  %v13756_v0 = vld [vmem:[%s28438_s26 + $0xfd0] sm:$0xf0] }
 0x105   :  { %4163 = vmatpush.bf16.msra.mxu2 %v13487_v24  ;;  %v13023_v24 = vor.u32 %v17414_v8, %v13020_v12  ;;  %v17514_v49 = vld [vmem:[%s28438_s26 + $0xd24] sm:$0xf]  ;;  %v13903_v57 = vor.u32 %v17634_v30, %v13900_v33  ;;  %v20484_v8 = vpop.f32.mrf.mxu0  ;;  %v13612_v15 = vld [vmem:[%s28438_s26 + $0xeb0] sm:$0xf0] }
 0x106   :  { %4152 = vmatpush.bf16.msrb.mxu3 %v13311_v55  ;;  %v17566_v51 = vld [vmem:[%s28438_s26 + $0xec4] sm:$0xf]  ;;  %v13628_v55 = vld [vmem:[%s28438_s26 + $0xed0] sm:$0xf0] }
 0x107   :  { %4125 = vmatpush.bf16.msrb.mxu0 %v13039_v3  ;;  %v17598_v63 = vld [vmem:[%s28438_s26 + $0xfc4] sm:$0xf]  ;;  %v13884_v3 = vld [vmem:[%s28438_s26 + $0x10d0] sm:$0xf0]  ;;  %v13631_v6 = vor.u32 %v17566_v51, %v13628_v55 }
 0x108   :  { %4139 = vmatpush.bf16.msrb.mxu1 %v13167_v13  ;;  %v17630_v2 = vld [vmem:[%s28438_s26 + $0x10c4] sm:$0xf]  ;;  %v13759_v61 = vor.u32 %v17598_v63, %v13756_v0  ;;  %v13404_v13 = vld [vmem:[%s28438_s26 + $0xd10] sm:$0xf0]  ;;  %v20544_v0 = vpop.f32.mrf.mxu3 }
 0x109   :  { %4164 = vmatpush.bf16.msra.mxu2 %v13471_v60  ;;  %v13420_v60 = vld [vmem:[%s28438_s26 + $0xd30] sm:$0xf0]  ;;  %v17510_v7 = vld [vmem:[%s28438_s26 + $0xd04] sm:$0xf]  ;;  %v13887_v18 = vor.u32 %v17630_v2, %v13884_v3  ;;  %28440 = vst [vmem:[#allocation2_spill] sm:$0xff] %v20544_v0 }
 0x10a   :  { %4153 = vmatpush.bf16.msrb.mxu3 %v13295_v14  ;;  %v13423_v12 = vor.u32 %v17514_v49, %v13420_v60  ;;  %v17562_v14 = vld [vmem:[%s28438_s26 + $0xea4] sm:$0xf]  ;;  %v13740_v21 = vld [vmem:[%s28438_s26 + $0xfb0] sm:$0xf0]  ;;  %v13407_v27 = vor.u32 %v17510_v7, %v13404_v13  ;;  %v20542_v60 = vpop.f32.mrf.mxu2 }
 0x10b   :  { %4126 = vmatpush.bf16.msrb.mxu0 %v13023_v24  ;;  %v17626_v22 = vld [vmem:[%s28438_s26 + $0x10a4] sm:$0xf]  ;;  %v13868_v23 = vld [vmem:[%s28438_s26 + $0x10b0] sm:$0xf0]  ;;  %v13615_v26 = vor.u32 %v17562_v14, %v13612_v15 }
 0x10c   :  { %4140 = vmatpush.bf16.msrb.mxu1 %v13151_v34  ;;  %v17666_v24 = vld [vmem:[%s28438_s26 + $0x11e4] sm:$0xf]  ;;  %v14028_v25 = vld [vmem:[%s28438_s26 + $0x11f0] sm:$0xf0]  ;;  %v13871_v34 = vor.u32 %v17626_v22, %v13868_v23 }
 0x10d   :  { %4165 = vmatpush.bf16.msra.mxu2 %v13455_v19  ;;  %v17594_v19 = vld [vmem:[%s28438_s26 + $0xfa4] sm:$0xf]  ;;  %v13596_v33 = vld [vmem:[%s28438_s26 + $0xe90] sm:$0xf0] }
 0x10e   :  { %4154 = vmatpush.bf16.msrb.mxu3 %v13279_v37  ;;  %4127 = vmatmul.bf16.vlgmr.msrb.gmra.mxu0 %v19399_v35  ;;  %v17558_v30 = vld [vmem:[%s28438_s26 + $0xe84] sm:$0xf]  ;;  %v14031_v37 = vor.u32 %v17666_v24, %v14028_v25  ;;  %v13852_v51 = vld [vmem:[%s28438_s26 + $0x1090] sm:$0xf0] }
 0x10f   :  { %4175 = vmatpush.bf16.msra.mxu0 %v13647_v29  ;;  %4141 = vmatmul.bf16.vlgmr.msrb.gmra.mxu1 %v19409_v40  ;;  %v13743_v29 = vor.u32 %v17594_v19, %v13740_v21  ;;  %v17622_v49 = vld [vmem:[%s28438_s26 + $0x1084] sm:$0xf]  ;;  %v13599_v63 = vor.u32 %v17558_v30, %v13596_v33  ;;  %v3890_v2 = vpop.f32.mrf.mxu0  ;;  %v13580_v7 = vld [vmem:[%s28438_s26 + $0xe70] sm:$0xf0] }
 0x110   :  { %4189 = vmatpush.bf16.msra.mxu1 %v13775_v45  ;;  %v13724_v45 = vld [vmem:[%s28438_s26 + $0xf90] sm:$0xf0]  ;;  %v17662_v55 = vld [vmem:[%s28438_s26 + $0x11c4] sm:$0xf]  ;;  %v3904_v13 = vpop.f32.mrf.mxu1 }
 0x111   :  { %4166 = vmatpush.bf16.msra.mxu2 %v13439_v42  ;;  %4155 = vmatmul.bf16.vlgmr.msrb.gmra.mxu3 %v19616_v32  ;;  %v17590_v42 = vld [vmem:[%s28438_s26 + $0xf84] sm:$0xf]  ;;  %v13836_v21 = vld [vmem:[%s28438_s26 + $0x1070] sm:$0xf0] }
 0x112   :  { %4203 = vmatpush.bf16.msra.mxu3 %v13903_v57  ;;  %v14012_v57 = vld [vmem:[%s28438_s26 + $0x11d0] sm:$0xf0]  ;;  %v13727_v3 = vor.u32 %v17590_v42, %v13724_v45  ;;  %v17586_v15 = vld [vmem:[%s28438_s26 + $0xf64] sm:$0xf] }
 0x113   :  { %4176 = vmatpush.bf16.msra.mxu0 %v13631_v6  ;;  %v17554_v6 = vld [vmem:[%s28438_s26 + $0xe64] sm:$0xf]  ;;  %v14015_v14 = vor.u32 %v17662_v55, %v14012_v57  ;;  %v13996_v22 = vld [vmem:[%s28438_s26 + $0x11b0] sm:$0xf0] }
 0x114   :  { %4190 = vmatpush.bf16.msra.mxu1 %v13759_v61  ;;  %v13855_v61 = vor.u32 %v17622_v49, %v13852_v51  ;;  %v17618_v19 = vld [vmem:[%s28438_s26 + $0x1064] sm:$0xf]  ;;  %v13583_v24 = vor.u32 %v17554_v6, %v13580_v7  ;;  %v13820_v42 = vld [vmem:[%s28438_s26 + $0x1050] sm:$0xf0]  ;;  %v3918_v51 = vpop.f32.mrf.mxu2 }
 0x115   :  { %4167 = vmatpush.bf16.msra.mxu2 %v13423_v12  ;;  %v3891_v12 = vadd.f32 %v3890_v2, %v20398_v59  ;;  %v17658_v59 = vld [vmem:[%s28438_s26 + $0x11a4] sm:$0xf]  ;;  %v13980_v49 = vld [vmem:[%s28438_s26 + $0x1190] sm:$0xf0] }
 0x116   :  { %4204 = vmatpush.bf16.msra.mxu3 %v13887_v18  ;;  %v13708_v18 = vld [vmem:[%s28438_s26 + $0xf70] sm:$0xf0]  ;;  %v13999_v30 = vor.u32 %v17658_v59, %v13996_v22  ;;  %v17582_v33 = vld [vmem:[%s28438_s26 + $0xf44] sm:$0xf] }
 0x117   :  { %4177 = vmatpush.bf16.msra.mxu0 %v13615_v26  ;;  %v3905_v23 = vadd.f32 %v3904_v13, %v3891_v12  ;;  %v13711_v25 = vor.u32 %v17586_v15, %v13708_v18  ;;  %v17550_v26 = vld [vmem:[%s28438_s26 + $0xe44] sm:$0xf]  ;;  %v13548_v6 = vld [vmem:[%s28438_s26 + $0xe30] sm:$0xf0] }
 0x118   :  { %4191 = vmatpush.bf16.msra.mxu1 %v13743_v29  ;;  %v13839_v29 = vor.u32 %v17618_v19, %v13836_v21  ;;  %v17654_v45 = vld [vmem:[%s28438_s26 + $0x1184] sm:$0xf]  ;;  %v13676_v13 = vld [vmem:[%s28438_s26 + $0xf30] sm:$0xf0] }
 0x119   :  { %4168 = vmatpush.bf16.msra.mxu2 %v13407_v27  ;;  %v13564_v27 = vld [vmem:[%s28438_s26 + $0xe50] sm:$0xf0]  ;;  %v3919_v57 = vadd.f32 %v3918_v51, %v3905_v23  ;;  %v13983_v12 = vor.u32 %v17654_v45, %v13980_v49  ;;  %v17650_v19 = vld [vmem:[%s28438_s26 + $0x1164] sm:$0xf] }
 0x11a   :  { %4205 = vmatpush.bf16.msra.mxu3 %v13871_v34  ;;  %v13692_v34 = vld [vmem:[%s28438_s26 + $0xf50] sm:$0xf0]  ;;  %v13567_v55 = vor.u32 %v17550_v26, %v13564_v27  ;;  %v17542_v22 = vld [vmem:[%s28438_s26 + $0xe04] sm:$0xf] }
 0x11b   :  { %4178 = vmatpush.bf16.msra.mxu0 %v13599_v63  ;;  %v3932_v63 = vpop.f32.mrf.mxu3  ;;  %v13695_v2 = vor.u32 %v17582_v33, %v13692_v34  ;;  %v13804_v18 = vld [vmem:[%s28438_s26 + $0x1030] sm:$0xf0]  ;;  %v17606_v27 = vld [vmem:[%s28438_s26 + $0x1004] sm:$0xf]  ;;  %v12114_v34 = vld [vmem:[%s28438_s26 + $0x2e8] sm:$0xf] }
 0x11c   :  { %4169 = vmatmul.bf16.vlgmr.msra.gmra.mxu2 %v19629_v41  ;;  %4192 = vmatpush.bf16.msra.mxu1 %v13727_v3  ;;  %v17546_v3 = vld [vmem:[%s28438_s26 + $0xe24] sm:$0xf]  ;;  %v20611_v15 = vadd.f32 %v3932_v63, %v3919_v57  ;;  %v13964_v21 = vld [vmem:[%s28438_s26 + $0x1170] sm:$0xf0]  ;;  %v11858_v57 = vld [vmem:[%s28438_s26 + $0xe8] sm:$0xf] }
 0x11d   :  { %4217 = vmatpush.bf16.msrb.mxu2 %v14031_v37  ;;  %v17614_v37 = vld [vmem:[%s28438_s26 + $0x1044] sm:$0xf]  ;;  %v13551_v59 = vor.u32 %v17546_v3, %v13548_v6  ;;  %v13532_v23 = vld [vmem:[%s28438_s26 + $0xe10] sm:$0xf0]  ;;  %v17125_v63 = vld [vmem:[%s28438_s26 + $0xf4] sm:$0xf0] }
 0x11e   :  { %4206 = vmatpush.bf16.msra.mxu3 %v13855_v61  ;;  %v13823_v7 = vor.u32 %v17614_v37, %v13820_v42  ;;  %v17578_v61 = vld [vmem:[%s28438_s26 + $0xf24] sm:$0xf]  ;;  %v13660_v26 = vld [vmem:[%s28438_s26 + $0xf10] sm:$0xf0]  ;;  %v17189_v37 = vld [vmem:[%s28438_s26 + $0x2f4] sm:$0xf0]  ;;  %v13535_v51 = vor.u32 %v17542_v22, %v13532_v23 }
 0x11f   :  { %4179 = vmatpush.bf16.msra.mxu0 %v13583_v24  ;;  %v13679_v24 = vor.u32 %v17578_v61, %v13676_v13  ;;  %v13788_v33 = vld [vmem:[%s28438_s26 + $0x1010] sm:$0xf0]  ;;  %v17646_v42 = vld [vmem:[%s28438_s26 + $0x1144] sm:$0xf]  ;;  %v12115_v3 = vor.u32 %v17189_v37, %v12114_v34  ;;  %v17185_v61 = vld [vmem:[%s28438_s26 + $0x2d4] sm:$0xf0]  ;;  %v20701_v34 = vpop.f32.mrf.mxu1 }
 0x120   :  { %4193 = vmatpush.bf16.msra.mxu1 %v13711_v25  ;;  %v17574_v25 = vld [vmem:[%s28438_s26 + $0xf04] sm:$0xf]  ;;  %v13948_v45 = vld [vmem:[%s28438_s26 + $0x1150] sm:$0xf0]  ;;  %v13791_v6 = vor.u32 %v17606_v27, %v13788_v33  ;;  %v11842_v23 = vld [vmem:[%s28438_s26 + $0xc8] sm:$0xf]  ;;  %v20699_v33 = vpop.f32.mrf.mxu0 }
 0x121   :  { %4218 = vmatpush.bf16.msrb.mxu2 %v14015_v14  ;;  %v17610_v14 = vld [vmem:[%s28438_s26 + $0x1024] sm:$0xf]  ;;  %v14060_v22 = vld [vmem:[%s28438_s26 + $0x1230] sm:$0xf0]  ;;  %28442 = vst [vmem:[#allocation4_spill] sm:$0xff] %v20699_v33 }
 0x122   :  { %4207 = vmatpush.bf16.msra.mxu3 %v13839_v29  ;;  %v13807_v29 = vor.u32 %v17610_v14, %v13804_v18  ;;  %v17678_v49 = vld [vmem:[%s28438_s26 + $0x1244] sm:$0xf]  ;;  %v11859_v14 = vor.u32 %v17125_v63, %v11858_v57  ;;  %28443 = vst [vmem:[#allocation5_spill] sm:$0xff] %v20701_v34  ;;  %v17117_v57 = vld [vmem:[%s28438_s26 + $0xb4] sm:$0xf0] }
 0x123   :  { %4180 = vmatpush.bf16.msra.mxu0 %v13567_v55  ;;  %v14076_v55 = vld [vmem:[%s28438_s26 + $0x1250] sm:$0xf0]  ;;  %v17642_v18 = vld [vmem:[%s28438_s26 + $0x1124] sm:$0xf]  ;;  %v11986_v63 = vld [vmem:[%s28438_s26 + $0x1e8] sm:$0xf] }
 0x124   :  { %4194 = vmatpush.bf16.msra.mxu1 %v13695_v2  ;;  %v13663_v2 = vor.u32 %v17574_v25, %v13660_v26  ;;  %v14079_v13 = vor.u32 %v17678_v49, %v14076_v55  ;;  %v17638_v27 = vld [vmem:[%s28438_s26 + $0x1104] sm:$0xf]  ;;  %v11826_v55 = vld [vmem:[%s28438_s26 + $0xa8] sm:$0xf] }
 0x125   :  { %4219 = vmatpush.bf16.msrb.mxu2 %v13999_v30  ;;  %v13967_v30 = vor.u32 %v17650_v19, %v13964_v21  ;;  %v13932_v19 = vld [vmem:[%s28438_s26 + $0x1130] sm:$0xf0]  ;;  %v17674_v21 = vld [vmem:[%s28438_s26 + $0x1224] sm:$0xf] }
 0x126   :  { %4208 = vmatpush.bf16.msra.mxu3 %v13823_v7  ;;  %v13951_v7 = vor.u32 %v17646_v42, %v13948_v45  ;;  %v13935_v26 = vor.u32 %v17642_v18, %v13932_v19  ;;  %v14063_v37 = vor.u32 %v17674_v21, %v14060_v22  ;;  %v13916_v45 = vld [vmem:[%s28438_s26 + $0x1110] sm:$0xf0]  ;;  %v17670_v49 = vld [vmem:[%s28438_s26 + $0x1204] sm:$0xf]  ;;  %v11827_v18 = vor.u32 %v17117_v57, %v11826_v55  ;;  %v11810_v22 = vld [vmem:[%s28438_s26 + $0x88] sm:$0xf] }
 0x127   :  { %4181 = vmatpush.bf16.msra.mxu0 %v13551_v59  ;;  %v20679_v59 = vpop.f32.mrf.mxu2 }
 0x128   :  { %4195 = vmatpush.bf16.msra.mxu1 %v13679_v24  ;;  %28441 = vst [vmem:[#allocation3_spill] sm:$0xff] %v20679_v59  ;;  %v17121_v24 = vld [vmem:[%s28438_s26 + $0xd4] sm:$0xf0] }
 0x129   :  { %4220 = vmatpush.bf16.msrb.mxu2 %v13983_v12  ;;  %v12098_v12 = vld [vmem:[%s28438_s26 + $0x2c8] sm:$0xf]  ;;  %v11843_v42 = vor.u32 %v17121_v24, %v11842_v23  ;;  %v17113_v23 = vld [vmem:[%s28438_s26 + $0x94] sm:$0xf0] }
 0x12a   :  { %4209 = vmatpush.bf16.msra.mxu3 %v13807_v29  ;;  %v12099_v25 = vor.u32 %v17185_v61, %v12098_v12  ;;  %v12082_v29 = vld [vmem:[%s28438_s26 + $0x2a8] sm:$0xf]  ;;  %v13919_v12 = vor.u32 %v17638_v27, %v13916_v45 }
 0x12b   :  { %4182 = vmatpush.bf16.msra.mxu0 %v13535_v51  ;;  %v14044_v51 = vld [vmem:[%s28438_s26 + $0x1210] sm:$0xf0]  ;;  %v12066_v61 = vld [vmem:[%s28438_s26 + $0x288] sm:$0xf]  ;;  %v3946_v45 = vpop.f32.mrf.mxu0 }
 0x12c   :  { %4196 = vmatpush.bf16.msra.mxu1 %v13663_v2  ;;  %v17157_v2 = vld [vmem:[%s28438_s26 + $0x1f4] sm:$0xf0]  ;;  %v11970_v24 = vld [vmem:[%s28438_s26 + $0x1c8] sm:$0xf]  ;;  %v3947_v55 = vadd.f32 %v3946_v45, %v20611_v15 }
 0x12d   :  { %4221 = vmatpush.bf16.msrb.mxu2 %v13967_v30  ;;  %v17181_v30 = vld [vmem:[%s28438_s26 + $0x2b4] sm:$0xf0]  ;;  %v11987_v19 = vor.u32 %v17157_v2, %v11986_v63  ;;  %v12226_v27 = vld [vmem:[%s28438_s26 + $0x3c8] sm:$0xf] }
 0x12e   :  { %4210 = vmatpush.bf16.msra.mxu3 %v13791_v6  ;;  %4183 = vmatmul.bf16.vlgmr.msra.gmra.mxu0 %v19627_v38  ;;  %v17221_v6 = vld [vmem:[%s28438_s26 + $0x3f4] sm:$0xf0]  ;;  %v11794_v2 = vld [vmem:[%s28438_s26 + $0x68] sm:$0xf] }
 0x12f   :  { %4273 = vmatpush.bf16.msrb.mxu0 %v12115_v3  ;;  %4197 = vmatmul.bf16.vlgmr.msra.gmra.mxu1 %v19637_v46  ;;  %v12242_v3 = vld [vmem:[%s28438_s26 + $0x3e8] sm:$0xf]  ;;  %v17149_v15 = vld [vmem:[%s28438_s26 + $0x1b4] sm:$0xf0] }
 0x130   :  { %4245 = vmatpush.bf16.msrb.mxu1 %v11859_v14  ;;  %v14047_v14 = vor.u32 %v17670_v49, %v14044_v51  ;;  %v12243_v21 = vor.u32 %v17221_v6, %v12242_v3  ;;  %v11811_v49 = vor.u32 %v17113_v23, %v11810_v22  ;;  %v3960_v51 = vpop.f32.mrf.mxu1  ;;  %v17109_v3 = vld [vmem:[%s28438_s26 + $0x74] sm:$0xf0]  ;;  %v11954_v6 = vld [vmem:[%s28438_s26 + $0x1a8] sm:$0xf] }
 0x131   :  { %4222 = vmatpush.bf16.msrb.mxu2 %v13951_v7  ;;  %4211 = vmatmul.bf16.vlgmr.msra.gmra.mxu3 %v19848_v52  ;;  %v12083_v7 = vor.u32 %v17181_v30, %v12082_v29  ;;  %v17217_v29 = vld [vmem:[%s28438_s26 + $0x3d4] sm:$0xf0]  ;;  %v11955_v23 = vor.u32 %v17149_v15, %v11954_v6  ;;  %v11762_v6 = vld [vmem:[%s28438_s26 + $0x28] sm:$0xf] }
 0x132   :  { %4236 = vmatpush.bf16.msrb.mxu3 %v14079_v13  ;;  %v17177_v13 = vld [vmem:[%s28438_s26 + $0x294] sm:$0xf0]  ;;  %v12227_v63 = vor.u32 %v17217_v29, %v12226_v27  ;;  %v11938_v29 = vld [vmem:[%s28438_s26 + $0x188] sm:$0xf] }
 0x133   :  { %4274 = vmatpush.bf16.msrb.mxu0 %v12099_v25  ;;  %v3974_v25 = vpop.f32.mrf.mxu2  ;;  %v12067_v30 = vor.u32 %v17177_v13, %v12066_v61  ;;  %v20783_v13 = vpop.f32.mrf.mxu3  ;;  %v17105_v27 = vld [vmem:[%s28438_s26 + $0x54] sm:$0xf0] }
 0x134   :  { %4246 = vmatpush.bf16.msrb.mxu1 %v11843_v42  ;;  %v17173_v42 = vld [vmem:[%s28438_s26 + $0x274] sm:$0xf0]  ;;  %28444 = vst [vmem:[#allocation6_spill] sm:$0xff] %v20783_v13  ;;  %v13634_v13 = vld [vmem:[%s28438_s26 + $0xec8] sm:$0xf] }
 0x135   :  { %4223 = vmatpush.bf16.msrb.mxu2 %v13935_v26  ;;  %v17153_v26 = vld [vmem:[%s28438_s26 + $0x1d4] sm:$0xf0] }
 0x136   :  { %4237 = vmatpush.bf16.msrb.mxu3 %v14063_v37  ;;  %v12050_v37 = vld [vmem:[%s28438_s26 + $0x268] sm:$0xf]  ;;  %v11971_v57 = vor.u32 %v17153_v26, %v11970_v24  ;;  %v17101_v15 = vld [vmem:[%s28438_s26 + $0x34] sm:$0xf0] }
 0x137   :  { %4275 = vmatpush.bf16.msrb.mxu0 %v12083_v7  ;;  %v12210_v7 = vld [vmem:[%s28438_s26 + $0x3a8] sm:$0xf]  ;;  %v12051_v61 = vor.u32 %v17173_v42, %v12050_v37  ;;  %v17209_v37 = vld [vmem:[%s28438_s26 + $0x394] sm:$0xf0] }
 0x138   :  { %4247 = vmatpush.bf16.msrb.mxu1 %v11827_v18  ;;  %v12034_v18 = vld [vmem:[%s28438_s26 + $0x248] sm:$0xf] }
 0x139   :  { %4224 = vmatpush.bf16.msrb.mxu2 %v13919_v12  ;;  %v17213_v12 = vld [vmem:[%s28438_s26 + $0x3b4] sm:$0xf0]  ;;  %v11778_v26 = vld [vmem:[%s28438_s26 + $0x48] sm:$0xf] }
 0x13a   :  { %4238 = vmatpush.bf16.msrb.mxu3 %v14047_v14  ;;  %v3961_v14 = vadd.f32 %v3960_v51, %v3947_v55  ;;  %v12211_v24 = vor.u32 %v17213_v12, %v12210_v7  ;;  %v17165_v51 = vld [vmem:[%s28438_s26 + $0x234] sm:$0xf0]  ;;  %v11779_v55 = vor.u32 %v17105_v27, %v11778_v26  ;;  %v11922_v7 = vld [vmem:[%s28438_s26 + $0x168] sm:$0xf] }
 0x13b   :  { %4276 = vmatpush.bf16.msrb.mxu0 %v12067_v30  ;;  %v12194_v30 = vld [vmem:[%s28438_s26 + $0x388] sm:$0xf]  ;;  %v20811_v45 = vpop.f32.mrf.mxu2  ;;  %v17141_v12 = vld [vmem:[%s28438_s26 + $0x174] sm:$0xf0] }
 0x13c   :  { %4225 = vmatmul.bf16.vlgmr.msrb.gmra.mxu2 %v19850_v54  ;;  %4248 = vmatpush.bf16.msrb.mxu1 %v11811_v49  ;;  %v20791_v22 = vadd.f32 %v3974_v25, %v3961_v14  ;;  %v17145_v25 = vld [vmem:[%s28438_s26 + $0x194] sm:$0xf0]  ;;  %28446 = vst [vmem:[#allocation8_spill] sm:$0xff] %v20811_v45  ;;  %v12018_v49 = vld [vmem:[%s28438_s26 + $0x228] sm:$0xf] }
 0x13d   :  { %4287 = vmatpush.bf16.msra.mxu2 %v12243_v21  ;;  %v11795_v21 = vor.u32 %v17109_v3, %v11794_v2  ;;  %v11939_v2 = vor.u32 %v17145_v25, %v11938_v29  ;;  %v12195_v3 = vor.u32 %v17209_v37, %v12194_v30  ;;  %v17205_v14 = vld [vmem:[%s28438_s26 + $0x374] sm:$0xf0]  ;;  %v12626_v27 = vld [vmem:[%s28438_s26 + $0x6e8] sm:$0xf]  ;;  %v11923_v25 = vor.u32 %v17141_v12, %v11922_v7 }
 0x13e   :  { %4259 = vmatpush.bf16.msra.mxu3 %v11987_v19  ;;  %v17169_v19 = vld [vmem:[%s28438_s26 + $0x254] sm:$0xf0]  ;;  %28445 = vst [vmem:[#allocation7_spill] sm:$0xff] %v20791_v22  ;;  %v11746_v37 = vld [vmem:[%s28438_s26 + $0x8] sm:$0xf] }
 0x13f   :  { %4277 = vmatpush.bf16.msrb.mxu0 %v12051_v61  ;;  %v12035_v42 = vor.u32 %v17169_v19, %v12034_v18  ;;  %v12178_v61 = vld [vmem:[%s28438_s26 + $0x368] sm:$0xf]  ;;  %v12019_v18 = vor.u32 %v17165_v51, %v12018_v49  ;;  %v3988_v19 = vpop.f32.mrf.mxu3  ;;  %v17317_v29 = vld [vmem:[%s28438_s26 + $0x6f4] sm:$0xf0] }
 0x140   :  { %4249 = vmatpush.bf16.msrb.mxu1 %v11795_v21  ;;  %v12002_v21 = vld [vmem:[%s28438_s26 + $0x208] sm:$0xf]  ;;  %v12179_v30 = vor.u32 %v17205_v14, %v12178_v61  ;;  %v17137_v51 = vld [vmem:[%s28438_s26 + $0x154] sm:$0xf0]  ;;  %v12627_v7 = vor.u32 %v17317_v29, %v12626_v27 }
 0x141   :  { %4288 = vmatpush.bf16.msra.mxu2 %v12227_v63  ;;  %14089 = vmatmul.msk.bf16.vlgmr.msrb.gmra.mxu3 %vm3709_vm0, %v19751_v53  ;;  %v11906_v49 = vld [vmem:[%s28438_s26 + $0x148] sm:$0xf]  ;;  %v17133_v29 = vld [vmem:[%s28438_s26 + $0x134] sm:$0xf0] }
 0x142   :  { %4260 = vmatpush.bf16.msra.mxu3 %v11971_v57  ;;  %v20822_v57 = vld [vmem:[%s28415_s3] sm:$0xf]  ;;  %v12610_v14 = vld [vmem:[%s28438_s26 + $0x6c8] sm:$0xf]  ;;  %v17241_v22 = vld [vmem:[%s28438_s26 + $0x494] sm:$0xf0] }
 0x143   :  { %v28433_v63 = vperm.slane %v20822_v57, 1  ;;  %4278 = vmatpush.bf16.msrb.mxu0 %v12035_v42  ;;  %v17097_v42 = vld [vmem:[%s28438_s26 + $0x14] sm:$0xf0]  ;;  %v4002_v12 = vpop.f32.mrf.mxu2  ;;  %v11890_v27 = vld [vmem:[%s28438_s26 + $0x128] sm:$0xf] }
 0x144   :  { %4250 = vmatpush.bf16.msrb.mxu1 %v11779_v55  ;;  %v12162_v55 = vld [vmem:[%s28438_s26 + $0x348] sm:$0xf]  ;;  %v11747_v61 = vor.u32 %v17097_v42, %v11746_v37 }
 0x145   :  { %4289 = vmatpush.bf16.msra.mxu2 %v12211_v24  ;;  %v11763_v24 = vor.u32 %v17101_v15, %v11762_v6  ;;  %v3989_v26 = vadd.f32 %v3988_v19, %v28433_v63  ;;  %v12370_v6 = vld [vmem:[%s28438_s26 + $0x4e8] sm:$0xf]  ;;  %v17253_v15 = vld [vmem:[%s28438_s26 + $0x4f4] sm:$0xf0] }
 0x146   :  { %4261 = vmatpush.bf16.msra.mxu3 %v11955_v23  ;;  %v17161_v23 = vld [vmem:[%s28438_s26 + $0x214] sm:$0xf0]  ;;  %v12146_v37 = vld [vmem:[%s28438_s26 + $0x328] sm:$0xf] }
 0x147   :  { %4279 = vmatpush.bf16.msrb.mxu0 %v12019_v18  ;;  %v17313_v18 = vld [vmem:[%s28438_s26 + $0x6d4] sm:$0xf0]  ;;  %v20889_v19 = vadd.f32 %v4002_v12, %v3989_v26 }
 0x148   :  { %4251 = vmatpush.bf16.msrb.mxu1 %v11763_v24  ;;  %v12371_v24 = vor.u32 %v17253_v15, %v12370_v6  ;;  %v17197_v26 = vld [vmem:[%s28438_s26 + $0x334] sm:$0xf0]  ;;  %v12611_v42 = vor.u32 %v17313_v18, %v12610_v14  ;;  %v11874_v6 = vld [vmem:[%s28438_s26 + $0x108] sm:$0xf] }
 0x149   :  { %4290 = vmatpush.bf16.msra.mxu2 %v12195_v3  ;;  %v12003_v3 = vor.u32 %v17161_v23, %v12002_v21  ;;  %v11907_v21 = vor.u32 %v17137_v51, %v11906_v49  ;;  %v12594_v49 = vld [vmem:[%s28438_s26 + $0x6a8] sm:$0xf]  ;;  %v17309_v51 = vld [vmem:[%s28438_s26 + $0x6b4] sm:$0xf0] }
 0x14a   :  { %4262 = vmatpush.bf16.msra.mxu3 %v11939_v2  ;;  %v17201_v2 = vld [vmem:[%s28438_s26 + $0x354] sm:$0xf0]  ;;  %v12338_v14 = vld [vmem:[%s28438_s26 + $0x4a8] sm:$0xf] }
 0x14b   :  { %v12163_v23 = vor.u32 %v17201_v2, %v12162_v55  ;;  %4280 = vmatpush.bf16.msrb.mxu0 %v12003_v3  ;;  %v20915_v55 = vpop.f32.mrf.mxu0  ;;  %v11891_v2 = vor.u32 %v17133_v29, %v11890_v27  ;;  %v12147_v3 = vor.u32 %v17197_v26, %v12146_v37  ;;  %v17129_v15 = vld [vmem:[%s28438_s26 + $0x114] sm:$0xf0]  ;;  %v12595_v29 = vor.u32 %v17309_v51, %v12594_v49  ;;  %v12578_v26 = vld [vmem:[%s28438_s26 + $0x688] sm:$0xf]  ;;  %v20957_v51 = vpop.f32.mrf.mxu3 }
 0x14c   :  { %4252 = vmatpush.bf16.msrb.mxu1 %v11747_v61  ;;  %28447 = vst [vmem:[#allocation9_spill] sm:$0xff] %v20915_v55  ;;  %v17193_v61 = vld [vmem:[%s28438_s26 + $0x314] sm:$0xf0] }
 0x14d   :  { %4291 = vmatpush.bf16.msra.mxu2 %v12179_v30  ;;  %v17249_v30 = vld [vmem:[%s28438_s26 + $0x4d4] sm:$0xf0] }
 0x14e   :  { %4263 = vmatpush.bf16.msra.mxu3 %v11923_v25  ;;  %v12354_v25 = vld [vmem:[%s28438_s26 + $0x4c8] sm:$0xf]  ;;  %v17245_v18 = vld [vmem:[%s28438_s26 + $0x4b4] sm:$0xf0]  ;;  %4281 = vmatmul.bf16.vlgmr.msrb.gmra.mxu0 %v18952_v1 }
 0x14f   :  { %4329 = vmatpush.bf16.msra.mxu0 %v12627_v7  ;;  %v12130_v7 = vld [vmem:[%s28438_s26 + $0x308] sm:$0xf]  ;;  %v12355_v12 = vor.u32 %v17249_v30, %v12354_v25  ;;  %v17285_v27 = vld [vmem:[%s28438_s26 + $0x5f4] sm:$0xf0]  ;;  %4253 = vmatmul.bf16.vlgmr.msrb.gmra.mxu1 %v18938_v58  ;;  %v11875_v30 = vor.u32 %v17129_v15, %v11874_v6  ;;  %v12339_v49 = vor.u32 %v17245_v18, %v12338_v14 }
 0x150   :  { %4301 = vmatpush.bf16.msra.mxu1 %v12371_v24  ;;  %v12754_v24 = vld [vmem:[%s28438_s26 + $0x7e8] sm:$0xf]  ;;  %v17349_v37 = vld [vmem:[%s28438_s26 + $0x7f4] sm:$0xf0] }
 0x151   :  { %4292 = vmatpush.bf16.msra.mxu2 %v12163_v23  ;;  %v12498_v23 = vld [vmem:[%s28438_s26 + $0x5e8] sm:$0xf]  ;;  %v17305_v25 = vld [vmem:[%s28438_s26 + $0x694] sm:$0xf0]  ;;  %v12755_v45 = vor.u32 %v17349_v37, %v12754_v24 }
 0x152   :  { %4264 = vmatpush.bf16.msra.mxu3 %v11907_v21  ;;  %v20936_v21 = vpop.f32.mrf.mxu1  ;;  %v12499_v63 = vor.u32 %v17285_v27, %v12498_v23  ;;  %v12738_v6 = vld [vmem:[%s28438_s26 + $0x7c8] sm:$0xf]  ;;  %v12579_v15 = vor.u32 %v17305_v25, %v12578_v26  ;;  %v12323_v23 = vor.u32 %v17241_v22, %v12322_v16  ;;  %v17277_v16 = vld [vmem:[%s28438_s26 + $0x5b4] sm:$0xf0] }
 0x153   :  { %28448 = vst [vmem:[#allocation10_spill] sm:$0xff] %v20936_v21  ;;  %4330 = vmatpush.bf16.msra.mxu0 %v12611_v42  ;;  %v12131_v42 = vor.u32 %v17193_v61, %v12130_v7  ;;  %v17345_v7 = vld [vmem:[%s28438_s26 + $0x7d4] sm:$0xf0]  ;;  %v4016_v14 = vpop.f32.mrf.mxu0  ;;  %v12306_v24 = vld [vmem:[%s28438_s26 + $0x468] sm:$0xf] }
 0x154   :  { %4302 = vmatpush.bf16.msra.mxu1 %v12355_v12  ;;  %v12562_v12 = vld [vmem:[%s28438_s26 + $0x668] sm:$0xf]  ;;  %v17301_v61 = vld [vmem:[%s28438_s26 + $0x674] sm:$0xf0]  ;;  %v4017_v18 = vadd.f32 %v4016_v14, %v20889_v19  ;;  %v12739_v26 = vor.u32 %v17345_v7, %v12738_v6 }
 0x155   :  { %4293 = vmatpush.bf16.msra.mxu2 %v12147_v3  ;;  %v17281_v3 = vld [vmem:[%s28438_s26 + $0x5d4] sm:$0xf0]  ;;  %v12722_v22 = vld [vmem:[%s28438_s26 + $0x7a8] sm:$0xf]  ;;  %v12563_v19 = vor.u32 %v17301_v61, %v12562_v12 }
 0x156   :  { %4265 = vmatpush.bf16.msra.mxu3 %v11891_v2  ;;  %v12482_v2 = vld [vmem:[%s28438_s26 + $0x5c8] sm:$0xf]  ;;  %v17233_v6 = vld [vmem:[%s28438_s26 + $0x454] sm:$0xf0] }
 0x157   :  { %4331 = vmatpush.bf16.msra.mxu0 %v12595_v29  ;;  %v12483_v27 = vor.u32 %v17281_v3, %v12482_v2  ;;  %v17237_v29 = vld [vmem:[%s28438_s26 + $0x474] sm:$0xf0]  ;;  %v12290_v3 = vld [vmem:[%s28438_s26 + $0x448] sm:$0xf] }
 0x158   :  { %4303 = vmatpush.bf16.msra.mxu1 %v12339_v49  ;;  %v12307_v49 = vor.u32 %v17237_v29, %v12306_v24  ;;  %v12450_v12 = vld [vmem:[%s28438_s26 + $0x588] sm:$0xf]  ;;  %v17273_v61 = vld [vmem:[%s28438_s26 + $0x594] sm:$0xf0] }
 0x159   :  { %4294 = vmatpush.bf16.msra.mxu2 %v12131_v42  ;;  %v17297_v42 = vld [vmem:[%s28438_s26 + $0x654] sm:$0xf0]  ;;  %v12706_v14 = vld [vmem:[%s28438_s26 + $0x788] sm:$0xf] }
 0x15a   :  { %4266 = vmatpush.bf16.msra.mxu3 %v11875_v30  ;;  %v4030_v37 = vpop.f32.mrf.mxu1  ;;  %v12546_v30 = vld [vmem:[%s28438_s26 + $0x648] sm:$0xf]  ;;  %v17293_v29 = vld [vmem:[%s28438_s26 + $0x634] sm:$0xf0] }
 0x15b   :  { %4332 = vmatpush.bf16.msra.mxu0 %v12579_v15  ;;  %v4031_v25 = vadd.f32 %v4030_v37, %v4017_v18  ;;  %v21016_v15 = vpop.f32.mrf.mxu2  ;;  %v12547_v18 = vor.u32 %v17297_v42, %v12546_v30  ;;  %v12530_v24 = vld [vmem:[%s28438_s26 + $0x628] sm:$0xf]  ;;  %v17365_v55 = vld [vmem:[%s28438_s26 + $0x874] sm:$0xf0] }
 0x15c   :  { %4295 = vmatmul.bf16.vlgmr.msra.gmra.mxu2 %v18988_v17  ;;  %4304 = vmatpush.bf16.msra.mxu1 %v12323_v23  ;;  %v4044_v23 = vpop.f32.mrf.mxu3  ;;  %v12690_v30 = vld [vmem:[%s28438_s26 + $0x768] sm:$0xf]  ;;  %v12531_v42 = vor.u32 %v17293_v29, %v12530_v24  ;;  %v17265_v24 = vld [vmem:[%s28438_s26 + $0x554] sm:$0xf0] }
 0x15d   :  { %4343 = vmatpush.bf16.msrb.mxu2 %v12755_v45  ;;  %v17341_v45 = vld [vmem:[%s28438_s26 + $0x7b4] sm:$0xf0]  ;;  %4267 = vmatmul.bf16.vlgmr.msra.gmra.mxu3 %v18974_v10  ;;  %v4045_v37 = vadd.f32 %v4044_v23, %v4031_v25  ;;  %v12674_v29 = vld [vmem:[%s28438_s26 + $0x748] sm:$0xf] }
 0x15e   :  { %4315 = vmatpush.bf16.msrb.mxu3 %v12499_v63  ;;  %v12466_v63 = vld [vmem:[%s28438_s26 + $0x5a8] sm:$0xf]  ;;  %v12723_v7 = vor.u32 %v17341_v45, %v12722_v22  ;;  %v17229_v22 = vld [vmem:[%s28438_s26 + $0x434] sm:$0xf0] }
 0x15f   :  { %v12467_v2 = vor.u32 %v17277_v16, %v12466_v63  ;;  %4333 = vmatpush.bf16.msra.mxu0 %v12563_v19  ;;  %v12451_v63 = vor.u32 %v17273_v61, %v12450_v12  ;;  %v12274_v16 = vld [vmem:[%s28438_s26 + $0x428] sm:$0xf]  ;;  %v17269_v25 = vld [vmem:[%s28438_s26 + $0x574] sm:$0xf0] }
 0x160   :  { %4305 = vmatpush.bf16.msra.mxu1 %v12307_v49  ;;  %v12434_v45 = vld [vmem:[%s28438_s26 + $0x568] sm:$0xf]  ;;  %v17333_v49 = vld [vmem:[%s28438_s26 + $0x774] sm:$0xf0]  ;;  %v12275_v12 = vor.u32 %v17229_v22, %v12274_v16 }
 0x161   :  { %4344 = vmatpush.bf16.msrb.mxu2 %v12739_v26  ;;  %v12291_v26 = vor.u32 %v17233_v6, %v12290_v3  ;;  %v17289_v3 = vld [vmem:[%s28438_s26 + $0x614] sm:$0xf0]  ;;  %v13138_v6 = vld [vmem:[%s28438_s26 + $0xae8] sm:$0xf]  ;;  %v12435_v61 = vor.u32 %v17269_v25, %v12434_v45  ;;  %v12691_v23 = vor.u32 %v17333_v49, %v12690_v30 }
 0x162   :  { %4316 = vmatpush.bf16.msrb.mxu3 %v12483_v27  ;;  %v17337_v27 = vld [vmem:[%s28438_s26 + $0x794] sm:$0xf0]  ;;  %v12882_v16 = vld [vmem:[%s28438_s26 + $0x8e8] sm:$0xf] }
 0x163   :  { %v12707_v19 = vor.u32 %v17337_v27, %v12706_v14  ;;  %4334 = vmatpush.bf16.msra.mxu0 %v12547_v18  ;;  %v12258_v14 = vld [vmem:[%s28438_s26 + $0x408] sm:$0xf]  ;;  %v17225_v18 = vld [vmem:[%s28438_s26 + $0x414] sm:$0xf0]  ;;  %v4058_v45 = vpop.f32.mrf.mxu2 }
 0x164   :  { %4306 = vmatpush.bf16.msra.mxu1 %v12291_v26  ;;  %v12418_v27 = vld [vmem:[%s28438_s26 + $0x548] sm:$0xf]  ;;  %v17381_v22 = vld [vmem:[%s28438_s26 + $0x8f4] sm:$0xf0]  ;;  %v12259_v49 = vor.u32 %v17225_v18, %v12258_v14 }
 0x165   :  { %4345 = vmatpush.bf16.msrb.mxu2 %v12723_v7  ;;  %v17445_v7 = vld [vmem:[%s28438_s26 + $0xaf4] sm:$0xf0]  ;;  %v13122_v25 = vld [vmem:[%s28438_s26 + $0xac8] sm:$0xf]  ;;  %v12883_v21 = vor.u32 %v17381_v22, %v12882_v16 }
 0x166   :  { %4317 = vmatpush.bf16.msrb.mxu3 %v12467_v2  ;;  %v12514_v2 = vld [vmem:[%s28438_s26 + $0x608] sm:$0xf]  ;;  %v17441_v30 = vld [vmem:[%s28438_s26 + $0xad4] sm:$0xf0] }
 0x167   :  { %4335 = vmatpush.bf16.msra.mxu0 %v12531_v42  ;;  %v12515_v26 = vor.u32 %v17289_v3, %v12514_v2  ;;  %v21096_v42 = vadd.f32 %v4058_v45, %v4045_v37  ;;  %v12419_v2 = vor.u32 %v17265_v24, %v12418_v27  ;;  %v17325_v37 = vld [vmem:[%s28438_s26 + $0x734] sm:$0xf0]  ;;  %v13123_v18 = vor.u32 %v17441_v30, %v13122_v25  ;;  %v12642_v45 = vld [vmem:[%s28438_s26 + $0x708] sm:$0xf] }
 0x168   :  { %4307 = vmatpush.bf16.msra.mxu1 %v12275_v12  ;;  %v12658_v12 = vld [vmem:[%s28438_s26 + $0x728] sm:$0xf]  ;;  %v17377_v14 = vld [vmem:[%s28438_s26 + $0x8d4] sm:$0xf0] }
 0x169   :  { %4346 = vmatpush.bf16.msrb.mxu2 %v12707_v19  ;;  %v13139_v19 = vor.u32 %v17445_v7, %v13138_v6  ;;  %v12402_v6 = vld [vmem:[%s28438_s26 + $0x528] sm:$0xf]  ;;  %v17261_v7 = vld [vmem:[%s28438_s26 + $0x534] sm:$0xf0]  ;;  %v12659_v16 = vor.u32 %v17325_v37, %v12658_v12 }
 0x16a   :  { %4318 = vmatpush.bf16.msrb.mxu3 %v12451_v63  ;;  %v17329_v63 = vld [vmem:[%s28438_s26 + $0x754] sm:$0xf0]  ;;  %v12403_v24 = vor.u32 %v17261_v7, %v12402_v6  ;;  %v12850_v30 = vld [vmem:[%s28438_s26 + $0x8a8] sm:$0xf] }
 0x16b   :  { %v12675_v3 = vor.u32 %v17329_v63, %v12674_v29  ;;  %4336 = vmatpush.bf16.msra.mxu0 %v12515_v26  ;;  %v17437_v27 = vld [vmem:[%s28438_s26 + $0xab4] sm:$0xf0]  ;;  %v12386_v29 = vld [vmem:[%s28438_s26 + $0x508] sm:$0xf]  ;;  %v21125_v26 = vpop.f32.mrf.mxu0  ;;  %v21127_v63 = vpop.f32.mrf.mxu1 }
 0x16c   :  { %4308 = vmatpush.bf16.msra.mxu1 %v12259_v49  ;;  %v17321_v25 = vld [vmem:[%s28438_s26 + $0x714] sm:$0xf0]  ;;  %v13010_v49 = vld [vmem:[%s28438_s26 + $0x9e8] sm:$0xf] }
 0x16d   :  { %4347 = vmatpush.bf16.msrb.mxu2 %v12691_v23  ;;  %v13106_v23 = vld [vmem:[%s28438_s26 + $0xaa8] sm:$0xf]  ;;  %v17477_v7 = vld [vmem:[%s28438_s26 + $0xbf4] sm:$0xf0] }
 0x16e   :  { %4319 = vmatpush.bf16.msrb.mxu3 %v12435_v61  ;;  %v12866_v61 = vld [vmem:[%s28438_s26 + $0x8c8] sm:$0xf]  ;;  %4337 = vmatmul.bf16.vlgmr.msra.gmra.mxu0 %v19171_v43 }
 0x16f   :  { %4385 = vmatpush.bf16.msrb.mxu0 %v13139_v19  ;;  %v12867_v22 = vor.u32 %v17377_v14, %v12866_v61  ;;  %v17257_v19 = vld [vmem:[%s28438_s26 + $0x514] sm:$0xf0]  ;;  %4309 = vmatmul.bf16.vlgmr.msra.gmra.mxu1 %v19160_v39  ;;  %v13266_v6 = vld [vmem:[%s28438_s26 + $0xbe8] sm:$0xf]  ;;  %v12643_v14 = vor.u32 %v17321_v25, %v12642_v45 }
 0x170   :  { %4357 = vmatpush.bf16.msrb.mxu1 %v12883_v21  ;;  %v17373_v21 = vld [vmem:[%s28438_s26 + $0x8b4] sm:$0xf0]  ;;  %v12387_v12 = vor.u32 %v17257_v19, %v12386_v29  ;;  %v13090_v37 = vld [vmem:[%s28438_s26 + $0xa88] sm:$0xf] }
 0x171   :  { %4348 = vmatpush.bf16.msrb.mxu2 %v12675_v3  ;;  %v17413_v3 = vld [vmem:[%s28438_s26 + $0x9f4] sm:$0xf0]  ;;  %v12994_v19 = vld [vmem:[%s28438_s26 + $0x9c8] sm:$0xf] }
 0x172   :  { %4320 = vmatpush.bf16.msrb.mxu3 %v12419_v2  ;;  %v13107_v2 = vor.u32 %v17437_v27, %v13106_v23  ;;  %v17433_v61 = vld [vmem:[%s28438_s26 + $0xa94] sm:$0xf0]  ;;  %v13011_v23 = vor.u32 %v17413_v3, %v13010_v49  ;;  %v13267_v27 = vor.u32 %v17477_v7, %v13266_v6 }
 0x173   :  { %4386 = vmatpush.bf16.msrb.mxu0 %v13123_v18  ;;  %v12851_v18 = vor.u32 %v17373_v21, %v12850_v30  ;;  %v17369_v29 = vld [vmem:[%s28438_s26 + $0x894] sm:$0xf0]  ;;  %v13091_v25 = vor.u32 %v17433_v61, %v13090_v37  ;;  %v21182_v30 = vpop.f32.mrf.mxu3  ;;  %v13074_v21 = vld [vmem:[%s28438_s26 + $0xa68] sm:$0xf]  ;;  %v4086_v6 = vpop.f32.mrf.mxu1 }
 0x174   :  { %4358 = vmatpush.bf16.msrb.mxu1 %v12867_v22  ;;  %v13250_v22 = vld [vmem:[%s28438_s26 + $0xbc8] sm:$0xf]  ;;  %v17473_v45 = vld [vmem:[%s28438_s26 + $0xbd4] sm:$0xf0] }
 0x175   :  { %4349 = vmatpush.bf16.msrb.mxu2 %v12659_v16  ;;  %v17409_v16 = vld [vmem:[%s28438_s26 + $0x9d4] sm:$0xf0]  ;;  %v13251_v61 = vor.u32 %v17473_v45, %v13250_v22 }
 0x176   :  { %4321 = vmatpush.bf16.msrb.mxu3 %v12403_v24  ;;  %v12834_v24 = vld [vmem:[%s28438_s26 + $0x888] sm:$0xf]  ;;  %v17429_v49 = vld [vmem:[%s28438_s26 + $0xa74] sm:$0xf0]  ;;  %v12995_v37 = vor.u32 %v17409_v16, %v12994_v19 }
 0x177   :  { %4387 = vmatpush.bf16.msrb.mxu0 %v13107_v2  ;;  %v4072_v2 = vpop.f32.mrf.mxu0  ;;  %v12835_v3 = vor.u32 %v17369_v29, %v12834_v24  ;;  %v13058_v29 = vld [vmem:[%s28438_s26 + $0xa48] sm:$0xf]  ;;  %v17425_v19 = vld [vmem:[%s28438_s26 + $0xa54] sm:$0xf0] }
 0x178   :  { %4359 = vmatpush.bf16.msrb.mxu1 %v12851_v18  ;;  %v4073_v7 = vadd.f32 %v4072_v2, %v21096_v42  ;;  %v17405_v42 = vld [vmem:[%s28438_s26 + $0x9b4] sm:$0xf0]  ;;  %v13234_v18 = vld [vmem:[%s28438_s26 + $0xba8] sm:$0xf] }
 0x179   :  { %4350 = vmatpush.bf16.msrb.mxu2 %v12643_v14  ;;  %v12978_v14 = vld [vmem:[%s28438_s26 + $0x9a8] sm:$0xf] }
 0x17a   :  { %4322 = vmatpush.bf16.msrb.mxu3 %v12387_v12  ;;  %v12818_v12 = vld [vmem:[%s28438_s26 + $0x868] sm:$0xf]  ;;  %v4087_v24 = vadd.f32 %v4086_v6, %v4073_v7  ;;  %v12979_v22 = vor.u32 %v17405_v42, %v12978_v14  ;;  %v13059_v6 = vor.u32 %v17425_v19, %v13058_v29  ;;  %v21235_v7 = vpop.f32.mrf.mxu2  ;;  %v17357_v29 = vld [vmem:[%s28438_s26 + $0x834] sm:$0xf0] }
 0x17b   :  { %4388 = vmatpush.bf16.msrb.mxu0 %v13091_v25  ;;  %v12819_v16 = vor.u32 %v17365_v55, %v12818_v12  ;;  %v12802_v25 = vld [vmem:[%s28438_s26 + $0x848] sm:$0xf]  ;;  %v17401_v55 = vld [vmem:[%s28438_s26 + $0x994] sm:$0xf0] }
 0x17c   :  { %4351 = vmatmul.bf16.vlgmr.msrb.gmra.mxu2 %v19181_v47  ;;  %4360 = vmatpush.bf16.msrb.mxu1 %v12835_v3  ;;  %v13218_v2 = vld [vmem:[%s28438_s26 + $0xb88] sm:$0xf]  ;;  %v17465_v3 = vld [vmem:[%s28438_s26 + $0xb94] sm:$0xf0] }
 0x17d   :  { %4399 = vmatpush.bf16.msra.mxu2 %v13267_v27  ;;  %4323 = vmatmul.bf16.vlgmr.msrb.gmra.mxu3 %v19173_v44  ;;  %v13075_v27 = vor.u32 %v17429_v49, %v13074_v21  ;;  %v17361_v21 = vld [vmem:[%s28438_s26 + $0x854] sm:$0xf0]  ;;  %v12962_v49 = vld [vmem:[%s28438_s26 + $0x988] sm:$0xf] }
 0x17e   :  { %4371 = vmatpush.bf16.msra.mxu3 %v13011_v23  ;;  %v17469_v23 = vld [vmem:[%s28438_s26 + $0xbb4] sm:$0xf0]  ;;  %v12803_v42 = vor.u32 %v17361_v21, %v12802_v25  ;;  %v12946_v19 = vld [vmem:[%s28438_s26 + $0x968] sm:$0xf] }
 0x17f   :  { %v13235_v45 = vor.u32 %v17469_v23, %v13234_v18  ;;  %4389 = vmatpush.bf16.msrb.mxu0 %v13075_v27  ;;  %v17421_v12 = vld [vmem:[%s28438_s26 + $0xa34] sm:$0xf0]  ;;  %v12963_v18 = vor.u32 %v17401_v55, %v12962_v49  ;;  %v13219_v23 = vor.u32 %v17465_v3, %v13218_v2  ;;  %v12786_v27 = vld [vmem:[%s28438_s26 + $0x828] sm:$0xf] }
 0x180   :  { %4361 = vmatpush.bf16.msrb.mxu1 %v12819_v16  ;;  %v13202_v16 = vld [vmem:[%s28438_s26 + $0xb68] sm:$0xf]  ;;  %v17417_v21 = vld [vmem:[%s28438_s26 + $0xa14] sm:$0xf0]  ;;  %v12787_v49 = vor.u32 %v17357_v29, %v12786_v27 }
 0x181   :  { %4400 = vmatpush.bf16.msra.mxu2 %v13251_v61  ;;  %v13042_v61 = vld [vmem:[%s28438_s26 + $0xa28] sm:$0xf]  ;;  %v17573_v2 = vld [vmem:[%s28438_s26 + $0xef4] sm:$0xf0] }
 0x182   :  { %4372 = vmatpush.bf16.msra.mxu3 %v12995_v37  ;;  %v4100_v37 = vpop.f32.mrf.mxu3  ;;  %v13026_v25 = vld [vmem:[%s28438_s26 + $0xa08] sm:$0xf]  ;;  %v4114_v29 = vpop.f32.mrf.mxu2 }
 0x183   :  { %v4101_v14 = vadd.f32 %v4100_v37, %v4087_v24  ;;  %4390 = vmatpush.bf16.msrb.mxu0 %v13059_v6  ;;  %v17397_v24 = vld [vmem:[%s28438_s26 + $0x974] sm:$0xf0]  ;;  %v13650_v55 = vld [vmem:[%s28438_s26 + $0xee8] sm:$0xf]  ;;  %v13027_v27 = vor.u32 %v17417_v21, %v13026_v25 }
 0x184   :  { %4362 = vmatpush.bf16.msrb.mxu1 %v12803_v42  ;;  %v12947_v3 = vor.u32 %v17397_v24, %v12946_v19  ;;  %v12770_v37 = vld [vmem:[%s28438_s26 + $0x808] sm:$0xf]  ;;  %v17393_v42 = vld [vmem:[%s28438_s26 + $0x954] sm:$0xf0] }
 0x185   :  { %4401 = vmatpush.bf16.msra.mxu2 %v13235_v45  ;;  %v13043_v45 = vor.u32 %v17421_v12, %v13042_v61  ;;  %v17353_v61 = vld [vmem:[%s28438_s26 + $0x814] sm:$0xf0]  ;;  %v12930_v12 = vld [vmem:[%s28438_s26 + $0x948] sm:$0xf] }
 0x186   :  { %4373 = vmatpush.bf16.msra.mxu3 %v12979_v22  ;;  %v17461_v22 = vld [vmem:[%s28438_s26 + $0xb74] sm:$0xf0]  ;;  %v13394_v19 = vld [vmem:[%s28438_s26 + $0xce8] sm:$0xf]  ;;  %v12931_v21 = vor.u32 %v17393_v42, %v12930_v12 }
 0x187   :  { %v13203_v6 = vor.u32 %v17461_v22, %v13202_v16  ;;  %4391 = vmatpush.bf16.msrb.mxu0 %v13043_v45  ;;  %v17509_v24 = vld [vmem:[%s28438_s26 + $0xcf4] sm:$0xf0]  ;;  %v13651_v16 = vor.u32 %v17573_v2, %v13650_v55  ;;  %v21297_v22 = vadd.f32 %v4114_v29, %v4101_v14  ;;  %v12771_v45 = vor.u32 %v17353_v61, %v12770_v37  ;;  %v12914_v55 = vld [vmem:[%s28438_s26 + $0x928] sm:$0xf] }
 0x188   :  { %4363 = vmatpush.bf16.msrb.mxu1 %v12787_v49  ;;  %v17569_v25 = vld [vmem:[%s28438_s26 + $0xed4] sm:$0xf0]  ;;  %v13395_v49 = vor.u32 %v17509_v24, %v13394_v19  ;;  %v13170_v2 = vld [vmem:[%s28438_s26 + $0xb28] sm:$0xf]  ;;  %v21340_v24 = vpop.f32.mrf.mxu1 }
 0x189   :  { %4402 = vmatpush.bf16.msra.mxu2 %v13219_v23  ;;  %v17457_v23 = vld [vmem:[%s28438_s26 + $0xb54] sm:$0xf0]  ;;  %v13635_v61 = vor.u32 %v17569_v25, %v13634_v13  ;;  %v13618_v12 = vld [vmem:[%s28438_s26 + $0xea8] sm:$0xf]  ;;  %28449 = vst [vmem:[#allocation11_spill] sm:$0xff] %v21340_v24 }
 0x18a   :  { %4374 = vmatpush.bf16.msra.mxu3 %v12963_v18  ;;  %v13186_v18 = vld [vmem:[%s28438_s26 + $0xb48] sm:$0xf]  ;;  %v17389_v14 = vld [vmem:[%s28438_s26 + $0x934] sm:$0xf0] }
 0x18b   :  { %v13187_v59 = vor.u32 %v17457_v23, %v13186_v18  ;;  %4392 = vmatpush.bf16.msrb.mxu0 %v13027_v27  ;;  %v17505_v37 = vld [vmem:[%s28438_s26 + $0xcd4] sm:$0xf0]  ;;  %v21329_v18 = vpop.f32.mrf.mxu0  ;;  %v12915_v23 = vor.u32 %v17389_v14, %v12914_v55  ;;  %v12898_v29 = vld [vmem:[%s28438_s26 + $0x908] sm:$0xf] }
 0x18c   :  { %4364 = vmatpush.bf16.msrb.mxu1 %v12771_v45  ;;  %v17565_v42 = vld [vmem:[%s28438_s26 + $0xeb4] sm:$0xf0]  ;;  %v13154_v19 = vld [vmem:[%s28438_s26 + $0xb08] sm:$0xf] }
 0x18d   :  { %4403 = vmatpush.bf16.msra.mxu2 %v13203_v6  ;;  %v13378_v6 = vld [vmem:[%s28438_s26 + $0xcc8] sm:$0xf]  ;;  %v17385_v13 = vld [vmem:[%s28438_s26 + $0x914] sm:$0xf0]  ;;  %v13619_v14 = vor.u32 %v17565_v42, %v13618_v12 }
 0x18e   :  { %4375 = vmatpush.bf16.msra.mxu3 %v12947_v3  ;;  %v17453_v3 = vld [vmem:[%s28438_s26 + $0xb34] sm:$0xf0]  ;;  %v13362_v45 = vld [vmem:[%s28438_s26 + $0xca8] sm:$0xf]  ;;  %4393 = vmatmul.bf16.vlgmr.msrb.gmra.mxu0 %v19399_v35 }
 0x18f   :  { %4441 = vmatpush.bf16.msra.mxu0 %v13651_v16  ;;  %v13171_v27 = vor.u32 %v17453_v3, %v13170_v2  ;;  %v13379_v16 = vor.u32 %v17505_v37, %v13378_v6  ;;  %v17501_v25 = vld [vmem:[%s28438_s26 + $0xcb4] sm:$0xf0]  ;;  %4365 = vmatmul.bf16.vlgmr.msrb.gmra.mxu1 %v19388_v31  ;;  %v13602_v3 = vld [vmem:[%s28438_s26 + $0xe88] sm:$0xf]  ;;  %v12899_v37 = vor.u32 %v17385_v13, %v12898_v29 }
 0x190   :  { %4413 = vmatpush.bf16.msra.mxu1 %v13395_v49  ;;  %v17541_v55 = vld [vmem:[%s28438_s26 + $0xdf4] sm:$0xf0]  ;;  %v13778_v49 = vld [vmem:[%s28438_s26 + $0xfe8] sm:$0xf]  ;;  %v13363_v34 = vor.u32 %v17501_v25, %v13362_v45 }
 0x191   :  { %4404 = vmatpush.bf16.msra.mxu2 %v13187_v59  ;;  %v17449_v59 = vld [vmem:[%s28438_s26 + $0xb14] sm:$0xf0]  ;;  %v13346_v12 = vld [vmem:[%s28438_s26 + $0xc88] sm:$0xf] }
 0x192   :  { %4376 = vmatpush.bf16.msra.mxu3 %v12931_v21  ;;  %v13522_v21 = vld [vmem:[%s28438_s26 + $0xde8] sm:$0xf]  ;;  %v17605_v2 = vld [vmem:[%s28438_s26 + $0xff4] sm:$0xf0] }
 0x193   :  { %4442 = vmatpush.bf16.msra.mxu0 %v13635_v61  ;;  %v17561_v6 = vld [vmem:[%s28438_s26 + $0xe94] sm:$0xf0]  ;;  %v13155_v61 = vor.u32 %v17449_v59, %v13154_v19  ;;  %v13523_v33 = vor.u32 %v17541_v55, %v13522_v21  ;;  %v13779_v24 = vor.u32 %v17605_v2, %v13778_v49  ;;  %v13762_v29 = vld [vmem:[%s28438_s26 + $0xfc8] sm:$0xf]  ;;  %v21386_v19 = vpop.f32.mrf.mxu3  ;;  %v4128_v25 = vpop.f32.mrf.mxu0 }
 0x194   :  { %4414 = vmatpush.bf16.msra.mxu1 %v13379_v16  ;;  %v17497_v42 = vld [vmem:[%s28438_s26 + $0xc94] sm:$0xf0]  ;;  %v13603_v13 = vor.u32 %v17561_v6, %v13602_v3  ;;  %28450 = vst [vmem:[#allocation12_spill] sm:$0xff] %v21386_v19  ;;  %v13586_v59 = vld [vmem:[%s28438_s26 + $0xe68] sm:$0xf]  ;;  %v4129_v21 = vadd.f32 %v4128_v25, %v21297_v22  ;;  %v4142_v49 = vpop.f32.mrf.mxu1 }
 0x195   :  { %4405 = vmatpush.bf16.msra.mxu2 %v13171_v27  ;;  %v17537_v27 = vld [vmem:[%s28438_s26 + $0xdd4] sm:$0xf0]  ;;  %v13347_v55 = vor.u32 %v17497_v42, %v13346_v12  ;;  %v13330_v2 = vld [vmem:[%s28438_s26 + $0xc68] sm:$0xf] }
 0x196   :  { %4377 = vmatpush.bf16.msra.mxu3 %v12915_v23  ;;  %v13506_v23 = vld [vmem:[%s28438_s26 + $0xdc8] sm:$0xf]  ;;  %v17601_v16 = vld [vmem:[%s28438_s26 + $0xfd4] sm:$0xf0] }
 0x197   :  { %4443 = vmatpush.bf16.msra.mxu0 %v13619_v14  ;;  %v17557_v45 = vld [vmem:[%s28438_s26 + $0xe74] sm:$0xf0]  ;;  %v13507_v14 = vor.u32 %v17537_v27, %v13506_v23  ;;  %v13763_v6 = vor.u32 %v17601_v16, %v13762_v29  ;;  %v13746_v22 = vld [vmem:[%s28438_s26 + $0xfa8] sm:$0xf] }
 0x198   :  { %4415 = vmatpush.bf16.msra.mxu1 %v13363_v34  ;;  %v17493_v3 = vld [vmem:[%s28438_s26 + $0xc74] sm:$0xf0]  ;;  %v13570_v12 = vld [vmem:[%s28438_s26 + $0xe48] sm:$0xf] }
 0x199   :  { %4406 = vmatpush.bf16.msra.mxu2 %v13155_v61  ;;  %v17533_v34 = vld [vmem:[%s28438_s26 + $0xdb4] sm:$0xf0]  ;;  %v4143_v61 = vadd.f32 %v4142_v49, %v4129_v21  ;;  %v13331_v23 = vor.u32 %v17493_v3, %v13330_v2  ;;  %v13314_v29 = vld [vmem:[%s28438_s26 + $0xc48] sm:$0xf]  ;;  %v21448_v3 = vpop.f32.mrf.mxu2 }
 0x19a   :  { %4378 = vmatpush.bf16.msra.mxu3 %v12899_v37  ;;  %v13587_v37 = vor.u32 %v17557_v45, %v13586_v59  ;;  %v17553_v42 = vld [vmem:[%s28438_s26 + $0xe54] sm:$0xf0]  ;;  %v13474_v59 = vld [vmem:[%s28438_s26 + $0xd88] sm:$0xf]  ;;  %28451 = vst [vmem:[#allocation13_spill] sm:$0xff] %v21448_v3 }
 0x19b   :  { %4444 = vmatpush.bf16.msra.mxu0 %v13603_v13  ;;  %v17489_v13 = vld [vmem:[%s28438_s26 + $0xc54] sm:$0xf0]  ;;  %v13730_v25 = vld [vmem:[%s28438_s26 + $0xf88] sm:$0xf]  ;;  %v13571_v21 = vor.u32 %v17553_v42, %v13570_v12 }
 0x19c   :  { %4407 = vmatmul.bf16.vlgmr.msra.gmra.mxu2 %v19409_v40  ;;  %4416 = vmatpush.bf16.msra.mxu1 %v13347_v55  ;;  %v17529_v45 = vld [vmem:[%s28438_s26 + $0xd94] sm:$0xf0]  ;;  %v4156_v55 = vpop.f32.mrf.mxu3  ;;  %v13458_v12 = vld [vmem:[%s28438_s26 + $0xd68] sm:$0xf] }
 0x19d   :  { %4455 = vmatpush.bf16.msrb.mxu2 %v13779_v24  ;;  %4379 = vmatmul.bf16.vlgmr.msra.gmra.mxu3 %v19401_v36  ;;  %v17597_v24 = vld [vmem:[%s28438_s26 + $0xfb4] sm:$0xf0]  ;;  %v13714_v42 = vld [vmem:[%s28438_s26 + $0xf68] sm:$0xf] }
 0x19e   :  { %4427 = vmatpush.bf16.msrb.mxu3 %v13523_v33  ;;  %v13490_v33 = vld [vmem:[%s28438_s26 + $0xda8] sm:$0xf]  ;;  %v13747_v16 = vor.u32 %v17597_v24, %v13746_v22  ;;  %v17593_v49 = vld [vmem:[%s28438_s26 + $0xf94] sm:$0xf0] }
 0x19f   :  { %v13491_v27 = vor.u32 %v17533_v34, %v13490_v33  ;;  %4445 = vmatpush.bf16.msra.mxu0 %v13587_v37  ;;  %v17549_v2 = vld [vmem:[%s28438_s26 + $0xe34] sm:$0xf0]  ;;  %v13315_v33 = vor.u32 %v17489_v13, %v13314_v29  ;;  %v13475_v34 = vor.u32 %v17529_v45, %v13474_v59  ;;  %v13298_v22 = vld [vmem:[%s28438_s26 + $0xc28] sm:$0xf]  ;;  %v13731_v24 = vor.u32 %v17593_v49, %v13730_v25 }
 0x1a0   :  { %4417 = vmatpush.bf16.msra.mxu1 %v13331_v23  ;;  %v17485_v37 = vld [vmem:[%s28438_s26 + $0xc34] sm:$0xf0]  ;;  %v13538_v29 = vld [vmem:[%s28438_s26 + $0xe08] sm:$0xf] }
 0x1a1   :  { %4456 = vmatpush.bf16.msrb.mxu2 %v13763_v6  ;;  %v4157_v6 = vadd.f32 %v4156_v55, %v4143_v61  ;;  %v17525_v61 = vld [vmem:[%s28438_s26 + $0xd74] sm:$0xf0]  ;;  %v13299_v45 = vor.u32 %v17485_v37, %v13298_v22  ;;  %v13906_v37 = vld [vmem:[%s28438_s26 + $0x10e8] sm:$0xf] }
 0x1a2   :  { %4428 = vmatpush.bf16.msrb.mxu3 %v13507_v14  ;;  %v13554_v14 = vld [vmem:[%s28438_s26 + $0xe28] sm:$0xf]  ;;  %v17545_v13 = vld [vmem:[%s28438_s26 + $0xe14] sm:$0xf0]  ;;  %v13459_v25 = vor.u32 %v17525_v61, %v13458_v12  ;;  %v4170_v61 = vpop.f32.mrf.mxu2 }
 0x1a3   :  { %4446 = vmatpush.bf16.msra.mxu0 %v13571_v21  ;;  %v13555_v23 = vor.u32 %v17549_v2, %v13554_v14  ;;  %v17681_v59 = vld [vmem:[%s28438_s26 + $0x1254] sm:$0xf0]  ;;  %v13282_v21 = vld [vmem:[%s28438_s26 + $0xc08] sm:$0xf] }
 0x1a4   :  { %4418 = vmatpush.bf16.msra.mxu1 %v13315_v33  ;;  %v17481_v55 = vld [vmem:[%s28438_s26 + $0xc14] sm:$0xf0]  ;;  %v13442_v14 = vld [vmem:[%s28438_s26 + $0xd48] sm:$0xf] }
 0x1a5   :  { %4457 = vmatpush.bf16.msrb.mxu2 %v13747_v16  ;;  %v14082_v16 = vld [vmem:[%s28438_s26 + $0x1248] sm:$0xf]  ;;  %v17521_v2 = vld [vmem:[%s28438_s26 + $0xd54] sm:$0xf0] }
 0x1a6   :  { %4429 = vmatpush.bf16.msrb.mxu3 %v13491_v27  ;;  %v17589_v27 = vld [vmem:[%s28438_s26 + $0xf74] sm:$0xf0]  ;;  %v13698_v33 = vld [vmem:[%s28438_s26 + $0xf48] sm:$0xf]  ;;  %v14083_v12 = vor.u32 %v17681_v59, %v14082_v16 }
 0x1a7   :  { %v13715_v49 = vor.u32 %v17589_v27, %v13714_v42  ;;  %4447 = vmatpush.bf16.msra.mxu0 %v13555_v23  ;;  %v17585_v22 = vld [vmem:[%s28438_s26 + $0xf54] sm:$0xf0]  ;;  %v14066_v42 = vld [vmem:[%s28438_s26 + $0x1228] sm:$0xf]  ;;  %v21510_v27 = vadd.f32 %v4170_v61, %v4157_v6 }
 0x1a8   :  { %v17677_v23 = vld [vmem:[%s28438_s26 + $0x1234] sm:$0xf0]  ;;  %4419 = vmatpush.bf16.msra.mxu1 %v13299_v45  ;;  %v13699_v3 = vor.u32 %v17585_v22, %v13698_v33  ;;  %v13426_v16 = vld [vmem:[%s28438_s26 + $0xd28] sm:$0xf]  ;;  %v11988_v22 = vld [vmem:[%s28438_s26 + $0x1f8] sm:$0xf0] }
 0x1a9   :  { %4458 = vmatpush.bf16.msrb.mxu2 %v13731_v24  ;;  %v17637_v24 = vld [vmem:[%s28438_s26 + $0x10f4] sm:$0xf0]  ;;  %v13682_v45 = vld [vmem:[%s28438_s26 + $0xf28] sm:$0xf] }
 0x1aa   :  { %4430 = vmatpush.bf16.msrb.mxu3 %v13475_v34  ;;  %v13539_v34 = vor.u32 %v17545_v13, %v13538_v29  ;;  %v13283_v29 = vor.u32 %v17481_v55, %v13282_v21  ;;  %v13443_v13 = vor.u32 %v17521_v2, %v13442_v14  ;;  %v13907_v19 = vor.u32 %v17637_v24, %v13906_v37  ;;  %v17517_v59 = vld [vmem:[%s28438_s26 + $0xd34] sm:$0xf0]  ;;  %v13410_v33 = vld [vmem:[%s28438_s26 + $0xd08] sm:$0xf]  ;;  %v21545_v37 = vpop.f32.mrf.mxu0  ;;  %v21547_v24 = vpop.f32.mrf.mxu1 }
 0x1ab   :  { %v17581_v6 = vld [vmem:[%s28438_s26 + $0xf34] sm:$0xf0]  ;;  %v14067_v55 = vor.u32 %v17677_v23, %v14066_v42  ;;  %v13427_v2 = vor.u32 %v17517_v59, %v13426_v16  ;;  %28452 = vst [vmem:[#allocation14_spill] sm:$0xff] %v21545_v37  ;;  %v13666_v23 = vld [vmem:[%s28438_s26 + $0xf08] sm:$0xf] }
 0x1ac   :  { %4448 = vmatpush.bf16.msra.mxu0 %v13539_v34  ;;  %v17633_v21 = vld [vmem:[%s28438_s26 + $0x10d4] sm:$0xf0]  ;;  %4420 = vmatpush.bf16.msra.mxu1 %v13283_v29  ;;  %v17155_v34 = vld [vmem:[%s28438_s26 + $0x1ec] sm:$0xf]  ;;  %28453 = vst [vmem:[#allocation15_spill] sm:$0xff] %v21547_v24 }
 0x1ad   :  { %4459 = vmatpush.bf16.msrb.mxu2 %v13715_v49  ;;  %v14050_v49 = vld [vmem:[%s28438_s26 + $0x1208] sm:$0xf]  ;;  %v17673_v14 = vld [vmem:[%s28438_s26 + $0x1214] sm:$0xf0] }
 0x1ae   :  { %4431 = vmatpush.bf16.msrb.mxu3 %v13459_v25  ;;  %v13890_v25 = vld [vmem:[%s28438_s26 + $0x10c8] sm:$0xf]  ;;  %v17513_v42 = vld [vmem:[%s28438_s26 + $0xd14] sm:$0xf0]  ;;  %v14051_v16 = vor.u32 %v17673_v14, %v14050_v49  ;;  %v11972_v49 = vld [vmem:[%s28438_s26 + $0x1d8] sm:$0xf0] }
 0x1af   :  { %v13891_v61 = vor.u32 %v17633_v21, %v13890_v25  ;;  %v17577_v29 = vld [vmem:[%s28438_s26 + $0xf14] sm:$0xf0]  ;;  %4421 = vmatmul.bf16.vlgmr.msra.gmra.mxu1 %v19616_v32  ;;  %4449 = vmatmul.bf16.vlgmr.msra.gmra.mxu0 %v19627_v38  ;;  %v11991_v25 = vor.u32 %v17155_v34, %v11988_v22  ;;  %v13411_v21 = vor.u32 %v17513_v42, %v13410_v33  ;;  %v14018_v34 = vld [vmem:[%s28438_s26 + $0x11c8] sm:$0xf] }
 0x1b0   :  { %4502 = vmatpush.bf16.msrb.mxu0 %v14083_v12  ;;  %4469 = vmatpush.bf16.msrb.mxu1 %v13907_v19  ;;  %v13683_v12 = vor.u32 %v17581_v6, %v13682_v45  ;;  %v17629_v19 = vld [vmem:[%s28438_s26 + $0x10b4] sm:$0xf0]  ;;  %v17123_v45 = vld [vmem:[%s28438_s26 + $0xec] sm:$0xf]  ;;  %v11860_v6 = vld [vmem:[%s28438_s26 + $0xf8] sm:$0xf0]  ;;  %v13667_v14 = vor.u32 %v17577_v29, %v13666_v23  ;;  %v21602_v23 = vpop.f32.mrf.mxu3 }
 0x1b1   :  { %4460 = vmatpush.bf16.msrb.mxu2 %v13699_v3  ;;  %v13874_v3 = vld [vmem:[%s28438_s26 + $0x10a8] sm:$0xf]  ;;  %v17669_v59 = vld [vmem:[%s28438_s26 + $0x11f4] sm:$0xf0]  ;;  %v11863_v0 = vor.u32 %v17123_v45, %v11860_v6  ;;  %v17147_v29 = vld [vmem:[%s28438_s26 + $0x1ac] sm:$0xf] }
 0x1b2   :  { %4432 = vmatpush.bf16.msrb.mxu3 %v13443_v13  ;;  %v14034_v13 = vld [vmem:[%s28438_s26 + $0x11e8] sm:$0xf]  ;;  %v13875_v24 = vor.u32 %v17629_v19, %v13874_v3  ;;  %v17625_v33 = vld [vmem:[%s28438_s26 + $0x1094] sm:$0xf0]  ;;  %v11956_v3 = vld [vmem:[%s28438_s26 + $0x1b8] sm:$0xf0]  ;;  %v4184_v19 = vpop.f32.mrf.mxu0 }
 0x1b3   :  { %v14035_v37 = vor.u32 %v17669_v59, %v14034_v13  ;;  %v17665_v22 = vld [vmem:[%s28438_s26 + $0x11d4] sm:$0xf0]  ;;  %v4185_v59 = vadd.f32 %v4184_v19, %v21510_v27  ;;  %v17115_v27 = vld [vmem:[%s28438_s26 + $0xac] sm:$0xf]  ;;  %v11812_v19 = vld [vmem:[%s28438_s26 + $0x98] sm:$0xf0] }
 0x1b4   :  { %4503 = vmatpush.bf16.msrb.mxu0 %v14067_v55  ;;  %v17151_v55 = vld [vmem:[%s28438_s26 + $0x1cc] sm:$0xf]  ;;  %4470 = vmatpush.bf16.msrb.mxu1 %v13891_v61  ;;  %v11844_v61 = vld [vmem:[%s28438_s26 + $0xd8] sm:$0xf0]  ;;  %v14019_v45 = vor.u32 %v17665_v22, %v14018_v34 }
 0x1b5   :  { %4461 = vmatpush.bf16.msrb.mxu2 %v13683_v12  ;;  %v17119_v12 = vld [vmem:[%s28438_s26 + $0xcc] sm:$0xf]  ;;  %v11975_v42 = vor.u32 %v17151_v55, %v11972_v49  ;;  %v11959_v55 = vor.u32 %v17147_v29, %v11956_v3  ;;  %v17657_v29 = vld [vmem:[%s28438_s26 + $0x1194] sm:$0xf0] }
 0x1b6   :  { %4433 = vmatpush.bf16.msrb.mxu3 %v13427_v2  ;;  %v13858_v2 = vld [vmem:[%s28438_s26 + $0x1088] sm:$0xf]  ;;  %v11847_v6 = vor.u32 %v17119_v12, %v11844_v61  ;;  %v17617_v61 = vld [vmem:[%s28438_s26 + $0x1054] sm:$0xf0]  ;;  %v17111_v3 = vld [vmem:[%s28438_s26 + $0x8c] sm:$0xf] }
 0x1b7   :  { %v13859_v13 = vor.u32 %v17625_v33, %v13858_v2  ;;  %v11940_v2 = vld [vmem:[%s28438_s26 + $0x198] sm:$0xf0]  ;;  %v13826_v12 = vld [vmem:[%s28438_s26 + $0x1048] sm:$0xf] }
 0x1b8   :  { %4504 = vmatpush.bf16.msrb.mxu0 %v14051_v16  ;;  %4471 = vmatpush.bf16.msrb.mxu1 %v13875_v24  ;;  %v4198_v16 = vpop.f32.mrf.mxu1  ;;  %v14002_v24 = vld [vmem:[%s28438_s26 + $0x11a8] sm:$0xf] }
 0x1b9   :  { %4462 = vmatpush.bf16.msrb.mxu2 %v13667_v14  ;;  %v4199_v49 = vadd.f32 %v4198_v16, %v4185_v59  ;;  %v17143_v14 = vld [vmem:[%s28438_s26 + $0x18c] sm:$0xf]  ;;  %v4212_v16 = vpop.f32.mrf.mxu3 }
 0x1ba   :  { %4434 = vmatpush.bf16.msrb.mxu3 %v13411_v21  ;;  %v17621_v21 = vld [vmem:[%s28438_s26 + $0x1074] sm:$0xf0]  ;;  %v17139_v59 = vld [vmem:[%s28438_s26 + $0x16c] sm:$0xf] }
 0x1bc   :  { %4525 = vmatpush.bf16.msra.mxu0 %v11991_v25  ;;  %v13842_v25 = vld [vmem:[%s28438_s26 + $0x1068] sm:$0xf]  ;;  %4463 = vmatmul.bf16.vlgmr.msrb.gmra.mxu2 %v19637_v46 }
 0x1bd   :  { %4511 = vmatpush.bf16.msra.mxu2 %v11863_v0  ;;  %4435 = vmatmul.bf16.vlgmr.msrb.gmra.mxu3 %v19629_v41  ;;  %v17661_v0 = vld [vmem:[%s28438_s26 + $0x11b4] sm:$0xf0]  ;;  %v13843_v33 = vor.u32 %v17621_v21, %v13842_v25  ;;  %v13827_v25 = vor.u32 %v17617_v61, %v13826_v12  ;;  %v13794_v12 = vld [vmem:[%s28438_s26 + $0x1008] sm:$0xf] }
 0x1be   :  { %4483 = vmatpush.bf16.msra.mxu3 %v14035_v37  ;;  %v11828_v37 = vld [vmem:[%s28438_s26 + $0xb8] sm:$0xf0]  ;;  %4472 = vmatpush.bf16.msrb.mxu1 %v13859_v13  ;;  %v14003_v34 = vor.u32 %v17661_v0, %v14002_v24  ;;  %v11943_v13 = vor.u32 %v17143_v14, %v11940_v2  ;;  %v11815_v24 = vor.u32 %v17111_v3, %v11812_v19  ;;  %v13810_v0 = vld [vmem:[%s28438_s26 + $0x1028] sm:$0xf]  ;;  %v17649_v19 = vld [vmem:[%s28438_s26 + $0x1154] sm:$0xf0] }
 0x1bf   :  { %v11831_v22 = vor.u32 %v17115_v27, %v11828_v37  ;;  %v17613_v27 = vld [vmem:[%s28438_s26 + $0x1034] sm:$0xf0]  ;;  %v13970_v37 = vld [vmem:[%s28438_s26 + $0x1168] sm:$0xf]  ;;  %v11796_v14 = vld [vmem:[%s28438_s26 + $0x78] sm:$0xf0]  ;;  %14090 = vmatmul.msk.bf16.vlgmr.msrb.gmra.mxu0 %vm3709_vm0, %v19751_v53 }
 0x1c0   :  { %4526 = vmatpush.bf16.msra.mxu0 %v11975_v42  ;;  %v13986_v42 = vld [vmem:[%s28438_s26 + $0x1188] sm:$0xf] }
 0x1c1   :  { %4512 = vmatpush.bf16.msra.mxu2 %v11847_v6  ;;  %v21661_v6 = vadd.f32 %v4212_v16, %v4199_v49  ;;  %v13987_v21 = vor.u32 %v17657_v29, %v13986_v42  ;;  %v17107_v49 = vld [vmem:[%s28438_s26 + $0x6c] sm:$0xf]  ;;  %v17609_v29 = vld [vmem:[%s28438_s26 + $0x1014] sm:$0xf0]  ;;  %v13954_v3 = vld [vmem:[%s28438_s26 + $0x1148] sm:$0xf] }
 0x1c2   :  { %4484 = vmatpush.bf16.msra.mxu3 %v14019_v45  ;;  %v11924_v45 = vld [vmem:[%s28438_s26 + $0x178] sm:$0xf0]  ;;  %4473 = vmatpush.bf16.msrb.mxu1 %v13843_v33  ;;  %v17135_v33 = vld [vmem:[%s28438_s26 + $0x14c] sm:$0xf]  ;;  %v11799_v42 = vor.u32 %v17107_v49, %v11796_v14  ;;  %v17645_v49 = vld [vmem:[%s28438_s26 + $0x1134] sm:$0xf0] }
 0x1c3   :  { %28454 = vst [vmem:[#allocation16_spill] sm:$0xff] %v21661_v6  ;;  %v11927_v2 = vor.u32 %v17139_v59, %v11924_v45  ;;  %v11780_v16 = vld [vmem:[%s28438_s26 + $0x58] sm:$0xf0]  ;;  %v17187_v59 = vld [vmem:[%s28438_s26 + $0x2ec] sm:$0xf] }
 0x1c4   :  { %4527 = vmatpush.bf16.msra.mxu0 %v11959_v55  ;;  %v17653_v55 = vld [vmem:[%s28438_s26 + $0x1174] sm:$0xf0] }
 0x1c5   :  { %4513 = vmatpush.bf16.msra.mxu2 %v11831_v22  ;;  %v13811_v22 = vor.u32 %v17613_v27, %v13810_v0  ;;  %v13971_v61 = vor.u32 %v17653_v55, %v13970_v37  ;;  %v13795_v0 = vor.u32 %v17609_v29, %v13794_v12  ;;  %v13955_v27 = vor.u32 %v17649_v19, %v13954_v3  ;;  %v13938_v55 = vld [vmem:[%s28438_s26 + $0x1128] sm:$0xf]  ;;  %v12100_v12 = vld [vmem:[%s28438_s26 + $0x2d8] sm:$0xf0]  ;;  %v17283_v29 = vld [vmem:[%s28438_s26 + $0x5ec] sm:$0xf] }
 0x1c6   :  { %4485 = vmatpush.bf16.msra.mxu3 %v14003_v34  ;;  %v11908_v34 = vld [vmem:[%s28438_s26 + $0x158] sm:$0xf0]  ;;  %4474 = vmatpush.bf16.msrb.mxu1 %v13827_v25  ;;  %v13939_v19 = vor.u32 %v17645_v49, %v13938_v55  ;;  %v17251_v49 = vld [vmem:[%s28438_s26 + $0x4ec] sm:$0xf] }
 0x1c7   :  { %v11911_v45 = vor.u32 %v17135_v33, %v11908_v34  ;;  %v12116_v25 = vld [vmem:[%s28438_s26 + $0x2f8] sm:$0xf0]  ;;  %v17183_v34 = vld [vmem:[%s28438_s26 + $0x2cc] sm:$0xf] }
 0x1c8   :  { %4528 = vmatpush.bf16.msra.mxu0 %v11943_v13  ;;  %v17103_v13 = vld [vmem:[%s28438_s26 + $0x4c] sm:$0xf]  ;;  %v12119_v14 = vor.u32 %v17187_v59, %v12116_v25  ;;  %v11764_v33 = vld [vmem:[%s28438_s26 + $0x38] sm:$0xf0]  ;;  %v17641_v59 = vld [vmem:[%s28438_s26 + $0x1114] sm:$0xf0]  ;;  %v12103_v25 = vor.u32 %v17183_v34, %v12100_v12 }
 0x1c9   :  { %4514 = vmatpush.bf16.msra.mxu2 %v11815_v24  ;;  %v11892_v24 = vld [vmem:[%s28438_s26 + $0x138] sm:$0xf0]  ;;  %v11783_v37 = vor.u32 %v17103_v13, %v11780_v16  ;;  %v13922_v16 = vld [vmem:[%s28438_s26 + $0x1108] sm:$0xf] }
 0x1ca   :  { %4486 = vmatpush.bf16.msra.mxu3 %v13987_v21  ;;  %v17131_v21 = vld [vmem:[%s28438_s26 + $0x12c] sm:$0xf]  ;;  %4475 = vmatpush.bf16.msrb.mxu1 %v13811_v22  ;;  %v12500_v3 = vld [vmem:[%s28438_s26 + $0x5f8] sm:$0xf0] }
 0x1cb   :  { %v11895_v22 = vor.u32 %v17131_v21, %v11892_v24  ;;  %v11748_v21 = vld [vmem:[%s28438_s26 + $0x18] sm:$0xf0]  ;;  %v17179_v24 = vld [vmem:[%s28438_s26 + $0x2ac] sm:$0xf] }
 0x1cc   :  { %4529 = vmatpush.bf16.msra.mxu0 %v11927_v2  ;;  %v17099_v2 = vld [vmem:[%s28438_s26 + $0x2c] sm:$0xf]  ;;  %v12244_v55 = vld [vmem:[%s28438_s26 + $0x3f8] sm:$0xf0] }
 0x1cd   :  { %4515 = vmatpush.bf16.msra.mxu2 %v11799_v42  ;;  %v11876_v42 = vld [vmem:[%s28438_s26 + $0x118] sm:$0xf0]  ;;  %v11767_v13 = vor.u32 %v17099_v2, %v11764_v33  ;;  %v17279_v33 = vld [vmem:[%s28438_s26 + $0x5cc] sm:$0xf] }
 0x1ce   :  { %4487 = vmatpush.bf16.msra.mxu3 %v13971_v61  ;;  %v17127_v61 = vld [vmem:[%s28438_s26 + $0x10c] sm:$0xf]  ;;  %4476 = vmatpush.bf16.msrb.mxu1 %v13795_v0  ;;  %v12084_v0 = vld [vmem:[%s28438_s26 + $0x2b8] sm:$0xf0] }
 0x1cf   :  { %v12372_v2 = vld [vmem:[%s28438_s26 + $0x4f8] sm:$0xf0] }
 0x1d0   :  { %4530 = vmatpush.bf16.msra.mxu0 %v11911_v45  ;;  %v17095_v45 = vld [vmem:[%s28438_s26 + $0xc] sm:$0xf]  ;;  %v12484_v34 = vld [vmem:[%s28438_s26 + $0x5d8] sm:$0xf0]  ;;  %v12375_v6 = vor.u32 %v17251_v49, %v12372_v2 }
 0x1d1   :  { %4516 = vmatpush.bf16.msra.mxu2 %v11783_v37  ;;  %4477 = vmatmul.bf16.vlgmr.msrb.gmra.mxu1 %v19848_v52  ;;  %v17219_v37 = vld [vmem:[%s28438_s26 + $0x3ec] sm:$0xf]  ;;  %v11751_v12 = vor.u32 %v17095_v45, %v11748_v21  ;;  %v12356_v45 = vld [vmem:[%s28438_s26 + $0x4d8] sm:$0xf0] }
 0x1d2   :  { %4488 = vmatpush.bf16.msra.mxu3 %v13955_v27  ;;  %4539 = vmatpush.bf16.msra.mxu1 %v12119_v14  ;;  %v11879_v27 = vor.u32 %v17127_v61, %v11876_v42  ;;  %v12503_v14 = vor.u32 %v17283_v29, %v12500_v3  ;;  %v12087_v61 = vor.u32 %v17179_v24, %v12084_v0  ;;  %v17175_v29 = vld [vmem:[%s28438_s26 + $0x28c] sm:$0xf]  ;;  %v12068_v3 = vld [vmem:[%s28438_s26 + $0x298] sm:$0xf0] }
 0x1d3   :  { %v12247_v42 = vor.u32 %v17219_v37, %v12244_v55  ;;  %v12468_v21 = vld [vmem:[%s28438_s26 + $0x5b8] sm:$0xf0]  ;;  %v12071_v24 = vor.u32 %v17175_v29, %v12068_v3  ;;  %v17211_v49 = vld [vmem:[%s28438_s26 + $0x3ac] sm:$0xf] }
 0x1d4   :  { %4531 = vmatpush.bf16.msra.mxu0 %v11895_v22  ;;  %v13923_v22 = vor.u32 %v17641_v59, %v13922_v16  ;;  %v17247_v16 = vld [vmem:[%s28438_s26 + $0x4cc] sm:$0xf]  ;;  %v12487_v59 = vor.u32 %v17279_v33, %v12484_v34  ;;  %v12052_v37 = vld [vmem:[%s28438_s26 + $0x278] sm:$0xf0] }
 0x1d5   :  { %4517 = vmatpush.bf16.msra.mxu2 %v11767_v13  ;;  %v12228_v13 = vld [vmem:[%s28438_s26 + $0x3d8] sm:$0xf0]  ;;  %v12359_v55 = vor.u32 %v17247_v16, %v12356_v45  ;;  %v17243_v2 = vld [vmem:[%s28438_s26 + $0x4ac] sm:$0xf] }
 0x1d6   :  { %4489 = vmatpush.bf16.msra.mxu3 %v13939_v19  ;;  %4540 = vmatpush.bf16.msra.mxu1 %v12103_v25  ;;  %v17215_v19 = vld [vmem:[%s28438_s26 + $0x3cc] sm:$0xf]  ;;  %v12036_v29 = vld [vmem:[%s28438_s26 + $0x258] sm:$0xf0] }
 0x1d7   :  { %v17275_v25 = vld [vmem:[%s28438_s26 + $0x5ac] sm:$0xf]  ;;  %v12231_v0 = vor.u32 %v17215_v19, %v12228_v13  ;;  %v12324_v16 = vld [vmem:[%s28438_s26 + $0x498] sm:$0xf0] }
 0x1d8   :  { %4532 = vmatpush.bf16.msra.mxu0 %v11879_v27  ;;  %v17171_v27 = vld [vmem:[%s28438_s26 + $0x26c] sm:$0xf]  ;;  %v12471_v33 = vor.u32 %v17275_v25, %v12468_v21  ;;  %v12436_v45 = vld [vmem:[%s28438_s26 + $0x578] sm:$0xf0] }
 0x1d9   :  { %4518 = vmatpush.bf16.msra.mxu2 %v11751_v12  ;;  %v17271_v34 = vld [vmem:[%s28438_s26 + $0x58c] sm:$0xf]  ;;  %v12055_v12 = vor.u32 %v17171_v27, %v12052_v37 }
 0x1da   :  { %4490 = vmatpush.bf16.msra.mxu3 %v13923_v22  ;;  %4541 = vmatpush.bf16.msra.mxu1 %v12087_v61  ;;  %v12452_v22 = vld [vmem:[%s28438_s26 + $0x598] sm:$0xf0]  ;;  %v17239_v19 = vld [vmem:[%s28438_s26 + $0x48c] sm:$0xf] }
 0x1db   :  { %4533 = vmatmul.bf16.vlgmr.msra.gmra.mxu0 %v18974_v10  ;;  %v12196_v10 = vld [vmem:[%s28438_s26 + $0x398] sm:$0xf0]  ;;  %v12455_v13 = vor.u32 %v17271_v34, %v12452_v22  ;;  %v12327_v27 = vor.u32 %v17239_v19, %v12324_v16  ;;  %v17203_v37 = vld [vmem:[%s28438_s26 + $0x36c] sm:$0xf] }
 0x1dc   :  { %4581 = vmatpush.bf16.msrb.mxu0 %v12503_v14  ;;  %v12212_v14 = vld [vmem:[%s28438_s26 + $0x3b8] sm:$0xf0]  ;;  %4519 = vmatmul.bf16.vlgmr.msra.gmra.mxu2 %v18938_v58  ;;  %v17207_v58 = vld [vmem:[%s28438_s26 + $0x38c] sm:$0xf] }
 0x1dd   :  { %4567 = vmatpush.bf16.msrb.mxu2 %v12375_v6  ;;  %4491 = vmatmul.bf16.vlgmr.msra.gmra.mxu3 %v19850_v54  ;;  %v12340_v6 = vld [vmem:[%s28438_s26 + $0x4b8] sm:$0xf0]  ;;  %v12215_v61 = vor.u32 %v17211_v49, %v12212_v14  ;;  %v12199_v21 = vor.u32 %v17207_v58, %v12196_v10  ;;  %v17235_v49 = vld [vmem:[%s28438_s26 + $0x46c] sm:$0xf] }
 0x1de   :  { %4553 = vmatpush.bf16.msrb.mxu3 %v12247_v42  ;;  %4542 = vmatpush.bf16.msra.mxu1 %v12071_v24  ;;  %v17167_v42 = vld [vmem:[%s28438_s26 + $0x24c] sm:$0xf]  ;;  %v12343_v3 = vor.u32 %v17243_v2, %v12340_v6  ;;  %v12308_v2 = vld [vmem:[%s28438_s26 + $0x478] sm:$0xf0] }
 0x1df   :  { %v12039_v25 = vor.u32 %v17167_v42, %v12036_v29  ;;  %v17163_v24 = vld [vmem:[%s28438_s26 + $0x22c] sm:$0xf]  ;;  %v12420_v6 = vld [vmem:[%s28438_s26 + $0x558] sm:$0xf0]  ;;  %v12311_v42 = vor.u32 %v17235_v49, %v12308_v2 }
 0x1e0   :  { %4582 = vmatpush.bf16.msrb.mxu0 %v12487_v59  ;;  %v17267_v59 = vld [vmem:[%s28438_s26 + $0x56c] sm:$0xf]  ;;  %v12292_v19 = vld [vmem:[%s28438_s26 + $0x458] sm:$0xf0] }
 0x1e1   :  { %4568 = vmatpush.bf16.msrb.mxu2 %v12359_v55  ;;  %v12180_v55 = vld [vmem:[%s28438_s26 + $0x378] sm:$0xf0]  ;;  %v12439_v14 = vor.u32 %v17267_v59, %v12436_v45  ;;  %v17199_v29 = vld [vmem:[%s28438_s26 + $0x34c] sm:$0xf] }
 0x1e2   :  { %4554 = vmatpush.bf16.msrb.mxu3 %v12231_v0  ;;  %4543 = vmatpush.bf16.msra.mxu1 %v12055_v12  ;;  %v12020_v0 = vld [vmem:[%s28438_s26 + $0x238] sm:$0xf0]  ;;  %v12183_v22 = vor.u32 %v17203_v37, %v12180_v55  ;;  %v17159_v12 = vld [vmem:[%s28438_s26 + $0x20c] sm:$0xf] }
 0x1e3   :  { %v12023_v34 = vor.u32 %v17163_v24, %v12020_v0  ;;  %v17231_v58 = vld [vmem:[%s28438_s26 + $0x44c] sm:$0xf]  ;;  %v12628_v16 = vld [vmem:[%s28438_s26 + $0x6f8] sm:$0xf0] }
 0x1e4   :  { %4583 = vmatpush.bf16.msrb.mxu0 %v12471_v33  ;;  %v17263_v33 = vld [vmem:[%s28438_s26 + $0x54c] sm:$0xf]  ;;  %v12404_v45 = vld [vmem:[%s28438_s26 + $0x538] sm:$0xf0]  ;;  %v12295_v24 = vor.u32 %v17231_v58, %v12292_v19 }
 0x1e5   :  { %4569 = vmatpush.bf16.msrb.mxu2 %v12343_v3  ;;  %v12164_v3 = vld [vmem:[%s28438_s26 + $0x358] sm:$0xf0]  ;;  %v12423_v10 = vor.u32 %v17263_v33, %v12420_v6  ;;  %v17259_v59 = vld [vmem:[%s28438_s26 + $0x52c] sm:$0xf] }
 0x1e6   :  { %4555 = vmatpush.bf16.msrb.mxu3 %v12215_v61  ;;  %4544 = vmatpush.bf16.msra.mxu1 %v12039_v25  ;;  %v12004_v61 = vld [vmem:[%s28438_s26 + $0x218] sm:$0xf0]  ;;  %v17227_v55 = vld [vmem:[%s28438_s26 + $0x42c] sm:$0xf]  ;;  %v12407_v33 = vor.u32 %v17259_v59, %v12404_v45 }
 0x1e7   :  { %v12007_v25 = vor.u32 %v17159_v12, %v12004_v61  ;;  %v12148_v37 = vld [vmem:[%s28438_s26 + $0x338] sm:$0xf0]  ;;  %v17255_v6 = vld [vmem:[%s28438_s26 + $0x50c] sm:$0xf] }
 0x1e8   :  { %4584 = vmatpush.bf16.msrb.mxu0 %v12455_v13  ;;  %v17315_v13 = vld [vmem:[%s28438_s26 + $0x6ec] sm:$0xf]  ;;  %v12276_v49 = vld [vmem:[%s28438_s26 + $0x438] sm:$0xf0] }
 0x1e9   :  { %4570 = vmatpush.bf16.msrb.mxu2 %v12327_v27  ;;  %v12631_v0 = vor.u32 %v17315_v13, %v12628_v16  ;;  %v17195_v27 = vld [vmem:[%s28438_s26 + $0x32c] sm:$0xf]  ;;  %v12612_v2 = vld [vmem:[%s28438_s26 + $0x6d8] sm:$0xf0] }
 0x1ea   :  { %4556 = vmatpush.bf16.msrb.mxu3 %v12199_v21  ;;  %4545 = vmatpush.bf16.msra.mxu1 %v12023_v34  ;;  %v12167_v21 = vor.u32 %v17199_v29, %v12164_v3  ;;  %v12388_v34 = vld [vmem:[%s28438_s26 + $0x518] sm:$0xf0]  ;;  %v17191_v12 = vld [vmem:[%s28438_s26 + $0x30c] sm:$0xf]  ;;  %v12279_v29 = vor.u32 %v17227_v55, %v12276_v49 }
 0x1eb   :  { %v17411_v61 = vld [vmem:[%s28438_s26 + $0x9ec] sm:$0xf]  ;;  %v12132_v58 = vld [vmem:[%s28438_s26 + $0x318] sm:$0xf0]  ;;  %v12391_v45 = vor.u32 %v17255_v6, %v12388_v34 }
 0x1ec   :  { %4585 = vmatpush.bf16.msrb.mxu0 %v12439_v14  ;;  %v17311_v14 = vld [vmem:[%s28438_s26 + $0x6cc] sm:$0xf]  ;;  %v12260_v19 = vld [vmem:[%s28438_s26 + $0x418] sm:$0xf0] }
 0x1ed   :  { %4571 = vmatpush.bf16.msrb.mxu2 %v12311_v42  ;;  %v13012_v42 = vld [vmem:[%s28438_s26 + $0x9f8] sm:$0xf0]  ;;  %v12615_v3 = vor.u32 %v17311_v14, %v12612_v2  ;;  %v17307_v13 = vld [vmem:[%s28438_s26 + $0x6ac] sm:$0xf] }
 0x1ee   :  { %4557 = vmatpush.bf16.msrb.mxu3 %v12183_v22  ;;  %4546 = vmatpush.bf16.msra.mxu1 %v12007_v25  ;;  %v12151_v22 = vor.u32 %v17195_v27, %v12148_v37  ;;  %v12596_v16 = vld [vmem:[%s28438_s26 + $0x6b8] sm:$0xf0]  ;;  %v17347_v59 = vld [vmem:[%s28438_s26 + $0x7ec] sm:$0xf]  ;;  %v12135_v27 = vor.u32 %v17191_v12, %v12132_v58 }
 0x1ef   :  { %v12756_v25 = vld [vmem:[%s28438_s26 + $0x7f8] sm:$0xf0]  ;;  %v17407_v37 = vld [vmem:[%s28438_s26 + $0x9cc] sm:$0xf]  ;;  %v12599_v14 = vor.u32 %v17307_v13, %v12596_v16 }
 0x1f0   :  { %4586 = vmatpush.bf16.msrb.mxu0 %v12423_v10  ;;  %v17223_v10 = vld [vmem:[%s28438_s26 + $0x40c] sm:$0xf]  ;;  %v12996_v55 = vld [vmem:[%s28438_s26 + $0x9d8] sm:$0xf0]  ;;  %v12759_v2 = vor.u32 %v17347_v59, %v12756_v25 }
 0x1f1   :  { %4572 = vmatpush.bf16.msrb.mxu2 %v12295_v24  ;;  %v12884_v24 = vld [vmem:[%s28438_s26 + $0x8f8] sm:$0xf0]  ;;  %4547 = vmatmul.bf16.vlgmr.msra.gmra.mxu1 %v18952_v1  ;;  %v12263_v49 = vor.u32 %v17223_v10, %v12260_v19  ;;  %v17303_v1 = vld [vmem:[%s28438_s26 + $0x68c] sm:$0xf] }
 0x1f2   :  { %4558 = vmatpush.bf16.msrb.mxu3 %v12167_v21  ;;  %4595 = vmatpush.bf16.msrb.mxu1 %v12631_v0  ;;  %v17379_v21 = vld [vmem:[%s28438_s26 + $0x8ec] sm:$0xf]  ;;  %v13015_v0 = vor.u32 %v17411_v61, %v13012_v42  ;;  %v12580_v6 = vld [vmem:[%s28438_s26 + $0x698] sm:$0xf0]  ;;  %v12999_v42 = vor.u32 %v17407_v37, %v12996_v55 }
 0x1f3   :  { %v17343_v34 = vld [vmem:[%s28438_s26 + $0x7cc] sm:$0xf]  ;;  %v12868_v61 = vld [vmem:[%s28438_s26 + $0x8d8] sm:$0xf0]  ;;  %v12583_v58 = vor.u32 %v17303_v1, %v12580_v6 }
 0x1f4   :  { %4587 = vmatpush.bf16.msrb.mxu0 %v12407_v33  ;;  %v12887_v33 = vor.u32 %v17379_v21, %v12884_v24  ;;  %v17375_v12 = vld [vmem:[%s28438_s26 + $0x8cc] sm:$0xf]  ;;  %v12564_v16 = vld [vmem:[%s28438_s26 + $0x678] sm:$0xf0] }
 0x1f5   :  { %4573 = vmatpush.bf16.msrb.mxu2 %v12279_v29  ;;  %v17403_v29 = vld [vmem:[%s28438_s26 + $0x9ac] sm:$0xf]  ;;  %v12871_v19 = vor.u32 %v17375_v12, %v12868_v61  ;;  %v12852_v21 = vld [vmem:[%s28438_s26 + $0x8b8] sm:$0xf0] }
 0x1f6   :  { %4559 = vmatpush.bf16.msrb.mxu3 %v12151_v22  ;;  %4596 = vmatpush.bf16.msrb.mxu1 %v12615_v3  ;;  %v12740_v22 = vld [vmem:[%s28438_s26 + $0x7d8] sm:$0xf0]  ;;  %v17299_v13 = vld [vmem:[%s28438_s26 + $0x66c] sm:$0xf] }
 0x1f7   :  { %v12980_v3 = vld [vmem:[%s28438_s26 + $0x9b8] sm:$0xf0]  ;;  %v12743_v10 = vor.u32 %v17343_v34, %v12740_v22  ;;  %v17339_v59 = vld [vmem:[%s28438_s26 + $0x7ac] sm:$0xf]  ;;  %v12567_v37 = vor.u32 %v17299_v13, %v12564_v16 }
 0x1f8   :  { %4588 = vmatpush.bf16.msrb.mxu0 %v12391_v45  ;;  %v12724_v45 = vld [vmem:[%s28438_s26 + $0x7b8] sm:$0xf0]  ;;  %v17371_v25 = vld [vmem:[%s28438_s26 + $0x8ac] sm:$0xf]  ;;  %v12983_v24 = vor.u32 %v17403_v29, %v12980_v3 }
 0x1f9   :  { %4574 = vmatpush.bf16.msrb.mxu2 %v12263_v49  ;;  %v12727_v55 = vor.u32 %v17339_v59, %v12724_v45  ;;  %v12855_v49 = vor.u32 %v17371_v25, %v12852_v21  ;;  %v12836_v1 = vld [vmem:[%s28438_s26 + $0x898] sm:$0xf0]  ;;  %v17395_v34 = vld [vmem:[%s28438_s26 + $0x96c] sm:$0xf] }
 0x1fa   :  { %4560 = vmatpush.bf16.msrb.mxu3 %v12135_v27  ;;  %4597 = vmatpush.bf16.msrb.mxu1 %v12599_v14  ;;  %v22033_v27 = vpop.f32.mrf.mxu3  ;;  %v17335_v14 = vld [vmem:[%s28438_s26 + $0x78c] sm:$0xf]  ;;  %v12948_v22 = vld [vmem:[%s28438_s26 + $0x978] sm:$0xf0] }
 0x1fb   :  { %4589 = vmatmul.bf16.vlgmr.msrb.gmra.mxu0 %v19173_v44  ;;  %28455 = vst [vmem:[#allocation17_spill] sm:$0xff] %v22033_v27  ;;  %v12548_v44 = vld [vmem:[%s28438_s26 + $0x658] sm:$0xf0]  ;;  %v17291_v29 = vld [vmem:[%s28438_s26 + $0x62c] sm:$0xf]  ;;  %v12951_v16 = vor.u32 %v17395_v34, %v12948_v22  ;;  %v22117_v22 = vpop.f32.mrf.mxu1 }
 0x1fc   :  { %4637 = vmatpush.bf16.msra.mxu0 %v13015_v0  ;;  %4575 = vmatmul.bf16.vlgmr.msrb.gmra.mxu2 %v19160_v39  ;;  %v12964_v0 = vld [vmem:[%s28438_s26 + $0x998] sm:$0xf0]  ;;  %v17295_v39 = vld [vmem:[%s28438_s26 + $0x64c] sm:$0xf]  ;;  %28457 = vst [vmem:[#allocation19_spill] sm:$0xff] %v22117_v22 }
 0x1fd   :  { %4623 = vmatpush.bf16.msra.mxu2 %v12887_v33  ;;  %4561 = vmatmul.bf16.vlgmr.msrb.gmra.mxu3 %v18988_v17  ;;  %v17399_v17 = vld [vmem:[%s28438_s26 + $0x98c] sm:$0xf]  ;;  %v12551_v12 = vor.u32 %v17295_v39, %v12548_v44  ;;  %v12532_v3 = vld [vmem:[%s28438_s26 + $0x638] sm:$0xf0] }
 0x1fe   :  { %4609 = vmatpush.bf16.msra.mxu3 %v12759_v2  ;;  %4598 = vmatpush.bf16.msrb.mxu1 %v12583_v58  ;;  %v12708_v2 = vld [vmem:[%s28438_s26 + $0x798] sm:$0xf0]  ;;  %v17367_v33 = vld [vmem:[%s28438_s26 + $0x88c] sm:$0xf]  ;;  %v12967_v6 = vor.u32 %v17399_v17, %v12964_v0  ;;  %v12535_v25 = vor.u32 %v17291_v29, %v12532_v3 }
 0x1ff   :  { %v12711_v61 = vor.u32 %v17335_v14, %v12708_v2  ;;  %v17331_v58 = vld [vmem:[%s28438_s26 + $0x76c] sm:$0xf]  ;;  %v12820_v13 = vld [vmem:[%s28438_s26 + $0x878] sm:$0xf0] }
 0x200   :  { %4638 = vmatpush.bf16.msra.mxu0 %v12999_v42  ;;  %v12839_v42 = vor.u32 %v17367_v33, %v12836_v1  ;;  %v17391_v59 = vld [vmem:[%s28438_s26 + $0x94c] sm:$0xf]  ;;  %v12932_v45 = vld [vmem:[%s28438_s26 + $0x958] sm:$0xf0]  ;;  %v22106_v33 = vpop.f32.mrf.mxu2 }
 0x201   :  { %4624 = vmatpush.bf16.msra.mxu2 %v12871_v19  ;;  %v17363_v19 = vld [vmem:[%s28438_s26 + $0x86c] sm:$0xf]  ;;  %v12516_v0 = vld [vmem:[%s28438_s26 + $0x618] sm:$0xf0]  ;;  %v12935_v2 = vor.u32 %v17391_v59, %v12932_v45 }
 0x202   :  { %4610 = vmatpush.bf16.msra.mxu3 %v12743_v10  ;;  %4599 = vmatpush.bf16.msrb.mxu1 %v12567_v37  ;;  %v12692_v10 = vld [vmem:[%s28438_s26 + $0x778] sm:$0xf0]  ;;  %v17287_v21 = vld [vmem:[%s28438_s26 + $0x60c] sm:$0xf]  ;;  %v12823_v17 = vor.u32 %v17363_v19, %v12820_v13 }
 0x203   :  { %v17327_v37 = vld [vmem:[%s28438_s26 + $0x74c] sm:$0xf]  ;;  %v12804_v44 = vld [vmem:[%s28438_s26 + $0x858] sm:$0xf0] }
 0x204   :  { %4639 = vmatpush.bf16.msra.mxu0 %v12983_v24  ;;  %v12695_v24 = vor.u32 %v17331_v58, %v12692_v10  ;;  %v17359_v39 = vld [vmem:[%s28438_s26 + $0x84c] sm:$0xf]  ;;  %v13140_v1 = vld [vmem:[%s28438_s26 + $0xaf8] sm:$0xf0] }
 0x205   :  { %4625 = vmatpush.bf16.msra.mxu2 %v12855_v49  ;;  %v22095_v49 = vpop.f32.mrf.mxu3  ;;  %v17443_v14 = vld [vmem:[%s28438_s26 + $0xaec] sm:$0xf]  ;;  %v12916_v34 = vld [vmem:[%s28438_s26 + $0x938] sm:$0xf0] }
 0x206   :  { %4611 = vmatpush.bf16.msra.mxu3 %v12727_v55  ;;  %4600 = vmatpush.bf16.msrb.mxu1 %v12551_v12  ;;  %v12676_v55 = vld [vmem:[%s28438_s26 + $0x758] sm:$0xf0]  ;;  %28456 = vst [vmem:[#allocation18_spill] sm:$0xff] %v22095_v49  ;;  %v12519_v12 = vor.u32 %v17287_v21, %v12516_v0  ;;  %v17323_v29 = vld [vmem:[%s28438_s26 + $0x72c] sm:$0xf]  ;;  %v13143_v58 = vor.u32 %v17443_v14, %v13140_v1 }
 0x207   :  { %v12660_v3 = vld [vmem:[%s28438_s26 + $0x738] sm:$0xf0]  ;;  %v17355_v10 = vld [vmem:[%s28438_s26 + $0x82c] sm:$0xf] }
 0x208   :  { %4640 = vmatpush.bf16.msra.mxu0 %v12967_v6  ;;  %v17387_v6 = vld [vmem:[%s28438_s26 + $0x92c] sm:$0xf]  ;;  %v12788_v19 = vld [vmem:[%s28438_s26 + $0x838] sm:$0xf0] }
 0x209   :  { %4626 = vmatpush.bf16.msra.mxu2 %v12839_v42  ;;  %v12807_v42 = vor.u32 %v17359_v39, %v12804_v44  ;;  %v17439_v13 = vld [vmem:[%s28438_s26 + $0xacc] sm:$0xf]  ;;  %v13124_v59 = vld [vmem:[%s28438_s26 + $0xad8] sm:$0xf0]  ;;  %v12791_v0 = vor.u32 %v17355_v10, %v12788_v19  ;;  %v22183_v10 = vpop.f32.mrf.mxu1 }
 0x20a   :  { %4612 = vmatpush.bf16.msra.mxu3 %v12711_v61  ;;  %4601 = vmatpush.bf16.msrb.mxu1 %v12535_v25  ;;  %v12679_v61 = vor.u32 %v17327_v37, %v12676_v55  ;;  %v17383_v45 = vld [vmem:[%s28438_s26 + $0x90c] sm:$0xf]  ;;  %v12900_v25 = vld [vmem:[%s28438_s26 + $0x918] sm:$0xf0]  ;;  %v13127_v44 = vor.u32 %v17439_v13, %v13124_v59 }
 0x20b   :  { %v17539_v21 = vld [vmem:[%s28438_s26 + $0xdec] sm:$0xf]  ;;  %v12644_v55 = vld [vmem:[%s28438_s26 + $0x718] sm:$0xf0] }
 0x20c   :  { %4641 = vmatpush.bf16.msra.mxu0 %v12951_v16  ;;  %v12919_v16 = vor.u32 %v17387_v6, %v12916_v34  ;;  %v17319_v37 = vld [vmem:[%s28438_s26 + $0x70c] sm:$0xf]  ;;  %v12772_v14 = vld [vmem:[%s28438_s26 + $0x818] sm:$0xf0]  ;;  %v12903_v6 = vor.u32 %v17383_v45, %v12900_v25  ;;  %v22167_v34 = vpop.f32.mrf.mxu0 }
 0x20d   :  { %4627 = vmatpush.bf16.msra.mxu2 %v12823_v17  ;;  %v12663_v17 = vor.u32 %v17323_v29, %v12660_v3  ;;  %v17351_v39 = vld [vmem:[%s28438_s26 + $0x80c] sm:$0xf]  ;;  %v13108_v1 = vld [vmem:[%s28438_s26 + $0xab8] sm:$0xf0]  ;;  %28458 = vst [vmem:[#allocation20_spill] sm:$0xff] %v22167_v34 }
 0x20e   :  { %4613 = vmatpush.bf16.msra.mxu3 %v12695_v24  ;;  %4602 = vmatpush.bf16.msrb.mxu1 %v12519_v12  ;;  %v13524_v24 = vld [vmem:[%s28438_s26 + $0xdf8] sm:$0xf0]  ;;  %v22169_v12 = vpop.f32.mrf.mxu2  ;;  %v17507_v29 = vld [vmem:[%s28438_s26 + $0xcec] sm:$0xf]  ;;  %v12775_v59 = vor.u32 %v17351_v39, %v12772_v14 }
 0x20f   :  { %28459 = vst [vmem:[#allocation21_spill] sm:$0xff] %v22169_v12  ;;  %v13527_v3 = vor.u32 %v17539_v21, %v13524_v24  ;;  %v17535_v19 = vld [vmem:[%s28438_s26 + $0xdcc] sm:$0xf]  ;;  %v13508_v13 = vld [vmem:[%s28438_s26 + $0xdd8] sm:$0xf0] }
 0x210   :  { %4642 = vmatpush.bf16.msra.mxu0 %v12935_v2  ;;  %v17435_v2 = vld [vmem:[%s28438_s26 + $0xaac] sm:$0xf]  ;;  %v13092_v24 = vld [vmem:[%s28438_s26 + $0xa98] sm:$0xf0] }
 0x211   :  { %4628 = vmatpush.bf16.msra.mxu2 %v12807_v42  ;;  %4603 = vmatmul.bf16.vlgmr.msrb.gmra.mxu1 %v19171_v43  ;;  %v13268_v42 = vld [vmem:[%s28438_s26 + $0xbf8] sm:$0xf0]  ;;  %v13111_v45 = vor.u32 %v17435_v2, %v13108_v1  ;;  %v17431_v21 = vld [vmem:[%s28438_s26 + $0xa8c] sm:$0xf] }
 0x212   :  { %4614 = vmatpush.bf16.msra.mxu3 %v12679_v61  ;;  %4651 = vmatpush.bf16.msra.mxu1 %v13143_v58  ;;  %v17475_v61 = vld [vmem:[%s28438_s26 + $0xbec] sm:$0xf]  ;;  %v22181_v58 = vpop.f32.mrf.mxu3  ;;  %v13396_v43 = vld [vmem:[%s28438_s26 + $0xcf8] sm:$0xf0]  ;;  %v13095_v2 = vor.u32 %v17431_v21, %v13092_v24  ;;  %v22251_v21 = vpop.f32.mrf.mxu1 }
 0x213   :  { %28460 = vst [vmem:[#allocation22_spill] sm:$0xff] %v22181_v58  ;;  %v13271_v25 = vor.u32 %v17475_v61, %v13268_v42  ;;  %v13399_v49 = vor.u32 %v17507_v29, %v13396_v43  ;;  %v13380_v39 = vld [vmem:[%s28438_s26 + $0xcd8] sm:$0xf0]  ;;  %v17423_v24 = vld [vmem:[%s28438_s26 + $0xa4c] sm:$0xf] }
 0x214   :  { %4643 = vmatpush.bf16.msra.mxu0 %v12919_v16  ;;  %v12647_v16 = vor.u32 %v17319_v37, %v12644_v55  ;;  %v17503_v37 = vld [vmem:[%s28438_s26 + $0xccc] sm:$0xf]  ;;  %v13511_v55 = vor.u32 %v17535_v19, %v13508_v13  ;;  %v13492_v14 = vld [vmem:[%s28438_s26 + $0xdb8] sm:$0xf0]  ;;  %v22224_v42 = vpop.f32.mrf.mxu0 }
 0x215   :  { %4629 = vmatpush.bf16.msra.mxu2 %v12791_v0  ;;  %v13252_v0 = vld [vmem:[%s28438_s26 + $0xbd8] sm:$0xf0]  ;;  %v13383_v29 = vor.u32 %v17503_v37, %v13380_v39  ;;  %v17499_v19 = vld [vmem:[%s28438_s26 + $0xcac] sm:$0xf] }
 0x216   :  { %4615 = vmatpush.bf16.msra.mxu3 %v12663_v17  ;;  %4652 = vmatpush.bf16.msra.mxu1 %v13127_v44  ;;  %v17471_v17 = vld [vmem:[%s28438_s26 + $0xbcc] sm:$0xf]  ;;  %v13076_v61 = vld [vmem:[%s28438_s26 + $0xa78] sm:$0xf0] }
 0x217   :  { %v17531_v44 = vld [vmem:[%s28438_s26 + $0xdac] sm:$0xf]  ;;  %v13255_v1 = vor.u32 %v17471_v17, %v13252_v0  ;;  %v13236_v43 = vld [vmem:[%s28438_s26 + $0xbb8] sm:$0xf0] }
 0x218   :  { %4644 = vmatpush.bf16.msra.mxu0 %v12903_v6  ;;  %v17427_v6 = vld [vmem:[%s28438_s26 + $0xa6c] sm:$0xf]  ;;  %v13495_v13 = vor.u32 %v17531_v44, %v13492_v14  ;;  %v13060_v17 = vld [vmem:[%s28438_s26 + $0xa58] sm:$0xf0] }
 0x219   :  { %4630 = vmatpush.bf16.msra.mxu2 %v12775_v59  ;;  %v17527_v59 = vld [vmem:[%s28438_s26 + $0xd8c] sm:$0xf]  ;;  %v13220_v37 = vld [vmem:[%s28438_s26 + $0xb98] sm:$0xf0] }
 0x21a   :  { %4616 = vmatpush.bf16.msra.mxu3 %v12647_v16  ;;  %4653 = vmatpush.bf16.msra.mxu1 %v13111_v45  ;;  %v22235_v16 = vpop.f32.mrf.mxu3  ;;  %v13476_v45 = vld [vmem:[%s28438_s26 + $0xd98] sm:$0xf0]  ;;  %v17523_v14 = vld [vmem:[%s28438_s26 + $0xd6c] sm:$0xf] }
 0x21b   :  { %4645 = vmatmul.bf16.vlgmr.msra.gmra.mxu0 %v19401_v36  ;;  %v17463_v36 = vld [vmem:[%s28438_s26 + $0xb8c] sm:$0xf]  ;;  %v13479_v39 = vor.u32 %v17527_v59, %v13476_v45  ;;  %v13348_v44 = vld [vmem:[%s28438_s26 + $0xc98] sm:$0xf0] }
 0x21c   :  { %4693 = vmatpush.bf16.msrb.mxu0 %v13527_v3  ;;  %v17467_v3 = vld [vmem:[%s28438_s26 + $0xbac] sm:$0xf]  ;;  %4631 = vmatmul.bf16.vlgmr.msra.gmra.mxu2 %v19388_v31  ;;  %v13332_v59 = vld [vmem:[%s28438_s26 + $0xc78] sm:$0xf0] }
 0x21d   :  { %4679 = vmatpush.bf16.msrb.mxu2 %v13399_v49  ;;  %4617 = vmatmul.bf16.vlgmr.msra.gmra.mxu3 %v19181_v47  ;;  %v13364_v49 = vld [vmem:[%s28438_s26 + $0xcb8] sm:$0xf0]  ;;  %v13079_v47 = vor.u32 %v17427_v6, %v13076_v61  ;;  %v13239_v31 = vor.u32 %v17467_v3, %v13236_v43  ;;  %v13223_v6 = vor.u32 %v17463_v36, %v13220_v37  ;;  %v17419_v61 = vld [vmem:[%s28438_s26 + $0xa2c] sm:$0xf] }
 0x21e   :  { %4665 = vmatpush.bf16.msrb.mxu3 %v13271_v25  ;;  %v22249_v25 = vpop.f32.mrf.mxu2  ;;  %4654 = vmatpush.bf16.msra.mxu1 %v13095_v2  ;;  %v13367_v0 = vor.u32 %v17499_v19, %v13364_v49  ;;  %v13460_v2 = vld [vmem:[%s28438_s26 + $0xd78] sm:$0xf0]  ;;  %v17459_v43 = vld [vmem:[%s28438_s26 + $0xb6c] sm:$0xf] }
 0x21f   :  { %28461 = vst [vmem:[#allocation23_spill] sm:$0xff] %v22249_v25  ;;  %v13204_v19 = vld [vmem:[%s28438_s26 + $0xb78] sm:$0xf0]  ;;  %v13463_v49 = vor.u32 %v17523_v14, %v13460_v2  ;;  %v17519_v45 = vld [vmem:[%s28438_s26 + $0xd4c] sm:$0xf] }
 0x220   :  { %4694 = vmatpush.bf16.msrb.mxu0 %v13511_v55  ;;  %v17495_v55 = vld [vmem:[%s28438_s26 + $0xc8c] sm:$0xf]  ;;  %v13207_v36 = vor.u32 %v17459_v43, %v13204_v19  ;;  %v13188_v14 = vld [vmem:[%s28438_s26 + $0xb58] sm:$0xf0]  ;;  %v28462_v43 = vperm.slane %v19879_v5, 0 }
 0x221   :  { %4680 = vmatpush.bf16.msrb.mxu2 %v13383_v29  ;;  %v13044_v29 = vld [vmem:[%s28438_s26 + $0xa38] sm:$0xf0]  ;;  %v13351_v3 = vor.u32 %v17495_v55, %v13348_v44  ;;  %v17415_v37 = vld [vmem:[%s28438_s26 + $0xa0c] sm:$0xf] }
 0x222   :  { %4666 = vmatpush.bf16.msrb.mxu3 %v13255_v1  ;;  %4655 = vmatpush.bf16.msra.mxu1 %v13079_v47  ;;  %v13063_v1 = vor.u32 %v17423_v24, %v13060_v17  ;;  %v13444_v47 = vld [vmem:[%s28438_s26 + $0xd58] sm:$0xf0]  ;;  %v22305_v17 = vpop.f32.mrf.mxu3  ;;  %v17455_v44 = vld [vmem:[%s28438_s26 + $0xb4c] sm:$0xf]  ;;  %v3725_v19 = vadd.f32 %v20052_v11, %v28462_v43 }
 0x223   :  { %v13028_v55 = vld [vmem:[%s28438_s26 + $0xa18] sm:$0xf0]  ;;  %v17487_v2 = vld [vmem:[%s28438_s26 + $0xc4c] sm:$0xf] }
 0x224   :  { %4695 = vmatpush.bf16.msrb.mxu0 %v13495_v13  ;;  %v17491_v13 = vld [vmem:[%s28438_s26 + $0xc6c] sm:$0xf]  ;;  %v13172_v11 = vld [vmem:[%s28438_s26 + $0xb38] sm:$0xf0] }
 0x225   :  { %4681 = vmatpush.bf16.msrb.mxu2 %v13367_v0  ;;  %v13047_v0 = vor.u32 %v17419_v61, %v13044_v29  ;;  %v13316_v61 = vld [vmem:[%s28438_s26 + $0xc58] sm:$0xf0]  ;;  %v17571_v29 = vld [vmem:[%s28438_s26 + $0xeec] sm:$0xf] }
 0x226   :  { %4667 = vmatpush.bf16.msrb.mxu3 %v13239_v31  ;;  %v22301_v31 = vpop.f32.mrf.mxu0  ;;  %v22303_v24 = vpop.f32.mrf.mxu2  ;;  %4656 = vmatpush.bf16.msra.mxu1 %v13063_v1  ;;  %v13447_v1 = vor.u32 %v17519_v45, %v13444_v47  ;;  %v13191_v45 = vor.u32 %v17455_v44, %v13188_v14  ;;  %v13319_v47 = vor.u32 %v17487_v2, %v13316_v61  ;;  %v17451_v5 = vld [vmem:[%s28438_s26 + $0xb2c] sm:$0xf]  ;;  %v22364_v44 = vld [vmem:[%s28415_s3] sm:$0xf]  ;;  %v13412_v61 = vld [vmem:[%s28438_s26 + $0xd18] sm:$0xf0] }
 0x227   :  { %v17483_v43 = vld [vmem:[%s28438_s26 + $0xc2c] sm:$0xf]  ;;  %28463 = vst [vmem:[#allocation24_spill] sm:$0xff] %v22364_v44  ;;  %v668_v14 = vperm.slane %v22364_v44, 2  ;;  %v13908_v12 = vld [vmem:[%s28438_s26 + $0x10f8] sm:$0xf0] }
 0x228   :  { %4696 = vmatpush.bf16.msrb.mxu0 %v13479_v39  ;;  %v13335_v39 = vor.u32 %v17491_v13, %v13332_v59  ;;  %v17515_v13 = vld [vmem:[%s28438_s26 + $0xd2c] sm:$0xf]  ;;  %v13031_v59 = vor.u32 %v17415_v37, %v13028_v55  ;;  %v13636_v37 = vld [vmem:[%s28438_s26 + $0xed8] sm:$0xf0] }
 0x229   :  { %4682 = vmatpush.bf16.msrb.mxu2 %v13351_v3  ;;  %v13652_v3 = vld [vmem:[%s28438_s26 + $0xef8] sm:$0xf0] }
 0x22a   :  { %4668 = vmatpush.bf16.msrb.mxu3 %v13223_v6  ;;  %v22322_v6 = vpop.f32.mrf.mxu1  ;;  %4657 = vmatpush.bf16.msra.mxu1 %v13047_v0  ;;  %v13655_v58 = vor.u32 %v17571_v29, %v13652_v3  ;;  %v13300_v0 = vld [vmem:[%s28438_s26 + $0xc38] sm:$0xf0]  ;;  %v22375_v29 = vpop.f32.mrf.mxu3  ;;  %v17447_v3 = vld [vmem:[%s28438_s26 + $0xb0c] sm:$0xf] }
 0x22c   :  { %4697 = vmatpush.bf16.msrb.mxu0 %v13463_v49  ;;  %v13428_v49 = vld [vmem:[%s28438_s26 + $0xd38] sm:$0xf0] }
 0x22d   :  { %4683 = vmatpush.bf16.msrb.mxu2 %v13335_v39  ;;  %v13431_v55 = vor.u32 %v17515_v13, %v13428_v49  ;;  %v3739_v39 = vadd.f32 %v20069_v20, %v3725_v19  ;;  %v13175_v20 = vor.u32 %v17451_v5, %v13172_v11  ;;  %v17667_v19 = vld [vmem:[%s28438_s26 + $0x11ec] sm:$0xf]  ;;  %v14036_v13 = vld [vmem:[%s28438_s26 + $0x11f8] sm:$0xf0]  ;;  %v13303_v49 = vor.u32 %v17483_v43, %v13300_v0 }
 0x22e   :  { %4669 = vmatpush.bf16.msrb.mxu3 %v13207_v36  ;;  %v17567_v36 = vld [vmem:[%s28438_s26 + $0xecc] sm:$0xf]  ;;  %v22367_v2 = vpop.f32.mrf.mxu0  ;;  %4658 = vmatpush.bf16.msra.mxu1 %v13031_v59  ;;  %v13156_v59 = vld [vmem:[%s28438_s26 + $0xb18] sm:$0xf0]  ;;  %v22395_v11 = vpop.f32.mrf.mxu2  ;;  %v14039_v25 = vor.u32 %v17667_v19, %v14036_v13 }
 0x22f   :  { %v13639_v44 = vor.u32 %v17567_v36, %v13636_v37  ;;  %v13284_v5 = vld [vmem:[%s28438_s26 + $0xc18] sm:$0xf0]  ;;  %v17603_v43 = vld [vmem:[%s28438_s26 + $0xfec] sm:$0xf]  ;;  %v3753_v36 = vadd.f32 %v20104_v50, %v3739_v39  ;;  %v4255_v39 = vadd.f32 %v22183_v10, %v668_v14 }
 0x230   :  { %4698 = vmatpush.bf16.msrb.mxu0 %v13447_v1  ;;  %v17511_v1 = vld [vmem:[%s28438_s26 + $0xd0c] sm:$0xf]  ;;  %v13780_v37 = vld [vmem:[%s28438_s26 + $0xff8] sm:$0xf0] }
 0x231   :  { %4684 = vmatpush.bf16.msrb.mxu2 %v13319_v47  ;;  %v13620_v47 = vld [vmem:[%s28438_s26 + $0xeb8] sm:$0xf0]  ;;  %v13415_v0 = vor.u32 %v17511_v1, %v13412_v61  ;;  %4659 = vmatmul.bf16.vlgmr.msra.gmra.mxu1 %v19399_v35  ;;  %v13159_v1 = vor.u32 %v17447_v3, %v13156_v59  ;;  %v17663_v35 = vld [vmem:[%s28438_s26 + $0x11cc] sm:$0xf]  ;;  %v13783_v34 = vor.u32 %v17603_v43, %v13780_v37 }
 0x232   :  { %4670 = vmatpush.bf16.msrb.mxu3 %v13191_v45  ;;  %4707 = vmatpush.bf16.msrb.mxu1 %v13655_v58  ;;  %v17479_v45 = vld [vmem:[%s28438_s26 + $0xc0c] sm:$0xf]  ;;  %v22417_v27 = vpop.f32.mrf.mxu1  ;;  %v14020_v50 = vld [vmem:[%s28438_s26 + $0x11d8] sm:$0xf0]  ;;  %v3767_v10 = vadd.f32 %v20121_v62, %v3753_v36 }
 0x233   :  { %v17563_v58 = vld [vmem:[%s28438_s26 + $0xeac] sm:$0xf]  ;;  %v13287_v61 = vor.u32 %v17479_v45, %v13284_v5  ;;  %v13604_v3 = vld [vmem:[%s28438_s26 + $0xe98] sm:$0xf0]  ;;  %v14023_v59 = vor.u32 %v17663_v35, %v14020_v50  ;;  %v4257_v45 = vadd.f32 %v22251_v21, %v668_v14  ;;  %v22458_v21 = vpop.f32.mrf.mxu3 }
 0x234   :  { %4699 = vmatpush.bf16.msrb.mxu0 %v13431_v55  ;;  %v17635_v55 = vld [vmem:[%s28438_s26 + $0x10ec] sm:$0xf]  ;;  %v13623_v22 = vor.u32 %v17563_v58, %v13620_v47  ;;  %v3781_v5 = vadd.f32 %v20274_v4, %v3767_v10  ;;  %v4269_v58 = vadd.f32 %v22235_v16, %v4255_v39  ;;  %v13588_v4 = vld [vmem:[%s28438_s26 + $0xe78] sm:$0xf0]  ;;  %v28464_v16 = vperm.slane %v20822_v57, 1 }
 0x235   :  { %4685 = vmatpush.bf16.msrb.mxu2 %v13303_v49  ;;  %v13911_v19 = vor.u32 %v17635_v55, %v13908_v12  ;;  %v17599_v13 = vld [vmem:[%s28438_s26 + $0xfcc] sm:$0xf]  ;;  %v13764_v12 = vld [vmem:[%s28438_s26 + $0xfd8] sm:$0xf0]  ;;  %v4271_v57 = vadd.f32 %v22305_v17, %v4257_v45 }
 0x236   :  { %4671 = vmatpush.bf16.msrb.mxu3 %v13175_v20  ;;  %4708 = vmatpush.bf16.msrb.mxu1 %v13639_v44  ;;  %v17559_v20 = vld [vmem:[%s28438_s26 + $0xe8c] sm:$0xf]  ;;  %v13892_v49 = vld [vmem:[%s28438_s26 + $0x10d8] sm:$0xf0]  ;;  %v22454_v47 = vpop.f32.mrf.mxu0  ;;  %v13767_v14 = vor.u32 %v17599_v13, %v13764_v12  ;;  %v3991_v55 = vadd.f32 %v20957_v51, %v28464_v16 }
 0x237   :  { %v17631_v44 = vld [vmem:[%s28438_s26 + $0x10cc] sm:$0xf]  ;;  %v13607_v43 = vor.u32 %v17559_v20, %v13604_v3  ;;  %v13876_v35 = vld [vmem:[%s28438_s26 + $0x10b8] sm:$0xf0] }
 0x238   :  { %4700 = vmatpush.bf16.msrb.mxu0 %v13415_v0  ;;  %v17659_v62 = vld [vmem:[%s28438_s26 + $0x11ac] sm:$0xf]  ;;  %v22456_v0 = vpop.f32.mrf.mxu2  ;;  %v13895_v36 = vor.u32 %v17631_v44, %v13892_v49  ;;  %v13988_v51 = vld [vmem:[%s28438_s26 + $0x1198] sm:$0xf0]  ;;  %v4005_v13 = vadd.f32 %v21016_v15, %v3991_v55 }
 0x239   :  { %4686 = vmatpush.bf16.msrb.mxu2 %v13287_v61  ;;  %v17555_v37 = vld [vmem:[%s28438_s26 + $0xe6c] sm:$0xf]  ;;  %v3795_v61 = vadd.f32 %v20282_v9, %v3781_v5  ;;  %v13572_v3 = vld [vmem:[%s28438_s26 + $0xe58] sm:$0xf0] }
 0x23a   :  { %4672 = vmatpush.bf16.msrb.mxu3 %v13159_v1  ;;  %4709 = vmatpush.bf16.msrb.mxu1 %v13623_v22  ;;  %v17595_v22 = vld [vmem:[%s28438_s26 + $0xfac] sm:$0xf]  ;;  %v22483_v39 = vpop.f32.mrf.mxu1  ;;  %v13591_v17 = vor.u32 %v17555_v37, %v13588_v4  ;;  %v13732_v10 = vld [vmem:[%s28438_s26 + $0xf98] sm:$0xf0]  ;;  %v4019_v37 = vadd.f32 %v21125_v26, %v4005_v13 }
 0x23b   :  { %v17627_v1 = vld [vmem:[%s28438_s26 + $0x10ac] sm:$0xf]  ;;  %4701 = vmatmul.bf16.vlgmr.msrb.gmra.mxu0 %v19629_v41  ;;  %v13860_v44 = vld [vmem:[%s28438_s26 + $0x1098] sm:$0xf0]  ;;  %v22525_v5 = vpop.f32.mrf.mxu3 }
 0x23c   :  { %4749 = vmatpush.bf16.msra.mxu0 %v14039_v25  ;;  %v14004_v25 = vld [vmem:[%s28438_s26 + $0x11b8] sm:$0xf0]  ;;  %4687 = vmatmul.bf16.vlgmr.msrb.gmra.mxu2 %v19616_v32  ;;  %v13879_v32 = vor.u32 %v17627_v1, %v13876_v35  ;;  %v17551_v41 = vld [vmem:[%s28438_s26 + $0xe4c] sm:$0xf] }
 0x23d   :  { %4735 = vmatpush.bf16.msra.mxu2 %v13911_v19  ;;  %4673 = vmatmul.bf16.vlgmr.msrb.gmra.mxu3 %v19409_v40  ;;  %v14007_v50 = vor.u32 %v17659_v62, %v14004_v25  ;;  %v17655_v40 = vld [vmem:[%s28438_s26 + $0x118c] sm:$0xf]  ;;  %v4283_v19 = vadd.f32 %v22224_v42, %v4269_v58  ;;  %v3809_v42 = vadd.f32 %v20329_v48, %v3795_v61  ;;  %v13972_v15 = vld [vmem:[%s28438_s26 + $0x1178] sm:$0xf0] }
 0x23e   :  { %4721 = vmatpush.bf16.msra.mxu3 %v13783_v34  ;;  %v13748_v34 = vld [vmem:[%s28438_s26 + $0xfb8] sm:$0xf0]  ;;  %4710 = vmatpush.bf16.msrb.mxu1 %v13607_v43  ;;  %v17591_v9 = vld [vmem:[%s28438_s26 + $0xf8c] sm:$0xf]  ;;  %v13991_v49 = vor.u32 %v17655_v40, %v13988_v51  ;;  %v22523_v62 = vpop.f32.mrf.mxu0  ;;  %v13575_v25 = vor.u32 %v17551_v41, %v13572_v3 }
 0x23f   :  { %v13751_v20 = vor.u32 %v17595_v22, %v13748_v34  ;;  %v17623_v12 = vld [vmem:[%s28438_s26 + $0x108c] sm:$0xf]  ;;  %v4297_v45 = vadd.f32 %v22303_v24, %v4283_v19  ;;  %v13735_v58 = vor.u32 %v17591_v9, %v13732_v10  ;;  %v13716_v4 = vld [vmem:[%s28438_s26 + $0xf78] sm:$0xf0] }
 0x240   :  { %4750 = vmatpush.bf16.msra.mxu0 %v14023_v59  ;;  %v4285_v59 = vadd.f32 %v22301_v31, %v4271_v57  ;;  %v17651_v48 = vld [vmem:[%s28438_s26 + $0x116c] sm:$0xf]  ;;  %v13863_v31 = vor.u32 %v17623_v12, %v13860_v44  ;;  %v13844_v16 = vld [vmem:[%s28438_s26 + $0x1078] sm:$0xf0]  ;;  %v22548_v1 = vpop.f32.mrf.mxu2 }
 0x241   :  { %4736 = vmatpush.bf16.msra.mxu2 %v13895_v36  ;;  %v17547_v43 = vld [vmem:[%s28438_s26 + $0xe2c] sm:$0xf]  ;;  %v3823_v36 = vadd.f32 %v20337_v56, %v3809_v42  ;;  %v13975_v55 = vor.u32 %v17651_v48, %v13972_v15  ;;  %v13956_v26 = vld [vmem:[%s28438_s26 + $0x1158] sm:$0xf0] }
 0x242   :  { %4722 = vmatpush.bf16.msra.mxu3 %v13767_v14  ;;  %4711 = vmatpush.bf16.msrb.mxu1 %v13591_v17  ;;  %v13556_v14 = vld [vmem:[%s28438_s26 + $0xe38] sm:$0xf0]  ;;  %v17587_v24 = vld [vmem:[%s28438_s26 + $0xf6c] sm:$0xf]  ;;  %v4299_v34 = vadd.f32 %v22395_v11, %v4285_v59  ;;  %v22561_v40 = vpop.f32.mrf.mxu1  ;;  %v4033_v17 = vadd.f32 %v21127_v63, %v4019_v37 }
 0x243   :  { %v17619_v22 = vld [vmem:[%s28438_s26 + $0x106c] sm:$0xf]  ;;  %v3837_v35 = vadd.f32 %v20484_v8, %v3823_v36  ;;  %v13559_v57 = vor.u32 %v17547_v43, %v13556_v14  ;;  %v13719_v51 = vor.u32 %v17587_v24, %v13716_v4  ;;  %v13540_v19 = vld [vmem:[%s28438_s26 + $0xe18] sm:$0xf0] }
 0x244   :  { %4751 = vmatpush.bf16.msra.mxu0 %v14007_v50  ;;  %v17647_v56 = vld [vmem:[%s28438_s26 + $0x114c] sm:$0xf]  ;;  %v4311_v50 = vadd.f32 %v22322_v6, %v4297_v45  ;;  %v13847_v61 = vor.u32 %v17619_v22, %v13844_v16  ;;  %v13700_v6 = vld [vmem:[%s28438_s26 + $0xf58] sm:$0xf0]  ;;  %v4313_v42 = vadd.f32 %v22417_v27, %v4299_v34  ;;  %v4047_v12 = vadd.f32 %v21182_v30, %v4033_v17 }
 0x245   :  { %4737 = vmatpush.bf16.msra.mxu2 %v13879_v32  ;;  %v17543_v11 = vld [vmem:[%s28438_s26 + $0xe0c] sm:$0xf]  ;;  %v13828_v41 = vld [vmem:[%s28438_s26 + $0x1058] sm:$0xf0]  ;;  %v13959_v9 = vor.u32 %v17647_v56, %v13956_v26  ;;  %v3851_v10 = vadd.f32 %v20495_v28, %v3837_v35 }
 0x246   :  { %4723 = vmatpush.bf16.msra.mxu3 %v13751_v20  ;;  %4712 = vmatpush.bf16.msrb.mxu1 %v13575_v25  ;;  %v17583_v8 = vld [vmem:[%s28438_s26 + $0xf4c] sm:$0xf]  ;;  %v4325_v20 = vadd.f32 %v22375_v29, %v4311_v50  ;;  %v14084_v63 = vld [vmem:[%s28438_s26 + $0x1258] sm:$0xf0]  ;;  %v13543_v44 = vor.u32 %v17543_v11, %v13540_v19  ;;  %v4327_v27 = vadd.f32 %v22458_v21, %v4313_v42  ;;  %v22604_v45 = vpop.f32.mrf.mxu0  ;;  %v28465_v19 = vld [vmem:[#allocation2_spill] sm:$0xff] }
 0x247   :  { %v17615_v32 = vld [vmem:[%s28438_s26 + $0x104c] sm:$0xf]  ;;  %v13940_v13 = vld [vmem:[%s28438_s26 + $0x1138] sm:$0xf0]  ;;  %v4061_v28 = vadd.f32 %v21235_v7, %v4047_v12  ;;  %v3865_v37 = vadd.f32 %v20542_v60, %v3851_v10  ;;  %v28467_v10 = vld [vmem:[#allocation12_spill] sm:$0xff] }
 0x248   :  { %4752 = vmatpush.bf16.msra.mxu0 %v13991_v49  ;;  %v17679_v3 = vld [vmem:[%s28438_s26 + $0x124c] sm:$0xf]  ;;  %v13703_v49 = vor.u32 %v17583_v8, %v13700_v6  ;;  %v13831_v59 = vor.u32 %v17615_v32, %v13828_v41  ;;  %v13684_v15 = vld [vmem:[%s28438_s26 + $0xf38] sm:$0xf0]  ;;  %v4339_v30 = vadd.f32 %v22367_v2, %v4325_v20  ;;  %v22615_v7 = vpop.f32.mrf.mxu2  ;;  %v22617_v2 = vpop.f32.mrf.mxu3  ;;  %v4341_v22 = vadd.f32 %v22454_v47, %v4327_v27  ;;  %v14278_v32 = vld [vmem:[%s28416_s4 + $0x170] sm:$0xf] }
 0x249   :  { %4738 = vmatpush.bf16.msra.mxu2 %v13863_v31  ;;  %v17643_v29 = vld [vmem:[%s28438_s26 + $0x112c] sm:$0xf]  ;;  %v14087_v25 = vor.u32 %v17679_v3, %v14084_v63  ;;  %v14068_v14 = vld [vmem:[%s28438_s26 + $0x1238] sm:$0xf0]  ;;  %v4075_v4 = vadd.f32 %v21329_v18, %v4061_v28  ;;  %v3879_v8 = vadd.f32 %v28465_v19, %v3865_v37  ;;  %v17729_v41 = vld [vmem:[%s28416_s4 + $0x174] sm:$0xf0] }
 0x24a   :  { %4724 = vmatpush.bf16.msra.mxu3 %v13735_v58  ;;  %4713 = vmatpush.bf16.msrb.mxu1 %v13559_v57  ;;  %v17579_v48 = vld [vmem:[%s28438_s26 + $0xf2c] sm:$0xf]  ;;  %v13812_v58 = vld [vmem:[%s28438_s26 + $0x1038] sm:$0xf0]  ;;  %v13943_v43 = vor.u32 %v17643_v29, %v13940_v13  ;;  %v22631_v16 = vpop.f32.mrf.mxu1  ;;  %v4353_v18 = vadd.f32 %v22456_v0, %v4339_v30  ;;  %v14150_v0 = vld [vmem:[%s28416_s4 + $0x70] sm:$0xf]  ;;  %v4355_v3 = vadd.f32 %v22548_v1, %v4341_v22 }
 0x24b   :  { %v17611_v21 = vld [vmem:[%s28438_s26 + $0x102c] sm:$0xf]  ;;  %v13924_v36 = vld [vmem:[%s28438_s26 + $0x1118] sm:$0xf0]  ;;  %v14142_v1 = vld [vmem:[%s28416_s4 + $0x60] sm:$0xf] }
 0x24c   :  { %4753 = vmatpush.bf16.msra.mxu0 %v13975_v55  ;;  %v17675_v31 = vld [vmem:[%s28438_s26 + $0x122c] sm:$0xf]  ;;  %v13687_v55 = vor.u32 %v17579_v48, %v13684_v15  ;;  %v13815_v34 = vor.u32 %v17611_v21, %v13812_v58  ;;  %v13668_v26 = vld [vmem:[%s28438_s26 + $0xf18] sm:$0xf0]  ;;  %v4367_v20 = vadd.f32 %v22483_v39, %v4353_v18  ;;  %v28468_v48 = vld [vmem:[#allocation4_spill] sm:$0xff]  ;;  %v4369_v28 = vadd.f32 %v22561_v40, %v4355_v3 }
 0x24d   :  { %4739 = vmatpush.bf16.msra.mxu2 %v13847_v61  ;;  %v17639_v24 = vld [vmem:[%s28438_s26 + $0x110c] sm:$0xf]  ;;  %v14071_v47 = vor.u32 %v17675_v31, %v14068_v14  ;;  %v13796_v35 = vld [vmem:[%s28438_s26 + $0x1018] sm:$0xf0]  ;;  %v14214_v61 = vld [vmem:[%s28416_s4 + $0xf0] sm:$0xf]  ;;  %v3893_v15 = vadd.f32 %v28468_v48, %v3879_v8 }
 0x24e   :  { %4725 = vmatpush.bf16.msra.mxu3 %v13719_v51  ;;  %4714 = vmatpush.bf16.msrb.mxu1 %v13543_v44  ;;  %v17575_v56 = vld [vmem:[%s28438_s26 + $0xf0c] sm:$0xf]  ;;  %v14052_v57 = vld [vmem:[%s28438_s26 + $0x1218] sm:$0xf0]  ;;  %v13927_v11 = vor.u32 %v17639_v24, %v13924_v36  ;;  %v17697_v51 = vld [vmem:[%s28416_s4 + $0x74] sm:$0xf0]  ;;  %v4381_v39 = vadd.f32 %v22525_v5, %v4367_v20  ;;  %v22676_v63 = vpop.f32.mrf.mxu0  ;;  %v4383_v40 = vadd.f32 %v22617_v2, %v4369_v28 }
 0x24f   :  { %v17607_v60 = vld [vmem:[%s28438_s26 + $0x100c] sm:$0xf]  ;;  %v14151_v13 = vor.u32 %v17697_v51, %v14150_v0  ;;  %v14206_v5 = vld [vmem:[%s28416_s4 + $0xe0] sm:$0xf]  ;;  %v17711_v30 = vld [vmem:[%s28416_s4 + $0xe4] sm:$0xf0] }
 0x250   :  { %4754 = vmatpush.bf16.msra.mxu0 %v13959_v9  ;;  %v17671_v50 = vld [vmem:[%s28438_s26 + $0x120c] sm:$0xf]  ;;  %v13671_v9 = vor.u32 %v17575_v56, %v13668_v26  ;;  %v13799_v42 = vor.u32 %v17607_v60, %v13796_v35  ;;  %v4436_v44 = vpop.f32.mrf.mxu3  ;;  %v17727_v21 = vld [vmem:[%s28416_s4 + $0x164] sm:$0xf0]  ;;  %v28469_v58 = vld [vmem:[#allocation13_spill] sm:$0xff]  ;;  %v4395_v14 = vadd.f32 %v22523_v62, %v4381_v39  ;;  %v14207_v22 = vor.u32 %v17711_v30, %v14206_v5 }
 0x251   :  { %4740 = vmatpush.bf16.msra.mxu2 %v13831_v59  ;;  %4715 = vmatmul.bf16.vlgmr.msrb.gmra.mxu1 %v19627_v38  ;;  %v28466_v6 = vld [vmem:[#allocation11_spill] sm:$0xff]  ;;  %v17713_v38 = vld [vmem:[%s28416_s4 + $0xf4] sm:$0xf0]  ;;  %v14055_v29 = vor.u32 %v17671_v50, %v14052_v57  ;;  %v28470_v36 = vld [vmem:[#allocation14_spill] sm:$0xff] }
 0x252   :  { %4726 = vmatpush.bf16.msra.mxu3 %v13703_v49  ;;  %4768 = vmatpush.bf16.msra.mxu1 %v14087_v25  ;;  %v4089_v17 = vadd.f32 %v28466_v6, %v4075_v4  ;;  %v14215_v27 = vor.u32 %v17713_v38, %v14214_v61  ;;  %v14279_v49 = vor.u32 %v17729_v41, %v14278_v32  ;;  %v17695_v59 = vld [vmem:[%s28416_s4 + $0x64] sm:$0xf0]  ;;  %v14270_v25 = vld [vmem:[%s28416_s4 + $0x160] sm:$0xf]  ;;  %v4424_v4 = vpop.f32.mrf.mxu1  ;;  %v17693_v62 = vld [vmem:[%s28416_s4 + $0x54] sm:$0xf0] }
 0x253   :  { %v14143_v24 = vor.u32 %v17695_v59, %v14142_v1  ;;  %v14198_v2 = vld [vmem:[%s28416_s4 + $0xd0] sm:$0xf]  ;;  %v28471_v56 = vld [vmem:[#allocation5_spill] sm:$0xff]  ;;  %v28472_v35 = vld [vmem:[#allocation3_spill] sm:$0xff] }
 0x254   :  { %4755 = vmatpush.bf16.msra.mxu0 %v13943_v43  ;;  %v4103_v12 = vadd.f32 %v28467_v10, %v4089_v17  ;;  %v4410_v43 = vpop.f32.mrf.mxu2  ;;  %v3907_v26 = vadd.f32 %v28471_v56, %v3893_v15  ;;  %v17709_v60 = vld [vmem:[%s28416_s4 + $0xd4] sm:$0xf0]  ;;  %v14262_v18 = vld [vmem:[%s28416_s4 + $0x150] sm:$0xf]  ;;  %v14126_v19 = vld [vmem:[%s28416_s4 + $0x40] sm:$0xf] }
 0x255   :  { %4741 = vmatpush.bf16.msra.mxu2 %v13815_v34  ;;  %v14134_v34 = vld [vmem:[%s28416_s4 + $0x50] sm:$0xf]  ;;  %v14199_v51 = vor.u32 %v17709_v60, %v14198_v2  ;;  %v17707_v6 = vld [vmem:[%s28416_s4 + $0xc4] sm:$0xf0]  ;;  %v14254_v17 = vld [vmem:[%s28416_s4 + $0x140] sm:$0xf] }
 0x256   :  { %4727 = vmatpush.bf16.msra.mxu3 %v13687_v55  ;;  %4769 = vmatpush.bf16.msra.mxu1 %v14071_v47  ;;  %v4117_v31 = vadd.f32 %v28469_v58, %v4103_v12  ;;  %v14271_v55 = vor.u32 %v17727_v21, %v14270_v25  ;;  %v17725_v47 = vld [vmem:[%s28416_s4 + $0x154] sm:$0xf0]  ;;  %v3921_v50 = vadd.f32 %v28472_v35, %v3907_v26  ;;  %v4452_v8 = vpop.f32.mrf.mxu0  ;;  %v17723_v20 = vld [vmem:[%s28416_s4 + $0x144] sm:$0xf0]  ;;  %v28474_v3 = vld [vmem:[#allocation6_spill] sm:$0xff] }
 0x257   :  { %v14135_v57 = vor.u32 %v17693_v62, %v14134_v34  ;;  %v14263_v61 = vor.u32 %v17725_v47, %v14262_v18  ;;  %v14255_v12 = vor.u32 %v17723_v20, %v14254_v17  ;;  %v14246_v1 = vld [vmem:[%s28416_s4 + $0x130] sm:$0xf]  ;;  %v17721_v59 = vld [vmem:[%s28416_s4 + $0x134] sm:$0xf0] }
 0x258   :  { %4756 = vmatpush.bf16.msra.mxu0 %v13927_v11  ;;  %v4131_v37 = vadd.f32 %v28470_v36, %v4117_v31  ;;  %v28473_v11 = vld [vmem:[#allocation15_spill] sm:$0xff]  ;;  %v4438_v41 = vpop.f32.mrf.mxu3  ;;  %v28475_v5 = vld [vmem:[#allocation9_spill] sm:$0xff]  ;;  %v28476_v15 = vld [vmem:[#allocation20_spill] sm:$0xff]  ;;  %v14247_v58 = vor.u32 %v17721_v59, %v14246_v1 }
 0x259   :  { %4742 = vmatpush.bf16.msra.mxu2 %v13799_v42  ;;  %v14110_v31 = vld [vmem:[%s28416_s4 + $0x20] sm:$0xf]  ;;  %v28479_v26 = vld [vmem:[#allocation17_spill] sm:$0xff]  ;;  %v17712_v59 = vld [vmem:[%s28416_s4 + $0xf4] sm:$0xf] }
 0x25a   :  { %4728 = vmatpush.bf16.msra.mxu3 %v13671_v9  ;;  %4770 = vmatpush.bf16.msra.mxu1 %v14055_v29  ;;  %v4145_v0 = vadd.f32 %v28473_v11, %v4131_v37  ;;  %v3935_v9 = vadd.f32 %v28474_v3, %v3921_v50  ;;  %v28477_v36 = vld [vmem:[#allocation10_spill] sm:$0xff]  ;;  %v14102_v50 = vld [vmem:[%s28416_s4 + $0x10] sm:$0xf]  ;;  %v17701_v11 = vld [vmem:[%s28416_s4 + $0x94] sm:$0xf0] }
 0x25b   :  { %4757 = vmatmul.bf16.vlgmr.msra.gmra.mxu0 %v19850_v54  ;;  %v17691_v54 = vld [vmem:[%s28416_s4 + $0x44] sm:$0xf0]  ;;  %v28484_v3 = vld [vmem:[#allocation22_spill] sm:$0xff]  ;;  %v14152_v1 = vld [vmem:[%s28416_s4 + $0x78] sm:$0xf0] }
 0x25c   :  { %4743 = vmatmul.bf16.vlgmr.msra.gmra.mxu2 %v19848_v52  ;;  %v4397_v52 = vadd.f32 %v22604_v45, %v4383_v40  ;;  %v14190_v45 = vld [vmem:[%s28416_s4 + $0xc0] sm:$0xf]  ;;  %v4159_v38 = vadd.f32 %v21602_v23, %v4145_v0  ;;  %v4464_v32 = vpop.f32.mrf.mxu2  ;;  %v14127_v39 = vor.u32 %v17691_v54, %v14126_v19  ;;  %v17689_v23 = vld [vmem:[%s28416_s4 + $0x34] sm:$0xf0]  ;;  %v3949_v48 = vadd.f32 %v28475_v5, %v3935_v9  ;;  %v14230_v0 = vld [vmem:[%s28416_s4 + $0x110] sm:$0xf] }
 0x25d   :  { %5207 = vmatpush.bf16.msrb.mxu2 %v14279_v49  ;;  %4729 = vmatmul.bf16.vlgmr.msra.gmra.mxu3 %v19637_v46  ;;  %v4409_v46 = vadd.f32 %v22615_v7, %v4395_v14  ;;  %v14191_v10 = vor.u32 %v17707_v6, %v14190_v45  ;;  %v14174_v14 = vld [vmem:[%s28416_s4 + $0xa0] sm:$0xf]  ;;  %v28481_v54 = vld [vmem:[#allocation23_spill] sm:$0xff]  ;;  %v28483_v6 = vld [vmem:[#allocation21_spill] sm:$0xff] }
 0x25e   :  { %5179 = vmatpush.bf16.msrb.mxu3 %v14151_v13  ;;  %5193 = vmatpush.bf16.msrb.mxu1 %v14215_v27  ;;  %v4173_v29 = vadd.f32 %v22106_v33, %v4159_v38  ;;  %v4478_v13 = vpop.f32.mrf.mxu1  ;;  %v14118_v27 = vld [vmem:[%s28416_s4 + $0x30] sm:$0xf]  ;;  %v17705_v33 = vld [vmem:[%s28416_s4 + $0xb4] sm:$0xf0]  ;;  %v14238_v40 = vld [vmem:[%s28416_s4 + $0x120] sm:$0xf]  ;;  %v3963_v37 = vadd.f32 %v28477_v36, %v3949_v48 }
 0x25f   :  { %v4423_v7 = vadd.f32 %v22631_v16, %v4409_v46  ;;  %v4411_v16 = vadd.f32 %v4410_v43, %v4397_v52  ;;  %v17687_v43 = vld [vmem:[%s28416_s4 + $0x24] sm:$0xf0]  ;;  %v17685_v46 = vld [vmem:[%s28416_s4 + $0x14] sm:$0xf0]  ;;  %v14166_v52 = vld [vmem:[%s28416_s4 + $0x90] sm:$0xf] }
 0x260   :  { %v4187_v28 = vadd.f32 %v28476_v15, %v4173_v29  ;;  %v4492_v34 = vpop.f32.mrf.mxu3  ;;  %v14111_v56 = vor.u32 %v17687_v43, %v14110_v31  ;;  %v14158_v29 = vld [vmem:[%s28416_s4 + $0x80] sm:$0xf]  ;;  %v14216_v5 = vld [vmem:[%s28416_s4 + $0xf8] sm:$0xf0]  ;;  %v28486_v48 = vld [vmem:[#allocation7_spill] sm:$0xff] }
 0x261   :  { %5208 = vmatpush.bf16.msrb.mxu2 %v14271_v55  ;;  %v4437_v42 = vadd.f32 %v4436_v44, %v4423_v7  ;;  %v14182_v44 = vld [vmem:[%s28416_s4 + $0xb0] sm:$0xf]  ;;  %v4425_v49 = vadd.f32 %v4424_v4, %v4411_v16  ;;  %14091 = vmatmul.msk.bf16.vlgmr.msra.gmra.mxu1 %vm3709_vm0, %v19751_v53  ;;  %v14119_v53 = vor.u32 %v17689_v23, %v14118_v27  ;;  %v28478_v4 = vld [vmem:[#allocation19_spill] sm:$0xff]  ;;  %v4506_v55 = vpop.f32.mrf.mxu0  ;;  %v14222_v23 = vld [vmem:[%s28416_s4 + $0x100] sm:$0xf]  ;;  %v4777_v15 = vmax.f32 %v28486_v48, 0.0 }
 0x262   :  { %5180 = vmatpush.bf16.msrb.mxu3 %v14143_v24  ;;  %5194 = vmatpush.bf16.msrb.mxu1 %v14207_v22  ;;  %v14183_v21 = vor.u32 %v17705_v33, %v14182_v44  ;;  %v17719_v24 = vld [vmem:[%s28416_s4 + $0x124] sm:$0xf0]  ;;  %v4201_v22 = vadd.f32 %v28478_v4, %v4187_v28  ;;  %v14167_v16 = vor.u32 %v17701_v11, %v14166_v52  ;;  %v17694_v4 = vld [vmem:[%s28416_s4 + $0x64] sm:$0xf]  ;;  %v17692_v52 = vld [vmem:[%s28416_s4 + $0x54] sm:$0xf] }
 0x263   :  { %v4451_v30 = vadd.f32 %v22676_v63, %v4437_v42  ;;  %v4439_v25 = vadd.f32 %v4438_v41, %v4425_v49  ;;  %v17703_v63 = vld [vmem:[%s28416_s4 + $0xa4] sm:$0xf0]  ;;  %v14239_v35 = vor.u32 %v17719_v24, %v14238_v40  ;;  %v14094_v41 = vld [vmem:[%s28416_s4] sm:$0xf]  ;;  %v17696_v49 = vld [vmem:[%s28416_s4 + $0x74] sm:$0xf] }
 0x264   :  { %v4215_v60 = vadd.f32 %v28479_v26, %v4201_v22  ;;  %v4466_v18 = vpop.f32.mrf.mxu2  ;;  %v14175_v47 = vor.u32 %v17703_v63, %v14174_v14  ;;  %v17715_v44 = vld [vmem:[%s28416_s4 + $0x104] sm:$0xf0]  ;;  %v14155_v36 = vor.u32 %v17696_v49, %v14152_v1  ;;  %v17726_v26 = vld [vmem:[%s28416_s4 + $0x164] sm:$0xf]  ;;  %v14136_v11 = vld [vmem:[%s28416_s4 + $0x58] sm:$0xf0] }
 0x265   :  { %5209 = vmatpush.bf16.msrb.mxu2 %v14263_v61  ;;  %v4465_v62 = vadd.f32 %v4464_v32, %v4451_v30  ;;  %v4453_v2 = vadd.f32 %v4452_v8, %v4439_v25  ;;  %v28480_v61 = vld [vmem:[#allocation8_spill] sm:$0xff]  ;;  %v14103_v32 = vor.u32 %v17685_v46, %v14102_v50  ;;  %v14223_v63 = vor.u32 %v17715_v44, %v14222_v23  ;;  %v17686_v23 = vld [vmem:[%s28416_s4 + $0x24] sm:$0xf]  ;;  %v14112_v49 = vld [vmem:[%s28416_s4 + $0x28] sm:$0xf0] }
 0x266   :  { %5181 = vmatpush.bf16.msrb.mxu3 %v14135_v57  ;;  %5195 = vmatpush.bf16.msrb.mxu1 %v14199_v51  ;;  %v17717_v51 = vld [vmem:[%s28416_s4 + $0x114] sm:$0xf0]  ;;  %v3977_v19 = vadd.f32 %v28480_v61, %v3963_v37  ;;  %v4229_v45 = vadd.f32 %v28481_v54, %v4215_v60  ;;  %v4480_v7 = vpop.f32.mrf.mxu1  ;;  %v28482_v8 = vld [vmem:[#allocation16_spill] sm:$0xff]  ;;  %v14219_v37 = vor.u32 %v17712_v59, %v14216_v5  ;;  %v14272_v60 = vld [vmem:[%s28416_s4 + $0x168] sm:$0xf0] }
 0x267   :  { %v4479_v57 = vadd.f32 %v4478_v13, %v4465_v62  ;;  %v4227_v17 = vadd.f32 %v28483_v6, %v28482_v8  ;;  %v4467_v20 = vadd.f32 %v4466_v18, %v4453_v2  ;;  %v14231_v42 = vor.u32 %v17717_v51, %v14230_v0  ;;  %v17699_v13 = vld [vmem:[%s28416_s4 + $0x84] sm:$0xf0]  ;;  %v14208_v62 = vld [vmem:[%s28416_s4 + $0xe8] sm:$0xf0]  ;;  %v17708_v0 = vld [vmem:[%s28416_s4 + $0xd4] sm:$0xf] }
 0x268   :  { %v4243_v9 = vadd.f32 %v28484_v3, %v4229_v45  ;;  %v4494_v33 = vpop.f32.mrf.mxu3  ;;  %v14159_v14 = vor.u32 %v17699_v13, %v14158_v29  ;;  %v14200_v51 = vld [vmem:[%s28416_s4 + $0xd8] sm:$0xf0]  ;;  %v17724_v61 = vld [vmem:[%s28416_s4 + $0x154] sm:$0xf]  ;;  %v14139_v54 = vor.u32 %v17692_v52, %v14136_v11  ;;  %v14128_v6 = vld [vmem:[%s28416_s4 + $0x48] sm:$0xf0]  ;;  %v14115_v48 = vor.u32 %v17686_v23, %v14112_v49 }
 0x269   :  { %5210 = vmatpush.bf16.msrb.mxu2 %v14255_v12  ;;  %v4493_v38 = vadd.f32 %v4492_v34, %v4479_v57  ;;  %v4481_v27 = vadd.f32 %v4480_v7, %v4467_v20  ;;  %v4508_v43 = vpop.f32.mrf.mxu0  ;;  %v17710_v34 = vld [vmem:[%s28416_s4 + $0xe4] sm:$0xf]  ;;  %v14275_v57 = vor.u32 %v17726_v26, %v14272_v60  ;;  %v14203_v45 = vor.u32 %v17708_v0, %v14200_v51  ;;  %v14192_v20 = vld [vmem:[%s28416_s4 + $0xc8] sm:$0xf0]  ;;  %v14184_v29 = vld [vmem:[%s28416_s4 + $0xb8] sm:$0xf0] }
 0x26a   :  { %5182 = vmatpush.bf16.msrb.mxu3 %v14127_v39  ;;  %5196 = vmatpush.bf16.msrb.mxu1 %v14191_v10  ;;  %v17683_v39 = vld [vmem:[%s28416_s4 + $0x4] sm:$0xf0]  ;;  %v28485_v10 = vld [vmem:[#allocation18_spill] sm:$0xff]  ;;  %v4782_v31 = vmax.f32 %v4243_v9, 0.0  ;;  %v14211_v46 = vor.u32 %v17710_v34, %v14208_v62  ;;  %v17688_v9 = vld [vmem:[%s28416_s4 + $0x34] sm:$0xf] }
 0x26b   :  { %v4241_v12 = vadd.f32 %v28485_v10, %v4227_v17  ;;  %v4507_v28 = vadd.f32 %v4506_v55, %v4493_v38  ;;  %v4495_v30 = vadd.f32 %v4494_v33, %v4481_v27  ;;  %v14095_v25 = vor.u32 %v17683_v39, %v14094_v41  ;;  %v14144_v55 = vld [vmem:[%s28416_s4 + $0x68] sm:$0xf0]  ;;  %v17690_v7 = vld [vmem:[%s28416_s4 + $0x44] sm:$0xf]  ;;  %v17704_v39 = vld [vmem:[%s28416_s4 + $0xb4] sm:$0xf] }
 0x26c   :  { %v14147_v50 = vor.u32 %v17694_v4, %v14144_v55  ;;  %v17706_v17 = vld [vmem:[%s28416_s4 + $0xc4] sm:$0xf]  ;;  %v14131_v41 = vor.u32 %v17690_v7, %v14128_v6  ;;  %v17720_v13 = vld [vmem:[%s28416_s4 + $0x134] sm:$0xf]  ;;  %v14248_v10 = vld [vmem:[%s28416_s4 + $0x138] sm:$0xf0]  ;;  %v14187_v27 = vor.u32 %v17704_v39, %v14184_v29 }
 0x26d   :  { %5211 = vmatpush.bf16.msrb.mxu2 %v14247_v58  ;;  %v4781_v58 = vmax.f32 %v3977_v19, 0.0  ;;  %v4778_v40 = vmax.f32 %v4241_v12, 0.0  ;;  %v4509_v24 = vadd.f32 %v4508_v43, %v4495_v30  ;;  %v4779_v2 = vmax.f32 %v4507_v28, 0.0  ;;  %v14264_v19 = vld [vmem:[%s28416_s4 + $0x158] sm:$0xf0] }
 0x26e   :  { %5183 = vmatpush.bf16.msrb.mxu3 %v14119_v53  ;;  %5197 = vmatpush.bf16.msrb.mxu1 %v14183_v21  ;;  %v17728_v53 = vld [vmem:[%s28416_s4 + $0x174] sm:$0xf]  ;;  %v14280_v21 = vld [vmem:[%s28416_s4 + $0x178] sm:$0xf0]  ;;  %v14267_v8 = vor.u32 %v17724_v61, %v14264_v19  ;;  %v17722_v38 = vld [vmem:[%s28416_s4 + $0x144] sm:$0xf]  ;;  %v14195_v3 = vor.u32 %v17706_v17, %v14192_v20  ;;  %v14251_v44 = vor.u32 %v17720_v13, %v14248_v10  ;;  %v4548_v26 = vpop.f32.mrf.mxu1 }
 0x26f   :  { %v14283_v22 = vor.u32 %v17728_v53, %v14280_v21  ;;  %v22874_v18 = vpack.c.bf16 %v4781_v58, %v4777_v15  ;;  %v17702_v33 = vld [vmem:[%s28416_s4 + $0xa4] sm:$0xf]  ;;  %v14176_v1 = vld [vmem:[%s28416_s4 + $0xa8] sm:$0xf0]  ;;  %v17684_v28 = vld [vmem:[%s28416_s4 + $0x14] sm:$0xf] }
 0x270   :  { %v17718_v59 = vld [vmem:[%s28416_s4 + $0x124] sm:$0xf]  ;;  %v14240_v5 = vld [vmem:[%s28416_s4 + $0x128] sm:$0xf0]  ;;  %v14179_v15 = vor.u32 %v17702_v33, %v14176_v1  ;;  %v17700_v53 = vld [vmem:[%s28416_s4 + $0x94] sm:$0xf] }
 0x271   :  { %5212 = vmatpush.bf16.msrb.mxu2 %v14239_v35  ;;  %v14243_v30 = vor.u32 %v17718_v59, %v14240_v5  ;;  %v14168_v21 = vld [vmem:[%s28416_s4 + $0x98] sm:$0xf0]  ;;  %v17716_v58 = vld [vmem:[%s28416_s4 + $0x114] sm:$0xf]  ;;  %v17714_v4 = vld [vmem:[%s28416_s4 + $0x104] sm:$0xf] }
 0x272   :  { %5184 = vmatpush.bf16.msrb.mxu3 %v14111_v56  ;;  %5198 = vmatpush.bf16.msrb.mxu1 %v14175_v47  ;;  %v4783_v56 = vmax.f32 %v4509_v24, 0.0  ;;  %v22876_v47 = vpack.c.bf16 %v4782_v31, %v4778_v40  ;;  %v14232_v31 = vld [vmem:[%s28416_s4 + $0x118] sm:$0xf0]  ;;  %v14096_v24 = vld [vmem:[%s28416_s4 + $0x8] sm:$0xf0]  ;;  %v28487_v61 = vld [vmem:[#allocation24_spill] sm:$0xff] }
 0x273   :  { %v14235_v40 = vor.u32 %v17716_v58, %v14232_v31  ;;  %v14342_v52 = vld [vmem:[%s28416_s4 + $0x1f0] sm:$0xf]  ;;  %v669_v19 = vperm.slane %v28487_v61, 3  ;;  %v14318_v20 = vld [vmem:[%s28416_s4 + $0x1c0] sm:$0xf] }
 0x274   :  { %v22878_v35 = vpack.c.bf16 %v4783_v56, %v4779_v2  ;;  %v4520_v2 = vpop.f32.mrf.mxu2  ;;  %v4534_v56 = vpop.f32.mrf.mxu0  ;;  %v14326_v7 = vld [vmem:[%s28416_s4 + $0x1d0] sm:$0xf]  ;;  %v17737_v29 = vld [vmem:[%s28416_s4 + $0x1b4] sm:$0xf0]  ;;  %v17735_v23 = vld [vmem:[%s28416_s4 + $0x1a4] sm:$0xf0] }
 0x275   :  { %5213 = vmatpush.bf16.msrb.mxu2 %v14231_v42  ;;  %v14120_v42 = vld [vmem:[%s28416_s4 + $0x38] sm:$0xf0]  ;;  %v4521_v6 = vadd.f32 %v4520_v2, %v669_v19  ;;  %v14310_v39 = vld [vmem:[%s28416_s4 + $0x1b0] sm:$0xf]  ;;  %v17731_v58 = vld [vmem:[%s28416_s4 + $0x184] sm:$0xf0] }
 0x276   :  { %5185 = vmatpush.bf16.msrb.mxu3 %v14103_v32  ;;  %5199 = vmatpush.bf16.msrb.mxu1 %v14167_v16  ;;  %v14256_v32 = vld [vmem:[%s28416_s4 + $0x148] sm:$0xf0]  ;;  %v14123_v12 = vor.u32 %v17688_v9, %v14120_v42  ;;  %v14311_v10 = vor.u32 %v17737_v29, %v14310_v39  ;;  %v17742_v2 = vld [vmem:[%s28416_s4 + $0x1e4] sm:$0xf] }
 0x277   :  { %v14259_v16 = vor.u32 %v17722_v38, %v14256_v32  ;;  %v17739_v38 = vld [vmem:[%s28416_s4 + $0x1c4] sm:$0xf0]  ;;  %v4535_v9 = vadd.f32 %v4534_v56, %v4521_v6  ;;  %v14336_v56 = vld [vmem:[%s28416_s4 + $0x1e8] sm:$0xf0] }
 0x278   :  { %v14319_v32 = vor.u32 %v17739_v38, %v14318_v20  ;;  %v14312_v20 = vld [vmem:[%s28416_s4 + $0x1b8] sm:$0xf0] }
 0x279   :  { %5214 = vmatpush.bf16.msrb.mxu2 %v14223_v63  ;;  %v17682_v63 = vld [vmem:[%s28416_s4 + $0x4] sm:$0xf]  ;;  %v4549_v13 = vadd.f32 %v4548_v26, %v4535_v9  ;;  %v14339_v26 = vor.u32 %v17742_v2, %v14336_v56  ;;  %v14304_v9 = vld [vmem:[%s28416_s4 + $0x1a8] sm:$0xf0]  ;;  %v5310_v56 = vld [vmem:[%s28417_s6 + $0x78] sm:$0xff] }
 0x27a   :  { %5186 = vmatpush.bf16.msrb.mxu3 %v14095_v25  ;;  %5200 = vmatpush.bf16.msrb.mxu1 %v14159_v14  ;;  %v14104_v25 = vld [vmem:[%s28416_s4 + $0x18] sm:$0xf0]  ;;  %v14171_v14 = vor.u32 %v17700_v53, %v14168_v21  ;;  %v14099_v55 = vor.u32 %v17682_v63, %v14096_v24  ;;  %v14286_v21 = vld [vmem:[%s28416_s4 + $0x180] sm:$0xf]  ;;  %v17744_v63 = vld [vmem:[%s28416_s4 + $0x1f4] sm:$0xf] }
 0x27b   :  { %v14107_v43 = vor.u32 %v17684_v28, %v14104_v25  ;;  %v17733_v28 = vld [vmem:[%s28416_s4 + $0x194] sm:$0xf0] }
 0x27c   :  { %5215 = vmatmul.bf16.vlgmr.msrb.gmra.mxu2 %v22878_v35  ;;  %v4522_v60 = vpop.f32.mrf.mxu2 }
 0x27d   :  { %5263 = vmatpush.bf16.msra.mxu2 %v14283_v22  ;;  %5187 = vmatmul.bf16.vlgmr.msrb.gmra.mxu3 %v22874_v18  ;;  %v14224_v22 = vld [vmem:[%s28416_s4 + $0x108] sm:$0xf0] }
 0x27e   :  { %5235 = vmatpush.bf16.msra.mxu3 %v14155_v36  ;;  %5249 = vmatpush.bf16.msra.mxu1 %v14219_v37  ;;  %v17698_v36 = vld [vmem:[%s28416_s4 + $0x84] sm:$0xf]  ;;  %v14160_v37 = vld [vmem:[%s28416_s4 + $0x88] sm:$0xf0]  ;;  %v14227_v62 = vor.u32 %v17714_v4, %v14224_v22 }
 0x27f   :  { %5201 = vmatmul.bf16.vlgmr.msrb.gmra.mxu1 %v22876_v47  ;;  %v14163_v34 = vor.u32 %v17698_v36, %v14160_v37 }
 0x280   :  { %v4562_v0 = vpop.f32.mrf.mxu3 }
 0x281   :  { %5264 = vmatpush.bf16.msra.mxu2 %v14275_v57  ;;  %v17745_v57 = vld [vmem:[%s28416_s4 + $0x1f4] sm:$0xf0]  ;;  %v4563_v1 = vadd.f32 %v4562_v0, %v4549_v13 }
 0x282   :  { %5236 = vmatpush.bf16.msra.mxu3 %v14147_v50  ;;  %5250 = vmatpush.bf16.msra.mxu1 %v14211_v46  ;;  %v4536_v50 = vpop.f32.mrf.mxu0  ;;  %v4550_v46 = vpop.f32.mrf.mxu1  ;;  %v14343_v11 = vor.u32 %v17745_v57, %v14342_v52  ;;  %v14328_v52 = vld [vmem:[%s28416_s4 + $0x1d8] sm:$0xf0] }
 0x284   :  { %v4576_v51 = vpop.f32.mrf.mxu2  ;;  %5221 = vmatpush.bf16.msrb.mxu0 %v14343_v11 }
 0x285   :  { %5265 = vmatpush.bf16.msra.mxu2 %v14267_v8  ;;  %v17741_v8 = vld [vmem:[%s28416_s4 + $0x1d4] sm:$0xf0] }
 0x286   :  { %5237 = vmatpush.bf16.msra.mxu3 %v14139_v54  ;;  %5251 = vmatpush.bf16.msra.mxu1 %v14203_v45  ;;  %v14327_v17 = vor.u32 %v17741_v8, %v14326_v7 }
 0x289   :  { %5266 = vmatpush.bf16.msra.mxu2 %v14259_v16 }
 0x28a   :  { %5238 = vmatpush.bf16.msra.mxu3 %v14131_v41  ;;  %5252 = vmatpush.bf16.msra.mxu1 %v14195_v3  ;;  %v4564_v41 = vpop.f32.mrf.mxu3 }
 0x28c   :  { %v4578_v3 = vpop.f32.mrf.mxu2 }
 0x28d   :  { %5267 = vmatpush.bf16.msra.mxu2 %v14251_v44 }
 0x28e   :  { %5239 = vmatpush.bf16.msra.mxu3 %v14123_v12  ;;  %5253 = vmatpush.bf16.msra.mxu1 %v14187_v27  ;;  %v4604_v54 = vpop.f32.mrf.mxu1  ;;  %v4523_v12 = vadd.f32 %v4522_v60, %v669_v19  ;;  %v14302_v27 = vld [vmem:[%s28416_s4 + $0x1a0] sm:$0xf]  ;;  %v17738_v19 = vld [vmem:[%s28416_s4 + $0x1c4] sm:$0xf] }
 0x28f   :  { %v14303_v33 = vor.u32 %v17735_v23, %v14302_v27  ;;  %v17732_v23 = vld [vmem:[%s28416_s4 + $0x194] sm:$0xf] }
 0x290   :  { %v4537_v5 = vadd.f32 %v4536_v50, %v4523_v12 }
 0x291   :  { %5268 = vmatpush.bf16.msra.mxu2 %v14243_v30  ;;  %v4577_v30 = vadd.f32 %v4576_v51, %v4563_v1 }
 0x292   :  { %5240 = vmatpush.bf16.msra.mxu3 %v14115_v48  ;;  %5254 = vmatpush.bf16.msra.mxu1 %v14179_v15  ;;  %v14294_v15 = vld [vmem:[%s28416_s4 + $0x190] sm:$0xf]  ;;  %v4551_v53 = vadd.f32 %v4550_v46, %v4537_v5  ;;  %v17740_v46 = vld [vmem:[%s28416_s4 + $0x1d4] sm:$0xf] }
 0x293   :  { %v14295_v25 = vor.u32 %v17733_v28, %v14294_v15  ;;  %v14331_v0 = vor.u32 %v17740_v46, %v14328_v52  ;;  %v17730_v15 = vld [vmem:[%s28416_s4 + $0x184] sm:$0xf]  ;;  %v14288_v28 = vld [vmem:[%s28416_s4 + $0x188] sm:$0xf0] }
 0x294   :  { %v5308_v46 = vld [vmem:[%s28417_s6 + $0x68] sm:$0xff] }
 0x295   :  { %5269 = vmatpush.bf16.msra.mxu2 %v14235_v40  ;;  %v14344_v40 = vld [vmem:[%s28416_s4 + $0x1f8] sm:$0xf0]  ;;  %v5390_v52 = vld [vmem:[%s28418_s8 + $0x68] sm:$0xff] }
 0x296   :  { %5241 = vmatpush.bf16.msra.mxu3 %v14107_v43  ;;  %5255 = vmatpush.bf16.msra.mxu1 %v14171_v14  ;;  %v4606_v42 = vpop.f32.mrf.mxu1  ;;  %v4565_v43 = vadd.f32 %v4564_v41, %v4551_v53  ;;  %v14287_v14 = vor.u32 %v17731_v58, %v14286_v21  ;;  %v14347_v37 = vor.u32 %v17744_v63, %v14344_v40 }
 0x299   :  { %5270 = vmatpush.bf16.msra.mxu2 %v14227_v62 }
 0x29a   :  { %5242 = vmatpush.bf16.msra.mxu3 %v14099_v55  ;;  %5256 = vmatpush.bf16.msra.mxu1 %v14163_v34  ;;  %v4579_v55 = vadd.f32 %v4578_v3, %v4565_v43  ;;  %v17734_v3 = vld [vmem:[%s28416_s4 + $0x1a4] sm:$0xf] }
 0x29b   :  { %v14307_v39 = vor.u32 %v17734_v3, %v14304_v9  ;;  %v5404_v3 = vld [vmem:[%s28418_s8 + $0xd8] sm:$0xff] }
 0x29c   :  { %5271 = vmatmul.bf16.vlgmr.msra.gmra.mxu2 %v22878_v35  ;;  %v17743_v35 = vld [vmem:[%s28416_s4 + $0x1e4] sm:$0xf0]  ;;  %v5302_v9 = vld [vmem:[%s28417_s6 + $0x38] sm:$0xff] }
 0x29d   :  { %5243 = vmatmul.bf16.vlgmr.msra.gmra.mxu3 %v22874_v18  ;;  %5257 = vmatmul.bf16.vlgmr.msra.gmra.mxu1 %v22876_v47  ;;  %v4590_v18 = vpop.f32.mrf.mxu0  ;;  %v14334_v47 = vld [vmem:[%s28416_s4 + $0x1e0] sm:$0xf] }
 0x29e   :  { %v14335_v45 = vor.u32 %v17743_v35, %v14334_v47  ;;  %v4591_v31 = vadd.f32 %v4590_v18, %v4577_v30  ;;  %5331 = vmatpush.msrb.mxu3 %v5310_v56  ;;  %v5394_v56 = vld [vmem:[%s28418_s8 + $0x88] sm:$0xff] }
 0x29f   :  { %v4632_v49 = vpop.f32.mrf.mxu2 }
 0x2a0   :  { %5222 = vmatpush.bf16.msrb.mxu0 %v14335_v45  ;;  %v4618_v44 = vpop.f32.mrf.mxu3  ;;  %v4605_v4 = vadd.f32 %v4604_v54, %v4591_v31  ;;  %v14320_v54 = vld [vmem:[%s28416_s4 + $0x1c8] sm:$0xf0] }
 0x2a1   :  { %v14323_v45 = vor.u32 %v17738_v19, %v14320_v54  ;;  %v5305_v19 = vld [vmem:[%s28417_s6 + $0x50] sm:$0xff] }
 0x2a2   :  { %v4619_v34 = vadd.f32 %v4618_v44, %v4605_v4  ;;  %v14296_v44 = vld [vmem:[%s28416_s4 + $0x198] sm:$0xf0]  ;;  %v5387_v54 = vld [vmem:[%s28418_s8 + $0x50] sm:$0xff] }
 0x2a4   :  { %5223 = vmatpush.bf16.msrb.mxu0 %v14327_v17  ;;  %v4633_v50 = vadd.f32 %v4632_v49, %v4619_v34  ;;  %v17736_v17 = vld [vmem:[%s28416_s4 + $0x1b4] sm:$0xf]  ;;  %v14299_v49 = vor.u32 %v17732_v23, %v14296_v44  ;;  %v5380_v23 = vld [vmem:[%s28418_s8 + $0x18] sm:$0xff] }
 0x2a5   :  { %v4592_v16 = vpop.f32.mrf.mxu0  ;;  %v14315_v38 = vor.u32 %v17736_v17, %v14312_v20  ;;  %v5386_v17 = vld [vmem:[%s28418_s8 + $0x48] sm:$0xff]  ;;  %v5405_v20 = vld [vmem:[%s28418_s8 + $0xe0] sm:$0xff]  ;;  %v5297_v44 = vld [vmem:[%s28417_s6 + $0x10] sm:$0xff] }
 0x2a6   :  { %v4593_v60 = vadd.f32 %v4592_v16, %v4579_v55 }
 0x2a7   :  { %v4634_v36 = vpop.f32.mrf.mxu2 }
 0x2a8   :  { %5224 = vmatpush.bf16.msrb.mxu0 %v14319_v32  ;;  %v4620_v24 = vpop.f32.mrf.mxu3  ;;  %v4607_v51 = vadd.f32 %v4606_v42, %v4593_v60  ;;  %v5309_v60 = vld [vmem:[%s28417_s6 + $0x70] sm:$0xff] }
 0x2a9   :  { %5332 = vmatpush.msrb.mxu3 %v5309_v60  ;;  %v5393_v60 = vld [vmem:[%s28418_s8 + $0x80] sm:$0xff] }
 0x2aa   :  { %v4621_v35 = vadd.f32 %v4620_v24, %v4607_v51  ;;  %v5306_v51 = vld [vmem:[%s28417_s6 + $0x58] sm:$0xff] }
 0x2ab   :  { %5333 = vmatpush.msrb.mxu3 %v5308_v46 }
 0x2ac   :  { %5225 = vmatpush.bf16.msrb.mxu0 %v14311_v10  ;;  %v4635_v8 = vadd.f32 %v4634_v36, %v4621_v35  ;;  %v5325_v35 = vld [vmem:[%s28417_s6 + $0xf0] sm:$0xff] }
 0x2ad   :  { %v4646_v59 = vpop.f32.mrf.mxu0 }
 0x2ae   :  { %v4660_v48 = vpop.f32.mrf.mxu1  ;;  %v4647_v47 = vadd.f32 %v4646_v59, %v4633_v50  ;;  %v5391_v50 = vld [vmem:[%s28418_s8 + $0x70] sm:$0xff] }
 0x2b0   :  { %5226 = vmatpush.bf16.msrb.mxu0 %v14303_v33  ;;  %v4661_v7 = vadd.f32 %v4660_v48, %v4647_v47  ;;  %v5408_v47 = vld [vmem:[%s28418_s8 + $0xf8] sm:$0xff] }
 0x2b4   :  { %5227 = vmatpush.bf16.msrb.mxu0 %v14295_v25  ;;  %v14291_v25 = vor.u32 %v17730_v15, %v14288_v28  ;;  %v5402_v15 = vld [vmem:[%s28418_s8 + $0xc8] sm:$0xff]  ;;  %v5295_v28 = vld [vmem:[%s28417_s6] sm:$0xff] }
 0x2b5   :  { %v4648_v22 = vpop.f32.mrf.mxu0 }
 0x2b6   :  { %v4662_v62 = vpop.f32.mrf.mxu1  ;;  %v4649_v16 = vadd.f32 %v4648_v22, %v4635_v8  ;;  %v5323_v8 = vld [vmem:[%s28417_s6 + $0xe0] sm:$0xff] }
 0x2b8   :  { %5228 = vmatpush.bf16.msrb.mxu0 %v14287_v14  ;;  %v4663_v10 = vadd.f32 %v4662_v62, %v4649_v16  ;;  %v5384_v16 = vld [vmem:[%s28418_s8 + $0x38] sm:$0xff] }
 0x2bc   :  { %5277 = vmatpush.bf16.msra.mxu0 %v14347_v37 }
 0x2bd   :  { %v4702_v18 = vpop.f32.mrf.mxu0 }
 0x2bf   :  { %v4688_v11 = vpop.f32.mrf.mxu2 }
 0x2c0   :  { %5278 = vmatpush.bf16.msra.mxu0 %v14339_v26  ;;  %v4674_v57 = vpop.f32.mrf.mxu3  ;;  %v5392_v26 = vld [vmem:[%s28418_s8 + $0x78] sm:$0xff] }
 0x2c1   :  { %v4675_v6 = vadd.f32 %v4674_v57, %v4661_v7  ;;  %5413 = vmatpush.msrb.mxu2 %v5392_v26  ;;  %v5307_v57 = vld [vmem:[%s28417_s6 + $0x60] sm:$0xff]  ;;  %v5406_v7 = vld [vmem:[%s28418_s8 + $0xe8] sm:$0xff] }
 0x2c2   :  { %5334 = vmatpush.msrb.mxu3 %v5307_v57  ;;  %v5311_v26 = vld [vmem:[%s28417_s6 + $0x80] sm:$0xff] }
 0x2c3   :  { %v4689_v42 = vadd.f32 %v4688_v11, %v4675_v6  ;;  %5414 = vmatpush.msrb.mxu2 %v5391_v50  ;;  %v5389_v11 = vld [vmem:[%s28418_s8 + $0x60] sm:$0xff]  ;;  %v5304_v6 = vld [vmem:[%s28417_s6 + $0x48] sm:$0xff] }
 0x2c4   :  { %5279 = vmatpush.bf16.msra.mxu0 %v14331_v0  ;;  %v5326_v0 = vld [vmem:[%s28417_s6 + $0xf8] sm:$0xff]  ;;  %5335 = vmatpush.msrb.mxu3 %v5306_v51 }
 0x2c5   :  { %v4704_v29 = vpop.f32.mrf.mxu0  ;;  %v4703_v12 = vadd.f32 %v4702_v18, %v4689_v42  ;;  %5415 = vmatpush.msrb.mxu2 %v5390_v52  ;;  %v5388_v18 = vld [vmem:[%s28418_s8 + $0x58] sm:$0xff]  ;;  %5354 = vmatpush.msrb.mxu1 %v5326_v0  ;;  %v5301_v42 = vld [vmem:[%s28417_s6 + $0x30] sm:$0xff] }
 0x2c6   :  { %5336 = vmatpush.msrb.mxu3 %v5305_v19 }
 0x2c7   :  { %v4690_v41 = vpop.f32.mrf.mxu2  ;;  %5416 = vmatpush.msrb.mxu2 %v5389_v11  ;;  %5355 = vmatpush.msrb.mxu1 %v5325_v35 }
 0x2c8   :  { %5280 = vmatpush.bf16.msra.mxu0 %v14323_v45  ;;  %v4676_v32 = vpop.f32.mrf.mxu3  ;;  %v5324_v45 = vld [vmem:[%s28417_s6 + $0xe8] sm:$0xff]  ;;  %5337 = vmatpush.msrb.mxu3 %v5304_v6 }
 0x2c9   :  { %v4677_v27 = vadd.f32 %v4676_v32, %v4663_v10  ;;  %5417 = vmatpush.msrb.mxu2 %v5388_v18  ;;  %5356 = vmatpush.msrb.mxu1 %v5324_v45  ;;  %v5303_v32 = vld [vmem:[%s28417_s6 + $0x40] sm:$0xff] }
 0x2ca   :  { %5338 = vmatpush.msrb.mxu3 %v5303_v32  ;;  %v5299_v10 = vld [vmem:[%s28417_s6 + $0x20] sm:$0xff] }
 0x2cb   :  { %v4691_v5 = vadd.f32 %v4690_v41, %v4677_v27  ;;  %5418 = vmatpush.msrb.mxu2 %v5387_v54  ;;  %v5385_v41 = vld [vmem:[%s28418_s8 + $0x40] sm:$0xff]  ;;  %5357 = vmatpush.msrb.mxu1 %v5323_v8  ;;  %v5298_v27 = vld [vmem:[%s28417_s6 + $0x18] sm:$0xff] }
 0x2cc   :  { %5281 = vmatpush.bf16.msra.mxu0 %v14315_v38  ;;  %v5322_v38 = vld [vmem:[%s28417_s6 + $0xd8] sm:$0xff]  ;;  %5339 = vmatpush.msrb.mxu3 %v5302_v9 }
 0x2cd   :  { %v4705_v21 = vadd.f32 %v4704_v29, %v4691_v5  ;;  %5419 = vmatpush.msrb.mxu2 %v5386_v17  ;;  %5358 = vmatpush.msrb.mxu1 %v5322_v38  ;;  %v5300_v29 = vld [vmem:[%s28417_s6 + $0x28] sm:$0xff] }
 0x2ce   :  { %v4716_v61 = vpop.f32.mrf.mxu1  ;;  %5340 = vmatpush.msrb.mxu3 %v5301_v42  ;;  %v5320_v5 = vld [vmem:[%s28417_s6 + $0xc8] sm:$0xff] }
 0x2cf   :  { %v4717_v33 = vadd.f32 %v4716_v61, %v4703_v12  ;;  %v5407_v61 = vld [vmem:[%s28418_s8 + $0xf0] sm:$0xff]  ;;  %5420 = vmatpush.msrb.mxu2 %v5385_v41  ;;  %v5381_v12 = vld [vmem:[%s28418_s8 + $0x20] sm:$0xff] }
 0x2d0   :  { %5282 = vmatpush.bf16.msra.mxu0 %v14307_v39  ;;  %v5383_v39 = vld [vmem:[%s28418_s8 + $0x30] sm:$0xff]  ;;  %5341 = vmatpush.msrb.mxu3 %v5300_v29 }
 0x2d1   :  { %5421 = vmatpush.msrb.mxu2 %v5384_v16 }
 0x2d2   :  { %5342 = vmatpush.msrb.mxu3 %v5299_v10 }
 0x2d3   :  { %5422 = vmatpush.msrb.mxu2 %v5383_v39 }
 0x2d4   :  { %5283 = vmatpush.bf16.msra.mxu0 %v14299_v49  ;;  %5343 = vmatpush.msrb.mxu3 %v5298_v27  ;;  %v5321_v49 = vld [vmem:[%s28417_s6 + $0xd0] sm:$0xff] }
 0x2d5   :  { %5359 = vmatpush.msrb.mxu1 %v5321_v49 }
 0x2d6   :  { %v4718_v13 = vpop.f32.mrf.mxu1  ;;  %5344 = vmatpush.msrb.mxu3 %v5297_v44 }
 0x2d7   :  { %v4719_v31 = vadd.f32 %v4718_v13, %v4705_v21  ;;  %v5382_v13 = vld [vmem:[%s28418_s8 + $0x28] sm:$0xff]  ;;  %5360 = vmatpush.msrb.mxu1 %v5320_v5  ;;  %v5318_v21 = vld [vmem:[%s28417_s6 + $0xb8] sm:$0xff]  ;;  %v23290_v5 = vld [vmem:[%s28419_s7] ss:$0 sm:$0xff] }
 0x2d8   :  { %v4758_v30 = vpop.f32.mrf.mxu0  ;;  %5284 = vmatpush.bf16.msra.mxu0 %v14291_v25  ;;  %5423 = vmatpush.msrb.mxu2 %v5382_v13  ;;  %v5377_v25 = vld [vmem:[%s28418_s8] sm:$0xff] }
 0x2da   :  { %5424 = vmatpush.msrb.mxu2 %v5381_v12 }
 0x2dc   :  { %5425 = vmatpush.msrb.mxu2 %v5380_v23 }
 0x2de   :  { %v4772_v53 = vpop.f32.mrf.mxu1 }
 0x2df   :  { %v4744_v59 = vpop.f32.mrf.mxu2 }
 0x2e0   :  { %v4730_v1 = vpop.f32.mrf.mxu3  ;;  %v4760_v36 = vpop.f32.mrf.mxu0 }
 0x2e1   :  { %v4731_v48 = vadd.f32 %v4730_v1, %v4717_v33  ;;  %v5379_v33 = vld [vmem:[%s28418_s8 + $0x10] sm:$0xff] }
 0x2e2   :  { %v5403_v1 = vld [vmem:[%s28418_s8 + $0xd0] sm:$0xff]  ;;  %5426 = vmatpush.msrb.mxu2 %v5379_v33 }
 0x2e3   :  { %v4745_v58 = vadd.f32 %v4744_v59, %v4731_v48  ;;  %v5296_v59 = vld [vmem:[%s28417_s6 + $0x8] sm:$0xff] }
 0x2e4   :  { %v5378_v48 = vld [vmem:[%s28418_s8 + $0x8] sm:$0xff]  ;;  %5345 = vmatpush.msrb.mxu3 %v5296_v59  ;;  %v18592_v59 = vmov 0  }
 0x2e5   :  { %v4759_v14 = vadd.f32 %v4758_v30, %v4745_v58  ;;  %v5319_v30 = vld [vmem:[%s28417_s6 + $0xc0] sm:$0xff]  ;;  %5427 = vmatpush.msrb.mxu2 %v5378_v48  ;;  %v5400_v58 = vld [vmem:[%s28418_s8 + $0xb8] sm:$0xff]  ;;  %18420 = vset.pattern.permute.xlu0 %v18592_v59 }
 0x2e6   :  { %v4774_v22 = vpop.f32.mrf.mxu1  ;;  %5346 = vmatpush.msrb.mxu3 %v5295_v28  ;;  %5361 = vmatpush.msrb.mxu1 %v5319_v30  ;;  %v23295_v48 = vld [vmem:[%s28421_s9] ss:$0 sm:$0xff]  ;;  %v17776_v30 = vld [vmem:[%s28422_s12 + $0xec] sm:$0xf0] }
 0x2e7   :  { %v4746_v40 = vpop.f32.mrf.mxu2  ;;  %v4773_v37 = vadd.f32 %v4772_v53, %v4759_v14  ;;  %v5401_v53 = vld [vmem:[%s28418_s8 + $0xc0] sm:$0xff]  ;;  %5428 = vmatpush.msrb.mxu2 %v5377_v25  ;;  %v5316_v14 = vld [vmem:[%s28417_s6 + $0xa8] sm:$0xff] }
 0x2e8   :  { %v4732_v43 = vpop.f32.mrf.mxu3  ;;  %5362 = vmatpush.msrb.mxu1 %v5318_v21  ;;  %v14463_v28 = vld [vmem:[%s28422_s12 + $0xe0] sm:$0xf] }
 0x2e9   :  { %v4733_v63 = vadd.f32 %v4732_v43, %v4719_v31  ;;  %v4780_v34 = vmax.f32 %v4773_v37, 0.0  ;;  %v5317_v31 = vld [vmem:[%s28417_s6 + $0xb0] sm:$0xff]  ;;  %v5396_v37 = vld [vmem:[%s28418_s8 + $0x98] sm:$0xff]  ;;  %v14591_v25 = vld [vmem:[%s28422_s12 + $0x1e0] sm:$0xf]  ;;  %v14464_v21 = vor.u32 %v17776_v30, %v14463_v28 }
 0x2ea   :  { %v5399_v43 = vld [vmem:[%s28418_s8 + $0xb0] sm:$0xff]  ;;  %5363 = vmatpush.msrb.mxu1 %v5317_v31  ;;  %v17774_v31 = vld [vmem:[%s28422_s12 + $0xe4] sm:$0xf]  ;;  %v14399_v28 = vld [vmem:[%s28422_s12 + $0x60] sm:$0xf] }
 0x2eb   :  { %v4747_v24 = vadd.f32 %v4746_v40, %v4733_v63  ;;  %v5398_v63 = vld [vmem:[%s28418_s8 + $0xa8] sm:$0xff]  ;;  %v5315_v40 = vld [vmem:[%s28417_s6 + $0xa0] sm:$0xff]  ;;  %5948 = vmatpush.bf16.msra.mxu3 %v14464_v21  ;;  %v17760_v30 = vld [vmem:[%s28422_s12 + $0x6c] sm:$0xf0] }
 0x2ec   :  { %5364 = vmatpush.msrb.mxu1 %v5316_v14 }
 0x2ed   :  { %v4761_v4 = vadd.f32 %v4760_v36, %v4747_v24  ;;  %v5397_v24 = vld [vmem:[%s28418_s8 + $0xa0] sm:$0xff]  ;;  %v5314_v36 = vld [vmem:[%s28417_s6 + $0x98] sm:$0xff] }
 0x2ee   :  { %5365 = vmatpush.msrb.mxu1 %v5315_v40  ;;  %v17806_v40 = vld [vmem:[%s28422_s12 + $0x1e4] sm:$0xf] }
 0x2ef   :  { %v4775_v55 = vadd.f32 %v4774_v22, %v4761_v4  ;;  %v4853_v4 = vld [vmem:[%s28420_s5] sm:$0x3] }
 0x2f0   :  { %5366 = vmatpush.msrb.mxu1 %v5314_v36  ;;  %v4856_v54 = vperm.slane %v4853_v4, 1  ;;  %v14447_v36 = vld [vmem:[%s28422_s12 + $0xc0] sm:$0xf] }
 0x2f1   :  { %v4784_v62 = vmax.f32 %v4775_v55, 0.0  ;;  %v5313_v55 = vld [vmem:[%s28417_s6 + $0x90] sm:$0xff] }
 0x2f2   :  { %5367 = vmatpush.msrb.mxu1 %v5313_v55  ;;  %v17804_v55 = vld [vmem:[%s28422_s12 + $0x1cc] sm:$0xf0] }
 0x2f3   :  { %v4788_v2 = vpack.c.bf16 %v4784_v62, %v4780_v34  ;;  %v5395_v34 = vld [vmem:[%s28418_s8 + $0x90] sm:$0xff]  ;;  %v4855_v62 = vperm.slane %v4853_v4, 0 }
 0x2f4   :  { %v17772_v4 = vld [vmem:[%s28422_s12 + $0xcc] sm:$0xf0] }
 0x2f5   :  { %5229 = vmatmul.bf16.vlgmr.msrb.gmra.mxu0 %v4788_v2 }
 0x2f6   :  { %5436 = vmatpush.msrb.mxu0 %v5408_v47 }
 0x2f8   :  { %5437 = vmatpush.msrb.mxu0 %v5407_v61 }
 0x2fa   :  { %5438 = vmatpush.msrb.mxu0 %v5406_v7 }
 0x2fc   :  { %5439 = vmatpush.msrb.mxu0 %v5405_v20  ;;  %v5202_v50 = vpop.f32.mrf.mxu1 }
 0x2fe   :  { %5440 = vmatpush.msrb.mxu0 %v5404_v3 }
 0x2ff   :  { %v5216_v52 = vpop.f32.mrf.mxu2 }
 0x300   :  { %5441 = vmatpush.msrb.mxu0 %v5403_v1  ;;  %v5188_v22 = vpop.f32.mrf.mxu3  ;;  %v18591_v1 = vmov 1  }
 0x301   :  { %v5189_v46 = vadd.f32 %v5188_v22, %v4855_v62  ;;  %18421 = vset.pattern.permute.xlu1 %v18591_v1  ;;  %v14575_v22 = vld [vmem:[%s28422_s12 + $0x1c0] sm:$0xf] }
 0x302   :  { %5442 = vmatpush.msrb.mxu0 %v5402_v15 }
 0x303   :  { %v5203_v11 = vadd.f32 %v5202_v50, %v5189_v46 }
 0x304   :  { %5443 = vmatpush.msrb.mxu0 %v5401_v53  ;;  %v5204_v18 = vpop.f32.mrf.mxu1 }
 0x305   :  { %5285 = vmatmul.bf16.vlgmr.msra.gmra.mxu0 %v4788_v2  ;;  %v5312_v2 = vld [vmem:[%s28417_s6 + $0x88] sm:$0xff]  ;;  %v5217_v0 = vadd.f32 %v5216_v52, %v5203_v11  ;;  %v14577_v52 = vld [vmem:[%s28422_s12 + $0x1d0] sm:$0xf0]  ;;  %v17768_v11 = vld [vmem:[%s28422_s12 + $0xac] sm:$0xf0] }
 0x306   :  { %5444 = vmatpush.msrb.mxu0 %v5400_v58  ;;  %5368 = vmatpush.msrb.mxu1 %v5312_v2  ;;  %v17808_v58 = vld [vmem:[%s28422_s12 + $0x1ec] sm:$0xf0]  ;;  %v17770_v2 = vld [vmem:[%s28422_s12 + $0xc4] sm:$0xf] }
 0x307   :  { %v5218_v7 = vpop.f32.mrf.mxu2  ;;  %v14592_v14 = vor.u32 %v17808_v58, %v14591_v25  ;;  %v14527_v25 = vld [vmem:[%s28422_s12 + $0x160] sm:$0xf]  ;;  %v17792_v58 = vld [vmem:[%s28422_s12 + $0x16c] sm:$0xf0] }
 0x308   :  { %5445 = vmatpush.msrb.mxu0 %v5399_v43  ;;  %5369 = vmatpush.msrb.mxu1 %v5311_v26  ;;  %v5190_v57 = vpop.f32.mrf.mxu3  ;;  %v14465_v43 = vld [vmem:[%s28422_s12 + $0xf0] sm:$0xf0]  ;;  %v17802_v26 = vld [vmem:[%s28422_s12 + $0x1c4] sm:$0xf] }
 0x309   :  { %v5191_v51 = vadd.f32 %v5190_v57, %v4855_v62  ;;  %v14576_v62 = vor.u32 %v17804_v55, %v14575_v22  ;;  %v14431_v57 = vld [vmem:[%s28422_s12 + $0xa0] sm:$0xf]  ;;  %v14528_v55 = vor.u32 %v17792_v58, %v14527_v25  ;;  %v17746_v58 = vld [vmem:[%s28422_s12 + $0x4] sm:$0xf] }
 0x30a   :  { %5446 = vmatpush.msrb.mxu0 %v5398_v63  ;;  %v14468_v63 = vor.u32 %v17774_v31, %v14465_v43  ;;  %5962 = vmatpush.bf16.msra.mxu1 %v14592_v14  ;;  %v17758_v31 = vld [vmem:[%s28422_s12 + $0x64] sm:$0xf]  ;;  %v14401_v43 = vld [vmem:[%s28422_s12 + $0x70] sm:$0xf0] }
 0x30b   :  { %v5205_v19 = vadd.f32 %v5204_v18, %v5191_v51  ;;  %v14580_v18 = vor.u32 %v17802_v26, %v14577_v52 }
 0x30c   :  { %5447 = vmatpush.msrb.mxu0 %v5397_v24  ;;  %v14593_v24 = vld [vmem:[%s28422_s12 + $0x1f0] sm:$0xf0]  ;;  %5976 = vmatpush.bf16.msra.mxu2 %v14468_v63 }
 0x30d   :  { %v5219_v8 = vadd.f32 %v5218_v7, %v5205_v19  ;;  %v14433_v7 = vld [vmem:[%s28422_s12 + $0xb0] sm:$0xf0] }
 0x30e   :  { %5448 = vmatpush.msrb.mxu0 %v5396_v37  ;;  %v14596_v37 = vor.u32 %v17806_v40, %v14593_v24  ;;  %5963 = vmatpush.bf16.msra.mxu1 %v14576_v62  ;;  %v14529_v24 = vld [vmem:[%s28422_s12 + $0x170] sm:$0xf0]  ;;  %v17756_v62 = vld [vmem:[%s28422_s12 + $0x4c] sm:$0xf0] }
 0x310   :  { %5449 = vmatpush.msrb.mxu0 %v5395_v34  ;;  %v14448_v34 = vor.u32 %v17772_v4, %v14447_v36  ;;  %v14400_v4 = vor.u32 %v17760_v30, %v14399_v28  ;;  %v14351_v28 = vld [vmem:[%s28422_s12] sm:$0xf]  ;;  %v17748_v30 = vld [vmem:[%s28422_s12 + $0xc] sm:$0xf0] }
 0x311   :  { %v14352_v25 = vor.u32 %v17748_v30, %v14351_v28  ;;  %v17759_v28 = vld [vmem:[%s28422_s12 + $0x6c] sm:$0xf]  ;;  %v14409_v30 = vld [vmem:[%s28422_s12 + $0x78] sm:$0xf0] }
 0x312   :  { %5450 = vmatpush.msrb.mxu0 %v5394_v56  ;;  %v14449_v56 = vld [vmem:[%s28422_s12 + $0xd0] sm:$0xf0]  ;;  %5949 = vmatpush.bf16.msra.mxu3 %v14448_v34  ;;  %v14383_v34 = vld [vmem:[%s28422_s12 + $0x40] sm:$0xf] }
 0x313   :  { %v14452_v46 = vor.u32 %v17770_v2, %v14449_v56 }
 0x314   :  { %5451 = vmatpush.msrb.mxu0 %v5393_v60 }
 0x315   :  { %5977 = vmatpush.bf16.msra.mxu2 %v14452_v46  ;;  %v14511_v46 = vld [vmem:[%s28422_s12 + $0x140] sm:$0xf] }
 0x316   :  { %5990 = vmatpush.bf16.msra.mxu0 %v14596_v37 }
 0x31a   :  { %v5258_v17 = vpop.f32.mrf.mxu1  ;;  %5991 = vmatpush.bf16.msra.mxu0 %v14580_v18 }
 0x31f   :  { %v5272_v3 = vpop.f32.mrf.mxu2 }
 0x320   :  { %v5244_v61 = vpop.f32.mrf.mxu3 }
 0x321   :  { %v5245_v6 = vadd.f32 %v5244_v61, %v4856_v54  ;;  %v17766_v61 = vld [vmem:[%s28422_s12 + $0xa4] sm:$0xf] }
 0x322   :  { %v5260_v13 = vpop.f32.mrf.mxu1 }
 0x323   :  { %v5259_v32 = vadd.f32 %v5258_v17, %v5245_v6  ;;  %v14561_v6 = vld [vmem:[%s28422_s12 + $0x1b0] sm:$0xf0] }
 0x325   :  { %v5273_v16 = vadd.f32 %v5272_v3, %v5259_v32  ;;  %v17764_v32 = vld [vmem:[%s28422_s12 + $0x8c] sm:$0xf0] }
 0x327   :  { %v5274_v27 = vpop.f32.mrf.mxu2 }
 0x328   :  { %v5246_v9 = vpop.f32.mrf.mxu3 }
 0x329   :  { %v5247_v42 = vadd.f32 %v5246_v9, %v4856_v54 }
 0x32b   :  { %v5261_v10 = vadd.f32 %v5260_v13, %v5247_v42  ;;  %v17796_v42 = vld [vmem:[%s28422_s12 + $0x18c] sm:$0xf0]  ;;  %v17762_v13 = vld [vmem:[%s28422_s12 + $0x84] sm:$0xf] }
 0x32d   :  { %v5275_v23 = vadd.f32 %v5274_v27, %v5261_v10  ;;  %v14417_v10 = vld [vmem:[%s28422_s12 + $0x90] sm:$0xf0] }
 0x372   :  { %v5230_v47 = vpop.f32.mrf.mxu0 }
 0x373   :  { %v5231_v35 = vadd.f32 %v5230_v47, %v5217_v0  ;;  %v14559_v47 = vld [vmem:[%s28422_s12 + $0x1a0] sm:$0xf] }
 0x375   :  { %v5291_v45 = vmax.f32 %v5231_v35, 0.0  ;;  %v17800_v35 = vld [vmem:[%s28422_s12 + $0x1ac] sm:$0xf0] }
 0x376   :  { %v14560_v17 = vor.u32 %v17800_v35, %v14559_v47  ;;  %v14384_v47 = vor.u32 %v17756_v62, %v14383_v34  ;;  %v17786_v35 = vld [vmem:[%s28422_s12 + $0x144] sm:$0xf] }
 0x377   :  { %5347 = vmatmul.f32.vlgmr.msrb.gmra.mxu3 %v5291_v45  ;;  %5429 = vmatmul.f32.vlgmr.msrb.gmra.mxu2 %v5291_v45  ;;  %v14432_v45 = vor.u32 %v17768_v11, %v14431_v57  ;;  %v17788_v57 = vld [vmem:[%s28422_s12 + $0x14c] sm:$0xf0]  ;;  %v17754_v11 = vld [vmem:[%s28422_s12 + $0x44] sm:$0xf] }
 0x378   :  { %5964 = vmatpush.bf16.msra.mxu1 %v14560_v17 }
 0x379   :  { %5950 = vmatpush.bf16.msra.mxu3 %v14432_v45 }
 0x37a   :  { %v5232_v20 = vpop.f32.mrf.mxu0 }
 0x37b   :  { %v5233_v38 = vadd.f32 %v5232_v20, %v5219_v8  ;;  %v17798_v8 = vld [vmem:[%s28422_s12 + $0x1a4] sm:$0xf]  ;;  %v14436_v20 = vor.u32 %v17766_v61, %v14433_v7  ;;  %v14513_v61 = vld [vmem:[%s28422_s12 + $0x150] sm:$0xf0] }
 0x37d   :  { %v5293_v41 = vmax.f32 %v5233_v38, 0.0  ;;  %v14415_v38 = vld [vmem:[%s28422_s12 + $0x80] sm:$0xf]  ;;  %5978 = vmatpush.bf16.msra.mxu2 %v14436_v20 }
 0x37f   :  { %5350 = vmatmul.f32.gmra.mxu3 %v5293_v41  ;;  %5432 = vmatmul.f32.gmra.mxu2 %v5293_v41  ;;  %v14543_v41 = vld [vmem:[%s28422_s12 + $0x180] sm:$0xf] }
 0x380   :  { %v14544_v59 = vor.u32 %v17796_v42, %v14543_v41 }
 0x382   :  { %v5286_v39 = vpop.f32.mrf.mxu0  ;;  %5965 = vmatpush.bf16.msra.mxu1 %v14544_v59  ;;  %v14497_v59 = vld [vmem:[%s28422_s12 + $0x130] sm:$0xf0] }
 0x383   :  { %v5287_v29 = vadd.f32 %v5286_v39, %v5273_v16  ;;  %v14564_v16 = vor.u32 %v17798_v8, %v14561_v6  ;;  %v14512_v6 = vor.u32 %v17788_v57, %v14511_v46  ;;  %v14583_v46 = vld [vmem:[%s28422_s12 + $0x1c8] sm:$0xf] }
 0x385   :  { %v5292_v12 = vmax.f32 %v5287_v29, 0.0  ;;  %5992 = vmatpush.bf16.msra.mxu0 %v14564_v16 }
 0x386   :  { %5966 = vmatpush.bf16.msra.mxu1 %v14528_v55  ;;  %v17775_v55 = vld [vmem:[%s28422_s12 + $0xec] sm:$0xf] }
 0x387   :  { %5370 = vmatmul.f32.vlgmr.msrb.gmra.mxu1 %v5292_v12  ;;  %5452 = vmatmul.f32.vlgmr.msrb.gmra.mxu0 %v5292_v12  ;;  %v17794_v12 = vld [vmem:[%s28422_s12 + $0x184] sm:$0xf] }
 0x38a   :  { %v5288_v44 = vpop.f32.mrf.mxu0  ;;  %5967 = vmatpush.bf16.msra.mxu1 %v14512_v6  ;;  %v17767_v6 = vld [vmem:[%s28422_s12 + $0xac] sm:$0xf] }
 0x38b   :  { %v5289_v49 = vadd.f32 %v5288_v44, %v5275_v23 }
 0x38d   :  { %v5294_v33 = vmax.f32 %v5289_v49, 0.0  ;;  %v14416_v49 = vor.u32 %v17764_v32, %v14415_v38  ;;  %v14516_v38 = vor.u32 %v17786_v35, %v14513_v61  ;;  %v14585_v35 = vld [vmem:[%s28422_s12 + $0x1d8] sm:$0xf0]  ;;  %v14439_v61 = vld [vmem:[%s28422_s12 + $0xa8] sm:$0xf] }
 0x38f   :  { %5373 = vmatmul.f32.gmra.mxu1 %v5294_v33  ;;  %5455 = vmatmul.f32.gmra.mxu0 %v5294_v33  ;;  %v14545_v33 = vld [vmem:[%s28422_s12 + $0x190] sm:$0xf0] }
 0x390   :  { %v14548_v21 = vor.u32 %v17794_v12, %v14545_v33  ;;  %5951 = vmatpush.bf16.msra.mxu3 %v14416_v49  ;;  %v17782_v33 = vld [vmem:[%s28422_s12 + $0x124] sm:$0xf] }
 0x392   :  { %5993 = vmatpush.bf16.msra.mxu0 %v14548_v21  ;;  %v17780_v21 = vld [vmem:[%s28422_s12 + $0x10c] sm:$0xf0] }
 0x394   :  { %5952 = vmatpush.bf16.msra.mxu3 %v14400_v4 }
 0x398   :  { %5953 = vmatpush.bf16.msra.mxu3 %v14384_v47 }
 0x3fa   :  { %v5430_v15 = vpop.f32.mrf.mxu2  ;;  %v5348_v53 = vpop.f32.mrf.mxu3 }
 0x3fb   :  { %v5349_v60 = vadd.f32 %v23290_v5, %v5348_v53  ;;  %v5431_v50 = vadd.f32 %v23295_v48, %v5430_v15  ;;  %v14420_v15 = vor.u32 %v17762_v13, %v14417_v10  ;;  %v17752_v13 = vld [vmem:[%s28422_s12 + $0x2c] sm:$0xf0]  ;;  %v14495_v10 = vld [vmem:[%s28422_s12 + $0x120] sm:$0xf] }
 0x3fd   :  { %5979 = vmatpush.bf16.msra.mxu2 %v14420_v15  ;;  %v14500_v15 = vor.u32 %v17782_v33, %v14497_v59  ;;  %v17761_v33 = vld [vmem:[%s28422_s12 + $0x74] sm:$0xf0]  ;;  %v14535_v59 = vld [vmem:[%s28422_s12 + $0x168] sm:$0xf] }
 0x402   :  { %v5433_v39 = vpop.f32.mrf.mxu2  ;;  %v5351_v27 = vpop.f32.mrf.mxu3 }
 0x403   :  { %v5434_v53 = vadd.f32 %v23295_v48, %v5433_v39  ;;  %v5352_v14 = vadd.f32 %v23290_v5, %v5351_v27  ;;  %v17790_v48 = vld [vmem:[%s28422_s12 + $0x164] sm:$0xf]  ;;  %v14404_v5 = vor.u32 %v17758_v31, %v14401_v43  ;;  %v17784_v27 = vld [vmem:[%s28422_s12 + $0x12c] sm:$0xf0]  ;;  %v14353_v43 = vld [vmem:[%s28422_s12 + $0x10] sm:$0xf0] }
 0x404   :  { %v5371_v0 = vpop.f32.mrf.mxu1  ;;  %v5453_v51 = vpop.f32.mrf.mxu0 }
 0x405   :  { %v23362_v19 = vadd.f32 %v5371_v0, %v5349_v60  ;;  %v5454_v54 = vadd.f32 %v5453_v51, %v5431_v50  ;;  %v5489_v60 = vld [vmem:[%s28423_s1] sm:$0xff]  ;;  %v14532_v50 = vor.u32 %v17790_v48, %v14529_v24  ;;  %v14385_v0 = vld [vmem:[%s28422_s12 + $0x50] sm:$0xf0]  ;;  %5980 = vmatpush.bf16.msra.mxu2 %v14404_v5  ;;  %v14471_v24 = vld [vmem:[%s28422_s12 + $0xe8] sm:$0xf] }
 0x406   :  { %v14388_v17 = vor.u32 %v17754_v11, %v14385_v0  ;;  %v14473_v5 = vld [vmem:[%s28422_s12 + $0xf8] sm:$0xf0]  ;;  %v17771_v0 = vld [vmem:[%s28422_s12 + $0xcc] sm:$0xf] }
 0x407   :  { %v5465_v3 = vmul.f32 1.442695, %v5454_v54  ;;  %v5483_v9 = vmul.f32 0.5, %v5454_v54  ;;  %v5461_v29 = vmul.f32 %v23362_v19, %v23362_v19  ;;  %v5459_v23 = vadd.f32 1.0, %v5454_v54  ;;  %5994 = vmatpush.bf16.msra.mxu0 %v14532_v50  ;;  %v17773_v50 = vld [vmem:[%s28422_s12 + $0xd4] sm:$0xf0] }
 0x408   :  { %v14476_v62 = vor.u32 %v17775_v55, %v14473_v5  ;;  %v23659_v55 = vld [vmem:[%s28424_s10] ss:$2 sm:$0x3] }
 0x409   :  { %18425 = vpow2.f32 %v5465_v3  ;;  %v5485_v44 = vmul.f32 1.442695, %v5483_v9  ;;  %v5463_v37 = vsub.f32 %v5459_v23, %v5461_v29  ;;  %v5490_v3 = vld [vmem:[%s28423_s1 + $0x8] sm:$0xff]  ;;  %5981 = vmatpush.bf16.msra.mxu2 %v14388_v17  ;;  %v14367_v29 = vld [vmem:[%s28422_s12 + $0x20] sm:$0xf] }
 0x40a   :  { %v14368_v12 = vor.u32 %v17752_v13, %v14367_v29  ;;  %v14369_v23 = vld [vmem:[%s28422_s12 + $0x30] sm:$0xf0]  ;;  %v17763_v29 = vld [vmem:[%s28422_s12 + $0x8c] sm:$0xf]  ;;  %v14425_v13 = vld [vmem:[%s28422_s12 + $0x98] sm:$0xf0] }
 0x40b   :  { %18427 = vpow2.f32 %v5485_v44  ;;  %5995 = vmatpush.bf16.msra.mxu0 %v14516_v38  ;;  %v14496_v44 = vor.u32 %v17784_v27, %v14495_v10  ;;  %v17799_v38 = vld [vmem:[%s28422_s12 + $0x1ac] sm:$0xf]  ;;  %v14553_v27 = vld [vmem:[%s28422_s12 + $0x198] sm:$0xf0] }
 0x40c   :  { %v5374_v63 = vpop.f32.mrf.mxu1  ;;  %v5456_v40 = vpop.f32.mrf.mxu0  ;;  %5954 = vmatpush.bf16.msra.mxu3 %v14368_v12  ;;  %v17795_v12 = vld [vmem:[%s28422_s12 + $0x18c] sm:$0xf] }
 0x40d   :  { %v5457_v36 = vadd.f32 %v5456_v40, %v5434_v53  ;;  %v5375_v22 = vadd.f32 %v5374_v63, %v5352_v14  ;;  %5968 = vmatpush.bf16.msra.mxu1 %v14496_v44  ;;  %v14479_v53 = vld [vmem:[%s28422_s12 + $0x100] sm:$0xf]  ;;  %v17778_v14 = vld [vmem:[%s28422_s12 + $0x104] sm:$0xf]  ;;  %v14481_v63 = vld [vmem:[%s28422_s12 + $0x110] sm:$0xf0]  ;;  %v14356_v40 = vor.u32 %v17746_v58, %v14353_v43  ;;  %v14556_v44 = vor.u32 %v17795_v12, %v14553_v27 }
 0x40e   :  { %v14480_v31 = vor.u32 %v17780_v21, %v14479_v53  ;;  %v14484_v48 = vor.u32 %v17778_v14, %v14481_v63  ;;  %v17791_v53 = vld [vmem:[%s28422_s12 + $0x16c] sm:$0xf]  ;;  %v14537_v21 = vld [vmem:[%s28422_s12 + $0x178] sm:$0xf0]  ;;  %v14391_v43 = vld [vmem:[%s28422_s12 + $0x48] sm:$0xf] }
 0x40f   :  { %v18426_v2 = vpop.eup %18425  ;;  %v5467_v56 = vmul.f32 1.442695, %v5457_v36  ;;  %v5484_v26 = vmul.f32 0.5, %v5457_v36  ;;  %v5462_v54 = vmul.f32 %v5375_v22, %v5375_v22  ;;  %v5460_v45 = vadd.f32 1.0, %v5457_v36  ;;  %5996 = vmatpush.bf16.msra.mxu0 %v14500_v15  ;;  %v17777_v36 = vld [vmem:[%s28422_s12 + $0xf4] sm:$0xf0] }
 0x410   :  { %v5469_v52 = vsub.f32 %v5463_v37, %v18426_v2  ;;  %5955 = vmatpush.bf16.msra.mxu3 %v14352_v25  ;;  %v14599_v37 = vld [vmem:[%s28422_s12 + $0x1e8] sm:$0xf]  ;;  %v14472_v4 = vor.u32 %v17777_v36, %v14471_v24  ;;  %v17807_v2 = vld [vmem:[%s28422_s12 + $0x1ec] sm:$0xf]  ;;  %v17793_v15 = vld [vmem:[%s28422_s12 + $0x174] sm:$0xf0] }
 0x411   :  { %v18428_v51 = vpop.eup %18427  ;;  %18429 = vpow2.f32 %v5467_v56  ;;  %v5487_v18 = vmul.f32 1.442695, %v5484_v26  ;;  %v5464_v32 = vsub.f32 %v5460_v45, %v5462_v54  ;;  %5969 = vmatpush.bf16.msra.mxu1 %v14480_v31  ;;  %v14601_v56 = vld [vmem:[%s28422_s12 + $0x1f8] sm:$0xf0]  ;;  %v14455_v26 = vld [vmem:[%s28422_s12 + $0xc8] sm:$0xf]  ;;  %v14536_v58 = vor.u32 %v17793_v15, %v14535_v59 }
 0x412   :  { %v5472_v7 = vsel %vm5471_vm1, %v5469_v52, 0.0  ;;  %v5491_v8 = vmul.f32 %v18428_v51, %v5489_v60  ;;  %v14604_v60 = vor.u32 %v17807_v2, %v14601_v56  ;;  %v17805_v52 = vld [vmem:[%s28422_s12 + $0x1d4] sm:$0xf0]  ;;  %v14456_v57 = vor.u32 %v17773_v50, %v14455_v26  ;;  %v14457_v51 = vld [vmem:[%s28422_s12 + $0xd8] sm:$0xf0] }
 0x413   :  { %18431 = vpow2.f32 %v5487_v18  ;;  %5473 = vadd.xlane.f32.xlu2 %v5472_v7  ;;  %5997 = vmatpush.bf16.msra.mxu0 %v14484_v48  ;;  %v14584_v11 = vor.u32 %v17805_v52, %v14583_v46  ;;  %v17803_v18 = vld [vmem:[%s28422_s12 + $0x1cc] sm:$0xf]  ;;  %v14460_v47 = vor.u32 %v17771_v0, %v14457_v51  ;;  %v17769_v54 = vld [vmem:[%s28422_s12 + $0xb4] sm:$0xf0]  ;;  %v14567_v7 = vld [vmem:[%s28422_s12 + $0x1a8] sm:$0xf]  ;;  %v14412_v31 = vor.u32 %v17759_v28, %v14409_v30 }
 0x414   :  { %v5493_v20 = vadd.f32 %v5491_v8, %v23362_v19  ;;  %6004 = vmatpush.bf16.msrb.mxu3 %v14472_v4  ;;  %v14588_v45 = vor.u32 %v17803_v18, %v14585_v35  ;;  %v17801_v8 = vld [vmem:[%s28422_s12 + $0x1b4] sm:$0xf0]  ;;  %v14440_v17 = vor.u32 %v17769_v54, %v14439_v61  ;;  %v14519_v63 = vld [vmem:[%s28422_s12 + $0x148] sm:$0xf]  ;;  %v17755_v24 = vld [vmem:[%s28422_s12 + $0x4c] sm:$0xf] }
 0x415   :  { %v17757_v14 = vld [vmem:[%s28422_s12 + $0x54] sm:$0xf0]  ;;  %v14393_v36 = vld [vmem:[%s28422_s12 + $0x58] sm:$0xf0]  ;;  %v14375_v2 = vld [vmem:[%s28422_s12 + $0x28] sm:$0xf] }
 0x416   :  { %5518 = vperm.xlu1 %18421, %v5493_v20   ;;  %5498 = vperm.xlu0 %18420, %v5493_v20   ;;  %v14441_v20 = vld [vmem:[%s28422_s12 + $0xb8] sm:$0xf0]  ;;  %v17789_v48 = vld [vmem:[%s28422_s12 + $0x154] sm:$0xf0]  ;;  %v14392_v5 = vor.u32 %v17757_v14, %v14391_v43  ;;  %v17751_v46 = vld [vmem:[%s28422_s12 + $0x2c] sm:$0xf] }
 0x417   :  { %v18430_v41 = vpop.eup %18429  ;;  %6046 = vmatpush.bf16.msrb.mxu0 %v14604_v60  ;;  %v14521_v4 = vld [vmem:[%s28422_s12 + $0x158] sm:$0xf0]  ;;  %v17753_v56 = vld [vmem:[%s28422_s12 + $0x34] sm:$0xf0]  ;;  %v14503_v60 = vld [vmem:[%s28422_s12 + $0x128] sm:$0xf] }
 0x418   :  { %v5470_v9 = vsub.f32 %v5464_v32, %v18430_v41  ;;  %6005 = vmatpush.bf16.msrb.mxu3 %v14456_v57  ;;  %v14569_v32 = vld [vmem:[%s28422_s12 + $0x1b8] sm:$0xf0]  ;;  %v14568_v41 = vor.u32 %v17801_v8, %v14567_v7  ;;  %v17785_v50 = vld [vmem:[%s28422_s12 + $0x134] sm:$0xf0]  ;;  %v17783_v57 = vld [vmem:[%s28422_s12 + $0x12c] sm:$0xf]  ;;  %v14376_v54 = vor.u32 %v17753_v56, %v14375_v2 }
 0x419   :  { %v18432_v16 = vpop.eup %18431  ;;  %v14377_v52 = vld [vmem:[%s28422_s12 + $0x38] sm:$0xf0]  ;;  %v5507_v18 = vperm.slane %v23659_v55, 0  ;;  %v14359_v35 = vld [vmem:[%s28422_s12 + $0x8] sm:$0xf] }
 0x41a   :  { %v5475_v42 = vsel %vm5471_vm1, %v5470_v9, 0.0  ;;  %v5492_v39 = vmul.f32 %v18432_v16, %v5490_v3  ;;  %v14444_v3 = vor.u32 %v17767_v6, %v14441_v20  ;;  %v14572_v9 = vor.u32 %v17799_v38, %v14569_v32  ;;  %v14423_v16 = vld [vmem:[%s28422_s12 + $0x88] sm:$0xf]  ;;  %v17749_v7 = vld [vmem:[%s28422_s12 + $0x14] sm:$0xf0] }
 0x41b   :  { %5476 = vadd.xlane.f32.xlu2 %v5475_v42  ;;  %6047 = vmatpush.bf16.msrb.mxu0 %v14588_v45  ;;  %v17765_v42 = vld [vmem:[%s28422_s12 + $0x94] sm:$0xf0]  ;;  %v14504_v45 = vor.u32 %v17785_v50, %v14503_v60  ;;  %v14487_v8 = vld [vmem:[%s28422_s12 + $0x108] sm:$0xf]  ;;  %v14380_v20 = vor.u32 %v17751_v46, %v14377_v52  ;;  %v17747_v32 = vld [vmem:[%s28422_s12 + $0xc] sm:$0xf] }
 0x41c   :  { %v5494_v19 = vadd.f32 %v5492_v39, %v5375_v22  ;;  %v17809_v22 = vld [vmem:[%s28422_s12 + $0x1f4] sm:$0xf0]  ;;  %v14551_v39 = vld [vmem:[%s28422_s12 + $0x188] sm:$0xf]  ;;  %6006 = vmatpush.bf16.msrb.mxu3 %v14440_v17  ;;  %v14424_v10 = vor.u32 %v17765_v42, %v14423_v16  ;;  %v17779_v16 = vld [vmem:[%s28422_s12 + $0x10c] sm:$0xf] }
 0x41d   :  { %v14600_v34 = vor.u32 %v17809_v22, %v14599_v37  ;;  %v17787_v37 = vld [vmem:[%s28422_s12 + $0x14c] sm:$0xf]  ;;  %v23654_v22 = vld [vmem:[%s28424_s10 + $0x1] ss:$2 sm:$0x3] }
 0x41e   :  { %5522 = vperm.xlu1 %18421, %v5494_v19   ;;  %5503 = vperm.xlu0 %18420, %v5494_v19   ;;  %v17797_v19 = vld [vmem:[%s28422_s12 + $0x194] sm:$0xf0]  ;;  %v14524_v26 = vor.u32 %v17787_v37, %v14521_v4  ;;  %v5526_v0 = vperm.slane %v23654_v22, 0  ;;  %v5527_v51 = vperm.slane %v23654_v22, 1  ;;  %v14489_v42 = vld [vmem:[%s28422_s12 + $0x118] sm:$0xf0] }
 0x41f   :  { %6018 = vmatpush.bf16.msrb.mxu1 %v14600_v34  ;;  %6048 = vmatpush.bf16.msrb.mxu0 %v14572_v9  ;;  %v14520_v34 = vor.u32 %v17789_v48, %v14519_v63  ;;  %v17781_v6 = vld [vmem:[%s28422_s12 + $0x114] sm:$0xf0]  ;;  %v14361_v9 = vld [vmem:[%s28422_s12 + $0x18] sm:$0xf0]  ;;  %v5538_v27 = vld [vmem:[%s28426_s11] sm:$0x3] }
 0x420   :  { %6007 = vmatpush.bf16.msrb.mxu3 %v14424_v10  ;;  %v15139_v48 = vld [vmem:[%s28427_s14 + $0x428] sm:$0xf]  ;;  %v17952_v37 = vld [vmem:[%s28427_s14 + $0x470] sm:$0xf0] }
 0x421   :  { %v15747_v4 = vld [vmem:[%s28427_s14 + $0x8e8] sm:$0xf]  ;;  %v18104_v22 = vld [vmem:[%s28427_s14 + $0x930] sm:$0xf0]  ;;  %v15140_v52 = vor.u32 %v17952_v37, %v15139_v48  ;;  %v17857_v37 = vld [vmem:[%s28427_s14 + $0x178] sm:$0xf0] }
 0x422   :  { %v18408_v60 = vld [vmem:[%s28427_s14 + $0x12b0] sm:$0xf0] }
 0x423   :  { %6019 = vmatpush.bf16.msrb.mxu1 %v14584_v11  ;;  %6049 = vmatpush.bf16.msrb.mxu0 %v14556_v44  ;;  %v14505_v11 = vld [vmem:[%s28422_s12 + $0x138] sm:$0xf0]  ;;  %v5540_v44 = vperm.slane %v5538_v27, 0 }
 0x424   :  { %v14508_v38 = vor.u32 %v17783_v57, %v14505_v11  ;;  %v15748_v57 = vor.u32 %v18104_v22, %v15747_v4  ;;  %v15063_v11 = vld [vmem:[%s28427_s14 + $0x390] sm:$0xf]  ;;  %v18009_v22 = vld [vmem:[%s28427_s14 + $0x638] sm:$0xf0] }
 0x425   :  { %v15367_v4 = vld [vmem:[%s28427_s14 + $0x5f0] sm:$0xf] }
 0x426   :  { %18422 = vset.pattern.permute.xlu0 %v18591_v1  ;;  %v17750_v1 = vld [vmem:[%s28422_s12 + $0x24] sm:$0xf] }
 0x427   :  { %v14372_v49 = vor.u32 %v17750_v1, %v14369_v23  ;;  %6020 = vmatpush.bf16.msrb.mxu1 %v14568_v41  ;;  %v14552_v1 = vor.u32 %v17797_v19, %v14551_v39  ;;  %v14428_v23 = vor.u32 %v17763_v29, %v14425_v13  ;;  %v14360_v19 = vor.u32 %v17749_v7, %v14359_v35  ;;  %v18389_v7 = vld [vmem:[%s28427_s14 + $0x1218] sm:$0xf0] }
 0x428   :  { %v14488_v29 = vor.u32 %v17781_v6, %v14487_v8 }
 0x429   :  { %5982 = vmatpush.bf16.msra.mxu2 %v14372_v49  ;;  %v14407_v49 = vld [vmem:[%s28422_s12 + $0x68] sm:$0xf] }
 0x42a   :  { %v14408_v25 = vor.u32 %v17761_v33, %v14407_v49  ;;  %v5541_v49 = vperm.slane %v5538_v27, 1  ;;  %v18047_v27 = vld [vmem:[%s28427_s14 + $0x768] sm:$0xf0] }
 0x42b   :  { %6021 = vmatpush.bf16.msrb.mxu1 %v14552_v1  ;;  %v14364_v1 = vor.u32 %v17747_v32, %v14361_v9  ;;  %v18066_v32 = vld [vmem:[%s28427_s14 + $0x800] sm:$0xf0]  ;;  %v16203_v9 = vld [vmem:[%s28427_s14 + $0xc78] sm:$0xf] }
 0x42c   :  { %6008 = vmatpush.bf16.msrb.mxu3 %v14408_v25 }
 0x42d   :  { %5983 = vmatpush.bf16.msra.mxu2 %v14356_v40  ;;  %v14540_v40 = vor.u32 %v17791_v53, %v14537_v21 }
 0x42f   :  { %6022 = vmatpush.bf16.msrb.mxu1 %v14536_v58  ;;  %6050 = vmatpush.bf16.msrb.mxu0 %v14540_v40 }
 0x430   :  { %6009 = vmatpush.bf16.msrb.mxu3 %v14392_v5 }
 0x431   :  { %6032 = vmatpush.bf16.msrb.mxu2 %v14476_v62  ;;  %v14396_v62 = vor.u32 %v17755_v24, %v14393_v36 }
 0x433   :  { %6023 = vmatpush.bf16.msrb.mxu1 %v14520_v34  ;;  %6051 = vmatpush.bf16.msrb.mxu0 %v14524_v26  ;;  %v16355_v34 = vld [vmem:[%s28427_s14 + $0xda8] sm:$0xf] }
 0x434   :  { %6010 = vmatpush.bf16.msrb.mxu3 %v14376_v54  ;;  %v16963_v26 = vld [vmem:[%s28427_s14 + $0x1268] sm:$0xf]  ;;  %v18237_v54 = vld [vmem:[%s28427_s14 + $0xd58] sm:$0xf0] }
 0x435   :  { %6033 = vmatpush.bf16.msrb.mxu2 %v14460_v47  ;;  %v5508_v47 = vperm.slane %v23659_v55, 1  ;;  %v16964_v35 = vor.u32 %v18408_v60, %v16963_v26  ;;  %v15291_v26 = vld [vmem:[%s28427_s14 + $0x558] sm:$0xf]  ;;  %v17990_v60 = vld [vmem:[%s28427_s14 + $0x5a0] sm:$0xf0] }
 0x437   :  { %6024 = vmatpush.bf16.msrb.mxu1 %v14504_v45  ;;  %6052 = vmatpush.bf16.msrb.mxu0 %v14508_v38  ;;  %v16887_v45 = vld [vmem:[%s28427_s14 + $0x11d0] sm:$0xf]  ;;  %v15595_v38 = vld [vmem:[%s28427_s14 + $0x7b8] sm:$0xf] }
 0x438   :  { %6011 = vmatpush.bf16.msrb.mxu3 %v14360_v19 }
 0x439   :  { %6034 = vmatpush.bf16.msrb.mxu2 %v14444_v3 }
 0x43b   :  { %6025 = vmatpush.bf16.msrb.mxu1 %v14488_v29  ;;  %v15596_v29 = vor.u32 %v18066_v32, %v15595_v38 }
 0x43d   :  { %6035 = vmatpush.bf16.msrb.mxu2 %v14428_v23  ;;  %v14492_v23 = vor.u32 %v17779_v16, %v14489_v42  ;;  %v18218_v16 = vld [vmem:[%s28427_s14 + $0xcc0] sm:$0xf0]  ;;  %v16811_v42 = vld [vmem:[%s28427_s14 + $0x1138] sm:$0xf] }
 0x43f   :  { %6053 = vmatpush.bf16.msrb.mxu0 %v14492_v23 }
 0x441   :  { %6036 = vmatpush.bf16.msrb.mxu2 %v14412_v31 }
 0x445   :  { %6037 = vmatpush.bf16.msrb.mxu2 %v14396_v62  ;;  %v18256_v62 = vld [vmem:[%s28427_s14 + $0xdf0] sm:$0xf0] }
 0x449   :  { %6038 = vmatpush.bf16.msrb.mxu2 %v14380_v20  ;;  %v17914_v20 = vld [vmem:[%s28427_s14 + $0x340] sm:$0xf0] }
 0x44d   :  { %6039 = vmatpush.bf16.msrb.mxu2 %v14364_v1  ;;  %v16204_v1 = vor.u32 %v18218_v16, %v16203_v9  ;;  %v16583_v9 = vld [vmem:[%s28427_s14 + $0xf70] sm:$0xf] }
 0x486   :  { %v5474_v61 = vpop.xlane.xlu2 %5473 }
 0x487   :  { %v5478_v17 = vmul.f32 -0.5, %v5474_v61  ;;  %v16279_v61 = vld [vmem:[%s28427_s14 + $0xd10] sm:$0xf] }
 0x488   :  { %v5519_v41 = vpop.permute.xlu1 %5518  ;;  %v5499_v3 = vpop.permute.xlu0 %5498 }
 0x489   :  { %5481 = vst.msk [vmem:[%s28425_s17] sm:$0xff] %vm5480_vm2, %v5478_v17  ;;  %v5530_v39 = vmul.f32 %v5526_v0, %v5519_v41  ;;  %v5531_v13 = vmul.f32 %v5527_v51, %v5519_v41  ;;  %v5511_v10 = vmul.f32 %v5507_v18, %v5499_v3  ;;  %v5512_v12 = vmul.f32 %v5508_v47, %v5499_v3  ;;  %v14987_v17 = vld [vmem:[%s28427_s14 + $0x2f8] sm:$0xf] }
 0x48a   :  { %v16280_v41 = vor.u32 %v18237_v54, %v16279_v61  ;;  %v16888_v3 = vor.u32 %v18389_v7, %v16887_v45  ;;  %v14988_v19 = vor.u32 %v17914_v20, %v14987_v17  ;;  %v18076_v17 = vld [vmem:[%s28427_s14 + $0x854] sm:$0xf]  ;;  %v15673_v20 = vld [vmem:[%s28427_s14 + $0x89c] sm:$0xf0] }
 0x48b   :  { %v5534_v33 = vadd.f32 %v5530_v39, %v5511_v10  ;;  %v5535_v59 = vadd.f32 %v5531_v13, %v5512_v12  ;;  %v18370_v39 = vld [vmem:[%s28427_s14 + $0x1180] sm:$0xf0]  ;;  %v14911_v13 = vld [vmem:[%s28427_s14 + $0x260] sm:$0xf]  ;;  %v17895_v10 = vld [vmem:[%s28427_s14 + $0x2a8] sm:$0xf0]  ;;  %v15676_v32 = vor.u32 %v18076_v17, %v15673_v20 }
 0x48c   :  { %v15519_v12 = vld [vmem:[%s28427_s14 + $0x720] sm:$0xf]  ;;  %v16812_v23 = vor.u32 %v18370_v39, %v16811_v42  ;;  %v18313_v42 = vld [vmem:[%s28427_s14 + $0xfb8] sm:$0xf0]  ;;  %v16205_v17 = vld [vmem:[%s28427_s14 + $0xcc4] sm:$0xf0] }
 0x48d   :  { %v5544_v43 = vadd.f32 %v5540_v44, %v5534_v33  ;;  %v5545_v14 = vadd.f32 %v5541_v49, %v5535_v59  ;;  %v16735_v33 = vld [vmem:[%s28427_s14 + $0x10a0] sm:$0xf]  ;;  %v18351_v59 = vld [vmem:[%s28427_s14 + $0x10e8] sm:$0xf0]  ;;  %v17905_v39 = vld [vmem:[%s28427_s14 + $0x2fc] sm:$0xf] }
 0x48e   :  { %v5477_v15 = vpop.xlane.xlu2 %5476 }
 0x48f   :  { %v5479_v28 = vmul.f32 -0.5, %v5477_v15  ;;  %v5548_v55 = vmax.f32 %v5544_v43, 0.0  ;;  %v5549_v5 = vmax.f32 %v5545_v14, 0.0  ;;  %v14912_v15 = vor.u32 %v17895_v10, %v14911_v13  ;;  %v16051_v43 = vld [vmem:[%s28427_s14 + $0xb48] sm:$0xf] }
 0x490   :  { %v5523_v30 = vpop.permute.xlu1 %5522  ;;  %v5504_v25 = vpop.permute.xlu0 %5503  ;;  %v18180_v14 = vld [vmem:[%s28427_s14 + $0xb90] sm:$0xf0]  ;;  %v18057_v10 = vld [vmem:[%s28427_s14 + $0x7bc] sm:$0xf] }
 0x491   :  { %5482 = vst.msk [vmem:[%s28425_s17 + $0x8] sm:$0xff] %vm5480_vm2, %v5479_v28  ;;  %v5532_v53 = vmul.f32 %v5526_v0, %v5523_v30  ;;  %v5533_v21 = vmul.f32 %v5527_v51, %v5523_v30  ;;  %v5513_v58 = vmul.f32 %v5507_v18, %v5504_v25  ;;  %v5514_v31 = vmul.f32 %v5508_v47, %v5504_v25  ;;  %v17933_v0 = vld [vmem:[%s28427_s14 + $0x3d8] sm:$0xf0]  ;;  %v15671_v51 = vld [vmem:[%s28427_s14 + $0x850] sm:$0xf] }
 0x492   :  { %v18085_v18 = vld [vmem:[%s28427_s14 + $0x898] sm:$0xf0]  ;;  %v16356_v47 = vor.u32 %v18256_v62, %v16355_v34  ;;  %v15064_v8 = vor.u32 %v17933_v0, %v15063_v11  ;;  %v15520_v28 = vor.u32 %v18047_v27, %v15519_v12  ;;  %v14835_v30 = vld [vmem:[%s28427_s14 + $0x1c8] sm:$0xf]  ;;  %v17876_v25 = vld [vmem:[%s28427_s14 + $0x210] sm:$0xf0]  ;;  %v15368_v62 = vor.u32 %v18009_v22, %v15367_v4 }
 0x493   :  { %v5536_v63 = vadd.f32 %v5532_v53, %v5513_v58  ;;  %v5537_v40 = vadd.f32 %v5533_v21, %v5514_v31  ;;  %v15672_v6 = vor.u32 %v18085_v18, %v15671_v51  ;;  %v15443_v53 = vld [vmem:[%s28427_s14 + $0x688] sm:$0xf]  ;;  %v18028_v21 = vld [vmem:[%s28427_s14 + $0x6d0] sm:$0xf0]  ;;  %v16736_v31 = vor.u32 %v18351_v59, %v16735_v33  ;;  %v15215_v11 = vld [vmem:[%s28427_s14 + $0x4c0] sm:$0xf] }
 0x494   :  { %v14836_v48 = vor.u32 %v17876_v25, %v14835_v30  ;;  %v17971_v0 = vld [vmem:[%s28427_s14 + $0x508] sm:$0xf0]  ;;  %v15141_v18 = vld [vmem:[%s28427_s14 + $0x474] sm:$0xf0]  ;;  %v15597_v12 = vld [vmem:[%s28427_s14 + $0x804] sm:$0xf0] }
 0x495   :  { %v5546_v24 = vadd.f32 %v5540_v44, %v5536_v63  ;;  %v5547_v36 = vadd.f32 %v5541_v49, %v5537_v40  ;;  %v16127_v44 = vld [vmem:[%s28427_s14 + $0xbe0] sm:$0xf]  ;;  %v18199_v49 = vld [vmem:[%s28427_s14 + $0xc28] sm:$0xf0]  ;;  %v16659_v63 = vld [vmem:[%s28427_s14 + $0x1008] sm:$0xf]  ;;  %v15216_v54 = vor.u32 %v17971_v0, %v15215_v11 }
 0x496   :  { %v16128_v58 = vor.u32 %v18199_v49, %v16127_v44  ;;  %v18332_v40 = vld [vmem:[%s28427_s14 + $0x1050] sm:$0xf0]  ;;  %v17943_v51 = vld [vmem:[%s28427_s14 + $0x42c] sm:$0xf]  ;;  %v15899_v27 = vld [vmem:[%s28427_s14 + $0xa18] sm:$0xf] }
 0x497   :  { %v5550_v2 = vmax.f32 %v5546_v24, 0.0  ;;  %v5551_v56 = vmax.f32 %v5547_v36, 0.0  ;;  %v15444_v24 = vor.u32 %v18028_v21, %v15443_v53  ;;  %v14759_v36 = vld [vmem:[%s28427_s14 + $0x130] sm:$0xf]  ;;  %v15144_v45 = vor.u32 %v17943_v51, %v15141_v18  ;;  %v16507_v44 = vld [vmem:[%s28427_s14 + $0xed8] sm:$0xf] }
 0x498   :  { %v14760_v34 = vor.u32 %v17857_v37, %v14759_v36  ;;  %v18294_v49 = vld [vmem:[%s28427_s14 + $0xf20] sm:$0xf0]  ;;  %v15521_v53 = vld [vmem:[%s28427_s14 + $0x76c] sm:$0xf0]  ;;  %v18019_v37 = vld [vmem:[%s28427_s14 + $0x68c] sm:$0xf] }
 0x499   :  { %v23748_v50 = vpack.c.bf16 %v5550_v2, %v5548_v55  ;;  %v23750_v46 = vpack.c.bf16 %v5551_v56, %v5549_v5  ;;  %v16052_v55 = vor.u32 %v18180_v14, %v16051_v43  ;;  %v16660_v5 = vor.u32 %v18332_v40, %v16659_v63  ;;  %v14683_v2 = vld [vmem:[%s28427_s14 + $0x98] sm:$0xf]  ;;  %v17838_v56 = vld [vmem:[%s28427_s14 + $0xe0] sm:$0xf0]  ;;  %v16431_v43 = vld [vmem:[%s28427_s14 + $0xe40] sm:$0xf] }
 0x49a   :  { %v16508_v59 = vor.u32 %v18294_v49, %v16507_v44  ;;  %v18038_v25 = vld [vmem:[%s28427_s14 + $0x724] sm:$0xf]  ;;  %v18275_v63 = vld [vmem:[%s28427_s14 + $0xe88] sm:$0xf0]  ;;  %v15445_v4 = vld [vmem:[%s28427_s14 + $0x6d4] sm:$0xf0] }
 0x49b   :  { %5956 = vmatmul.bf16.vlgmr.msra.gmra.mxu3 %v23748_v50  ;;  %5970 = vmatmul.bf16.vlgmr.msra.gmra.mxu1 %v23750_v46  ;;  %v15524_v21 = vor.u32 %v18038_v25, %v15521_v53  ;;  %v17867_v40 = vld [vmem:[%s28427_s14 + $0x1cc] sm:$0xf]  ;;  %v16281_v11 = vld [vmem:[%s28427_s14 + $0xd5c] sm:$0xf0]  ;;  %v18380_v18 = vld [vmem:[%s28427_s14 + $0x11d4] sm:$0xf] }
 0x49c   :  { %5984 = vmatmul.bf16.vlgmr.msra.gmra.mxu2 %v23748_v50  ;;  %5998 = vmatmul.bf16.vlgmr.msra.gmra.mxu0 %v23750_v46  ;;  %v18247_v22 = vld [vmem:[%s28427_s14 + $0xdac] sm:$0xf]  ;;  %v16053_v49 = vld [vmem:[%s28427_s14 + $0xb94] sm:$0xf0]  ;;  %v15977_v25 = vld [vmem:[%s28427_s14 + $0xafc] sm:$0xf0] }
 0x49d   :  { %9828 = vmatpush.bf16.msra.mxu3 %v15140_v52  ;;  %9842 = vmatpush.bf16.msra.mxu1 %v15748_v57  ;;  %v14607_v52 = vld [vmem:[%s28427_s14] sm:$0xf]  ;;  %v17819_v57 = vld [vmem:[%s28427_s14 + $0x48] sm:$0xf0]  ;;  %v18304_v53 = vld [vmem:[%s28427_s14 + $0xf74] sm:$0xf] }
 0x49e   :  { %9856 = vmatpush.bf16.msra.mxu2 %v16356_v47  ;;  %9870 = vmatpush.bf16.msra.mxu0 %v16964_v35  ;;  %v18095_v47 = vld [vmem:[%s28427_s14 + $0x8ec] sm:$0xf]  ;;  %v15749_v35 = vld [vmem:[%s28427_s14 + $0x934] sm:$0xf0]  ;;  %v14608_v61 = vor.u32 %v17819_v57, %v14607_v52  ;;  %v15369_v52 = vld [vmem:[%s28427_s14 + $0x63c] sm:$0xf0] }
 0x49f   :  { %v15752_v7 = vor.u32 %v18095_v47, %v15749_v35  ;;  %v18228_v57 = vld [vmem:[%s28427_s14 + $0xd14] sm:$0xf]  ;;  %v16889_v47 = vld [vmem:[%s28427_s14 + $0x121c] sm:$0xf0]  ;;  %v18171_v44 = vld [vmem:[%s28427_s14 + $0xb4c] sm:$0xf] }
 0x4a0   :  { %v16284_v51 = vor.u32 %v18228_v57, %v16281_v11  ;;  %v16892_v35 = vor.u32 %v18380_v18, %v16889_v47 }
 0x4a1   :  { %9829 = vmatpush.bf16.msra.mxu3 %v15064_v8  ;;  %9843 = vmatpush.bf16.msra.mxu1 %v15672_v6  ;;  %v17924_v8 = vld [vmem:[%s28427_s14 + $0x394] sm:$0xf]  ;;  %v15065_v6 = vld [vmem:[%s28427_s14 + $0x3dc] sm:$0xf0] }
 0x4a2   :  { %9857 = vmatpush.bf16.msra.mxu2 %v16280_v41  ;;  %9871 = vmatpush.bf16.msra.mxu0 %v16888_v3  ;;  %v15068_v38 = vor.u32 %v17924_v8, %v15065_v6  ;;  %v15975_v41 = vld [vmem:[%s28427_s14 + $0xab0] sm:$0xf]  ;;  %v18161_v3 = vld [vmem:[%s28427_s14 + $0xaf8] sm:$0xf0]  ;;  %v15293_v8 = vld [vmem:[%s28427_s14 + $0x5a4] sm:$0xf0] }
 0x4a3   :  { %v15976_v16 = vor.u32 %v18161_v3, %v15975_v41  ;;  %v18209_v6 = vld [vmem:[%s28427_s14 + $0xc7c] sm:$0xf]  ;;  %v16813_v41 = vld [vmem:[%s28427_s14 + $0x1184] sm:$0xf0] }
 0x4a5   :  { %9830 = vmatpush.bf16.msra.mxu3 %v14988_v19  ;;  %9844 = vmatpush.bf16.msra.mxu1 %v15596_v29  ;;  %v14989_v19 = vld [vmem:[%s28427_s14 + $0x344] sm:$0xf0]  ;;  %v16584_v29 = vor.u32 %v18313_v42, %v16583_v9  ;;  %v17810_v9 = vld [vmem:[%s28427_s14 + $0x4] sm:$0xf] }
 0x4a6   :  { %9858 = vmatpush.bf16.msra.mxu2 %v16204_v1  ;;  %9872 = vmatpush.bf16.msra.mxu0 %v16812_v23  ;;  %v14992_v13 = vor.u32 %v17905_v39, %v14989_v19  ;;  %v15600_v1 = vor.u32 %v18057_v10, %v15597_v12  ;;  %v18142_v23 = vld [vmem:[%s28427_s14 + $0xa60] sm:$0xf0]  ;;  %v15217_v19 = vld [vmem:[%s28427_s14 + $0x50c] sm:$0xf0] }
 0x4a7   :  { %v15900_v33 = vor.u32 %v18142_v23, %v15899_v27  ;;  %v17962_v42 = vld [vmem:[%s28427_s14 + $0x4c4] sm:$0xf]  ;;  %v16129_v10 = vld [vmem:[%s28427_s14 + $0xc2c] sm:$0xf0] }
 0x4a8   :  { %v18342_v12 = vld [vmem:[%s28427_s14 + $0x10a4] sm:$0xf] }
 0x4a9   :  { %9831 = vmatpush.bf16.msra.mxu3 %v14912_v15  ;;  %9845 = vmatpush.bf16.msra.mxu1 %v15520_v28  ;;  %v17886_v15 = vld [vmem:[%s28427_s14 + $0x264] sm:$0xf]  ;;  %v14913_v28 = vld [vmem:[%s28427_s14 + $0x2ac] sm:$0xf0] }
 0x4aa   :  { %9859 = vmatpush.bf16.msra.mxu2 %v16128_v58  ;;  %9873 = vmatpush.bf16.msra.mxu0 %v16736_v31  ;;  %v14916_v30 = vor.u32 %v17886_v15, %v14913_v28  ;;  %v15823_v58 = vld [vmem:[%s28427_s14 + $0x980] sm:$0xf]  ;;  %v18123_v31 = vld [vmem:[%s28427_s14 + $0x9c8] sm:$0xf0]  ;;  %v16056_v15 = vor.u32 %v18171_v44, %v16053_v49 }
 0x4ab   :  { %6012 = vmatmul.bf16.vlgmr.msrb.gmra.mxu3 %v23748_v50  ;;  %6026 = vmatmul.bf16.vlgmr.msrb.gmra.mxu1 %v23750_v46  ;;  %v15824_v14 = vor.u32 %v18123_v31, %v15823_v58  ;;  %v16585_v58 = vld [vmem:[%s28427_s14 + $0xfbc] sm:$0xf0] }
 0x4ac   :  { %6040 = vmatmul.bf16.vlgmr.msrb.gmra.mxu2 %v23748_v50  ;;  %6054 = vmatmul.bf16.vlgmr.msrb.gmra.mxu0 %v23750_v46  ;;  %v14684_v50 = vor.u32 %v17838_v56, %v14683_v2  ;;  %v15292_v46 = vor.u32 %v17990_v60, %v15291_v26  ;;  %v17848_v26 = vld [vmem:[%s28427_s14 + $0x134] sm:$0xf]  ;;  %v14761_v60 = vld [vmem:[%s28427_s14 + $0x17c] sm:$0xf0]  ;;  %v16588_v31 = vor.u32 %v18304_v53, %v16585_v58 }
 0x4ad   :  { %9832 = vmatpush.bf16.msra.mxu3 %v14836_v48  ;;  %9846 = vmatpush.bf16.msra.mxu1 %v15444_v24  ;;  %v14837_v48 = vld [vmem:[%s28427_s14 + $0x214] sm:$0xf0]  ;;  %v16432_v24 = vor.u32 %v18275_v63, %v16431_v43  ;;  %v18133_v43 = vld [vmem:[%s28427_s14 + $0xa1c] sm:$0xf] }
 0x4ae   :  { %9860 = vmatpush.bf16.msra.mxu2 %v16052_v55  ;;  %9874 = vmatpush.bf16.msra.mxu0 %v16660_v5  ;;  %v14840_v36 = vor.u32 %v17867_v40, %v14837_v48  ;;  %v15448_v55 = vor.u32 %v18019_v37, %v15445_v4  ;;  %v16357_v5 = vld [vmem:[%s28427_s14 + $0xdf4] sm:$0xf0]  ;;  %v18285_v63 = vld [vmem:[%s28427_s14 + $0xedc] sm:$0xf]  ;;  %v24111_v4 = vld [vmem:[%s28428_s13] sm:$0xf] }
 0x4af   :  { %v16360_v2 = vor.u32 %v18247_v22, %v16357_v5  ;;  %v18114_v22 = vld [vmem:[%s28427_s14 + $0x984] sm:$0xf]  ;;  %v5623_v44 = vperm.slane %v24111_v4, 3 }
 0x4b0   :  { %v18266_v5 = vld [vmem:[%s28427_s14 + $0xe44] sm:$0xf] }
 0x4b1   :  { %9833 = vmatpush.bf16.msra.mxu3 %v14760_v34  ;;  %9847 = vmatpush.bf16.msra.mxu1 %v15368_v62  ;;  %v18399_v34 = vld [vmem:[%s28427_s14 + $0x126c] sm:$0xf]  ;;  %v16965_v62 = vld [vmem:[%s28427_s14 + $0x12b4] sm:$0xf0] }
 0x4b2   :  { %9861 = vmatpush.bf16.msra.mxu2 %v15976_v16  ;;  %9875 = vmatpush.bf16.msra.mxu0 %v16584_v29  ;;  %v16968_v56 = vor.u32 %v18399_v34, %v16965_v62  ;;  %v14609_v16 = vld [vmem:[%s28427_s14 + $0x4c] sm:$0xf0]  ;;  %v18190_v29 = vld [vmem:[%s28427_s14 + $0xbe4] sm:$0xf] }
 0x4b3   :  { %v14612_v39 = vor.u32 %v17810_v9, %v14609_v16  ;;  %v16132_v27 = vor.u32 %v18190_v29, %v16129_v10  ;;  %v15679_v10 = vld [vmem:[%s28427_s14 + $0x858] sm:$0xf] }
 0x4b5   :  { %9834 = vmatpush.bf16.msra.mxu3 %v14684_v50  ;;  %9848 = vmatpush.bf16.msra.mxu1 %v15292_v46  ;;  %v18000_v50 = vld [vmem:[%s28427_s14 + $0x5f4] sm:$0xf]  ;;  %v14764_v46 = vor.u32 %v17848_v26, %v14761_v60 }
 0x4b6   :  { %9862 = vmatpush.bf16.msra.mxu2 %v15900_v33  ;;  %9876 = vmatpush.bf16.msra.mxu0 %v16508_v59  ;;  %v15372_v0 = vor.u32 %v18000_v50, %v15369_v52  ;;  %v18323_v33 = vld [vmem:[%s28427_s14 + $0x100c] sm:$0xf]  ;;  %v16661_v59 = vld [vmem:[%s28427_s14 + $0x1054] sm:$0xf0]  ;;  %v5621_v50 = vperm.slane %v24111_v4, 1 }
 0x4b7   :  { %v16664_v28 = vor.u32 %v18323_v33, %v16661_v59  ;;  %v14995_v59 = vld [vmem:[%s28427_s14 + $0x300] sm:$0xf] }
 0x4b9   :  { %9835 = vmatpush.bf16.msra.mxu3 %v14608_v61  ;;  %9849 = vmatpush.bf16.msra.mxu1 %v15216_v54  ;;  %v17829_v61 = vld [vmem:[%s28427_s14 + $0x9c] sm:$0xf]  ;;  %v14685_v54 = vld [vmem:[%s28427_s14 + $0xe4] sm:$0xf0] }
 0x4ba   :  { %9863 = vmatpush.bf16.msra.mxu2 %v15824_v14  ;;  %9877 = vmatpush.bf16.msra.mxu0 %v16432_v24  ;;  %v15901_v14 = vld [vmem:[%s28427_s14 + $0xa64] sm:$0xf0] }
 0x4bb   :  { %v15904_v48 = vor.u32 %v18133_v43, %v15901_v14  ;;  %v16509_v24 = vld [vmem:[%s28427_s14 + $0xf24] sm:$0xf0]  ;;  %v17896_v43 = vld [vmem:[%s28427_s14 + $0x2b0] sm:$0xf0] }
 0x4bc   :  { %v16512_v37 = vor.u32 %v18285_v63, %v16509_v24  ;;  %v15527_v63 = vld [vmem:[%s28427_s14 + $0x728] sm:$0xf] }
 0x4bd   :  { %9884 = vmatpush.bf16.msrb.mxu3 %v15144_v45  ;;  %9898 = vmatpush.bf16.msrb.mxu1 %v15752_v7  ;;  %v17981_v45 = vld [vmem:[%s28427_s14 + $0x55c] sm:$0xf]  ;;  %v14688_v7 = vor.u32 %v17829_v61, %v14685_v54 }
 0x4be   :  { %9912 = vmatpush.bf16.msrb.mxu2 %v16360_v2  ;;  %9926 = vmatpush.bf16.msrb.mxu0 %v16968_v56  ;;  %v15296_v20 = vor.u32 %v17981_v45, %v15293_v8  ;;  %v16433_v2 = vld [vmem:[%s28427_s14 + $0xe8c] sm:$0xf0]  ;;  %v5620_v56 = vperm.slane %v24111_v4, 0 }
 0x4bf   :  { %v16436_v60 = vor.u32 %v18266_v5, %v16433_v2  ;;  %v15147_v45 = vld [vmem:[%s28427_s14 + $0x430] sm:$0xf] }
 0x4c0   :  { %v14843_v2 = vld [vmem:[%s28427_s14 + $0x1d0] sm:$0xf] }
 0x4c1   :  { %9885 = vmatpush.bf16.msrb.mxu3 %v15068_v38  ;;  %9899 = vmatpush.bf16.msrb.mxu1 %v15676_v32  ;;  %v16208_v38 = vor.u32 %v18209_v6, %v16205_v17  ;;  %v18361_v32 = vld [vmem:[%s28427_s14 + $0x113c] sm:$0xf]  ;;  %v15755_v6 = vld [vmem:[%s28427_s14 + $0x8f0] sm:$0xf] }
 0x4c2   :  { %9913 = vmatpush.bf16.msrb.mxu2 %v16284_v51  ;;  %9927 = vmatpush.bf16.msrb.mxu0 %v16892_v35  ;;  %v16816_v3 = vor.u32 %v18361_v32, %v16813_v41  ;;  %v18105_v17 = vld [vmem:[%s28427_s14 + $0x938] sm:$0xf0] }
 0x4c3   :  { %v15756_v16 = vor.u32 %v18105_v17, %v15755_v6 }
 0x4c5   :  { %9886 = vmatpush.bf16.msrb.mxu3 %v14992_v13  ;;  %9900 = vmatpush.bf16.msrb.mxu1 %v15600_v1  ;;  %v15220_v13 = vor.u32 %v17962_v42, %v15217_v19  ;;  %v16737_v1 = vld [vmem:[%s28427_s14 + $0x10ec] sm:$0xf0]  ;;  %v15071_v42 = vld [vmem:[%s28427_s14 + $0x398] sm:$0xf] }
 0x4c6   :  { %9914 = vmatpush.bf16.msrb.mxu2 %v16208_v38  ;;  %9928 = vmatpush.bf16.msrb.mxu0 %v16816_v3  ;;  %v16740_v23 = vor.u32 %v18342_v12, %v16737_v1  ;;  %v18086_v12 = vld [vmem:[%s28427_s14 + $0x8a0] sm:$0xf0]  ;;  %v5622_v1 = vperm.slane %v24111_v4, 2 }
 0x4c7   :  { %v15680_v33 = vor.u32 %v18086_v12, %v15679_v10 }
 0x4c9   :  { %9887 = vmatpush.bf16.msrb.mxu3 %v14916_v30  ;;  %9901 = vmatpush.bf16.msrb.mxu1 %v15524_v21  ;;  %v18152_v30 = vld [vmem:[%s28427_s14 + $0xab4] sm:$0xf] }
 0x4ca   :  { %9915 = vmatpush.bf16.msrb.mxu2 %v16132_v27  ;;  %9929 = vmatpush.bf16.msrb.mxu0 %v16740_v23  ;;  %v15980_v21 = vor.u32 %v18152_v30, %v15977_v25  ;;  %v18067_v30 = vld [vmem:[%s28427_s14 + $0x808] sm:$0xf0] }
 0x4cd   :  { %9888 = vmatpush.bf16.msrb.mxu3 %v14840_v36  ;;  %9902 = vmatpush.bf16.msrb.mxu1 %v15448_v55  ;;  %v15825_v55 = vld [vmem:[%s28427_s14 + $0x9cc] sm:$0xf0] }
 0x4ce   :  { %9916 = vmatpush.bf16.msrb.mxu2 %v16056_v15  ;;  %9930 = vmatpush.bf16.msrb.mxu0 %v16664_v28  ;;  %v15828_v62 = vor.u32 %v18114_v22, %v15825_v55  ;;  %v17915_v15 = vld [vmem:[%s28427_s14 + $0x348] sm:$0xf0]  ;;  %v15603_v28 = vld [vmem:[%s28427_s14 + $0x7c0] sm:$0xf] }
 0x4cf   :  { %v15604_v58 = vor.u32 %v18067_v30, %v15603_v28  ;;  %v14615_v28 = vld [vmem:[%s28427_s14 + $0x8] sm:$0xf]  ;;  %v17820_v30 = vld [vmem:[%s28427_s14 + $0x50] sm:$0xf0] }
 0x4d1   :  { %9889 = vmatpush.bf16.msrb.mxu3 %v14764_v46  ;;  %9903 = vmatpush.bf16.msrb.mxu1 %v15372_v0 }
 0x4d2   :  { %9917 = vmatpush.bf16.msrb.mxu2 %v15980_v21  ;;  %9931 = vmatpush.bf16.msrb.mxu0 %v16588_v31  ;;  %v14996_v21 = vor.u32 %v17915_v15, %v14995_v59  ;;  %v14919_v31 = vld [vmem:[%s28427_s14 + $0x268] sm:$0xf] }
 0x4d3   :  { %v14920_v55 = vor.u32 %v17896_v43, %v14919_v31  ;;  %v16135_v31 = vld [vmem:[%s28427_s14 + $0xbe8] sm:$0xf]  ;;  %v18200_v43 = vld [vmem:[%s28427_s14 + $0xc30] sm:$0xf0] }
 0x4d5   :  { %9890 = vmatpush.bf16.msrb.mxu3 %v14688_v7  ;;  %9904 = vmatpush.bf16.msrb.mxu1 %v15296_v20  ;;  %v17953_v7 = vld [vmem:[%s28427_s14 + $0x478] sm:$0xf0] }
 0x4d6   :  { %9918 = vmatpush.bf16.msrb.mxu2 %v15904_v48  ;;  %9932 = vmatpush.bf16.msrb.mxu0 %v16512_v37  ;;  %v15148_v3 = vor.u32 %v17953_v7, %v15147_v45  ;;  %v14767_v45 = vld [vmem:[%s28427_s14 + $0x138] sm:$0xf]  ;;  %v17858_v7 = vld [vmem:[%s28427_s14 + $0x180] sm:$0xf0] }
 0x4d9   :  { %9891 = vmatpush.bf16.msrb.mxu3 %v14612_v39  ;;  %9905 = vmatpush.bf16.msrb.mxu1 %v15220_v13  ;;  %v17934_v39 = vld [vmem:[%s28427_s14 + $0x3e0] sm:$0xf0] }
 0x4da   :  { %9919 = vmatpush.bf16.msrb.mxu2 %v15828_v62  ;;  %9933 = vmatpush.bf16.msrb.mxu0 %v16436_v60  ;;  %v15072_v49 = vor.u32 %v17934_v39, %v15071_v42  ;;  %v14768_v42 = vor.u32 %v17858_v7, %v14767_v45  ;;  %v17906_v45 = vld [vmem:[%s28427_s14 + $0x304] sm:$0xf]  ;;  %v14997_v7 = vld [vmem:[%s28427_s14 + $0x34c] sm:$0xf0] }
 0x518   :  { %v5971_v40 = vpop.f32.mrf.mxu1 }
 0x519   :  { %v5999_v36 = vpop.f32.mrf.mxu0 }
 0x51e   :  { %v5957_v34 = vpop.f32.mrf.mxu3 }
 0x51f   :  { %v5985_v26 = vpop.f32.mrf.mxu2  ;;  %v5958_v46 = vadd.f32 %v5957_v34, %v5620_v56 }
 0x520   :  { %v5986_v52 = vadd.f32 %v5985_v26, %v5621_v50  ;;  %v5973_v57 = vpop.f32.mrf.mxu1  ;;  %v15451_v26 = vld [vmem:[%s28427_s14 + $0x690] sm:$0xf] }
 0x521   :  { %v6001_v11 = vpop.f32.mrf.mxu0  ;;  %v5972_v51 = vadd.f32 %v5971_v40, %v5958_v46  ;;  %v18048_v40 = vld [vmem:[%s28427_s14 + $0x770] sm:$0xf0]  ;;  %v16363_v46 = vld [vmem:[%s28427_s14 + $0xdb0] sm:$0xf] }
 0x522   :  { %v6000_v35 = vadd.f32 %v5999_v36, %v5986_v52  ;;  %v15528_v62 = vor.u32 %v18048_v40, %v15527_v63  ;;  %v18257_v52 = vld [vmem:[%s28427_s14 + $0xdf8] sm:$0xf0]  ;;  %v18352_v63 = vld [vmem:[%s28427_s14 + $0x10f0] sm:$0xf0] }
 0x523   :  { %v6060_v20 = vmax.f32 %v5972_v51, 0.0  ;;  %v18409_v51 = vld [vmem:[%s28427_s14 + $0x12b8] sm:$0xf0]  ;;  %v16364_v6 = vor.u32 %v18257_v52, %v16363_v46  ;;  %v17944_v40 = vld [vmem:[%s28427_s14 + $0x434] sm:$0xf] }
 0x524   :  { %v6061_v32 = vmax.f32 %v6000_v35, 0.0  ;;  %v18077_v46 = vld [vmem:[%s28427_s14 + $0x85c] sm:$0xf]  ;;  %v15681_v52 = vld [vmem:[%s28427_s14 + $0x8a4] sm:$0xf0] }
 0x526   :  { %v5959_v0 = vpop.f32.mrf.mxu3 }
 0x527   :  { %v5960_v18 = vadd.f32 %v5959_v0, %v5620_v56  ;;  %v5987_v47 = vpop.f32.mrf.mxu2  ;;  %v17877_v56 = vld [vmem:[%s28427_s14 + $0x218] sm:$0xf0]  ;;  %v16971_v0 = vld [vmem:[%s28427_s14 + $0x1270] sm:$0xf] }
 0x528   :  { %v5988_v61 = vadd.f32 %v5987_v47, %v5621_v50  ;;  %v6027_v29 = vpop.f32.mrf.mxu1  ;;  %v18029_v50 = vld [vmem:[%s28427_s14 + $0x6d8] sm:$0xf0]  ;;  %v16972_v17 = vor.u32 %v18409_v51, %v16971_v0  ;;  %v15983_v0 = vld [vmem:[%s28427_s14 + $0xab8] sm:$0xf]  ;;  %v18162_v51 = vld [vmem:[%s28427_s14 + $0xb00] sm:$0xf0] }
 0x529   :  { %v5974_v54 = vadd.f32 %v5973_v57, %v5960_v18  ;;  %v6055_v27 = vpop.f32.mrf.mxu0 }
 0x52a   :  { %v6002_v8 = vadd.f32 %v6001_v11, %v5988_v61  ;;  %v14844_v61 = vor.u32 %v17877_v56, %v14843_v2  ;;  %v16667_v56 = vld [vmem:[%s28427_s14 + $0x1010] sm:$0xf] }
 0x52b   :  { %v6064_v38 = vmax.f32 %v5974_v54, 0.0  ;;  %v15452_v54 = vor.u32 %v18029_v50, %v15451_v26  ;;  %v18333_v26 = vld [vmem:[%s28427_s14 + $0x1058] sm:$0xf0]  ;;  %v15073_v50 = vld [vmem:[%s28427_s14 + $0x3e4] sm:$0xf0] }
 0x52c   :  { %v6065_v41 = vmax.f32 %v6002_v8, 0.0 }
 0x52d   :  { %v24139_v9 = vpack.c.bf16 %v6064_v38, %v6060_v20  ;;  %v15375_v20 = vld [vmem:[%s28427_s14 + $0x5f8] sm:$0xf]  ;;  %v18010_v38 = vld [vmem:[%s28427_s14 + $0x640] sm:$0xf0] }
 0x52e   :  { %v24147_v19 = vpack.c.bf16 %v6065_v41, %v6061_v32  ;;  %v6013_v13 = vpop.f32.mrf.mxu3  ;;  %v16287_v32 = vld [vmem:[%s28427_s14 + $0xd18] sm:$0xf]  ;;  %v18238_v41 = vld [vmem:[%s28427_s14 + $0xd60] sm:$0xf0]  ;;  %v15376_v39 = vor.u32 %v18010_v38, %v15375_v20  ;;  %v15984_v20 = vor.u32 %v18162_v51, %v15983_v0  ;;  %v16213_v51 = vld [vmem:[%s28427_s14 + $0xccc] sm:$0xf0] }
 0x52f   :  { %v6041_v23 = vpop.f32.mrf.mxu2  ;;  %9836 = vmatmul.bf16.vlgmr.msra.gmra.mxu3 %v24139_v9  ;;  %v6014_v25 = vadd.f32 %v6013_v13, %v5622_v1  ;;  %v17839_v13 = vld [vmem:[%s28427_s14 + $0xe8] sm:$0xf0]  ;;  %v16288_v10 = vor.u32 %v18238_v41, %v16287_v32  ;;  %v15907_v32 = vld [vmem:[%s28427_s14 + $0xa20] sm:$0xf]  ;;  %v18210_v0 = vld [vmem:[%s28427_s14 + $0xc84] sm:$0xf] }
 0x530   :  { %9850 = vmatmul.bf16.vlgmr.msra.gmra.mxu1 %v24147_v19  ;;  %9940 = vmatpush.bf16.msra.mxu3 %v15148_v3  ;;  %v6042_v53 = vadd.f32 %v6041_v23, %v5623_v44  ;;  %v6029_v4 = vpop.f32.mrf.mxu1  ;;  %v16895_v3 = vld [vmem:[%s28427_s14 + $0x11d8] sm:$0xf]  ;;  %v16211_v23 = vld [vmem:[%s28427_s14 + $0xc80] sm:$0xf]  ;;  %v18143_v41 = vld [vmem:[%s28427_s14 + $0xa68] sm:$0xf0] }
 0x531   :  { %9954 = vmatpush.bf16.msra.mxu1 %v15756_v16  ;;  %v6028_v48 = vadd.f32 %v6027_v29, %v6014_v25  ;;  %v6057_v5 = vpop.f32.mrf.mxu0  ;;  %v18390_v16 = vld [vmem:[%s28427_s14 + $0x1220] sm:$0xf0]  ;;  %v14691_v29 = vld [vmem:[%s28427_s14 + $0xa0] sm:$0xf]  ;;  %v15223_v25 = vld [vmem:[%s28427_s14 + $0x4c8] sm:$0xf] }
 0x532   :  { %v6056_v37 = vadd.f32 %v6055_v27, %v6042_v53  ;;  %v16896_v12 = vor.u32 %v18390_v16, %v16895_v3  ;;  %v15299_v27 = vld [vmem:[%s28427_s14 + $0x560] sm:$0xf]  ;;  %v14692_v59 = vor.u32 %v17839_v13, %v14691_v29  ;;  %v15000_v3 = vor.u32 %v17906_v45, %v14997_v7  ;;  %v17887_v29 = vld [vmem:[%s28427_s14 + $0x26c] sm:$0xf]  ;;  %v14921_v13 = vld [vmem:[%s28427_s14 + $0x2b4] sm:$0xf0] }
 0x533   :  { %v6062_v57 = vmax.f32 %v6028_v48, 0.0  ;;  %v15149_v48 = vld [vmem:[%s28427_s14 + $0x47c] sm:$0xf0]  ;;  %v17811_v45 = vld [vmem:[%s28427_s14 + $0xc] sm:$0xf] }
 0x534   :  { %9941 = vmatpush.bf16.msra.mxu3 %v15072_v49  ;;  %v6063_v18 = vmax.f32 %v6056_v37, 0.0  ;;  %v16819_v49 = vld [vmem:[%s28427_s14 + $0x1140] sm:$0xf]  ;;  %v14616_v37 = vor.u32 %v17820_v30, %v14615_v28  ;;  %v17868_v28 = vld [vmem:[%s28427_s14 + $0x1d4] sm:$0xf] }
 0x535   :  { %9955 = vmatpush.bf16.msra.mxu1 %v15680_v33  ;;  %v18371_v33 = vld [vmem:[%s28427_s14 + $0x1188] sm:$0xf0]  ;;  %v14845_v30 = vld [vmem:[%s28427_s14 + $0x21c] sm:$0xf0]  ;;  %v14617_v7 = vld [vmem:[%s28427_s14 + $0x54] sm:$0xf0] }
 0x536   :  { %v6015_v14 = vpop.f32.mrf.mxu3 }
 0x537   :  { %v6016_v24 = vadd.f32 %v6015_v14, %v5622_v1  ;;  %v6043_v36 = vpop.f32.mrf.mxu2  ;;  %v17991_v1 = vld [vmem:[%s28427_s14 + $0x5a8] sm:$0xf0]  ;;  %v16743_v14 = vld [vmem:[%s28427_s14 + $0x10a8] sm:$0xf] }
 0x538   :  { %v6044_v22 = vadd.f32 %v6043_v36, %v5623_v44  ;;  %9942 = vmatpush.bf16.msra.mxu3 %v14996_v21  ;;  %v18219_v44 = vld [vmem:[%s28427_s14 + $0xcc8] sm:$0xf0]  ;;  %v15300_v15 = vor.u32 %v17991_v1, %v15299_v27  ;;  %v16820_v21 = vor.u32 %v18371_v33, %v16819_v49  ;;  %v15757_v36 = vld [vmem:[%s28427_s14 + $0x93c] sm:$0xf0]  ;;  %v15908_v27 = vor.u32 %v18143_v41, %v15907_v32  ;;  %v16439_v49 = vld [vmem:[%s28427_s14 + $0xe48] sm:$0xf] }
 0x539   :  { %v6030_v34 = vadd.f32 %v6029_v4, %v6016_v24  ;;  %9956 = vmatpush.bf16.msra.mxu1 %v15604_v58  ;;  %v16212_v53 = vor.u32 %v18219_v44, %v16211_v23  ;;  %v17972_v58 = vld [vmem:[%s28427_s14 + $0x510] sm:$0xf0]  ;;  %v15831_v23 = vld [vmem:[%s28427_s14 + $0x988] sm:$0xf]  ;;  %v14924_v33 = vor.u32 %v17887_v29, %v14921_v13  ;;  %v18191_v32 = vld [vmem:[%s28427_s14 + $0xbec] sm:$0xf] }
 0x53a   :  { %v6058_v60 = vadd.f32 %v6057_v5, %v6044_v22  ;;  %v18096_v24 = vld [vmem:[%s28427_s14 + $0x8f4] sm:$0xf]  ;;  %v15224_v4 = vor.u32 %v17972_v58, %v15223_v25  ;;  %v16136_v22 = vor.u32 %v18200_v43, %v16135_v31  ;;  %v16059_v5 = vld [vmem:[%s28427_s14 + $0xb50] sm:$0xf]  ;;  %v16365_v58 = vld [vmem:[%s28427_s14 + $0xdfc] sm:$0xf0] }
 0x53b   :  { %v6066_v11 = vmax.f32 %v6030_v34, 0.0  ;;  %v18181_v34 = vld [vmem:[%s28427_s14 + $0xb98] sm:$0xf0]  ;;  %v15760_v2 = vor.u32 %v18096_v24, %v15757_v36  ;;  %v18124_v44 = vld [vmem:[%s28427_s14 + $0x9d0] sm:$0xf0] }
 0x53c   :  { %v6067_v47 = vmax.f32 %v6058_v60, 0.0  ;;  %9943 = vmatpush.bf16.msra.mxu3 %v14920_v55  ;;  %v16744_v55 = vor.u32 %v18352_v63, %v16743_v14  ;;  %v17925_v60 = vld [vmem:[%s28427_s14 + $0x39c] sm:$0xf]  ;;  %v18020_v25 = vld [vmem:[%s28427_s14 + $0x694] sm:$0xf]  ;;  %v15832_v14 = vor.u32 %v18124_v44, %v15831_v23 }
 0x53d   :  { %v24207_v35 = vpack.c.bf16 %v6066_v11, %v6062_v57  ;;  %9957 = vmatpush.bf16.msra.mxu1 %v15528_v62  ;;  %v15152_v62 = vor.u32 %v17944_v40, %v15149_v48  ;;  %v16060_v57 = vor.u32 %v18181_v34, %v16059_v5  ;;  %v16668_v11 = vor.u32 %v18333_v26, %v16667_v56  ;;  %v18400_v31 = vld [vmem:[%s28427_s14 + $0x1274] sm:$0xf]  ;;  %v16973_v43 = vld [vmem:[%s28427_s14 + $0x12bc] sm:$0xf0]  ;;  %v17849_v24 = vld [vmem:[%s28427_s14 + $0x13c] sm:$0xf] }
 0x53e   :  { %v24215_v8 = vpack.c.bf16 %v6067_v47, %v6063_v18  ;;  %v15076_v18 = vor.u32 %v17925_v60, %v15073_v50  ;;  %v15684_v47 = vor.u32 %v18077_v46, %v15681_v52  ;;  %v14848_v40 = vor.u32 %v17868_v28, %v14845_v30  ;;  %v14769_v36 = vld [vmem:[%s28427_s14 + $0x184] sm:$0xf0]  ;;  %v18229_v5 = vld [vmem:[%s28427_s14 + $0xd1c] sm:$0xf]  ;;  %v17830_v60 = vld [vmem:[%s28427_s14 + $0xa4] sm:$0xf] }
 0x53f   :  { %9864 = vmatmul.bf16.vlgmr.msra.gmra.mxu2 %v24207_v35  ;;  %9892 = vmatmul.bf16.vlgmr.msrb.gmra.mxu3 %v24139_v9  ;;  %v16289_v34 = vld [vmem:[%s28427_s14 + $0xd64] sm:$0xf0]  ;;  %v14772_v56 = vor.u32 %v17849_v24, %v14769_v36  ;;  %v14693_v50 = vld [vmem:[%s28427_s14 + $0xec] sm:$0xf0]  ;;  %v16137_v41 = vld [vmem:[%s28427_s14 + $0xc34] sm:$0xf0] }
 0x540   :  { %9878 = vmatmul.bf16.vlgmr.msra.gmra.mxu0 %v24215_v8  ;;  %9906 = vmatmul.bf16.vlgmr.msrb.gmra.mxu1 %v24147_v19  ;;  %v16292_v46 = vor.u32 %v18229_v5, %v16289_v34  ;;  %v15763_v29 = vld [vmem:[%s28427_s14 + $0x8f8] sm:$0xf]  ;;  %v18106_v13 = vld [vmem:[%s28427_s14 + $0x940] sm:$0xf0]  ;;  %v18172_v23 = vld [vmem:[%s28427_s14 + $0xb54] sm:$0xf] }
 0x541   :  { %9944 = vmatpush.bf16.msra.mxu3 %v14844_v61  ;;  %9958 = vmatpush.bf16.msra.mxu1 %v15452_v54  ;;  %v16591_v61 = vld [vmem:[%s28427_s14 + $0xf78] sm:$0xf]  ;;  %v18314_v54 = vld [vmem:[%s28427_s14 + $0xfc0] sm:$0xf0]  ;;  %v16061_v44 = vld [vmem:[%s28427_s14 + $0xb9c] sm:$0xf0] }
 0x542   :  { %9968 = vmatpush.bf16.msra.mxu2 %v16364_v6  ;;  %9982 = vmatpush.bf16.msra.mxu0 %v16972_v17  ;;  %v18058_v6 = vld [vmem:[%s28427_s14 + $0x7c4] sm:$0xf]  ;;  %v15605_v17 = vld [vmem:[%s28427_s14 + $0x80c] sm:$0xf0]  ;;  %v16592_v38 = vor.u32 %v18314_v54, %v16591_v61  ;;  %v14696_v61 = vor.u32 %v17830_v60, %v14693_v50  ;;  %v15079_v28 = vld [vmem:[%s28427_s14 + $0x3a0] sm:$0xf] }
 0x543   :  { %v15608_v16 = vor.u32 %v18058_v6, %v15605_v17  ;;  %v17963_v6 = vld [vmem:[%s28427_s14 + $0x4cc] sm:$0xf]  ;;  %v16216_v17 = vor.u32 %v18210_v0, %v16213_v51  ;;  %v15003_v24 = vld [vmem:[%s28427_s14 + $0x308] sm:$0xf]  ;;  %v17916_v36 = vld [vmem:[%s28427_s14 + $0x350] sm:$0xf0] }
 0x544   :  { %v17935_v30 = vld [vmem:[%s28427_s14 + $0x3e8] sm:$0xf0]  ;;  %v18134_v5 = vld [vmem:[%s28427_s14 + $0xa24] sm:$0xf]  ;;  %v15909_v34 = vld [vmem:[%s28427_s14 + $0xa6c] sm:$0xf0] }
 0x545   :  { %9945 = vmatpush.bf16.msra.mxu3 %v14768_v42  ;;  %9959 = vmatpush.bf16.msra.mxu1 %v15376_v39  ;;  %v16515_v42 = vld [vmem:[%s28427_s14 + $0xee0] sm:$0xf]  ;;  %v18295_v39 = vld [vmem:[%s28427_s14 + $0xf28] sm:$0xf0]  ;;  %v14927_v60 = vld [vmem:[%s28427_s14 + $0x270] sm:$0xf] }
 0x546   :  { %9969 = vmatpush.bf16.msra.mxu2 %v16288_v10  ;;  %9983 = vmatpush.bf16.msra.mxu0 %v16896_v12  ;;  %v18039_v10 = vld [vmem:[%s28427_s14 + $0x72c] sm:$0xf]  ;;  %v15529_v12 = vld [vmem:[%s28427_s14 + $0x774] sm:$0xf0]  ;;  %v16516_v1 = vor.u32 %v18295_v39, %v16515_v42  ;;  %v17954_v39 = vld [vmem:[%s28427_s14 + $0x480] sm:$0xf0] }
 0x547   :  { %v15155_v42 = vld [vmem:[%s28427_s14 + $0x438] sm:$0xf]  ;;  %v17897_v50 = vld [vmem:[%s28427_s14 + $0x2b8] sm:$0xf0]  ;;  %v18115_v0 = vld [vmem:[%s28427_s14 + $0x98c] sm:$0xf] }
 0x548   :  { %v15833_v51 = vld [vmem:[%s28427_s14 + $0x9d4] sm:$0xf0] }
 0x549   :  { %9946 = vmatpush.bf16.msra.mxu3 %v14692_v59  ;;  %9960 = vmatpush.bf16.msra.mxu1 %v15300_v15  ;;  %v15532_v59 = vor.u32 %v18039_v10, %v15529_v12  ;;  %v18276_v15 = vld [vmem:[%s28427_s14 + $0xe90] sm:$0xf0]  ;;  %v14620_v10 = vor.u32 %v17811_v45, %v14617_v7  ;;  %v14851_v45 = vld [vmem:[%s28427_s14 + $0x1d8] sm:$0xf]  ;;  %v17878_v7 = vld [vmem:[%s28427_s14 + $0x220] sm:$0xf0] }
 0x54a   :  { %9970 = vmatpush.bf16.msra.mxu2 %v16212_v53  ;;  %9984 = vmatpush.bf16.msra.mxu0 %v16820_v21  ;;  %v15453_v53 = vld [vmem:[%s28427_s14 + $0x6dc] sm:$0xf0]  ;;  %v18248_v21 = vld [vmem:[%s28427_s14 + $0xdb4] sm:$0xf]  ;;  %v16440_v63 = vor.u32 %v18276_v15, %v16439_v49  ;;  %v15156_v49 = vor.u32 %v17954_v39, %v15155_v42  ;;  %v14852_v42 = vor.u32 %v17878_v7, %v14851_v45  ;;  %v17926_v45 = vld [vmem:[%s28427_s14 + $0x3a4] sm:$0xf] }
 0x54b   :  { %v15456_v48 = vor.u32 %v18020_v25, %v15453_v53  ;;  %v16669_v15 = vld [vmem:[%s28427_s14 + $0x105c] sm:$0xf0]  ;;  %v18087_v53 = vld [vmem:[%s28427_s14 + $0x8a8] sm:$0xf0]  ;;  %v15081_v7 = vld [vmem:[%s28427_s14 + $0x3ec] sm:$0xf0] }
 0x54c   :  { %v15687_v25 = vld [vmem:[%s28427_s14 + $0x860] sm:$0xf] }
 0x54d   :  { %9947 = vmatpush.bf16.msra.mxu3 %v14616_v37  ;;  %9961 = vmatpush.bf16.msra.mxu1 %v15224_v4  ;;  %v16368_v37 = vor.u32 %v18248_v21, %v16365_v58  ;;  %v16976_v4 = vor.u32 %v18400_v31, %v16973_v43  ;;  %v16064_v21 = vor.u32 %v18172_v23, %v16061_v44  ;;  %v18153_v31 = vld [vmem:[%s28427_s14 + $0xabc] sm:$0xf]  ;;  %v15985_v43 = vld [vmem:[%s28427_s14 + $0xb04] sm:$0xf0]  ;;  %v16295_v23 = vld [vmem:[%s28427_s14 + $0xd20] sm:$0xf] }
 0x54e   :  { %9971 = vmatpush.bf16.msra.mxu2 %v16136_v22  ;;  %9985 = vmatpush.bf16.msra.mxu0 %v16744_v55  ;;  %v18001_v22 = vld [vmem:[%s28427_s14 + $0x5fc] sm:$0xf]  ;;  %v15377_v55 = vld [vmem:[%s28427_s14 + $0x644] sm:$0xf0]  ;;  %v18239_v44 = vld [vmem:[%s28427_s14 + $0xd68] sm:$0xf0] }
 0x54f   :  { %9920 = vmatmul.bf16.vlgmr.msrb.gmra.mxu2 %v24207_v35  ;;  %v15380_v26 = vor.u32 %v18001_v22, %v15377_v55  ;;  %v15988_v22 = vor.u32 %v18153_v31, %v15985_v43  ;;  %v16219_v31 = vld [vmem:[%s28427_s14 + $0xc88] sm:$0xf]  ;;  %v18220_v43 = vld [vmem:[%s28427_s14 + $0xcd0] sm:$0xf0] }
 0x550   :  { %9934 = vmatmul.bf16.vlgmr.msrb.gmra.mxu0 %v24215_v8  ;;  %9948 = vmatmul.bf16.vlgmr.msra.gmra.mxu3 %v24139_v9 }
 0x551   :  { %9996 = vmatpush.bf16.msrb.mxu3 %v15152_v62  ;;  %10010 = vmatpush.bf16.msrb.mxu1 %v15760_v2  ;;  %v18381_v62 = vld [vmem:[%s28427_s14 + $0x11dc] sm:$0xf]  ;;  %v16897_v2 = vld [vmem:[%s28427_s14 + $0x1224] sm:$0xf0] }
 0x552   :  { %9962 = vmatmul.bf16.vlgmr.msra.gmra.mxu1 %v24147_v19  ;;  %9972 = vmatpush.bf16.msra.mxu2 %v16060_v57  ;;  %v16900_v52 = vor.u32 %v18381_v62, %v16897_v2  ;;  %v17982_v57 = vld [vmem:[%s28427_s14 + $0x564] sm:$0xf]  ;;  %v15004_v62 = vor.u32 %v17916_v36, %v15003_v24  ;;  %v14623_v24 = vld [vmem:[%s28427_s14 + $0x10] sm:$0xf]  ;;  %v17821_v36 = vld [vmem:[%s28427_s14 + $0x58] sm:$0xf0] }
 0x553   :  { %9986 = vmatpush.bf16.msra.mxu0 %v16668_v11  ;;  %v15301_v11 = vld [vmem:[%s28427_s14 + $0x5ac] sm:$0xf0] }
 0x554   :  { %v15304_v54 = vor.u32 %v17982_v57, %v15301_v11  ;;  %v15912_v57 = vor.u32 %v18134_v5, %v15909_v34  ;;  %v16143_v5 = vld [vmem:[%s28427_s14 + $0xbf0] sm:$0xf]  ;;  %v18201_v34 = vld [vmem:[%s28427_s14 + $0xc38] sm:$0xf0] }
 0x555   :  { %9997 = vmatpush.bf16.msrb.mxu3 %v15076_v18  ;;  %10011 = vmatpush.bf16.msrb.mxu1 %v15684_v47  ;;  %v18362_v18 = vld [vmem:[%s28427_s14 + $0x1144] sm:$0xf]  ;;  %v16821_v47 = vld [vmem:[%s28427_s14 + $0x118c] sm:$0xf0] }
 0x556   :  { %9973 = vmatpush.bf16.msra.mxu2 %v15984_v20  ;;  %v16824_v20 = vor.u32 %v18362_v18, %v16821_v47  ;;  %v18267_v18 = vld [vmem:[%s28427_s14 + $0xe4c] sm:$0xf]  ;;  %v14928_v47 = vor.u32 %v17897_v50, %v14927_v60  ;;  %v18097_v60 = vld [vmem:[%s28427_s14 + $0x8fc] sm:$0xf]  ;;  %v15765_v50 = vld [vmem:[%s28427_s14 + $0x944] sm:$0xf0] }
 0x557   :  { %9987 = vmatpush.bf16.msra.mxu0 %v16592_v38  ;;  %v15225_v38 = vld [vmem:[%s28427_s14 + $0x514] sm:$0xf0] }
 0x558   :  { %v15228_v12 = vor.u32 %v17963_v6, %v15225_v38  ;;  %v15459_v6 = vld [vmem:[%s28427_s14 + $0x698] sm:$0xf]  ;;  %v18258_v38 = vld [vmem:[%s28427_s14 + $0xe00] sm:$0xf0] }
 0x559   :  { %9998 = vmatpush.bf16.msrb.mxu3 %v15000_v3  ;;  %10012 = vmatpush.bf16.msrb.mxu1 %v15608_v16  ;;  %v18343_v3 = vld [vmem:[%s28427_s14 + $0x10ac] sm:$0xf]  ;;  %v16745_v16 = vld [vmem:[%s28427_s14 + $0x10f4] sm:$0xf0] }
 0x55a   :  { %9974 = vmatpush.bf16.msra.mxu2 %v15908_v27  ;;  %v16140_v27 = vor.u32 %v18191_v32, %v16137_v41  ;;  %v16979_v32 = vld [vmem:[%s28427_s14 + $0x1278] sm:$0xf]  ;;  %v18410_v41 = vld [vmem:[%s28427_s14 + $0x12c0] sm:$0xf0] }
 0x55b   :  { %9988 = vmatpush.bf16.msra.mxu0 %v16516_v1  ;;  %v16748_v1 = vor.u32 %v18343_v3, %v16745_v16  ;;  %v15836_v3 = vor.u32 %v18115_v0, %v15833_v51  ;;  %v16067_v0 = vld [vmem:[%s28427_s14 + $0xb58] sm:$0xf]  ;;  %v18182_v51 = vld [vmem:[%s28427_s14 + $0xba0] sm:$0xf0] }
 0x55d   :  { %9999 = vmatpush.bf16.msrb.mxu3 %v14924_v33  ;;  %10013 = vmatpush.bf16.msrb.mxu1 %v15532_v59  ;;  %v15764_v33 = vor.u32 %v18106_v13, %v15763_v29  ;;  %v18324_v59 = vld [vmem:[%s28427_s14 + $0x1014] sm:$0xf]  ;;  %v14775_v29 = vld [vmem:[%s28427_s14 + $0x140] sm:$0xf]  ;;  %v17859_v13 = vld [vmem:[%s28427_s14 + $0x188] sm:$0xf0] }
 0x55e   :  { %9975 = vmatpush.bf16.msra.mxu2 %v15832_v14  ;;  %v16672_v58 = vor.u32 %v18324_v59, %v16669_v15  ;;  %v15080_v14 = vor.u32 %v17935_v30, %v15079_v28  ;;  %v14776_v59 = vor.u32 %v17859_v13, %v14775_v29  ;;  %v14699_v28 = vld [vmem:[%s28427_s14 + $0xa8] sm:$0xf]  ;;  %v17840_v30 = vld [vmem:[%s28427_s14 + $0xf0] sm:$0xf0]  ;;  %v17907_v29 = vld [vmem:[%s28427_s14 + $0x30c] sm:$0xf] }
 0x55f   :  { %9989 = vmatpush.bf16.msra.mxu0 %v16440_v63  ;;  %v15688_v63 = vor.u32 %v18087_v53, %v15687_v25  ;;  %v16296_v25 = vor.u32 %v18239_v44, %v16295_v23  ;;  %v15005_v13 = vld [vmem:[%s28427_s14 + $0x354] sm:$0xf0]  ;;  %v15915_v23 = vld [vmem:[%s28427_s14 + $0xa28] sm:$0xf]  ;;  %v18144_v44 = vld [vmem:[%s28427_s14 + $0xa70] sm:$0xf0] }
 0x561   :  { %10000 = vmatpush.bf16.msrb.mxu3 %v14848_v40  ;;  %10014 = vmatpush.bf16.msrb.mxu1 %v15456_v48  ;;  %v18305_v40 = vld [vmem:[%s28427_s14 + $0xf7c] sm:$0xf]  ;;  %v16593_v48 = vld [vmem:[%s28427_s14 + $0xfc4] sm:$0xf0] }
 0x562   :  { %10024 = vmatpush.bf16.msrb.mxu2 %v16368_v37  ;;  %9990 = vmatmul.bf16.vlgmr.msra.gmra.mxu0 %v24215_v8  ;;  %v15611_v37 = vld [vmem:[%s28427_s14 + $0x7c8] sm:$0xf]  ;;  %v16596_v55 = vor.u32 %v18305_v40, %v16593_v48  ;;  %v14700_v40 = vor.u32 %v17840_v30, %v14699_v28  ;;  %v17888_v28 = vld [vmem:[%s28427_s14 + $0x274] sm:$0xf]  ;;  %v14929_v30 = vld [vmem:[%s28427_s14 + $0x2bc] sm:$0xf0] }
 0x563   :  { %10038 = vmatpush.bf16.msrb.mxu0 %v16976_v4  ;;  %9976 = vmatmul.bf16.vlgmr.msra.gmra.mxu2 %v24207_v35  ;;  %v18068_v4 = vld [vmem:[%s28427_s14 + $0x810] sm:$0xf0] }
 0x564   :  { %v15612_v2 = vor.u32 %v18068_v4, %v15611_v37  ;;  %v15231_v37 = vld [vmem:[%s28427_s14 + $0x4d0] sm:$0xf]  ;;  %v16220_v4 = vor.u32 %v18220_v43, %v16219_v31  ;;  %v18125_v43 = vld [vmem:[%s28427_s14 + $0x9d8] sm:$0xf0] }
 0x565   :  { %10001 = vmatpush.bf16.msrb.mxu3 %v14772_v56  ;;  %10015 = vmatpush.bf16.msrb.mxu1 %v15380_v26  ;;  %v18286_v56 = vld [vmem:[%s28427_s14 + $0xee4] sm:$0xf]  ;;  %v16517_v26 = vld [vmem:[%s28427_s14 + $0xf2c] sm:$0xf0] }
 0x566   :  { %10025 = vmatpush.bf16.msrb.mxu2 %v16292_v46  ;;  %v15535_v46 = vld [vmem:[%s28427_s14 + $0x730] sm:$0xf]  ;;  %v16520_v11 = vor.u32 %v18286_v56, %v16517_v26  ;;  %v17945_v56 = vld [vmem:[%s28427_s14 + $0x43c] sm:$0xf]  ;;  %v15157_v26 = vld [vmem:[%s28427_s14 + $0x484] sm:$0xf0] }
 0x567   :  { %10039 = vmatpush.bf16.msrb.mxu0 %v16900_v52  ;;  %v18049_v52 = vld [vmem:[%s28427_s14 + $0x778] sm:$0xf0]  ;;  %v15839_v31 = vld [vmem:[%s28427_s14 + $0x990] sm:$0xf] }
 0x569   :  { %10002 = vmatpush.bf16.msrb.mxu3 %v14696_v61  ;;  %10016 = vmatpush.bf16.msrb.mxu1 %v15304_v54  ;;  %v15536_v61 = vor.u32 %v18049_v52, %v15535_v46  ;;  %v16441_v54 = vld [vmem:[%s28427_s14 + $0xe94] sm:$0xf0]  ;;  %v14624_v46 = vor.u32 %v17821_v36, %v14623_v24  ;;  %v17869_v24 = vld [vmem:[%s28427_s14 + $0x1dc] sm:$0xf]  ;;  %v14853_v36 = vld [vmem:[%s28427_s14 + $0x224] sm:$0xf0] }
 0x56a   :  { %10026 = vmatpush.bf16.msrb.mxu2 %v16216_v17  ;;  %v18030_v17 = vld [vmem:[%s28427_s14 + $0x6e0] sm:$0xf0]  ;;  %v16444_v16 = vor.u32 %v18267_v18, %v16441_v54  ;;  %v15160_v18 = vor.u32 %v17945_v56, %v15157_v26  ;;  %v14856_v56 = vor.u32 %v17869_v24, %v14853_v36  ;;  %v15087_v24 = vld [vmem:[%s28427_s14 + $0x3a8] sm:$0xf]  ;;  %v17936_v36 = vld [vmem:[%s28427_s14 + $0x3f0] sm:$0xf0] }
 0x56b   :  { %10040 = vmatpush.bf16.msrb.mxu0 %v16824_v20  ;;  %v16371_v20 = vld [vmem:[%s28427_s14 + $0xdb8] sm:$0xf]  ;;  %v15460_v39 = vor.u32 %v18030_v17, %v15459_v6  ;;  %v18334_v54 = vld [vmem:[%s28427_s14 + $0x1060] sm:$0xf0]  ;;  %v15689_v17 = vld [vmem:[%s28427_s14 + $0x8ac] sm:$0xf0] }
 0x56c   :  { %v18078_v6 = vld [vmem:[%s28427_s14 + $0x864] sm:$0xf] }
 0x56d   :  { %10003 = vmatpush.bf16.msrb.mxu3 %v14620_v10  ;;  %10017 = vmatpush.bf16.msrb.mxu1 %v15228_v12  ;;  %v16372_v10 = vor.u32 %v18258_v38, %v16371_v20  ;;  %v16980_v12 = vor.u32 %v18410_v41, %v16979_v32  ;;  %v16068_v20 = vor.u32 %v18182_v51, %v16067_v0  ;;  %v15991_v32 = vld [vmem:[%s28427_s14 + $0xac0] sm:$0xf]  ;;  %v18163_v41 = vld [vmem:[%s28427_s14 + $0xb08] sm:$0xf0]  ;;  %v18230_v0 = vld [vmem:[%s28427_s14 + $0xd24] sm:$0xf] }
 0x56e   :  { %10027 = vmatpush.bf16.msrb.mxu2 %v16140_v27  ;;  %v15383_v27 = vld [vmem:[%s28427_s14 + $0x600] sm:$0xf]  ;;  %v16297_v51 = vld [vmem:[%s28427_s14 + $0xd6c] sm:$0xf0] }
 0x56f   :  { %10041 = vmatpush.bf16.msrb.mxu0 %v16748_v1  ;;  %v18011_v1 = vld [vmem:[%s28427_s14 + $0x648] sm:$0xf0] }
 0x570   :  { %10004 = vmatmul.bf16.vlgmr.msrb.gmra.mxu3 %v24139_v9  ;;  %10018 = vmatmul.bf16.vlgmr.msrb.gmra.mxu1 %v24147_v19  ;;  %v15384_v15 = vor.u32 %v18011_v1, %v15383_v27  ;;  %v15992_v27 = vor.u32 %v18163_v41, %v15991_v32  ;;  %v18211_v32 = vld [vmem:[%s28427_s14 + $0xc8c] sm:$0xf]  ;;  %v16221_v41 = vld [vmem:[%s28427_s14 + $0xcd4] sm:$0xf0] }
 0x571   :  { %10052 = vmatpush.bf16.msra.mxu3 %v15156_v49  ;;  %10066 = vmatpush.bf16.msra.mxu1 %v15764_v33  ;;  %v16903_v49 = vld [vmem:[%s28427_s14 + $0x11e0] sm:$0xf]  ;;  %v18391_v33 = vld [vmem:[%s28427_s14 + $0x1228] sm:$0xf0] }
 0x572   :  { %10028 = vmatpush.bf16.msrb.mxu2 %v16064_v21  ;;  %v16904_v53 = vor.u32 %v18391_v33, %v16903_v49  ;;  %v15307_v21 = vld [vmem:[%s28427_s14 + $0x568] sm:$0xf]  ;;  %v15008_v49 = vor.u32 %v17907_v29, %v15005_v13  ;;  %v17812_v29 = vld [vmem:[%s28427_s14 + $0x14] sm:$0xf]  ;;  %v14625_v13 = vld [vmem:[%s28427_s14 + $0x5c] sm:$0xf0] }
 0x573   :  { %10042 = vmatpush.bf16.msrb.mxu0 %v16672_v58  ;;  %v17992_v58 = vld [vmem:[%s28427_s14 + $0x5b0] sm:$0xf0] }
 0x574   :  { %v15308_v48 = vor.u32 %v17992_v58, %v15307_v21  ;;  %v15916_v21 = vor.u32 %v18144_v44, %v15915_v23  ;;  %v18192_v23 = vld [vmem:[%s28427_s14 + $0xbf4] sm:$0xf]  ;;  %v16145_v44 = vld [vmem:[%s28427_s14 + $0xc3c] sm:$0xf0] }
 0x575   :  { %10053 = vmatpush.bf16.msra.mxu3 %v15080_v14  ;;  %10067 = vmatpush.bf16.msra.mxu1 %v15688_v63  ;;  %v16827_v14 = vld [vmem:[%s28427_s14 + $0x1148] sm:$0xf]  ;;  %v18372_v63 = vld [vmem:[%s28427_s14 + $0x1190] sm:$0xf0] }
 0x576   :  { %10029 = vmatpush.bf16.msrb.mxu2 %v15988_v22  ;;  %v16828_v22 = vor.u32 %v18372_v63, %v16827_v14  ;;  %v16447_v14 = vld [vmem:[%s28427_s14 + $0xe50] sm:$0xf]  ;;  %v14932_v63 = vor.u32 %v17888_v28, %v14929_v30  ;;  %v15771_v28 = vld [vmem:[%s28427_s14 + $0x900] sm:$0xf]  ;;  %v18107_v30 = vld [vmem:[%s28427_s14 + $0x948] sm:$0xf0] }
 0x577   :  { %10043 = vmatpush.bf16.msrb.mxu0 %v16596_v55  ;;  %v17973_v55 = vld [vmem:[%s28427_s14 + $0x518] sm:$0xf0] }
 0x578   :  { %v15232_v52 = vor.u32 %v17973_v55, %v15231_v37  ;;  %v18021_v37 = vld [vmem:[%s28427_s14 + $0x69c] sm:$0xf]  ;;  %v16373_v55 = vld [vmem:[%s28427_s14 + $0xe04] sm:$0xf0] }
 0x579   :  { %10054 = vmatpush.bf16.msra.mxu3 %v15004_v62  ;;  %10068 = vmatpush.bf16.msra.mxu1 %v15612_v2  ;;  %v16751_v62 = vld [vmem:[%s28427_s14 + $0x10b0] sm:$0xf]  ;;  %v18353_v2 = vld [vmem:[%s28427_s14 + $0x10f8] sm:$0xf0] }
 0x57a   :  { %10030 = vmatpush.bf16.msrb.mxu2 %v15912_v57  ;;  %v16144_v57 = vor.u32 %v18201_v34, %v16143_v5  ;;  %v18401_v5 = vld [vmem:[%s28427_s14 + $0x127c] sm:$0xf]  ;;  %v16981_v34 = vld [vmem:[%s28427_s14 + $0x12c4] sm:$0xf0] }
 0x57b   :  { %10044 = vmatpush.bf16.msrb.mxu0 %v16520_v11  ;;  %v16752_v11 = vor.u32 %v18353_v2, %v16751_v62  ;;  %v15840_v62 = vor.u32 %v18125_v43, %v15839_v31  ;;  %v18173_v31 = vld [vmem:[%s28427_s14 + $0xb5c] sm:$0xf]  ;;  %v16069_v43 = vld [vmem:[%s28427_s14 + $0xba4] sm:$0xf0] }
 0x57d   :  { %10055 = vmatpush.bf16.msra.mxu3 %v14928_v47  ;;  %10069 = vmatpush.bf16.msra.mxu1 %v15536_v61  ;;  %v15768_v47 = vor.u32 %v18097_v60, %v15765_v50  ;;  %v16675_v61 = vld [vmem:[%s28427_s14 + $0x1018] sm:$0xf]  ;;  %v17850_v60 = vld [vmem:[%s28427_s14 + $0x144] sm:$0xf]  ;;  %v14777_v50 = vld [vmem:[%s28427_s14 + $0x18c] sm:$0xf0] }
 0x57e   :  { %10031 = vmatpush.bf16.msrb.mxu2 %v15836_v3  ;;  %v16676_v38 = vor.u32 %v18334_v54, %v16675_v61  ;;  %v15084_v3 = vor.u32 %v17926_v45, %v15081_v7  ;;  %v14780_v61 = vor.u32 %v17850_v60, %v14777_v50  ;;  %v17831_v45 = vld [vmem:[%s28427_s14 + $0xac] sm:$0xf]  ;;  %v14701_v7 = vld [vmem:[%s28427_s14 + $0xf4] sm:$0xf0]  ;;  %v15011_v60 = vld [vmem:[%s28427_s14 + $0x310] sm:$0xf] }
 0x57f   :  { %10045 = vmatpush.bf16.msrb.mxu0 %v16444_v16  ;;  %v15692_v16 = vor.u32 %v18078_v6, %v15689_v17  ;;  %v16300_v6 = vor.u32 %v18230_v0, %v16297_v51  ;;  %v17917_v50 = vld [vmem:[%s28427_s14 + $0x358] sm:$0xf0]  ;;  %v18135_v0 = vld [vmem:[%s28427_s14 + $0xa2c] sm:$0xf]  ;;  %v15917_v51 = vld [vmem:[%s28427_s14 + $0xa74] sm:$0xf0] }
 0x581   :  { %10056 = vmatpush.bf16.msra.mxu3 %v14852_v42  ;;  %10070 = vmatpush.bf16.msra.mxu1 %v15460_v39  ;;  %v16599_v42 = vld [vmem:[%s28427_s14 + $0xf80] sm:$0xf]  ;;  %v18315_v39 = vld [vmem:[%s28427_s14 + $0xfc8] sm:$0xf0] }
 0x582   :  { %10080 = vmatpush.bf16.msra.mxu2 %v16372_v10  ;;  %10046 = vmatmul.bf16.vlgmr.msrb.gmra.mxu0 %v24215_v8  ;;  %v18059_v10 = vld [vmem:[%s28427_s14 + $0x7cc] sm:$0xf]  ;;  %v16600_v1 = vor.u32 %v18315_v39, %v16599_v42  ;;  %v14704_v42 = vor.u32 %v17831_v45, %v14701_v7  ;;  %v14935_v45 = vld [vmem:[%s28427_s14 + $0x278] sm:$0xf]  ;;  %v17898_v7 = vld [vmem:[%s28427_s14 + $0x2c0] sm:$0xf0] }
 0x583   :  { %10094 = vmatpush.bf16.msra.mxu0 %v16980_v12  ;;  %10032 = vmatmul.bf16.vlgmr.msrb.gmra.mxu2 %v24207_v35  ;;  %v15613_v12 = vld [vmem:[%s28427_s14 + $0x814] sm:$0xf0] }
 0x584   :  { %v15616_v33 = vor.u32 %v18059_v10, %v15613_v12  ;;  %v17964_v10 = vld [vmem:[%s28427_s14 + $0x4d4] sm:$0xf]  ;;  %v16224_v12 = vor.u32 %v18211_v32, %v16221_v41  ;;  %v15841_v41 = vld [vmem:[%s28427_s14 + $0x9dc] sm:$0xf0] }
 0x585   :  { %10057 = vmatpush.bf16.msra.mxu3 %v14776_v59  ;;  %10071 = vmatpush.bf16.msra.mxu1 %v15384_v15  ;;  %v16523_v59 = vld [vmem:[%s28427_s14 + $0xee8] sm:$0xf]  ;;  %v18296_v15 = vld [vmem:[%s28427_s14 + $0xf30] sm:$0xf0] }
 0x586   :  { %10081 = vmatpush.bf16.msra.mxu2 %v16296_v25  ;;  %v18040_v25 = vld [vmem:[%s28427_s14 + $0x734] sm:$0xf]  ;;  %v16524_v58 = vor.u32 %v18296_v15, %v16523_v59  ;;  %v15163_v59 = vld [vmem:[%s28427_s14 + $0x440] sm:$0xf]  ;;  %v17955_v15 = vld [vmem:[%s28427_s14 + $0x488] sm:$0xf0] }
 0x587   :  { %10095 = vmatpush.bf16.msra.mxu0 %v16904_v53  ;;  %v15537_v53 = vld [vmem:[%s28427_s14 + $0x77c] sm:$0xf0]  ;;  %v18116_v32 = vld [vmem:[%s28427_s14 + $0x994] sm:$0xf] }
 0x589   :  { %10058 = vmatpush.bf16.msra.mxu3 %v14700_v40  ;;  %10072 = vmatpush.bf16.msra.mxu1 %v15308_v48  ;;  %v15540_v40 = vor.u32 %v18040_v25, %v15537_v53  ;;  %v18277_v48 = vld [vmem:[%s28427_s14 + $0xe98] sm:$0xf0]  ;;  %v14628_v25 = vor.u32 %v17812_v29, %v14625_v13  ;;  %v14859_v29 = vld [vmem:[%s28427_s14 + $0x1e0] sm:$0xf]  ;;  %v17879_v13 = vld [vmem:[%s28427_s14 + $0x228] sm:$0xf0] }
 0x58a   :  { %10082 = vmatpush.bf16.msra.mxu2 %v16220_v4  ;;  %v15461_v4 = vld [vmem:[%s28427_s14 + $0x6e4] sm:$0xf0]  ;;  %v16448_v2 = vor.u32 %v18277_v48, %v16447_v14  ;;  %v15164_v14 = vor.u32 %v17955_v15, %v15163_v59  ;;  %v25002_v15 = vld [vmem:[%s28429_s15] sm:$0xff] }
 0x58b   :  { %10096 = vmatpush.bf16.msra.mxu0 %v16828_v22  ;;  %v18249_v22 = vld [vmem:[%s28427_s14 + $0xdbc] sm:$0xf]  ;;  %v15464_v26 = vor.u32 %v18021_v37, %v15461_v4  ;;  %v16677_v48 = vld [vmem:[%s28427_s14 + $0x1064] sm:$0xf0]  ;;  %v18088_v4 = vld [vmem:[%s28427_s14 + $0x8b0] sm:$0xf0] }
 0x58c   :  { %v15695_v37 = vld [vmem:[%s28427_s14 + $0x868] sm:$0xf] }
 0x58d   :  { %10059 = vmatpush.bf16.msra.mxu3 %v14624_v46  ;;  %10073 = vmatpush.bf16.msra.mxu1 %v15232_v52  ;;  %v16376_v46 = vor.u32 %v18249_v22, %v16373_v55  ;;  %v16984_v52 = vor.u32 %v18401_v5, %v16981_v34  ;;  %v16072_v22 = vor.u32 %v18173_v31, %v16069_v43  ;;  %v18154_v5 = vld [vmem:[%s28427_s14 + $0xac4] sm:$0xf]  ;;  %v15993_v34 = vld [vmem:[%s28427_s14 + $0xb0c] sm:$0xf0]  ;;  %v15391_v31 = vld [vmem:[%s28427_s14 + $0x608] sm:$0xf] }
 0x58e   :  { %10083 = vmatpush.bf16.msra.mxu2 %v16144_v57  ;;  %v18002_v57 = vld [vmem:[%s28427_s14 + $0x604] sm:$0xf]  ;;  %v18012_v43 = vld [vmem:[%s28427_s14 + $0x650] sm:$0xf0] }
 0x58f   :  { %10097 = vmatpush.bf16.msra.mxu0 %v16752_v11  ;;  %v15385_v11 = vld [vmem:[%s28427_s14 + $0x64c] sm:$0xf0] }
 0x590   :  { %10060 = vmatmul.bf16.vlgmr.msra.gmra.mxu3 %v24139_v9  ;;  %10074 = vmatmul.bf16.vlgmr.msra.gmra.mxu1 %v24147_v19  ;;  %v15388_v54 = vor.u32 %v18002_v57, %v15385_v11  ;;  %v15996_v57 = vor.u32 %v18154_v5, %v15993_v34 }
 0x591   :  { %10108 = vmatpush.bf16.msrb.mxu3 %v15160_v18  ;;  %10122 = vmatpush.bf16.msrb.mxu1 %v15768_v47  ;;  %v18382_v18 = vld [vmem:[%s28427_s14 + $0x11e4] sm:$0xf]  ;;  %v16905_v47 = vld [vmem:[%s28427_s14 + $0x122c] sm:$0xf0] }
 0x592   :  { %10084 = vmatpush.bf16.msra.mxu2 %v16068_v20  ;;  %v16908_v17 = vor.u32 %v18382_v18, %v16905_v47  ;;  %v17983_v20 = vld [vmem:[%s28427_s14 + $0x56c] sm:$0xf]  ;;  %v15012_v18 = vor.u32 %v17917_v50, %v15011_v60  ;;  %v18221_v60 = vld [vmem:[%s28427_s14 + $0xcd8] sm:$0xf0]  ;;  %v16835_v50 = vld [vmem:[%s28427_s14 + $0x1150] sm:$0xf] }
 0x593   :  { %10098 = vmatpush.bf16.msra.mxu0 %v16676_v38  ;;  %v15309_v38 = vld [vmem:[%s28427_s14 + $0x5b4] sm:$0xf0] }
 0x594   :  { %v15312_v39 = vor.u32 %v17983_v20, %v15309_v38  ;;  %v15920_v20 = vor.u32 %v18135_v0, %v15917_v51  ;;  %v14631_v51 = vld [vmem:[%s28427_s14 + $0x18] sm:$0xf] }
 0x595   :  { %10109 = vmatpush.bf16.msrb.mxu3 %v15084_v3  ;;  %10123 = vmatpush.bf16.msrb.mxu1 %v15692_v16  ;;  %v18363_v3 = vld [vmem:[%s28427_s14 + $0x114c] sm:$0xf]  ;;  %v16829_v16 = vld [vmem:[%s28427_s14 + $0x1194] sm:$0xf0] }
 0x596   :  { %10085 = vmatpush.bf16.msra.mxu2 %v15992_v27  ;;  %v16832_v27 = vor.u32 %v18363_v3, %v16829_v16  ;;  %v18268_v3 = vld [vmem:[%s28427_s14 + $0xe54] sm:$0xf]  ;;  %v14936_v16 = vor.u32 %v17898_v7, %v14935_v45  ;;  %v17974_v45 = vld [vmem:[%s28427_s14 + $0x520] sm:$0xf0]  ;;  %v16151_v7 = vld [vmem:[%s28427_s14 + $0xbf8] sm:$0xf] }
 0x597   :  { %10099 = vmatpush.bf16.msra.mxu0 %v16600_v1  ;;  %v15233_v1 = vld [vmem:[%s28427_s14 + $0x51c] sm:$0xf0] }
 0x598   :  { %v15236_v53 = vor.u32 %v17964_v10, %v15233_v1  ;;  %v16379_v1 = vld [vmem:[%s28427_s14 + $0xdc0] sm:$0xf] }
 0x599   :  { %10110 = vmatpush.bf16.msrb.mxu3 %v15008_v49  ;;  %10124 = vmatpush.bf16.msrb.mxu1 %v15616_v33  ;;  %v18344_v49 = vld [vmem:[%s28427_s14 + $0x10b4] sm:$0xf]  ;;  %v16753_v33 = vld [vmem:[%s28427_s14 + $0x10fc] sm:$0xf0] }
 0x59a   :  { %10086 = vmatpush.bf16.msra.mxu2 %v15916_v21  ;;  %v16148_v21 = vor.u32 %v18192_v23, %v16145_v44  ;;  %v18259_v23 = vld [vmem:[%s28427_s14 + $0xe08] sm:$0xf0]  ;;  %v16987_v44 = vld [vmem:[%s28427_s14 + $0x1280] sm:$0xf] }
 0x59b   :  { %10100 = vmatpush.bf16.msra.mxu0 %v16524_v58  ;;  %v16756_v58 = vor.u32 %v18344_v49, %v16753_v33  ;;  %v18411_v49 = vld [vmem:[%s28427_s14 + $0x12c8] sm:$0xf0]  ;;  %v15844_v33 = vor.u32 %v18116_v32, %v15841_v41  ;;  %v15165_v32 = vld [vmem:[%s28427_s14 + $0x48c] sm:$0xf0]  ;;  %v18098_v41 = vld [vmem:[%s28427_s14 + $0x904] sm:$0xf] }
 0x59d   :  { %10111 = vmatpush.bf16.msrb.mxu3 %v14932_v63  ;;  %10125 = vmatpush.bf16.msrb.mxu1 %v15540_v40  ;;  %v15772_v63 = vor.u32 %v18107_v30, %v15771_v28  ;;  %v18325_v40 = vld [vmem:[%s28427_s14 + $0x101c] sm:$0xf]  ;;  %v14860_v28 = vor.u32 %v17879_v13, %v14859_v29 }
 0x59e   :  { %10087 = vmatpush.bf16.msra.mxu2 %v15840_v62  ;;  %v16680_v55 = vor.u32 %v18325_v40, %v16677_v48  ;;  %v15088_v62 = vor.u32 %v17936_v36, %v15087_v24  ;;  %v16911_v40 = vld [vmem:[%s28427_s14 + $0x11e8] sm:$0xf]  ;;  %v18392_v48 = vld [vmem:[%s28427_s14 + $0x1230] sm:$0xf0]  ;;  %v6718_v36 = vperm.slane %v25002_v15, 0 }
 0x59f   :  { %10101 = vmatpush.bf16.msra.mxu0 %v16448_v2  ;;  %v15696_v2 = vor.u32 %v18088_v4, %v15695_v37  ;;  %v15392_v4 = vor.u32 %v18012_v43, %v15391_v31  ;;  %v16912_v34 = vor.u32 %v18392_v48, %v16911_v40  ;;  %v15999_v40 = vld [vmem:[%s28427_s14 + $0xac8] sm:$0xf]  ;;  %v18164_v48 = vld [vmem:[%s28427_s14 + $0xb10] sm:$0xf0] }
 0x5a1   :  { %10112 = vmatpush.bf16.msrb.mxu3 %v14856_v56  ;;  %10126 = vmatpush.bf16.msrb.mxu1 %v15464_v26  ;;  %v18306_v56 = vld [vmem:[%s28427_s14 + $0xf84] sm:$0xf]  ;;  %v16601_v26 = vld [vmem:[%s28427_s14 + $0xfcc] sm:$0xf0] }
 0x5a2   :  { %10136 = vmatpush.bf16.msrb.mxu2 %v16376_v46  ;;  %10102 = vmatmul.bf16.vlgmr.msra.gmra.mxu0 %v24215_v8  ;;  %v15619_v46 = vld [vmem:[%s28427_s14 + $0x7d0] sm:$0xf]  ;;  %v16604_v11 = vor.u32 %v18306_v56, %v16601_v26 }
 0x5a3   :  { %10150 = vmatpush.bf16.msrb.mxu0 %v16984_v52  ;;  %10088 = vmatmul.bf16.vlgmr.msra.gmra.mxu2 %v24207_v35  ;;  %v18069_v52 = vld [vmem:[%s28427_s14 + $0x818] sm:$0xf0]  ;;  %v16227_v56 = vld [vmem:[%s28427_s14 + $0xc90] sm:$0xf] }
 0x5a4   :  { %v15620_v47 = vor.u32 %v18069_v52, %v15619_v46  ;;  %v18373_v46 = vld [vmem:[%s28427_s14 + $0x1198] sm:$0xf0] }
 0x5a5   :  { %10113 = vmatpush.bf16.msrb.mxu3 %v14780_v61  ;;  %10127 = vmatpush.bf16.msrb.mxu1 %v15388_v54  ;;  %v18287_v61 = vld [vmem:[%s28427_s14 + $0xeec] sm:$0xf]  ;;  %v16525_v54 = vld [vmem:[%s28427_s14 + $0xf34] sm:$0xf0] }
 0x5a6   :  { %10137 = vmatpush.bf16.msrb.mxu2 %v16300_v6  ;;  %v15543_v6 = vld [vmem:[%s28427_s14 + $0x738] sm:$0xf]  ;;  %v16528_v38 = vor.u32 %v18287_v61, %v16525_v54  ;;  %v16228_v61 = vor.u32 %v18221_v60, %v16227_v56  ;;  %v16836_v54 = vor.u32 %v18373_v46, %v16835_v50  ;;  %v6719_v56 = vperm.slane %v25002_v15, 1  ;;  %v15923_v46 = vld [vmem:[%s28427_s14 + $0xa30] sm:$0xf] }
 0x5a7   :  { %10151 = vmatpush.bf16.msrb.mxu0 %v16908_v17  ;;  %v18050_v17 = vld [vmem:[%s28427_s14 + $0x780] sm:$0xf0] }
 0x5a9   :  { %10114 = vmatpush.bf16.msrb.mxu3 %v14704_v42  ;;  %10128 = vmatpush.bf16.msrb.mxu1 %v15312_v39  ;;  %v15544_v42 = vor.u32 %v18050_v17, %v15543_v6  ;;  %v16449_v39 = vld [vmem:[%s28427_s14 + $0xe9c] sm:$0xf0]  ;;  %v18202_v6 = vld [vmem:[%s28427_s14 + $0xc40] sm:$0xf0]  ;;  %v16759_v17 = vld [vmem:[%s28427_s14 + $0x10b8] sm:$0xf] }
 0x5aa   :  { %10138 = vmatpush.bf16.msrb.mxu2 %v16224_v12  ;;  %v15467_v12 = vld [vmem:[%s28427_s14 + $0x6a0] sm:$0xf]  ;;  %v16452_v59 = vor.u32 %v18268_v3, %v16449_v39  ;;  %v15773_v3 = vld [vmem:[%s28427_s14 + $0x94c] sm:$0xf0]  ;;  %v16152_v13 = vor.u32 %v18202_v6, %v16151_v7  ;;  %v15545_v7 = vld [vmem:[%s28427_s14 + $0x784] sm:$0xf0] }
 0x5ab   :  { %10152 = vmatpush.bf16.msrb.mxu0 %v16832_v27  ;;  %v18031_v27 = vld [vmem:[%s28427_s14 + $0x6e8] sm:$0xf0] }
 0x5ac   :  { %v15468_v30 = vor.u32 %v18031_v27, %v15467_v12  ;;  %v16075_v27 = vld [vmem:[%s28427_s14 + $0xb60] sm:$0xf] }
 0x5ad   :  { %10115 = vmatpush.bf16.msrb.mxu3 %v14628_v25  ;;  %10129 = vmatpush.bf16.msrb.mxu1 %v15236_v53  ;;  %v14783_v25 = vld [vmem:[%s28427_s14 + $0x148] sm:$0xf]  ;;  %v17860_v53 = vld [vmem:[%s28427_s14 + $0x190] sm:$0xf0]  ;;  %v9851_v24 = vpop.f32.mrf.mxu1 }
 0x5ae   :  { %10139 = vmatpush.bf16.msrb.mxu2 %v16148_v21  ;;  %v16380_v21 = vor.u32 %v18259_v23, %v16379_v1  ;;  %v14784_v37 = vor.u32 %v17860_v53, %v14783_v25  ;;  %v18183_v1 = vld [vmem:[%s28427_s14 + $0xba8] sm:$0xf0]  ;;  %v15697_v53 = vld [vmem:[%s28427_s14 + $0x8b4] sm:$0xf0] }
 0x5af   :  { %10153 = vmatpush.bf16.msrb.mxu0 %v16756_v58  ;;  %v16988_v58 = vor.u32 %v18411_v49, %v16987_v44  ;;  %v15776_v44 = vor.u32 %v18098_v41, %v15773_v3  ;;  %v18079_v25 = vld [vmem:[%s28427_s14 + $0x86c] sm:$0xf]  ;;  %v16076_v43 = vor.u32 %v18183_v1, %v16075_v27  ;;  %v16455_v3 = vld [vmem:[%s28427_s14 + $0xe58] sm:$0xf]  ;;  %v14861_v27 = vld [vmem:[%s28427_s14 + $0x22c] sm:$0xf0] }
 0x5b0   :  { %10116 = vmatmul.bf16.vlgmr.msrb.gmra.mxu3 %v24139_v9  ;;  %10130 = vmatmul.bf16.vlgmr.msrb.gmra.mxu1 %v24147_v19  ;;  %v18022_v1 = vld [vmem:[%s28427_s14 + $0x6a4] sm:$0xf] }
 0x5b1   :  { %10164 = vmatpush.bf16.msra.mxu3 %v15164_v14  ;;  %10178 = vmatpush.bf16.msra.mxu1 %v15772_v63  ;;  %v16303_v14 = vld [vmem:[%s28427_s14 + $0xd28] sm:$0xf]  ;;  %v18240_v63 = vld [vmem:[%s28427_s14 + $0xd70] sm:$0xf0] }
 0x5b2   :  { %10140 = vmatpush.bf16.msrb.mxu2 %v16072_v22  ;;  %v9837_v10 = vpop.f32.mrf.mxu3  ;;  %v14707_v22 = vld [vmem:[%s28427_s14 + $0xb0] sm:$0xf]  ;;  %v16304_v5 = vor.u32 %v18240_v63, %v16303_v14 }
 0x5b3   :  { %10154 = vmatpush.bf16.msrb.mxu0 %v16680_v55  ;;  %v17841_v55 = vld [vmem:[%s28427_s14 + $0xf8] sm:$0xf0]  ;;  %v9838_v52 = vadd.f32 %v9837_v10, %v6718_v36 }
 0x5b5   :  { %10165 = vmatpush.bf16.msra.mxu3 %v15088_v62  ;;  %10179 = vmatpush.bf16.msra.mxu1 %v15696_v2  ;;  %v15315_v62 = vld [vmem:[%s28427_s14 + $0x570] sm:$0xf]  ;;  %v17993_v2 = vld [vmem:[%s28427_s14 + $0x5b8] sm:$0xf0]  ;;  %v9852_v39 = vadd.f32 %v9851_v24, %v9838_v52  ;;  %v9853_v29 = vpop.f32.mrf.mxu1  ;;  %v16607_v24 = vld [vmem:[%s28427_s14 + $0xf88] sm:$0xf] }
 0x5b6   :  { %10141 = vmatpush.bf16.msrb.mxu2 %v15996_v57  ;;  %v14708_v57 = vor.u32 %v17841_v55, %v14707_v22  ;;  %v18316_v22 = vld [vmem:[%s28427_s14 + $0xfd0] sm:$0xf0]  ;;  %v18145_v52 = vld [vmem:[%s28427_s14 + $0xa78] sm:$0xf0] }
 0x5b7   :  { %10155 = vmatpush.bf16.msrb.mxu0 %v16604_v11  ;;  %v15316_v11 = vor.u32 %v17993_v2, %v15315_v62  ;;  %v17908_v55 = vld [vmem:[%s28427_s14 + $0x314] sm:$0xf]  ;;  %v15621_v62 = vld [vmem:[%s28427_s14 + $0x81c] sm:$0xf0]  ;;  %v16608_v60 = vor.u32 %v18316_v22, %v16607_v24  ;;  %v18231_v22 = vld [vmem:[%s28427_s14 + $0xd2c] sm:$0xf] }
 0x5b9   :  { %10166 = vmatpush.bf16.msra.mxu3 %v15012_v18  ;;  %10180 = vmatpush.bf16.msra.mxu1 %v15620_v47  ;;  %v17822_v18 = vld [vmem:[%s28427_s14 + $0x60] sm:$0xf0]  ;;  %v15239_v47 = vld [vmem:[%s28427_s14 + $0x4d8] sm:$0xf] }
 0x5ba   :  { %10142 = vmatpush.bf16.msrb.mxu2 %v15920_v20  ;;  %v9839_v26 = vpop.f32.mrf.mxu3  ;;  %v18354_v20 = vld [vmem:[%s28427_s14 + $0x1100] sm:$0xf0] }
 0x5bb   :  { %10156 = vmatpush.bf16.msrb.mxu0 %v16528_v38  ;;  %v17946_v38 = vld [vmem:[%s28427_s14 + $0x444] sm:$0xf]  ;;  %v16760_v10 = vor.u32 %v18354_v20, %v16759_v17  ;;  %v15847_v17 = vld [vmem:[%s28427_s14 + $0x998] sm:$0xf] }
 0x5bc   :  { %v15168_v23 = vor.u32 %v17946_v38, %v15165_v32  ;;  %v18126_v20 = vld [vmem:[%s28427_s14 + $0x9e0] sm:$0xf0]  ;;  %v15924_v32 = vor.u32 %v18145_v52, %v15923_v46  ;;  %v17984_v46 = vld [vmem:[%s28427_s14 + $0x574] sm:$0xf] }
 0x5bd   :  { %10167 = vmatpush.bf16.msra.mxu3 %v14936_v16  ;;  %10181 = vmatpush.bf16.msra.mxu1 %v15544_v42  ;;  %v9879_v0 = vpop.f32.mrf.mxu0  ;;  %v14632_v16 = vor.u32 %v17822_v18, %v14631_v51  ;;  %v15240_v42 = vor.u32 %v17974_v45, %v15239_v47  ;;  %v16531_v51 = vld [vmem:[%s28427_s14 + $0xef0] sm:$0xf]  ;;  %v18297_v18 = vld [vmem:[%s28427_s14 + $0xf38] sm:$0xf0] }
 0x5be   :  { %10143 = vmatpush.bf16.msrb.mxu2 %v15844_v33  ;;  %v16683_v33 = vld [vmem:[%s28427_s14 + $0x1020] sm:$0xf]  ;;  %v17889_v47 = vld [vmem:[%s28427_s14 + $0x27c] sm:$0xf]  ;;  %v16532_v41 = vor.u32 %v18297_v18, %v16531_v51 }
 0x5bf   :  { %10157 = vmatpush.bf16.msrb.mxu0 %v16452_v59  ;;  %v18335_v59 = vld [vmem:[%s28427_s14 + $0x1068] sm:$0xf0]  ;;  %v18041_v45 = vld [vmem:[%s28427_s14 + $0x73c] sm:$0xf]  ;;  %v25260_v51 = vld [vmem:[%s28427_s14 + $0xcdc] sm:$0xf0] }
 0x5c0   :  { %v16684_v14 = vor.u32 %v18335_v59, %v16683_v33  ;;  %v18250_v33 = vld [vmem:[%s28427_s14 + $0xdc4] sm:$0xf]  ;;  %v16381_v59 = vld [vmem:[%s28427_s14 + $0xe0c] sm:$0xf0] }
 0x5c1   :  { %10168 = vmatpush.bf16.msra.mxu3 %v14860_v28  ;;  %10182 = vmatpush.bf16.msra.mxu1 %v15468_v30  ;;  %v17927_v28 = vld [vmem:[%s28427_s14 + $0x3ac] sm:$0xf]  ;;  %v15089_v30 = vld [vmem:[%s28427_s14 + $0x3f4] sm:$0xf0] }
 0x5c2   :  { %10192 = vmatpush.bf16.msra.mxu2 %v16380_v21  ;;  %10158 = vmatmul.bf16.vlgmr.msrb.gmra.mxu0 %v24215_v8  ;;  %v9865_v12 = vpop.f32.mrf.mxu2  ;;  %v9840_v21 = vadd.f32 %v9839_v26, %v6718_v36  ;;  %v9893_v31 = vpop.f32.mrf.mxu3  ;;  %v16000_v26 = vor.u32 %v18164_v48, %v15999_v40  ;;  %v14785_v40 = vld [vmem:[%s28427_s14 + $0x194] sm:$0xf0]  ;;  %v16384_v48 = vor.u32 %v18250_v33, %v16381_v59 }
 0x5c3   :  { %10206 = vmatpush.bf16.msra.mxu0 %v16988_v58  ;;  %10144 = vmatmul.bf16.vlgmr.msrb.gmra.mxu2 %v24207_v35  ;;  %v9866_v49 = vadd.f32 %v9865_v12, %v9852_v39  ;;  %v9894_v38 = vadd.f32 %v9893_v31, %v6719_v56  ;;  %v15548_v12 = vor.u32 %v18041_v45, %v15545_v7  ;;  %v18364_v7 = vld [vmem:[%s28427_s14 + $0x1154] sm:$0xf] }
 0x5c4   :  { %v9854_v2 = vadd.f32 %v9853_v29, %v9840_v21 }
 0x5c5   :  { %10169 = vmatpush.bf16.msra.mxu3 %v14784_v37  ;;  %10183 = vmatpush.bf16.msra.mxu1 %v15392_v4  ;;  %v9880_v58 = vadd.f32 %v9879_v0, %v9866_v49  ;;  %v9881_v63 = vpop.f32.mrf.mxu0  ;;  %v15092_v37 = vor.u32 %v17927_v28, %v15089_v30  ;;  %v15700_v4 = vor.u32 %v18079_v25, %v15697_v53  ;;  %v15469_v49 = vld [vmem:[%s28427_s14 + $0x6ec] sm:$0xf0]  ;;  %v18402_v28 = vld [vmem:[%s28427_s14 + $0x1284] sm:$0xf] }
 0x5c6   :  { %10193 = vmatpush.bf16.msra.mxu2 %v16304_v5  ;;  %v15013_v5 = vld [vmem:[%s28427_s14 + $0x35c] sm:$0xf0]  ;;  %v16989_v30 = vld [vmem:[%s28427_s14 + $0x12cc] sm:$0xf0]  ;;  %v15848_v25 = vor.u32 %v18126_v20, %v15847_v17  ;;  %v15472_v31 = vor.u32 %v18022_v1, %v15469_v49  ;;  %v25311_v1 = vld [vmem:[%s28427_s14 + $0x10bc] sm:$0xf] }
 0x5c7   :  { %10207 = vmatpush.bf16.msra.mxu0 %v16912_v34  ;;  %v17037_v36 = vmul.f32 -1.442695, %v9880_v58  ;;  %v18060_v34 = vld [vmem:[%s28427_s14 + $0x7d4] sm:$0xf]  ;;  %v16992_v24 = vor.u32 %v18402_v28, %v16989_v30  ;;  %v16837_v20 = vld [vmem:[%s28427_s14 + $0x119c] sm:$0xf0] }
 0x5c8   :  { %v16840_v33 = vor.u32 %v18364_v7, %v16837_v20  ;;  %v16761_v28 = vld [vmem:[%s28427_s14 + $0x1104] sm:$0xf0]  ;;  %v25415_v7 = vld [vmem:[%s28427_s14 + $0xb14] sm:$0xf0] }
 0x5c9   :  { %10170 = vmatpush.bf16.msra.mxu3 %v14708_v57  ;;  %10184 = vmatpush.bf16.msra.mxu1 %v15316_v11  ;;  %18433 = vpow2.f32 %v17037_v36  ;;  %v15016_v57 = vor.u32 %v17908_v55, %v15013_v5  ;;  %v15624_v11 = vor.u32 %v18060_v34, %v15621_v62  ;;  %v16305_v55 = vld [vmem:[%s28427_s14 + $0xd74] sm:$0xf0]  ;;  %v18383_v5 = vld [vmem:[%s28427_s14 + $0x11ec] sm:$0xf]  ;;  %v25322_v30 = vld [vmem:[%s28427_s14 + $0x448] sm:$0xf] }
 0x5ca   :  { %10194 = vmatpush.bf16.msra.mxu2 %v16228_v61  ;;  %v9867_v50 = vpop.f32.mrf.mxu2  ;;  %v9907_v61 = vpop.f32.mrf.mxu1  ;;  %v16913_v34 = vld [vmem:[%s28427_s14 + $0x1234] sm:$0xf0] }
 0x5cb   :  { %10208 = vmatpush.bf16.msra.mxu0 %v16836_v54  ;;  %v9868_v0 = vadd.f32 %v9867_v50, %v9854_v2  ;;  %v14937_v54 = vld [vmem:[%s28427_s14 + $0x2c4] sm:$0xf0]  ;;  %v9908_v21 = vadd.f32 %v9907_v61, %v9894_v38  ;;  %v14709_v50 = vld [vmem:[%s28427_s14 + $0xfc] sm:$0xf0]  ;;  %v16916_v45 = vor.u32 %v18383_v5, %v16913_v34  ;;  %v25279_v38 = vld [vmem:[%s28427_s14 + $0x1c] sm:$0xf] }
 0x5cc   :  { %v18051_v34 = vld [vmem:[%s28427_s14 + $0x788] sm:$0xf0] }
 0x5cd   :  { %10171 = vmatpush.bf16.msra.mxu3 %v14632_v16  ;;  %10185 = vmatpush.bf16.msra.mxu1 %v15240_v42  ;;  %v9882_v6 = vadd.f32 %v9881_v63, %v9868_v0  ;;  %v18278_v16 = vld [vmem:[%s28427_s14 + $0xea0] sm:$0xf0]  ;;  %v17851_v63 = vld [vmem:[%s28427_s14 + $0x14c] sm:$0xf]  ;;  %v25255_v0 = vld [vmem:[%s28427_s14 + $0xc94] sm:$0xf] }
 0x5ce   :  { %10195 = vmatpush.bf16.msra.mxu2 %v16152_v13  ;;  %v17870_v42 = vld [vmem:[%s28427_s14 + $0x1e4] sm:$0xf]  ;;  %v9895_v13 = vpop.f32.mrf.mxu3  ;;  %v16456_v53 = vor.u32 %v18278_v16, %v16455_v3  ;;  %v25290_v16 = vld [vmem:[%s28427_s14 + $0x4dc] sm:$0xf]  ;;  %v16232_v49 = vor.u32 %v25255_v0, %v25260_v51  ;;  %v15703_v0 = vld [vmem:[%s28427_s14 + $0x870] sm:$0xf] }
 0x5cf   :  { %10209 = vmatpush.bf16.msra.mxu0 %v16760_v10  ;;  %v18434_v39 = vpop.eup %18433  ;;  %v17056_v29 = vmul.f32 -1.442695, %v9882_v6  ;;  %v14940_v10 = vor.u32 %v17889_v47, %v14937_v54  ;;  %v14864_v58 = vor.u32 %v17870_v42, %v14861_v27  ;;  %v9896_v2 = vadd.f32 %v9895_v13, %v6719_v56  ;;  %v25295_v42 = vld [vmem:[%s28427_s14 + $0x524] sm:$0xf0]  ;;  %v18089_v51 = vld [vmem:[%s28427_s14 + $0x8b8] sm:$0xf0] }
 0x5d0   :  { %10172 = vmatmul.bf16.vlgmr.msra.gmra.mxu3 %v24139_v9  ;;  %10186 = vmatmul.bf16.vlgmr.msra.gmra.mxu1 %v24147_v19  ;;  %v14788_v56 = vor.u32 %v17851_v63, %v14785_v40  ;;  %v16308_v54 = vor.u32 %v18231_v22, %v16305_v55  ;;  %v25306_v27 = vld [vmem:[%s28427_s14 + $0xc44] sm:$0xf0]  ;;  %v15244_v63 = vor.u32 %v25290_v16, %v25295_v42  ;;  %v18108_v40 = vld [vmem:[%s28427_s14 + $0x950] sm:$0xf0]  ;;  %v25363_v22 = vld [vmem:[%s28427_s14 + $0x1024] sm:$0xf] }
 0x5d1   :  { %10220 = vmatpush.bf16.msrb.mxu3 %v15168_v23  ;;  %10234 = vmatpush.bf16.msrb.mxu1 %v15776_v44  ;;  %v25193_v23 = vadd.f32 1.0, %v18434_v39  ;;  %v9935_v44 = vpop.f32.mrf.mxu0  ;;  %18435 = vpow2.f32 %v17056_v29  ;;  %v25300_v39 = vld [vmem:[%s28427_s14 + $0xbfc] sm:$0xf]  ;;  %v25368_v55 = vld [vmem:[%s28427_s14 + $0x106c] sm:$0xf0] }
 0x5d2   :  { %10196 = vmatpush.bf16.msra.mxu2 %v16076_v43  ;;  %v9921_v43 = vpop.f32.mrf.mxu2  ;;  %v9909_v62 = vpop.f32.mrf.mxu1  ;;  %v16688_v20 = vor.u32 %v25363_v22, %v25368_v55 }
 0x5d3   :  { %10210 = vmatpush.bf16.msra.mxu0 %v16684_v14  ;;  %18437 = vrcp.f32 %v25193_v23  ;;  %v6720_v14 = vperm.slane %v25002_v15, 2  ;;  %v9922_v36 = vadd.f32 %v9921_v43, %v9908_v21  ;;  %v9910_v3 = vadd.f32 %v9909_v62, %v9896_v2  ;;  %v25330_v21 = vld [vmem:[%s28427_s14 + $0x490] sm:$0xf0] }
 0x5d4   :  { %vm11049_vm4 = vweird.f32 %v25193_v23 }
 0x5d5   :  { %10221 = vmatpush.bf16.msrb.mxu3 %v15092_v37  ;;  %10235 = vmatpush.bf16.msrb.mxu1 %v15700_v4  ;;  %v18003_v37 = vld [vmem:[%s28427_s14 + $0x60c] sm:$0xf]  ;;  %v15393_v4 = vld [vmem:[%s28427_s14 + $0x654] sm:$0xf0] }
 0x5d6   :  { %10197 = vmatpush.bf16.msra.mxu2 %v16000_v26  ;;  %v9936_v26 = vadd.f32 %v9935_v44, %v9922_v36  ;;  %v9949_v17 = vpop.f32.mrf.mxu3  ;;  %v11055_v44 = vand.u32 2147483648, %v25193_v23 }
 0x5d7   :  { %10211 = vmatpush.bf16.msra.mxu0 %v16608_v60  ;;  %v25241_v60 = vld [vmem:[%s28427_s14 + $0xb4] sm:$0xf]  ;;  %v18436_v52 = vpop.eup %18435 }
 0x5d8   :  { %v25264_v47 = vadd.f32 1.0, %v18436_v52  ;;  %v17038_v61 = vmul.f32 -1.442695, %v9936_v26  ;;  %v14712_v13 = vor.u32 %v25241_v60, %v14709_v50  ;;  %v11056_v62 = vor.u32 1.1754944e-38, %v11055_v44  ;;  %v15627_v44 = vld [vmem:[%s28427_s14 + $0x7d8] sm:$0xf] }
 0x5d9   :  { %10222 = vmatpush.bf16.msrb.mxu3 %v15016_v57  ;;  %10236 = vmatpush.bf16.msrb.mxu1 %v15624_v11  ;;  %v15396_v57 = vor.u32 %v18003_v37, %v15393_v4  ;;  %v15317_v11 = vld [vmem:[%s28427_s14 + $0x5bc] sm:$0xf0]  ;;  %v25262_v18 = vpop.eup %18437  ;;  %v9950_v37 = vadd.f32 %v9949_v17, %v6720_v14  ;;  %v16156_v4 = vor.u32 %v25300_v39, %v25306_v27 }
 0x5da   :  { %10198 = vmatpush.bf16.msra.mxu2 %v15924_v32  ;;  %v11045_v6 = vmul.f32 %v25262_v18, %v25193_v23  ;;  %v25284_v32 = vld [vmem:[%s28427_s14 + $0x64] sm:$0xf0]  ;;  %18439 = vrcp.f32 %v25264_v47  ;;  %vm11050_vm3 = vweird.f32 %v25262_v18  ;;  %v9963_v2 = vpop.f32.mrf.mxu1  ;;  %v16764_v60 = vor.u32 %v25311_v1, %v16761_v28 }
 0x5db   :  { %10212 = vmatpush.bf16.msra.mxu0 %v16532_v41  ;;  %v9937_v41 = vpop.f32.mrf.mxu0  ;;  %18441 = vpow2.f32 %v17038_v61  ;;  %v14636_v43 = vor.u32 %v25279_v38, %v25284_v32  ;;  %vm25379_vm5 = vmor %vm11049_vm4, %vm11050_vm3  ;;  %v15172_v50 = vor.u32 %v25330_v21, %v25322_v30  ;;  %v9964_v38 = vadd.f32 %v9963_v2, %v9950_v37  ;;  %v18307_v32 = vld [vmem:[%s28427_s14 + $0xf8c] sm:$0xf]  ;;  %v14943_v37 = vld [vmem:[%s28427_s14 + $0x280] sm:$0xf] }
 0x5dc   :  { %v11046_v29 = vsub.f32 1.0, %v11045_v6  ;;  %v15704_v39 = vor.u32 %v18089_v51, %v15703_v0  ;;  %v11338_v27 = vand.u32 2147483647, %v25264_v47  ;;  %vm11334_vm8 = vweird.f32 %v25264_v47  ;;  %v17880_v0 = vld [vmem:[%s28427_s14 + $0x230] sm:$0xf0] }
 0x5dd   :  { %10223 = vmatpush.bf16.msrb.mxu3 %v14940_v10  ;;  %10237 = vmatpush.bf16.msrb.mxu1 %v15548_v12  ;;  %v15320_v10 = vor.u32 %v17984_v46, %v15317_v11  ;;  %v9923_v12 = vpop.f32.mrf.mxu2  ;;  %v25389_v46 = vld [vmem:[%s28427_s14 + $0x3f8] sm:$0xf0] }
 0x5de   :  { %10199 = vmatpush.bf16.msra.mxu2 %v15848_v25  ;;  %v9924_v59 = vadd.f32 %v9923_v12, %v9910_v3  ;;  %v11047_v25 = vmul.f32 %v25262_v18, %v11046_v29  ;;  %v9951_v17 = vpop.f32.mrf.mxu3  ;;  %v11340_v3 = vand.u32 2147483648, %v25264_v47  ;;  %vm11339_vm10 = vcmp.eq.f32.partialorder %v11338_v27, 8.507059e+37  ;;  %v17861_v27 = vld [vmem:[%s28427_s14 + $0x198] sm:$0xf0] }
 0x5df   :  { %10213 = vmatpush.bf16.msra.mxu0 %v16456_v53  ;;  %v11053_v53 = vand.u32 2147483647, %v25193_v23  ;;  %v25373_v23 = vld [vmem:[%s28427_s14 + $0x3b0] sm:$0xf]  ;;  %v9952_v28 = vadd.f32 %v9951_v17, %v6720_v14 }
 0x5e0   :  { %v11048_v36 = vadd.f32 %v25262_v18, %v11047_v25  ;;  %v25375_v5 = vpop.eup %18439  ;;  %v15096_v42 = vor.u32 %v25389_v46, %v25373_v23  ;;  %v18136_v25 = vld [vmem:[%s28427_s14 + $0xa34] sm:$0xf]  ;;  %v17899_v23 = vld [vmem:[%s28427_s14 + $0x2c8] sm:$0xf0] }
 0x5e1   :  { %10224 = vmatpush.bf16.msrb.mxu3 %v14864_v58  ;;  %10238 = vmatpush.bf16.msrb.mxu1 %v15472_v31  ;;  %v25335_v58 = vld [vmem:[%s28427_s14 + $0x908] sm:$0xf]  ;;  %v9938_v31 = vadd.f32 %v9937_v41, %v9924_v59  ;;  %v18442_v52 = vpop.eup %18441  ;;  %vm11054_vm6 = vcmp.eq.f32.partialorder %v11053_v53, 8.507059e+37  ;;  %v16609_v41 = vld [vmem:[%s28427_s14 + $0xfd4] sm:$0xf0]  ;;  %vm11335_vm7 = vweird.f32 %v25375_v5 }
 0x5e2   :  { %10248 = vmatpush.bf16.msrb.mxu2 %v16384_v48  ;;  %10214 = vmatmul.bf16.vlgmr.msra.gmra.mxu0 %v24215_v8  ;;  %v25347_v48 = vld [vmem:[%s28427_s14 + $0xb64] sm:$0xf]  ;;  %v15780_v11 = vor.u32 %v18108_v40, %v25335_v58  ;;  %v15925_v53 = vld [vmem:[%s28427_s14 + $0xa7c] sm:$0xf0]  ;;  %vm25463_vm9 = vmor %vm11334_vm8, %vm11335_vm7  ;;  %v16612_v14 = vor.u32 %v18307_v32, %v16609_v41  ;;  %v9965_v55 = vpop.f32.mrf.mxu1 }
 0x5e3   :  { %10262 = vmatpush.bf16.msrb.mxu0 %v16992_v24  ;;  %10200 = vmatmul.bf16.vlgmr.msra.gmra.mxu2 %v24207_v35  ;;  %v25352_v24 = vld [vmem:[%s28427_s14 + $0xbac] sm:$0xf0]  ;;  %v17057_v26 = vmul.f32 -1.442695, %v9938_v31  ;;  %v9991_v16 = vpop.f32.mrf.mxu0  ;;  %v16533_v40 = vld [vmem:[%s28427_s14 + $0xf3c] sm:$0xf0]  ;;  %v9966_v2 = vadd.f32 %v9965_v55, %v9952_v28  ;;  %v15928_v46 = vor.u32 %v18136_v25, %v15925_v53 }
 0x5e4   :  { %v18260_v32 = vld [vmem:[%s28427_s14 + $0xe10] sm:$0xf0]  ;;  %v18013_v28 = vld [vmem:[%s28427_s14 + $0x658] sm:$0xf0]  ;;  %v16311_v58 = vld [vmem:[%s28427_s14 + $0xd30] sm:$0xf] }
 0x5e5   :  { %10225 = vmatpush.bf16.msrb.mxu3 %v14788_v56  ;;  %10239 = vmatpush.bf16.msrb.mxu1 %v15396_v57  ;;  %v11052_v56 = vsel %vm25379_vm5, %v25262_v18, %v11048_v36  ;;  %v11330_v57 = vmul.f32 %v25375_v5, %v25264_v47  ;;  %18443 = vpow2.f32 %v17057_v26  ;;  %v16080_v18 = vor.u32 %v25347_v48, %v25352_v24  ;;  %v18117_v26 = vld [vmem:[%s28427_s14 + $0x99c] sm:$0xf] }
 0x5e6   :  { %10249 = vmatpush.bf16.msrb.mxu2 %v16308_v54  ;;  %v11057_v61 = vsel %vm11054_vm6, %v11056_v62, %v11052_v56  ;;  %v25403_v54 = vadd.f32 1.0, %v18442_v52  ;;  %v9977_v29 = vpop.f32.mrf.mxu2  ;;  %v11341_v47 = vor.u32 1.1754944e-38, %v11340_v3 }
 0x5e7   :  { %10263 = vmatpush.bf16.msrb.mxu0 %v16916_v45  ;;  %v25410_v45 = vld [vmem:[%s28427_s14 + $0xacc] sm:$0xf]  ;;  %11614 = vst [vmem:[%s28430_s16] sm:$0xff] %v11057_v61  ;;  %v11331_v6 = vsub.f32 1.0, %v11330_v57  ;;  %v9978_v1 = vadd.f32 %v9977_v29, %v9964_v38  ;;  %v16457_v57 = vld [vmem:[%s28427_s14 + $0xea4] sm:$0xf0]  ;;  %v14944_v61 = vor.u32 %v17899_v23, %v14943_v37 }
 0x5e8   :  { %18445 = vrcp.f32 %v25403_v54  ;;  %v11070_v17 = vand.u32 2147483648, %v25403_v54  ;;  %v16387_v38 = vld [vmem:[%s28427_s14 + $0xdc8] sm:$0xf]  ;;  %v11068_v3 = vand.u32 2147483647, %v25403_v54  ;;  %vm11064_vm12 = vweird.f32 %v25403_v54 }
 0x5e9   :  { %10226 = vmatpush.bf16.msrb.mxu3 %v14712_v13  ;;  %10240 = vmatpush.bf16.msrb.mxu1 %v15320_v10  ;;  %v15019_v13 = vld [vmem:[%s28427_s14 + $0x318] sm:$0xf]  ;;  %v17918_v10 = vld [vmem:[%s28427_s14 + $0x360] sm:$0xf0]  ;;  %v11332_v12 = vmul.f32 %v25375_v5, %v11331_v6  ;;  %v9992_v30 = vadd.f32 %v9991_v16, %v9978_v1  ;;  %v18032_v6 = vld [vmem:[%s28427_s14 + $0x6f0] sm:$0xf0]  ;;  %v16388_v53 = vor.u32 %v18260_v32, %v16387_v38 }
 0x5ea   :  { %10250 = vmatpush.bf16.msrb.mxu2 %v16232_v49  ;;  %v18070_v49 = vld [vmem:[%s28427_s14 + $0x820] sm:$0xf0]  ;;  %v15020_v31 = vor.u32 %v17918_v10, %v15019_v13  ;;  %v11071_v25 = vor.u32 1.1754944e-38, %v11070_v17  ;;  %vm11069_vm14 = vcmp.eq.f32.partialorder %v11068_v3, 8.507059e+37  ;;  %v14715_v37 = vld [vmem:[%s28427_s14 + $0xb8] sm:$0xf] }
 0x5eb   :  { %10264 = vmatpush.bf16.msrb.mxu0 %v16840_v33  ;;  %v16004_v33 = vor.u32 %v25410_v45, %v25415_v7  ;;  %v11333_v59 = vadd.f32 %v25375_v5, %v11332_v12  ;;  %v18444_v21 = vpop.eup %18443  ;;  %v17039_v36 = vmul.f32 -1.442695, %v9992_v30  ;;  %v15475_v7 = vld [vmem:[%s28427_s14 + $0x6a8] sm:$0xf]  ;;  %v25541_v12 = vld [vmem:[%s28427_s14 + $0x150] sm:$0xf] }
 0x5ec   :  { %v25476_v24 = vadd.f32 1.0, %v18444_v21  ;;  %v16159_v38 = vld [vmem:[%s28427_s14 + $0xc00] sm:$0xf] }
 0x5ed   :  { %10227 = vmatpush.bf16.msrb.mxu3 %v14636_v43  ;;  %10241 = vmatpush.bf16.msrb.mxu1 %v15244_v63  ;;  %v15628_v43 = vor.u32 %v18070_v49, %v15627_v44  ;;  %v18288_v63 = vld [vmem:[%s28427_s14 + $0xef4] sm:$0xf]  ;;  %v11337_v48 = vsel %vm25463_vm9, %v25375_v5, %v11333_v59  ;;  %v15551_v5 = vld [vmem:[%s28427_s14 + $0x740] sm:$0xf]  ;;  %v15399_v59 = vld [vmem:[%s28427_s14 + $0x610] sm:$0xf] }
 0x5ee   :  { %10251 = vmatpush.bf16.msrb.mxu2 %v16156_v4  ;;  %v25481_v4 = vpop.eup %18445  ;;  %v11342_v22 = vsel %vm11339_vm10, %v11341_v47, %v11337_v48  ;;  %18447 = vrcp.f32 %v25476_v24  ;;  %v16536_v52 = vor.u32 %v18288_v63, %v16533_v40  ;;  %v9979_v56 = vpop.f32.mrf.mxu2  ;;  %v18241_v47 = vld [vmem:[%s28427_s14 + $0xd78] sm:$0xf0]  ;;  %v15400_v55 = vor.u32 %v18013_v28, %v15399_v59  ;;  %v25673_v28 = vld [vmem:[%s28427_s14 + $0xb68] sm:$0xf] }
 0x5ef   :  { %10265 = vmatpush.bf16.msrb.mxu0 %v16764_v60  ;;  %11633 = vst [vmem:[%s28430_s16 + $0x98] sm:$0xff] %v11342_v22  ;;  %v11060_v62 = vmul.f32 %v25481_v4, %v25403_v54  ;;  %v15849_v60 = vld [vmem:[%s28427_s14 + $0x9e4] sm:$0xf0]  ;;  %18449 = vpow2.f32 %v17039_v36  ;;  %v9980_v45 = vadd.f32 %v9979_v56, %v9966_v2  ;;  %vm11065_vm11 = vweird.f32 %v25481_v4  ;;  %v18393_v63 = vld [vmem:[%s28427_s14 + $0x1238] sm:$0xf0] }
 0x5f0   :  { %10228 = vmatmul.bf16.vlgmr.msrb.gmra.mxu3 %v24139_v9  ;;  %10242 = vmatmul.bf16.vlgmr.msrb.gmra.mxu1 %v24147_v19  ;;  %v15852_v29 = vor.u32 %v18117_v26, %v15849_v60  ;;  %vm11066_vm13 = vmor %vm11064_vm12, %vm11065_vm11  ;;  %v14792_v36 = vor.u32 %v17861_v27, %v25541_v12  ;;  %v11355_v22 = vand.u32 2147483648, %v25476_v24  ;;  %v16312_v23 = vor.u32 %v18241_v47, %v16311_v58  ;;  %v16235_v60 = vld [vmem:[%s28427_s14 + $0xc98] sm:$0xf]  ;;  %v18336_v47 = vld [vmem:[%s28427_s14 + $0x1070] sm:$0xf0] }
 0x5f1   :  { %10276 = vmatpush.bf16.msra.mxu3 %v15172_v50  ;;  %10290 = vmatpush.bf16.msra.mxu1 %v15780_v11  ;;  %v18269_v50 = vld [vmem:[%s28427_s14 + $0xe5c] sm:$0xf]  ;;  %v14867_v11 = vld [vmem:[%s28427_s14 + $0x1e8] sm:$0xf]  ;;  %v11061_v51 = vsub.f32 1.0, %v11060_v62  ;;  %vm11349_vm1 = vweird.f32 %v25476_v24 }
 0x5f2   :  { %10252 = vmatpush.bf16.msrb.mxu2 %v16080_v18  ;;  %v15552_v18 = vor.u32 %v18051_v34, %v15551_v5  ;;  %v16460_v13 = vor.u32 %v18269_v50, %v16457_v57  ;;  %v14868_v10 = vor.u32 %v17880_v0, %v14867_v11  ;;  %v15323_v5 = vld [vmem:[%s28427_s14 + $0x578] sm:$0xf]  ;;  %v17994_v34 = vld [vmem:[%s28427_s14 + $0x5c0] sm:$0xf0]  ;;  %v11353_v2 = vand.u32 2147483647, %v25476_v24 }
 0x5f3   :  { %10266 = vmatpush.bf16.msrb.mxu0 %v16688_v20  ;;  %v9993_v20 = vpop.f32.mrf.mxu0  ;;  %v11062_v41 = vmul.f32 %v25481_v4, %v11061_v51  ;;  %v18222_v50 = vld [vmem:[%s28427_s14 + $0xce0] sm:$0xf0]  ;;  %v16843_v56 = vld [vmem:[%s28427_s14 + $0x1158] sm:$0xf]  ;;  %v14639_v0 = vld [vmem:[%s28427_s14 + $0x20] sm:$0xf] }
 0x5f4   :  { %v9994_v16 = vadd.f32 %v9993_v20, %v9980_v45  ;;  %v25546_v1 = vpop.eup %18447  ;;  %v18374_v57 = vld [vmem:[%s28427_s14 + $0x11a0] sm:$0xf0]  ;;  %v17823_v51 = vld [vmem:[%s28427_s14 + $0x68] sm:$0xf0]  ;;  %v16236_v17 = vor.u32 %v18222_v50, %v16235_v60  ;;  %vm11354_vm3 = vcmp.eq.f32.partialorder %v11353_v2, 8.507059e+37 }
 0x5f5   :  { %10277 = vmatpush.bf16.msra.mxu3 %v15096_v42  ;;  %10291 = vmatpush.bf16.msra.mxu1 %v15704_v39  ;;  %v16995_v42 = vld [vmem:[%s28427_s14 + $0x1288] sm:$0xf]  ;;  %v18412_v39 = vld [vmem:[%s28427_s14 + $0x12d0] sm:$0xf0]  ;;  %v11063_v44 = vadd.f32 %v25481_v4, %v11062_v41  ;;  %v18450_v30 = vpop.eup %18449  ;;  %v11345_v54 = vmul.f32 %v25546_v1, %v25476_v24  ;;  %vm11350_vm15 = vweird.f32 %v25546_v1  ;;  %v11356_v24 = vor.u32 1.1754944e-38, %v11355_v22 }
 0x5f6   :  { %10253 = vmatpush.bf16.msrb.mxu2 %v16004_v33  ;;  %v17058_v49 = vmul.f32 -1.442695, %v9994_v16  ;;  %v15476_v33 = vor.u32 %v18032_v6, %v15475_v7  ;;  %v16996_v21 = vor.u32 %v18412_v39, %v16995_v42  ;;  %vm25624_vm2 = vmor %vm11349_vm1, %vm11350_vm15  ;;  %v15324_v6 = vor.u32 %v17994_v34, %v15323_v5  ;;  %v17975_v20 = vld [vmem:[%s28427_s14 + $0x528] sm:$0xf0]  ;;  %v16767_v42 = vld [vmem:[%s28427_s14 + $0x10c0] sm:$0xf] }
 0x5f7   :  { %10267 = vmatpush.bf16.msrb.mxu0 %v16612_v14  ;;  %v11067_v14 = vsel %vm11066_vm13, %v25481_v4, %v11063_v44  ;;  %v11346_v48 = vsub.f32 1.0, %v11345_v54  ;;  %v17842_v4 = vld [vmem:[%s28427_s14 + $0x100] sm:$0xf0]  ;;  %v16844_v3 = vor.u32 %v18374_v57, %v16843_v56  ;;  %v18203_v16 = vld [vmem:[%s28427_s14 + $0xc48] sm:$0xf0] }
 0x5f8   :  { %18451 = vpow2.f32 %v17058_v49  ;;  %v11072_v40 = vsel %vm11069_vm14, %v11071_v25, %v11067_v14  ;;  %v14716_v7 = vor.u32 %v17842_v4, %v14715_v37  ;;  %v15173_v12 = vld [vmem:[%s28427_s14 + $0x494] sm:$0xf0]  ;;  %v25683_v25 = vld [vmem:[%s28427_s14 + $0x1028] sm:$0xf]  ;;  %v25691_v14 = vld [vmem:[%s28427_s14 + $0x3b4] sm:$0xf] }
 0x5f9   :  { %10278 = vmatpush.bf16.msra.mxu3 %v15020_v31  ;;  %10292 = vmatpush.bf16.msra.mxu1 %v15628_v43  ;;  %v25567_v31 = vadd.f32 1.0, %v18450_v30  ;;  %v16919_v43 = vld [vmem:[%s28427_s14 + $0x11f0] sm:$0xf]  ;;  %11615 = vst [vmem:[%s28430_s16 + $0x8] sm:$0xff] %v11072_v40  ;;  %v11347_v62 = vmul.f32 %v25546_v1, %v11346_v48  ;;  %v15781_v44 = vld [vmem:[%s28427_s14 + $0x954] sm:$0xf0]  ;;  %v16692_v56 = vor.u32 %v18336_v47, %v25683_v25 }
 0x5fa   :  { %10254 = vmatpush.bf16.msrb.mxu2 %v15928_v46  ;;  %v16920_v26 = vor.u32 %v18393_v63, %v16919_v43  ;;  %v6721_v46 = vperm.slane %v25002_v15, 3  ;;  %v25678_v30 = vld [vmem:[%s28427_s14 + $0xbb0] sm:$0xf0]  ;;  %v15097_v48 = vld [vmem:[%s28427_s14 + $0x3fc] sm:$0xf0] }
 0x5fb   :  { %10268 = vmatpush.bf16.msrb.mxu0 %v16536_v52  ;;  %18453 = vrcp.f32 %v25567_v31  ;;  %v10005_v52 = vpop.f32.mrf.mxu3  ;;  %v11348_v11 = vadd.f32 %v25546_v1, %v11347_v62  ;;  %v11085_v43 = vand.u32 2147483648, %v25567_v31  ;;  %v11083_v4 = vand.u32 2147483647, %v25567_v31  ;;  %v15705_v22 = vld [vmem:[%s28427_s14 + $0x8bc] sm:$0xf0] }
 0x5fc   :  { %v10006_v49 = vadd.f32 %v10005_v52, %v6721_v46  ;;  %v16084_v5 = vor.u32 %v25678_v30, %v25673_v28  ;;  %v25716_v62 = vld [vmem:[%s28427_s14 + $0xb18] sm:$0xf0]  ;;  %v25721_v2 = vld [vmem:[%s28427_s14 + $0xf90] sm:$0xf]  ;;  %vm11079_vm5 = vweird.f32 %v25567_v31  ;;  %v18042_v28 = vld [vmem:[%s28427_s14 + $0x744] sm:$0xf] }
 0x5fd   :  { %10279 = vmatpush.bf16.msra.mxu3 %v14944_v61  ;;  %10293 = vmatpush.bf16.msra.mxu1 %v15552_v18  ;;  %v15247_v61 = vld [vmem:[%s28427_s14 + $0x4e0] sm:$0xf]  ;;  %v11352_v32 = vsel %vm25624_vm2, %v25546_v1, %v11348_v11  ;;  %v18099_v1 = vld [vmem:[%s28427_s14 + $0x90c] sm:$0xf]  ;;  %v15100_v11 = vor.u32 %v25691_v14, %v15097_v48  ;;  %vm11084_vm7 = vcmp.eq.f32.partialorder %v11083_v4, 8.507059e+37 }
 0x5fe   :  { %10255 = vmatpush.bf16.msrb.mxu2 %v15852_v29  ;;  %v18452_v18 = vpop.eup %18451  ;;  %v11357_v29 = vsel %vm11354_vm3, %v11356_v24, %v11352_v32  ;;  %v15248_v59 = vor.u32 %v17975_v20, %v15247_v61  ;;  %v15784_v40 = vor.u32 %v18099_v1, %v15781_v44  ;;  %v11086_v61 = vor.u32 1.1754944e-38, %v11085_v43  ;;  %v15553_v30 = vld [vmem:[%s28427_s14 + $0x78c] sm:$0xf0]  ;;  %v18279_v48 = vld [vmem:[%s28427_s14 + $0xea8] sm:$0xf0] }
 0x5ff   :  { %10269 = vmatpush.bf16.msrb.mxu0 %v16460_v13  ;;  %v25637_v41 = vadd.f32 1.0, %v18452_v18  ;;  %v18355_v13 = vld [vmem:[%s28427_s14 + $0x1108] sm:$0xf0]  ;;  %11634 = vst [vmem:[%s28430_s16 + $0xa0] sm:$0xff] %v11357_v29  ;;  %v10047_v52 = vpop.f32.mrf.mxu0  ;;  %v18146_v29 = vld [vmem:[%s28427_s14 + $0xa80] sm:$0xf0] }
 0x600   :  { %v16768_v58 = vor.u32 %v18355_v13, %v16767_v42  ;;  %v16539_v13 = vld [vmem:[%s28427_s14 + $0xef8] sm:$0xf]  ;;  %v18194_v47 = vld [vmem:[%s28427_s14 + $0xc04] sm:$0xf] }
 0x601   :  { %10280 = vmatpush.bf16.msra.mxu3 %v14868_v10  ;;  %10294 = vmatpush.bf16.msra.mxu1 %v15476_v33  ;;  %v25645_v39 = vpop.eup %18453  ;;  %v17947_v10 = vld [vmem:[%s28427_s14 + $0x44c] sm:$0xf]  ;;  %18455 = vrcp.f32 %v25637_v41  ;;  %v14640_v33 = vor.u32 %v17823_v51, %v14639_v0  ;;  %v17909_v0 = vld [vmem:[%s28427_s14 + $0x31c] sm:$0xf]  ;;  %v15021_v51 = vld [vmem:[%s28427_s14 + $0x364] sm:$0xf0]  ;;  %vm11364_vm9 = vweird.f32 %v25637_v41 }
 0x602   :  { %10304 = vmatpush.bf16.msra.mxu2 %v16388_v53  ;;  %10270 = vmatmul.bf16.vlgmr.msrb.gmra.mxu0 %v24215_v8  ;;  %v11075_v27 = vmul.f32 %v25645_v39, %v25567_v31  ;;  %v10019_v53 = vpop.f32.mrf.mxu1  ;;  %v15176_v63 = vor.u32 %v17947_v10, %v15173_v12  ;;  %vm11080_vm4 = vweird.f32 %v25645_v39  ;;  %v11370_v15 = vand.u32 2147483648, %v25637_v41  ;;  %v18298_v12 = vld [vmem:[%s28427_s14 + $0xf40] sm:$0xf0] }
 0x603   :  { %10318 = vmatpush.bf16.msra.mxu0 %v16996_v21  ;;  %10256 = vmatmul.bf16.vlgmr.msrb.gmra.mxu2 %v24207_v35  ;;  %v16160_v21 = vor.u32 %v18203_v16, %v16159_v38  ;;  %v10020_v34 = vadd.f32 %v10019_v53, %v10006_v49  ;;  %vm25740_vm6 = vmor %vm11079_vm5, %vm11080_vm4  ;;  %v11368_v44 = vand.u32 2147483647, %v25637_v41  ;;  %v15855_v53 = vld [vmem:[%s28427_s14 + $0x9a0] sm:$0xf]  ;;  %v16540_v43 = vor.u32 %v18298_v12, %v16539_v13  ;;  %v17833_v13 = vld [vmem:[%s28427_s14 + $0xbc] sm:$0xf] }
 0x604   :  { %v11076_v54 = vsub.f32 1.0, %v11075_v27  ;;  %v17890_v27 = vld [vmem:[%s28427_s14 + $0x284] sm:$0xf]  ;;  %v17985_v12 = vld [vmem:[%s28427_s14 + $0x57c] sm:$0xf] }
 0x605   :  { %10281 = vmatpush.bf16.msra.mxu3 %v14792_v36  ;;  %10295 = vmatpush.bf16.msra.mxu1 %v15400_v55  ;;  %v18080_v36 = vld [vmem:[%s28427_s14 + $0x874] sm:$0xf]  ;;  %v25709_v55 = vld [vmem:[%s28427_s14 + $0xad0] sm:$0xf]  ;;  %vm11369_vm11 = vcmp.eq.f32.partialorder %v11368_v44, 8.507059e+37 }
 0x606   :  { %10305 = vmatpush.bf16.msra.mxu2 %v16312_v23  ;;  %v11077_v37 = vmul.f32 %v25645_v39, %v11076_v54  ;;  %v10007_v23 = vpop.f32.mrf.mxu3  ;;  %v10033_v57 = vpop.f32.mrf.mxu2  ;;  %v15708_v24 = vor.u32 %v18080_v36, %v15705_v22  ;;  %v16008_v20 = vor.u32 %v25716_v62, %v25709_v55  ;;  %v17871_v36 = vld [vmem:[%s28427_s14 + $0x1ec] sm:$0xf]  ;;  %v15556_v22 = vor.u32 %v18042_v28, %v15553_v30  ;;  %v14869_v55 = vld [vmem:[%s28427_s14 + $0x234] sm:$0xf0]  ;;  %v17814_v28 = vld [vmem:[%s28427_s14 + $0x24] sm:$0xf] }
 0x607   :  { %10319 = vmatpush.bf16.msra.mxu0 %v16920_v26  ;;  %v18317_v26 = vld [vmem:[%s28427_s14 + $0xfd8] sm:$0xf0]  ;;  %v25726_v60 = vpop.eup %18455  ;;  %v10034_v45 = vadd.f32 %v10033_v57, %v10020_v34  ;;  %v10008_v16 = vadd.f32 %v10007_v23, %v6721_v46  ;;  %v15024_v46 = vor.u32 %v17909_v0, %v15021_v51  ;;  %v18023_v23 = vld [vmem:[%s28427_s14 + $0x6ac] sm:$0xf]  ;;  %v10049_v34 = vpop.f32.mrf.mxu0  ;;  %v15477_v62 = vld [vmem:[%s28427_s14 + $0x6f4] sm:$0xf0]  ;;  %v14872_v31 = vor.u32 %v17871_v36, %v14869_v55 }
 0x608   :  { %v11078_v50 = vadd.f32 %v25645_v39, %v11077_v37  ;;  %v11360_v18 = vmul.f32 %v25726_v60, %v25637_v41  ;;  %v16616_v38 = vor.u32 %v18317_v26, %v25721_v2  ;;  %vm11365_vm8 = vweird.f32 %v25726_v60  ;;  %v18251_v2 = vld [vmem:[%s28427_s14 + $0xdcc] sm:$0xf]  ;;  %v16389_v26 = vld [vmem:[%s28427_s14 + $0xe14] sm:$0xf0]  ;;  %v14641_v30 = vld [vmem:[%s28427_s14 + $0x6c] sm:$0xf0] }
 0x609   :  { %10282 = vmatpush.bf16.msra.mxu3 %v14716_v7  ;;  %10296 = vmatpush.bf16.msra.mxu1 %v15324_v6  ;;  %v18061_v7 = vld [vmem:[%s28427_s14 + $0x7dc] sm:$0xf]  ;;  %v15629_v6 = vld [vmem:[%s28427_s14 + $0x824] sm:$0xf0]  ;;  %v10048_v42 = vadd.f32 %v10047_v52, %v10034_v45  ;;  %vm25806_vm10 = vmor %vm11364_vm9, %vm11365_vm8  ;;  %v11371_v41 = vor.u32 1.1754944e-38, %v11370_v15 }
 0x60a   :  { %10306 = vmatpush.bf16.msra.mxu2 %v16236_v17  ;;  %v11082_v17 = vsel %vm25740_vm6, %v25645_v39, %v11078_v50  ;;  %v15931_v39 = vld [vmem:[%s28427_s14 + $0xa38] sm:$0xf]  ;;  %v15632_v10 = vor.u32 %v18061_v7, %v15629_v6  ;;  %v18403_v50 = vld [vmem:[%s28427_s14 + $0x128c] sm:$0xf]  ;;  %v18004_v45 = vld [vmem:[%s28427_s14 + $0x614] sm:$0xf]  ;;  %v16392_v7 = vor.u32 %v18251_v2, %v16389_v26  ;;  %v14644_v26 = vor.u32 %v17814_v28, %v14641_v30 }
 0x60b   :  { %10320 = vmatpush.bf16.msra.mxu0 %v16844_v3  ;;  %v11087_v32 = vsel %vm11084_vm7, %v11086_v61, %v11082_v17  ;;  %v11361_v3 = vsub.f32 1.0, %v11360_v18  ;;  %v17040_v49 = vmul.f32 -1.442695, %v10048_v42  ;;  %v15932_v14 = vor.u32 %v18146_v29, %v15931_v39  ;;  %v16997_v52 = vld [vmem:[%s28427_s14 + $0x12d4] sm:$0xf0] }
 0x60c   :  { %11616 = vst [vmem:[%s28430_s16 + $0x10] sm:$0xff] %v11087_v32  ;;  %v15480_v61 = vor.u32 %v18023_v23, %v15477_v62  ;;  %v14793_v18 = vld [vmem:[%s28427_s14 + $0x19c] sm:$0xf0]  ;;  %v17000_v6 = vor.u32 %v18403_v50, %v16997_v52  ;;  %v18384_v32 = vld [vmem:[%s28427_s14 + $0x11f4] sm:$0xf] }
 0x60d   :  { %10283 = vmatpush.bf16.msra.mxu3 %v14640_v33  ;;  %10297 = vmatpush.bf16.msra.mxu1 %v15248_v59  ;;  %v11362_v1 = vmul.f32 %v25726_v60, %v11361_v3  ;;  %v14945_v33 = vld [vmem:[%s28427_s14 + $0x2cc] sm:$0xf0]  ;;  %v10021_v59 = vpop.f32.mrf.mxu1  ;;  %18457 = vpow2.f32 %v17040_v49  ;;  %v15401_v17 = vld [vmem:[%s28427_s14 + $0x65c] sm:$0xf0]  ;;  %v14717_v15 = vld [vmem:[%s28427_s14 + $0x104] sm:$0xf0] }
 0x60e   :  { %10307 = vmatpush.bf16.msra.mxu2 %v16160_v21  ;;  %v10022_v54 = vadd.f32 %v10021_v59, %v10008_v16  ;;  %v18127_v21 = vld [vmem:[%s28427_s14 + $0x9e8] sm:$0xf0]  ;;  %v16921_v3 = vld [vmem:[%s28427_s14 + $0x123c] sm:$0xf0]  ;;  %v15404_v29 = vor.u32 %v18004_v45, %v15401_v17  ;;  %v16237_v49 = vld [vmem:[%s28427_s14 + $0xce4] sm:$0xf0] }
 0x60f   :  { %10321 = vmatpush.bf16.msra.mxu0 %v16768_v58  ;;  %v11363_v25 = vadd.f32 %v25726_v60, %v11362_v1  ;;  %v16463_v58 = vld [vmem:[%s28427_s14 + $0xe60] sm:$0xf]  ;;  %v18213_v1 = vld [vmem:[%s28427_s14 + $0xc9c] sm:$0xf]  ;;  %v16845_v59 = vld [vmem:[%s28427_s14 + $0x11a4] sm:$0xf0] }
 0x610   :  { %10284 = vmatmul.bf16.vlgmr.msra.gmra.mxu3 %v24139_v9  ;;  %10298 = vmatmul.bf16.vlgmr.msra.gmra.mxu1 %v24147_v19  ;;  %v16464_v57 = vor.u32 %v18279_v48, %v16463_v58  ;;  %v25873_v16 = vld [vmem:[%s28429_s15] sm:$0xff]  ;;  %v15249_v58 = vld [vmem:[%s28427_s14 + $0x52c] sm:$0xf0]  ;;  %v18109_v23 = vld [vmem:[%s28427_s14 + $0x958] sm:$0xf0] }
 0x611   :  { %10332 = vmatpush.bf16.msrb.mxu3 %v15176_v63  ;;  %10346 = vmatpush.bf16.msrb.mxu1 %v15784_v40  ;;  %v10035_v63 = vpop.f32.mrf.mxu2  ;;  %v14948_v40 = vor.u32 %v17890_v27, %v14945_v33  ;;  %v11367_v37 = vsel %vm25806_vm10, %v25726_v60, %v11363_v25  ;;  %v6722_v42 = vperm.slane %v25873_v16, 4  ;;  %v15325_v27 = vld [vmem:[%s28427_s14 + $0x5c4] sm:$0xf0]  ;;  %v18365_v33 = vld [vmem:[%s28427_s14 + $0x115c] sm:$0xf] }
 0x612   :  { %10308 = vmatpush.bf16.msra.mxu2 %v16084_v5  ;;  %v10036_v4 = vadd.f32 %v10035_v63, %v10022_v54  ;;  %v11372_v5 = vsel %vm11369_vm11, %v11371_v41, %v11367_v37  ;;  %v17966_v25 = vld [vmem:[%s28427_s14 + $0x4e4] sm:$0xf]  ;;  %v16161_v41 = vld [vmem:[%s28427_s14 + $0xc4c] sm:$0xf0]  ;;  %v16240_v63 = vor.u32 %v18213_v1, %v16237_v49  ;;  %v18327_v50 = vld [vmem:[%s28427_s14 + $0x102c] sm:$0xf] }
 0x613   :  { %10322 = vmatpush.bf16.msra.mxu0 %v16692_v56  ;;  %11635 = vst [vmem:[%s28430_s16 + $0xa8] sm:$0xff] %v11372_v5  ;;  %v15856_v56 = vor.u32 %v18127_v21, %v15855_v53  ;;  %v18458_v0 = vpop.eup %18457  ;;  %v10061_v44 = vpop.f32.mrf.mxu3  ;;  %v14720_v53 = vor.u32 %v17833_v13, %v14717_v15  ;;  %v15328_v21 = vor.u32 %v17985_v12, %v15325_v27  ;;  %v18346_v48 = vld [vmem:[%s28427_s14 + $0x10c4] sm:$0xf]  ;;  %v16769_v36 = vld [vmem:[%s28427_s14 + $0x110c] sm:$0xf0] }
 0x614   :  { %v10050_v60 = vadd.f32 %v10049_v34, %v10036_v4  ;;  %v15179_v4 = vld [vmem:[%s28427_s14 + $0x450] sm:$0xf]  ;;  %v25948_v5 = vld [vmem:[%s28427_s14 + $0xb6c] sm:$0xf]  ;;  %v25953_v34 = vld [vmem:[%s28427_s14 + $0xbb4] sm:$0xf0]  ;;  %v10062_v2 = vadd.f32 %v10061_v44, %v6722_v42 }
 0x615   :  { %10333 = vmatpush.bf16.msrb.mxu3 %v15100_v11  ;;  %10347 = vmatpush.bf16.msrb.mxu1 %v15708_v24  ;;  %v17852_v11 = vld [vmem:[%s28427_s14 + $0x154] sm:$0xf]  ;;  %v25852_v24 = vadd.f32 1.0, %v18458_v0  ;;  %v15787_v55 = vld [vmem:[%s28427_s14 + $0x910] sm:$0xf]  ;;  %v16772_v0 = vor.u32 %v18346_v48, %v16769_v36 }
 0x616   :  { %10309 = vmatpush.bf16.msra.mxu2 %v16008_v20  ;;  %v17059_v51 = vmul.f32 -1.442695, %v10050_v60  ;;  %v18232_v20 = vld [vmem:[%s28427_s14 + $0xd34] sm:$0xf]  ;;  %v14796_v39 = vor.u32 %v17852_v11, %v14793_v18  ;;  %v15252_v60 = vor.u32 %v17966_v25, %v15249_v58  ;;  %v16693_v52 = vld [vmem:[%s28427_s14 + $0x1074] sm:$0xf0]  ;;  %v16164_v11 = vor.u32 %v18194_v47, %v16161_v41 }
 0x617   :  { %10323 = vmatpush.bf16.msra.mxu0 %v16616_v38  ;;  %v16313_v38 = vld [vmem:[%s28427_s14 + $0xd7c] sm:$0xf0]  ;;  %v11098_v45 = vand.u32 2147483647, %v25852_v24  ;;  %v18090_v17 = vld [vmem:[%s28427_s14 + $0x8c0] sm:$0xf0]  ;;  %vm11094_vm13 = vweird.f32 %v25852_v24  ;;  %v16696_v27 = vor.u32 %v18327_v50, %v16693_v52 }
 0x618   :  { %18459 = vpow2.f32 %v17059_v51  ;;  %v18308_v13 = vld [vmem:[%s28427_s14 + $0xf94] sm:$0xf]  ;;  %v16617_v15 = vld [vmem:[%s28427_s14 + $0xfdc] sm:$0xf0]  ;;  %v18289_v48 = vld [vmem:[%s28427_s14 + $0xefc] sm:$0xf] }
 0x619   :  { %10334 = vmatpush.bf16.msrb.mxu3 %v15024_v46  ;;  %10348 = vmatpush.bf16.msrb.mxu1 %v15632_v10  ;;  %18461 = vrcp.f32 %v25852_v24  ;;  %v16316_v46 = vor.u32 %v18232_v20, %v16313_v38  ;;  %v16924_v10 = vor.u32 %v18384_v32, %v16921_v3  ;;  %v25982_v20 = vld [vmem:[%s28427_s14 + $0xad4] sm:$0xf]  ;;  %v16088_v3 = vor.u32 %v25948_v5, %v25953_v34 }
 0x61a   :  { %10310 = vmatpush.bf16.msra.mxu2 %v15932_v14  ;;  %vm11099_vm15 = vcmp.eq.f32.partialorder %v11098_v45, 8.507059e+37  ;;  %v16465_v45 = vld [vmem:[%s28427_s14 + $0xeac] sm:$0xf0] }
 0x61b   :  { %10324 = vmatpush.bf16.msra.mxu0 %v16540_v43  ;;  %v10063_v32 = vpop.f32.mrf.mxu3 }
 0x61c   :  { %v10064_v47 = vadd.f32 %v10063_v32, %v6722_v42  ;;  %v16620_v42 = vor.u32 %v18308_v13, %v16617_v15  ;;  %v15483_v32 = vld [vmem:[%s28427_s14 + $0x6b0] sm:$0xf]  ;;  %v18261_v15 = vld [vmem:[%s28427_s14 + $0xe18] sm:$0xf0] }
 0x61d   :  { %10335 = vmatpush.bf16.msrb.mxu3 %v14948_v40  ;;  %10349 = vmatpush.bf16.msrb.mxu1 %v15556_v22  ;;  %v16848_v40 = vor.u32 %v18365_v33, %v16845_v59  ;;  %v17957_v22 = vld [vmem:[%s28427_s14 + $0x498] sm:$0xf0]  ;;  %v15027_v33 = vld [vmem:[%s28427_s14 + $0x320] sm:$0xf]  ;;  %v17919_v59 = vld [vmem:[%s28427_s14 + $0x368] sm:$0xf0] }
 0x61e   :  { %10311 = vmatpush.bf16.msra.mxu2 %v15856_v56  ;;  %v18460_v54 = vpop.eup %18459  ;;  %v11100_v56 = vand.u32 2147483648, %v25852_v24  ;;  %v15180_v51 = vor.u32 %v17957_v22, %v15179_v4  ;;  %v16541_v22 = vld [vmem:[%s28427_s14 + $0xf44] sm:$0xf0]  ;;  %v16395_v13 = vld [vmem:[%s28427_s14 + $0xdd0] sm:$0xf] }
 0x61f   :  { %10325 = vmatpush.bf16.msra.mxu0 %v16464_v57  ;;  %v25920_v14 = vpop.eup %18461  ;;  %v25922_v43 = vadd.f32 1.0, %v18460_v54  ;;  %v10075_v57 = vpop.f32.mrf.mxu1  ;;  %v15635_v54 = vld [vmem:[%s28427_s14 + $0x7e0] sm:$0xf] }
 0x620   :  { %v11090_v37 = vmul.f32 %v25920_v14, %v25852_v24  ;;  %vm11095_vm12 = vweird.f32 %v25920_v14  ;;  %v10103_v12 = vpop.f32.mrf.mxu0 }
 0x621   :  { %10336 = vmatpush.bf16.msrb.mxu3 %v14872_v31  ;;  %10350 = vmatpush.bf16.msrb.mxu1 %v15480_v61  ;;  %18463 = vrcp.f32 %v25922_v43  ;;  %v15103_v31 = vld [vmem:[%s28427_s14 + $0x3b8] sm:$0xf]  ;;  %v17938_v61 = vld [vmem:[%s28427_s14 + $0x400] sm:$0xf0]  ;;  %vm26001_vm14 = vmor %vm11094_vm13, %vm11095_vm12  ;;  %v11385_v36 = vand.u32 2147483648, %v25922_v43  ;;  %vm11379_vm2 = vweird.f32 %v25922_v43 }
 0x622   :  { %10360 = vmatpush.bf16.msrb.mxu2 %v16392_v7  ;;  %10326 = vmatmul.bf16.vlgmr.msra.gmra.mxu0 %v24215_v8  ;;  %v11091_v62 = vsub.f32 1.0, %v11090_v37  ;;  %v15788_v7 = vor.u32 %v18109_v23, %v15787_v55  ;;  %v15104_v44 = vor.u32 %v17938_v61, %v15103_v31  ;;  %v15028_v37 = vor.u32 %v17919_v59, %v15027_v33  ;;  %v14951_v55 = vld [vmem:[%s28427_s14 + $0x288] sm:$0xf] }
 0x623   :  { %10374 = vmatpush.bf16.msrb.mxu0 %v17000_v6  ;;  %10312 = vmatmul.bf16.vlgmr.msra.gmra.mxu2 %v24207_v35  ;;  %v15711_v6 = vld [vmem:[%s28427_s14 + $0x878] sm:$0xf]  ;;  %v11383_v5 = vand.u32 2147483647, %v25922_v43  ;;  %v16544_v31 = vor.u32 %v18289_v48, %v16541_v22  ;;  %v15331_v22 = vld [vmem:[%s28427_s14 + $0x580] sm:$0xf] }
 0x624   :  { %v11092_v18 = vmul.f32 %v25920_v14, %v11091_v62  ;;  %v15712_v49 = vor.u32 %v18090_v17, %v15711_v6  ;;  %v17900_v62 = vld [vmem:[%s28427_s14 + $0x2d0] sm:$0xf0] }
 0x625   :  { %10337 = vmatpush.bf16.msrb.mxu3 %v14796_v39  ;;  %10351 = vmatpush.bf16.msrb.mxu1 %v15404_v29  ;;  %v10076_v39 = vadd.f32 %v10075_v57, %v10062_v2  ;;  %v16009_v29 = vld [vmem:[%s28427_s14 + $0xb1c] sm:$0xf0]  ;;  %v15857_v57 = vld [vmem:[%s28427_s14 + $0x9ec] sm:$0xf0]  ;;  %vm11384_vm4 = vcmp.eq.f32.partialorder %v11383_v5, 8.507059e+37 }
 0x626   :  { %10361 = vmatpush.bf16.msrb.mxu2 %v16316_v46  ;;  %v11093_v38 = vadd.f32 %v25920_v14, %v11092_v18  ;;  %v10089_v1 = vpop.f32.mrf.mxu2  ;;  %v14952_v18 = vor.u32 %v17900_v62, %v14951_v55  ;;  %v17003_v46 = vld [vmem:[%s28427_s14 + $0x1290] sm:$0xf]  ;;  %v17995_v55 = vld [vmem:[%s28427_s14 + $0x5c8] sm:$0xf0]  ;;  %v16851_v62 = vld [vmem:[%s28427_s14 + $0x1160] sm:$0xf] }
 0x627   :  { %10375 = vmatpush.bf16.msrb.mxu0 %v16924_v10  ;;  %v25997_v24 = vpop.eup %18463  ;;  %v11101_v10 = vor.u32 1.1754944e-38, %v11100_v56  ;;  %v10090_v25 = vadd.f32 %v10089_v1, %v10076_v39  ;;  %v10077_v2 = vpop.f32.mrf.mxu1  ;;  %v18118_v56 = vld [vmem:[%s28427_s14 + $0x9a4] sm:$0xf]  ;;  %v14799_v1 = vld [vmem:[%s28427_s14 + $0x158] sm:$0xf] }
 0x628   :  { %v11097_v28 = vsel %vm26001_vm14, %v25920_v14, %v11093_v38  ;;  %v11375_v30 = vmul.f32 %v25997_v24, %v25922_v43  ;;  %v16012_v14 = vor.u32 %v25982_v20, %v16009_v29  ;;  %vm11380_vm1 = vweird.f32 %v25997_v24  ;;  %v17881_v38 = vld [vmem:[%s28427_s14 + $0x238] sm:$0xf0]  ;;  %v10105_v39 = vpop.f32.mrf.mxu0 }
 0x629   :  { %10338 = vmatpush.bf16.msrb.mxu3 %v14720_v53  ;;  %10352 = vmatpush.bf16.msrb.mxu1 %v15328_v21  ;;  %v18071_v53 = vld [vmem:[%s28427_s14 + $0x828] sm:$0xf0]  ;;  %v11102_v21 = vsel %vm11099_vm15, %v11101_v10, %v11097_v28  ;;  %v10104_v41 = vadd.f32 %v10103_v12, %v10090_v25  ;;  %v10078_v52 = vadd.f32 %v10077_v2, %v10064_v47  ;;  %vm26071_vm3 = vmor %vm11379_vm2, %vm11380_vm1  ;;  %v11386_v43 = vor.u32 1.1754944e-38, %v11385_v36  ;;  %v18033_v29 = vld [vmem:[%s28427_s14 + $0x6f8] sm:$0xf0] }
 0x62a   :  { %10362 = vmatpush.bf16.msrb.mxu2 %v16240_v63  ;;  %11617 = vst [vmem:[%s28430_s16 + $0x18] sm:$0xff] %v11102_v21  ;;  %v11376_v58 = vsub.f32 1.0, %v11375_v30  ;;  %v18137_v63 = vld [vmem:[%s28427_s14 + $0xa3c] sm:$0xf]  ;;  %v15636_v4 = vor.u32 %v18071_v53, %v15635_v54  ;;  %v15860_v12 = vor.u32 %v18118_v56, %v15857_v57  ;;  %v15484_v59 = vor.u32 %v18033_v29, %v15483_v32  ;;  %v17862_v28 = vld [vmem:[%s28427_s14 + $0x1a0] sm:$0xf0] }
 0x62b   :  { %10376 = vmatpush.bf16.msrb.mxu0 %v16848_v40  ;;  %v15933_v40 = vld [vmem:[%s28427_s14 + $0xa84] sm:$0xf0]  ;;  %v17041_v34 = vmul.f32 -1.442695, %v10104_v41  ;;  %v18413_v10 = vld [vmem:[%s28427_s14 + $0x12d8] sm:$0xf0]  ;;  %v16396_v54 = vor.u32 %v18261_v15, %v16395_v13  ;;  %v15332_v57 = vor.u32 %v17995_v55, %v15331_v22 }
 0x62c   :  { %v11377_v23 = vmul.f32 %v25997_v24, %v11376_v58  ;;  %v15407_v30 = vld [vmem:[%s28427_s14 + $0x618] sm:$0xf]  ;;  %v17004_v53 = vor.u32 %v18413_v10, %v17003_v46  ;;  %v18014_v21 = vld [vmem:[%s28427_s14 + $0x660] sm:$0xf0]  ;;  %v14723_v36 = vld [vmem:[%s28427_s14 + $0xc0] sm:$0xf] }
 0x62d   :  { %10339 = vmatpush.bf16.msrb.mxu3 %v14644_v26  ;;  %10353 = vmatpush.bf16.msrb.mxu1 %v15252_v60  ;;  %v15559_v26 = vld [vmem:[%s28427_s14 + $0x748] sm:$0xf]  ;;  %v18052_v60 = vld [vmem:[%s28427_s14 + $0x790] sm:$0xf0]  ;;  %18465 = vpow2.f32 %v17041_v34  ;;  %v16319_v58 = vld [vmem:[%s28427_s14 + $0xd38] sm:$0xf]  ;;  %v15408_v48 = vor.u32 %v18014_v21, %v15407_v30 }
 0x62e   :  { %10363 = vmatpush.bf16.msrb.mxu2 %v16164_v11  ;;  %v11378_v50 = vadd.f32 %v25997_v24, %v11377_v23  ;;  %v18270_v11 = vld [vmem:[%s28427_s14 + $0xe64] sm:$0xf]  ;;  %v10091_v61 = vpop.f32.mrf.mxu2  ;;  %v15560_v20 = vor.u32 %v18052_v60, %v15559_v26  ;;  %v16927_v41 = vld [vmem:[%s28427_s14 + $0x11f8] sm:$0xf]  ;;  %v16243_v23 = vld [vmem:[%s28427_s14 + $0xca0] sm:$0xf] }
 0x62f   :  { %10377 = vmatpush.bf16.msrb.mxu0 %v16772_v0  ;;  %v10092_v17 = vadd.f32 %v10091_v61, %v10078_v52  ;;  %v18242_v47 = vld [vmem:[%s28427_s14 + $0xd80] sm:$0xf0]  ;;  %v18223_v34 = vld [vmem:[%s28427_s14 + $0xce8] sm:$0xf0]  ;;  %v14647_v26 = vld [vmem:[%s28427_s14 + $0x28] sm:$0xf] }
 0x630   :  { %10340 = vmatmul.bf16.vlgmr.msrb.gmra.mxu3 %v24139_v9  ;;  %10354 = vmatmul.bf16.vlgmr.msrb.gmra.mxu1 %v24147_v19  ;;  %v11382_v6 = vsel %vm26071_vm3, %v25997_v24, %v11378_v50  ;;  %v18375_v2 = vld [vmem:[%s28427_s14 + $0x11a8] sm:$0xf0]  ;;  %v17824_v60 = vld [vmem:[%s28427_s14 + $0x70] sm:$0xf0]  ;;  %v15255_v50 = vld [vmem:[%s28427_s14 + $0x4e8] sm:$0xf]  ;;  %v16244_v61 = vor.u32 %v18223_v34, %v16243_v23 }
 0x631   :  { %10388 = vmatpush.bf16.msra.mxu3 %v15180_v51  ;;  %10402 = vmatpush.bf16.msra.mxu1 %v15788_v7  ;;  %v15936_v51 = vor.u32 %v18137_v63, %v15933_v40  ;;  %v14875_v7 = vld [vmem:[%s28427_s14 + $0x1f0] sm:$0xf]  ;;  %v10106_v24 = vadd.f32 %v10105_v39, %v10092_v17  ;;  %v6723_v63 = vperm.slane %v25873_v16, 5  ;;  %v14800_v40 = vor.u32 %v17862_v28, %v14799_v1  ;;  %v16167_v0 = vld [vmem:[%s28427_s14 + $0xc08] sm:$0xf] }
 0x632   :  { %10364 = vmatpush.bf16.msrb.mxu2 %v16088_v3  ;;  %v11387_v3 = vsel %vm11384_vm4, %v11386_v43, %v11382_v6  ;;  %v14876_v33 = vor.u32 %v17881_v38, %v14875_v7  ;;  %v18204_v43 = vld [vmem:[%s28427_s14 + $0xc50] sm:$0xf0]  ;;  %v15789_v32 = vld [vmem:[%s28427_s14 + $0x95c] sm:$0xf0]  ;;  %v26213_v39 = vld [vmem:[%s28427_s14 + $0xbb8] sm:$0xf0]  ;;  %v14648_v15 = vor.u32 %v17824_v60, %v14647_v26 }
 0x633   :  { %10378 = vmatpush.bf16.msrb.mxu0 %v16696_v27  ;;  %11636 = vst [vmem:[%s28430_s16 + $0xb0] sm:$0xff] %v11387_v3  ;;  %v16468_v27 = vor.u32 %v18270_v11, %v16465_v45  ;;  %v10117_v5 = vpop.f32.mrf.mxu3  ;;  %v17976_v11 = vld [vmem:[%s28427_s14 + $0x530] sm:$0xf0]  ;;  %v16775_v45 = vld [vmem:[%s28427_s14 + $0x10c8] sm:$0xf]  ;;  %v16168_v1 = vor.u32 %v18204_v43, %v16167_v0 }
 0x634   :  { %v18356_v7 = vld [vmem:[%s28427_s14 + $0x1110] sm:$0xf0]  ;;  %v26208_v3 = vld [vmem:[%s28427_s14 + $0xb70] sm:$0xf]  ;;  %v10118_v13 = vadd.f32 %v10117_v5, %v6723_v63  ;;  %v18337_v10 = vld [vmem:[%s28427_s14 + $0x1078] sm:$0xf0] }
 0x635   :  { %10389 = vmatpush.bf16.msra.mxu3 %v15104_v44  ;;  %10403 = vmatpush.bf16.msra.mxu1 %v15712_v49  ;;  %v18466_v44 = vpop.eup %18465  ;;  %v17060_v49 = vmul.f32 -1.442695, %v10106_v24  ;;  %v17948_v17 = vld [vmem:[%s28427_s14 + $0x454] sm:$0xf]  ;;  %v15256_v24 = vor.u32 %v17976_v11, %v15255_v50  ;;  %v16699_v46 = vld [vmem:[%s28427_s14 + $0x1030] sm:$0xf] }
 0x636   :  { %10365 = vmatpush.bf16.msrb.mxu2 %v16012_v14  ;;  %v26117_v25 = vadd.f32 1.0, %v18466_v44  ;;  %v18394_v14 = vld [vmem:[%s28427_s14 + $0x1240] sm:$0xf0]  ;;  %v18100_v38 = vld [vmem:[%s28427_s14 + $0x914] sm:$0xf]  ;;  %v16776_v44 = vor.u32 %v18356_v7, %v16775_v45  ;;  %v16700_v55 = vor.u32 %v18337_v10, %v16699_v46 }
 0x637   :  { %10379 = vmatpush.bf16.msrb.mxu0 %v16620_v42  ;;  %18467 = vpow2.f32 %v17060_v49  ;;  %v17843_v42 = vld [vmem:[%s28427_s14 + $0x108] sm:$0xf0]  ;;  %v15713_v21 = vld [vmem:[%s28427_s14 + $0x8c4] sm:$0xf0]  ;;  %v16547_v45 = vld [vmem:[%s28427_s14 + $0xf00] sm:$0xf] }
 0x638   :  { %18469 = vrcp.f32 %v26117_v25  ;;  %v14724_v56 = vor.u32 %v17843_v42, %v14723_v36  ;;  %v11113_v30 = vand.u32 2147483647, %v26117_v25  ;;  %vm11109_vm6 = vweird.f32 %v26117_v25  ;;  %v16623_v36 = vld [vmem:[%s28427_s14 + $0xf98] sm:$0xf]  ;;  %v18318_v42 = vld [vmem:[%s28427_s14 + $0xfe0] sm:$0xf0] }
 0x639   :  { %10390 = vmatpush.bf16.msra.mxu3 %v15028_v37  ;;  %10404 = vmatpush.bf16.msra.mxu1 %v15636_v4  ;;  %v16320_v37 = vor.u32 %v18242_v47, %v16319_v58  ;;  %v16928_v4 = vor.u32 %v18394_v14, %v16927_v41  ;;  %v26242_v58 = vld [vmem:[%s28427_s14 + $0xad8] sm:$0xf]  ;;  %v16092_v14 = vor.u32 %v26213_v39, %v26208_v3 }
 0x63a   :  { %10366 = vmatpush.bf16.msrb.mxu2 %v15936_v51  ;;  %vm11114_vm8 = vcmp.eq.f32.partialorder %v11113_v30, 8.507059e+37  ;;  %v18280_v30 = vld [vmem:[%s28427_s14 + $0xeb0] sm:$0xf0] }
 0x63b   :  { %10380 = vmatpush.bf16.msrb.mxu0 %v16544_v31  ;;  %v10119_v41 = vpop.f32.mrf.mxu3 }
 0x63c   :  { %v10120_v0 = vadd.f32 %v10119_v41, %v6723_v63  ;;  %v16624_v63 = vor.u32 %v18318_v42, %v16623_v36  ;;  %v18024_v41 = vld [vmem:[%s28427_s14 + $0x6b4] sm:$0xf]  ;;  %v16397_v42 = vld [vmem:[%s28427_s14 + $0xe1c] sm:$0xf0] }
 0x63d   :  { %10391 = vmatpush.bf16.msra.mxu3 %v14952_v18  ;;  %10405 = vmatpush.bf16.msra.mxu1 %v15560_v20  ;;  %v18468_v52 = vpop.eup %18467  ;;  %v16852_v18 = vor.u32 %v18375_v2, %v16851_v62  ;;  %v15181_v20 = vld [vmem:[%s28427_s14 + $0x49c] sm:$0xf0]  ;;  %v17910_v62 = vld [vmem:[%s28427_s14 + $0x324] sm:$0xf]  ;;  %v15029_v2 = vld [vmem:[%s28427_s14 + $0x36c] sm:$0xf0] }
 0x63e   :  { %10367 = vmatpush.bf16.msrb.mxu2 %v15860_v12  ;;  %v26180_v51 = vpop.eup %18469  ;;  %v26182_v31 = vadd.f32 1.0, %v18468_v52  ;;  %v11115_v12 = vand.u32 2147483648, %v26117_v25  ;;  %v15184_v49 = vor.u32 %v17948_v17, %v15181_v20  ;;  %v18062_v52 = vld [vmem:[%s28427_s14 + $0x7e4] sm:$0xf]  ;;  %v18299_v20 = vld [vmem:[%s28427_s14 + $0xf48] sm:$0xf0] }
 0x63f   :  { %10381 = vmatpush.bf16.msrb.mxu0 %v16468_v27  ;;  %v11105_v6 = vmul.f32 %v26180_v51, %v26117_v25  ;;  %v10131_v27 = vpop.f32.mrf.mxu1  ;;  %vm11110_vm5 = vweird.f32 %v26180_v51  ;;  %v10159_v22 = vpop.f32.mrf.mxu0  ;;  %v18252_v36 = vld [vmem:[%s28427_s14 + $0xdd4] sm:$0xf] }
 0x640   :  { %18471 = vrcp.f32 %v26182_v31  ;;  %vm26261_vm7 = vmor %vm11109_vm6, %vm11110_vm5  ;;  %v11400_v7 = vand.u32 2147483648, %v26182_v31  ;;  %v11398_v3 = vand.u32 2147483647, %v26182_v31  ;;  %vm11394_vm10 = vweird.f32 %v26182_v31 }
 0x641   :  { %10392 = vmatpush.bf16.msra.mxu3 %v14876_v33  ;;  %10406 = vmatpush.bf16.msra.mxu1 %v15484_v59  ;;  %v11106_v29 = vsub.f32 1.0, %v11105_v6  ;;  %v17929_v33 = vld [vmem:[%s28427_s14 + $0x3bc] sm:$0xf]  ;;  %v15105_v59 = vld [vmem:[%s28427_s14 + $0x404] sm:$0xf0]  ;;  %v15032_v6 = vor.u32 %v17910_v62, %v15029_v2 }
 0x642   :  { %10416 = vmatpush.bf16.msra.mxu2 %v16396_v54  ;;  %10382 = vmatmul.bf16.vlgmr.msrb.gmra.mxu0 %v24215_v8  ;;  %v15792_v54 = vor.u32 %v18100_v38, %v15789_v32  ;;  %v15108_v5 = vor.u32 %v17929_v33, %v15105_v59  ;;  %v17891_v38 = vld [vmem:[%s28427_s14 + $0x28c] sm:$0xf]  ;;  %v16548_v33 = vor.u32 %v18299_v20, %v16547_v45  ;;  %vm11399_vm12 = vcmp.eq.f32.partialorder %v11398_v3, 8.507059e+37  ;;  %v17986_v20 = vld [vmem:[%s28427_s14 + $0x584] sm:$0xf] }
 0x643   :  { %10430 = vmatpush.bf16.msra.mxu0 %v17004_v53  ;;  %10368 = vmatmul.bf16.vlgmr.msrb.gmra.mxu2 %v24207_v35  ;;  %v11107_v28 = vmul.f32 %v26180_v51, %v11106_v29  ;;  %v18081_v53 = vld [vmem:[%s28427_s14 + $0x87c] sm:$0xf]  ;;  %v14953_v29 = vld [vmem:[%s28427_s14 + $0x2d4] sm:$0xf0] }
 0x644   :  { %v15716_v34 = vor.u32 %v18081_v53, %v15713_v21 }
 0x645   :  { %10393 = vmatpush.bf16.msra.mxu3 %v14800_v40  ;;  %10407 = vmatpush.bf16.msra.mxu1 %v15408_v48  ;;  %v11108_v47 = vadd.f32 %v26180_v51, %v11107_v28  ;;  %v10132_v40 = vadd.f32 %v10131_v27, %v10118_v13  ;;  %v18166_v48 = vld [vmem:[%s28427_s14 + $0xb20] sm:$0xf0]  ;;  %v18128_v27 = vld [vmem:[%s28427_s14 + $0x9f0] sm:$0xf0]  ;;  %v14956_v28 = vor.u32 %v17891_v38, %v14953_v29  ;;  %v15333_v38 = vld [vmem:[%s28427_s14 + $0x5cc] sm:$0xf0] }
 0x646   :  { %10417 = vmatpush.bf16.msra.mxu2 %v16320_v37  ;;  %v26257_v25 = vpop.eup %18471  ;;  %v10145_v23 = vpop.f32.mrf.mxu2  ;;  %v18404_v37 = vld [vmem:[%s28427_s14 + $0x1294] sm:$0xf]  ;;  %v18366_v29 = vld [vmem:[%s28427_s14 + $0x1164] sm:$0xf] }
 0x647   :  { %10431 = vmatpush.bf16.msra.mxu0 %v16928_v4  ;;  %v11116_v4 = vor.u32 1.1754944e-38, %v11115_v12  ;;  %v11112_v26 = vsel %vm26261_vm7, %v26180_v51, %v11108_v47  ;;  %v11390_v60 = vmul.f32 %v26257_v25, %v26182_v31  ;;  %v10146_v50 = vadd.f32 %v10145_v23, %v10132_v40  ;;  %v10133_v13 = vpop.f32.mrf.mxu1  ;;  %v15863_v12 = vld [vmem:[%s28427_s14 + $0x9a8] sm:$0xf]  ;;  %v14877_v47 = vld [vmem:[%s28427_s14 + $0x23c] sm:$0xf0]  ;;  %v10161_v40 = vpop.f32.mrf.mxu0 }
 0x648   :  { %v16016_v51 = vor.u32 %v18166_v48, %v26242_v58  ;;  %vm11395_vm9 = vweird.f32 %v26257_v25  ;;  %v10134_v10 = vadd.f32 %v10133_v13, %v10120_v0  ;;  %v11401_v31 = vor.u32 1.1754944e-38, %v11400_v7  ;;  %v15485_v48 = vld [vmem:[%s28427_s14 + $0x6fc] sm:$0xf0]  ;;  %v17853_v23 = vld [vmem:[%s28427_s14 + $0x15c] sm:$0xf] }
 0x649   :  { %10394 = vmatpush.bf16.msra.mxu3 %v14724_v56  ;;  %10408 = vmatpush.bf16.msra.mxu1 %v15332_v57  ;;  %v15637_v56 = vld [vmem:[%s28427_s14 + $0x82c] sm:$0xf0]  ;;  %v11117_v57 = vsel %vm11114_vm8, %v11116_v4, %v11112_v26  ;;  %v11391_v11 = vsub.f32 1.0, %v11390_v60  ;;  %v10160_v43 = vadd.f32 %v10159_v22, %v10146_v50  ;;  %vm26331_vm11 = vmor %vm11394_vm10, %vm11395_vm9  ;;  %v17005_v4 = vld [vmem:[%s28427_s14 + $0x12dc] sm:$0xf0]  ;;  %v15864_v22 = vor.u32 %v18128_v27, %v15863_v12 }
 0x64a   :  { %10418 = vmatpush.bf16.msra.mxu2 %v16244_v61  ;;  %11618 = vst [vmem:[%s28430_s16 + $0x20] sm:$0xff] %v11117_v57  ;;  %v15939_v61 = vld [vmem:[%s28427_s14 + $0xa40] sm:$0xf]  ;;  %v15640_v17 = vor.u32 %v18062_v52, %v15637_v56  ;;  %v15488_v2 = vor.u32 %v18024_v41, %v15485_v48  ;;  %v14801_v26 = vld [vmem:[%s28427_s14 + $0x1a4] sm:$0xf0]  ;;  %v16400_v52 = vor.u32 %v18252_v36, %v16397_v42 }
 0x64b   :  { %10432 = vmatpush.bf16.msra.mxu0 %v16852_v18  ;;  %v18147_v18 = vld [vmem:[%s28427_s14 + $0xa88] sm:$0xf0]  ;;  %v11392_v32 = vmul.f32 %v26257_v25, %v11391_v11  ;;  %v17042_v39 = vmul.f32 -1.442695, %v10160_v43  ;;  %v18005_v60 = vld [vmem:[%s28427_s14 + $0x61c] sm:$0xf]  ;;  %v17008_v56 = vor.u32 %v18404_v37, %v17005_v4  ;;  %v15336_v27 = vor.u32 %v17986_v20, %v15333_v38 }
 0x64c   :  { %v15409_v57 = vld [vmem:[%s28427_s14 + $0x664] sm:$0xf0]  ;;  %v18233_v11 = vld [vmem:[%s28427_s14 + $0xd3c] sm:$0xf]  ;;  %v17834_v7 = vld [vmem:[%s28427_s14 + $0xc4] sm:$0xf] }
 0x64d   :  { %10395 = vmatpush.bf16.msra.mxu3 %v14648_v15  ;;  %10409 = vmatpush.bf16.msra.mxu1 %v15256_v24  ;;  %v18043_v15 = vld [vmem:[%s28427_s14 + $0x74c] sm:$0xf]  ;;  %v15561_v24 = vld [vmem:[%s28427_s14 + $0x794] sm:$0xf0]  ;;  %v11393_v46 = vadd.f32 %v26257_v25, %v11392_v32  ;;  %18473 = vpow2.f32 %v17042_v39  ;;  %v16321_v0 = vld [vmem:[%s28427_s14 + $0xd84] sm:$0xf0]  ;;  %v15412_v45 = vor.u32 %v18005_v60, %v15409_v57 }
 0x64e   :  { %10419 = vmatpush.bf16.msra.mxu2 %v16168_v1  ;;  %v16471_v1 = vld [vmem:[%s28427_s14 + $0xe68] sm:$0xf]  ;;  %v10147_v59 = vpop.f32.mrf.mxu2  ;;  %v15564_v58 = vor.u32 %v18043_v15, %v15561_v24  ;;  %v18385_v43 = vld [vmem:[%s28427_s14 + $0x11fc] sm:$0xf]  ;;  %v18214_v32 = vld [vmem:[%s28427_s14 + $0xca4] sm:$0xf] }
 0x64f   :  { %10433 = vmatpush.bf16.msra.mxu0 %v16776_v44  ;;  %v11397_v53 = vsel %vm26331_vm11, %v26257_v25, %v11393_v46  ;;  %v10148_v21 = vadd.f32 %v10147_v59, %v10134_v10  ;;  %v16245_v39 = vld [vmem:[%s28427_s14 + $0xcec] sm:$0xf0]  ;;  %v17815_v15 = vld [vmem:[%s28427_s14 + $0x2c] sm:$0xf]  ;;  %v14649_v24 = vld [vmem:[%s28427_s14 + $0x74] sm:$0xf0] }
 0x650   :  { %10396 = vmatmul.bf16.vlgmr.msra.gmra.mxu3 %v24139_v9  ;;  %10410 = vmatmul.bf16.vlgmr.msra.gmra.mxu1 %v24147_v19  ;;  %v16853_v13 = vld [vmem:[%s28427_s14 + $0x11ac] sm:$0xf0]  ;;  %v17967_v46 = vld [vmem:[%s28427_s14 + $0x4ec] sm:$0xf]  ;;  %v16248_v59 = vor.u32 %v18214_v32, %v16245_v39  ;;  %v18110_v41 = vld [vmem:[%s28427_s14 + $0x960] sm:$0xf0]  ;;  %v14652_v42 = vor.u32 %v17815_v15, %v14649_v24 }
 0x651   :  { %10444 = vmatpush.bf16.msrb.mxu3 %v15184_v49  ;;  %10458 = vmatpush.bf16.msrb.mxu1 %v15792_v54  ;;  %v15940_v49 = vor.u32 %v18147_v18, %v15939_v61  ;;  %v17872_v54 = vld [vmem:[%s28427_s14 + $0x1f4] sm:$0xf]  ;;  %v10162_v25 = vadd.f32 %v10161_v40, %v10148_v21  ;;  %v6724_v61 = vperm.slane %v25873_v16, 6  ;;  %v14804_v18 = vor.u32 %v17853_v23, %v14801_v26  ;;  %v18195_v44 = vld [vmem:[%s28427_s14 + $0xc0c] sm:$0xf] }
 0x652   :  { %10420 = vmatpush.bf16.msra.mxu2 %v16092_v14  ;;  %v11402_v14 = vsel %vm11399_vm12, %v11401_v31, %v11397_v53  ;;  %v14880_v62 = vor.u32 %v17872_v54, %v14877_v47  ;;  %v16169_v31 = vld [vmem:[%s28427_s14 + $0xc54] sm:$0xf0]  ;;  %v26473_v40 = vld [vmem:[%s28427_s14 + $0xbbc] sm:$0xf0]  ;;  %v18328_v37 = vld [vmem:[%s28427_s14 + $0x1034] sm:$0xf] }
 0x653   :  { %10434 = vmatpush.bf16.msra.mxu0 %v16700_v55  ;;  %11637 = vst [vmem:[%s28430_s16 + $0xb8] sm:$0xff] %v11402_v14  ;;  %v16472_v55 = vor.u32 %v18280_v30, %v16471_v1  ;;  %v10173_v3 = vpop.f32.mrf.mxu3  ;;  %v15257_v1 = vld [vmem:[%s28427_s14 + $0x534] sm:$0xf0]  ;;  %v18347_v30 = vld [vmem:[%s28427_s14 + $0x10cc] sm:$0xf]  ;;  %v16172_v23 = vor.u32 %v18195_v44, %v16169_v31 }
 0x654   :  { %v16777_v54 = vld [vmem:[%s28427_s14 + $0x1114] sm:$0xf0]  ;;  %v26468_v14 = vld [vmem:[%s28427_s14 + $0xb74] sm:$0xf]  ;;  %v10174_v36 = vadd.f32 %v10173_v3, %v6724_v61  ;;  %v16701_v4 = vld [vmem:[%s28427_s14 + $0x107c] sm:$0xf0] }
 0x655   :  { %10445 = vmatpush.bf16.msrb.mxu3 %v15108_v5  ;;  %10459 = vmatpush.bf16.msrb.mxu1 %v15716_v34  ;;  %v18474_v5 = vpop.eup %18473  ;;  %v17061_v34 = vmul.f32 -1.442695, %v10162_v25  ;;  %v15187_v21 = vld [vmem:[%s28427_s14 + $0x458] sm:$0xf]  ;;  %v15260_v25 = vor.u32 %v17967_v46, %v15257_v1  ;;  %v18091_v57 = vld [vmem:[%s28427_s14 + $0x8c8] sm:$0xf0]  ;;  %v16704_v38 = vor.u32 %v18328_v37, %v16701_v4 }
 0x656   :  { %10421 = vmatpush.bf16.msra.mxu2 %v16016_v51  ;;  %v26377_v50 = vadd.f32 1.0, %v18474_v5  ;;  %v16929_v51 = vld [vmem:[%s28427_s14 + $0x1244] sm:$0xf0]  ;;  %v15795_v47 = vld [vmem:[%s28427_s14 + $0x918] sm:$0xf]  ;;  %v16780_v5 = vor.u32 %v18347_v30, %v16777_v54 }
 0x657   :  { %10435 = vmatpush.bf16.msra.mxu0 %v16624_v63  ;;  %18475 = vpow2.f32 %v17061_v34  ;;  %v14725_v63 = vld [vmem:[%s28427_s14 + $0x10c] sm:$0xf0]  ;;  %v18290_v30 = vld [vmem:[%s28427_s14 + $0xf04] sm:$0xf]  ;;  %v18119_v4 = vld [vmem:[%s28427_s14 + $0x9ac] sm:$0xf] }
 0x658   :  { %18477 = vrcp.f32 %v26377_v50  ;;  %v14728_v12 = vor.u32 %v17834_v7, %v14725_v63  ;;  %v11128_v60 = vand.u32 2147483647, %v26377_v50  ;;  %vm11124_vm14 = vweird.f32 %v26377_v50  ;;  %v18309_v7 = vld [vmem:[%s28427_s14 + $0xf9c] sm:$0xf]  ;;  %v16625_v63 = vld [vmem:[%s28427_s14 + $0xfe4] sm:$0xf0] }
 0x659   :  { %10446 = vmatpush.bf16.msrb.mxu3 %v15032_v6  ;;  %10460 = vmatpush.bf16.msrb.mxu1 %v15640_v17  ;;  %v16324_v6 = vor.u32 %v18233_v11, %v16321_v0  ;;  %v16932_v17 = vor.u32 %v18385_v43, %v16929_v51  ;;  %v26502_v11 = vld [vmem:[%s28427_s14 + $0xadc] sm:$0xf]  ;;  %v16096_v51 = vor.u32 %v26468_v14, %v26473_v40 }
 0x65a   :  { %10422 = vmatpush.bf16.msra.mxu2 %v15940_v49  ;;  %vm11129_vm1 = vcmp.eq.f32.partialorder %v11128_v60, 8.507059e+37  ;;  %v16628_v16 = vor.u32 %v18309_v7, %v16625_v63  ;;  %v17901_v40 = vld [vmem:[%s28427_s14 + $0x2d8] sm:$0xf0]  ;;  %v14883_v60 = vld [vmem:[%s28427_s14 + $0x1f8] sm:$0xf] }
 0x65b   :  { %10436 = vmatpush.bf16.msra.mxu0 %v16548_v33  ;;  %v10175_v43 = vpop.f32.mrf.mxu3  ;;  %v18262_v7 = vld [vmem:[%s28427_s14 + $0xe20] sm:$0xf0] }
 0x65c   :  { %v10176_v44 = vadd.f32 %v10175_v43, %v6724_v61 }
 0x65d   :  { %10447 = vmatpush.bf16.msrb.mxu3 %v14956_v28  ;;  %10461 = vmatpush.bf16.msrb.mxu1 %v15564_v58  ;;  %v18476_v10 = vpop.eup %18475  ;;  %v16856_v28 = vor.u32 %v18366_v29, %v16853_v13  ;;  %v17958_v58 = vld [vmem:[%s28427_s14 + $0x4a0] sm:$0xf0]  ;;  %v15035_v29 = vld [vmem:[%s28427_s14 + $0x328] sm:$0xf]  ;;  %v17920_v13 = vld [vmem:[%s28427_s14 + $0x370] sm:$0xf0] }
 0x65e   :  { %10423 = vmatpush.bf16.msra.mxu2 %v15864_v22  ;;  %v26440_v49 = vpop.eup %18477  ;;  %v26442_v33 = vadd.f32 1.0, %v18476_v10  ;;  %v11130_v22 = vand.u32 2147483648, %v26377_v50  ;;  %v15188_v34 = vor.u32 %v17958_v58, %v15187_v21  ;;  %v15643_v10 = vld [vmem:[%s28427_s14 + $0x7e8] sm:$0xf]  ;;  %v15036_v61 = vor.u32 %v17920_v13, %v15035_v29  ;;  %v16549_v21 = vld [vmem:[%s28427_s14 + $0xf4c] sm:$0xf0] }
 0x65f   :  { %10437 = vmatpush.bf16.msra.mxu0 %v16472_v55  ;;  %v11120_v53 = vmul.f32 %v26440_v49, %v26377_v50  ;;  %v10187_v55 = vpop.f32.mrf.mxu1  ;;  %vm11125_vm13 = vweird.f32 %v26440_v49  ;;  %v10215_v20 = vpop.f32.mrf.mxu0  ;;  %v14959_v58 = vld [vmem:[%s28427_s14 + $0x290] sm:$0xf]  ;;  %v17863_v13 = vld [vmem:[%s28427_s14 + $0x1a8] sm:$0xf0] }
 0x660   :  { %18479 = vrcp.f32 %v26442_v33  ;;  %vm26521_vm15 = vmor %vm11124_vm14, %vm11125_vm13  ;;  %v11415_v54 = vand.u32 2147483648, %v26442_v33  ;;  %vm11409_vm3 = vweird.f32 %v26442_v33 }
 0x661   :  { %10448 = vmatpush.bf16.msrb.mxu3 %v14880_v62  ;;  %10462 = vmatpush.bf16.msrb.mxu1 %v15488_v2  ;;  %v11121_v48 = vsub.f32 1.0, %v11120_v53  ;;  %v15111_v62 = vld [vmem:[%s28427_s14 + $0x3c0] sm:$0xf]  ;;  %v17939_v2 = vld [vmem:[%s28427_s14 + $0x408] sm:$0xf0] }
 0x662   :  { %10472 = vmatpush.bf16.msrb.mxu2 %v16400_v52  ;;  %10438 = vmatmul.bf16.vlgmr.msra.gmra.mxu0 %v24215_v8  ;;  %v15796_v52 = vor.u32 %v18110_v41, %v15795_v47  ;;  %v15112_v3 = vor.u32 %v17939_v2, %v15111_v62  ;;  %v11413_v41 = vand.u32 2147483647, %v26442_v33  ;;  %v14960_v2 = vor.u32 %v17901_v40, %v14959_v58  ;;  %v17996_v58 = vld [vmem:[%s28427_s14 + $0x5d0] sm:$0xf0]  ;;  %v16859_v40 = vld [vmem:[%s28427_s14 + $0x1168] sm:$0xf] }
 0x663   :  { %10486 = vmatpush.bf16.msrb.mxu0 %v17008_v56  ;;  %10424 = vmatmul.bf16.vlgmr.msra.gmra.mxu2 %v24207_v35  ;;  %v11122_v26 = vmul.f32 %v26440_v49, %v11121_v48  ;;  %v15719_v56 = vld [vmem:[%s28427_s14 + $0x880] sm:$0xf] }
 0x664   :  { %v15720_v39 = vor.u32 %v18091_v57, %v15719_v56  ;;  %vm11414_vm5 = vcmp.eq.f32.partialorder %v11413_v41, 8.507059e+37 }
 0x665   :  { %10449 = vmatpush.bf16.msrb.mxu3 %v14804_v18  ;;  %10463 = vmatpush.bf16.msrb.mxu1 %v15412_v45  ;;  %v11123_v0 = vadd.f32 %v26440_v49, %v11122_v26  ;;  %v10188_v18 = vadd.f32 %v10187_v55, %v10174_v36  ;;  %v16017_v45 = vld [vmem:[%s28427_s14 + $0xb24] sm:$0xf0]  ;;  %v15567_v36 = vld [vmem:[%s28427_s14 + $0x750] sm:$0xf]  ;;  %v18271_v55 = vld [vmem:[%s28427_s14 + $0xe6c] sm:$0xf] }
 0x666   :  { %10473 = vmatpush.bf16.msrb.mxu2 %v16324_v6  ;;  %v26517_v50 = vpop.eup %18479  ;;  %v10201_v32 = vpop.f32.mrf.mxu2  ;;  %v16473_v26 = vld [vmem:[%s28427_s14 + $0xeb4] sm:$0xf0]  ;;  %v18414_v6 = vld [vmem:[%s28427_s14 + $0x12e0] sm:$0xf0] }
 0x667   :  { %10487 = vmatpush.bf16.msrb.mxu0 %v16932_v17  ;;  %v11131_v17 = vor.u32 1.1754944e-38, %v11130_v22  ;;  %v11127_v15 = vsel %vm26521_vm15, %v26440_v49, %v11123_v0  ;;  %v11405_v24 = vmul.f32 %v26517_v50, %v26442_v33  ;;  %v10202_v46 = vadd.f32 %v10201_v32, %v10188_v18  ;;  %v10189_v48 = vpop.f32.mrf.mxu1  ;;  %v15865_v22 = vld [vmem:[%s28427_s14 + $0x9f4] sm:$0xf0]  ;;  %v18034_v18 = vld [vmem:[%s28427_s14 + $0x700] sm:$0xf0] }
 0x668   :  { %v16020_v49 = vor.u32 %v26502_v11, %v16017_v45  ;;  %vm11410_vm2 = vweird.f32 %v26517_v50  ;;  %v10190_v37 = vadd.f32 %v10189_v48, %v10176_v44  ;;  %v11416_v33 = vor.u32 1.1754944e-38, %v11415_v54  ;;  %v17882_v11 = vld [vmem:[%s28427_s14 + $0x240] sm:$0xf0]  ;;  %v15491_v0 = vld [vmem:[%s28427_s14 + $0x6b8] sm:$0xf] }
 0x669   :  { %10450 = vmatpush.bf16.msrb.mxu3 %v14728_v12  ;;  %10464 = vmatpush.bf16.msrb.mxu1 %v15336_v27  ;;  %v18072_v12 = vld [vmem:[%s28427_s14 + $0x830] sm:$0xf0]  ;;  %v11132_v27 = vsel %vm11129_vm1, %v11131_v17, %v11127_v15  ;;  %v11406_v1 = vsub.f32 1.0, %v11405_v24  ;;  %v10216_v31 = vadd.f32 %v10215_v20, %v10202_v46  ;;  %vm26591_vm4 = vmor %vm11409_vm3, %vm11410_vm2  ;;  %v16403_v45 = vld [vmem:[%s28427_s14 + $0xdd8] sm:$0xf]  ;;  %v15868_v17 = vor.u32 %v18119_v4, %v15865_v22 }
 0x66a   :  { %10474 = vmatpush.bf16.msrb.mxu2 %v16248_v59  ;;  %11619 = vst [vmem:[%s28430_s16 + $0x28] sm:$0xff] %v11132_v27  ;;  %v18138_v59 = vld [vmem:[%s28427_s14 + $0xa44] sm:$0xf]  ;;  %v15644_v53 = vor.u32 %v18072_v12, %v15643_v10  ;;  %v16476_v20 = vor.u32 %v18271_v55, %v16473_v26  ;;  %v15492_v29 = vor.u32 %v18034_v18, %v15491_v0  ;;  %v15415_v15 = vld [vmem:[%s28427_s14 + $0x620] sm:$0xf] }
 0x66b   :  { %10488 = vmatpush.bf16.msrb.mxu0 %v16856_v28  ;;  %v15941_v28 = vld [vmem:[%s28427_s14 + $0xa8c] sm:$0xf0]  ;;  %v11407_v47 = vmul.f32 %v26517_v50, %v11406_v1  ;;  %v17043_v14 = vmul.f32 -1.442695, %v10216_v31  ;;  %v16404_v46 = vor.u32 %v18262_v7, %v16403_v45  ;;  %v18015_v12 = vld [vmem:[%s28427_s14 + $0x668] sm:$0xf0] }
 0x66c   :  { %v16327_v27 = vld [vmem:[%s28427_s14 + $0xd40] sm:$0xf]  ;;  %v18243_v1 = vld [vmem:[%s28427_s14 + $0xd88] sm:$0xf0]  ;;  %v14731_v54 = vld [vmem:[%s28427_s14 + $0xc8] sm:$0xf] }
 0x66d   :  { %10451 = vmatpush.bf16.msrb.mxu3 %v14652_v42  ;;  %10465 = vmatpush.bf16.msrb.mxu1 %v15260_v25  ;;  %v18053_v42 = vld [vmem:[%s28427_s14 + $0x798] sm:$0xf0]  ;;  %v11408_v25 = vadd.f32 %v26517_v50, %v11407_v47  ;;  %18481 = vpow2.f32 %v17043_v14  ;;  %v16935_v44 = vld [vmem:[%s28427_s14 + $0x1200] sm:$0xf]  ;;  %v18395_v31 = vld [vmem:[%s28427_s14 + $0x1248] sm:$0xf0] }
 0x66e   :  { %10475 = vmatpush.bf16.msrb.mxu2 %v16172_v23  ;;  %v10203_v62 = vpop.f32.mrf.mxu2  ;;  %v15568_v57 = vor.u32 %v18053_v42, %v15567_v36  ;;  %v16251_v47 = vld [vmem:[%s28427_s14 + $0xca8] sm:$0xf]  ;;  %v18224_v14 = vld [vmem:[%s28427_s14 + $0xcf0] sm:$0xf0]  ;;  %v14655_v36 = vld [vmem:[%s28427_s14 + $0x30] sm:$0xf] }
 0x66f   :  { %10489 = vmatpush.bf16.msrb.mxu0 %v16780_v5  ;;  %v15944_v5 = vor.u32 %v18138_v59, %v15941_v28  ;;  %v10204_v56 = vadd.f32 %v10203_v62, %v10190_v37  ;;  %v18376_v48 = vld [vmem:[%s28427_s14 + $0x11b0] sm:$0xf0]  ;;  %v17825_v42 = vld [vmem:[%s28427_s14 + $0x78] sm:$0xf0]  ;;  %v16175_v23 = vld [vmem:[%s28427_s14 + $0xc10] sm:$0xf]  ;;  %v16252_v62 = vor.u32 %v18224_v14, %v16251_v47 }
 0x670   :  { %10452 = vmatmul.bf16.vlgmr.msrb.gmra.mxu3 %v24139_v9  ;;  %10466 = vmatmul.bf16.vlgmr.msrb.gmra.mxu1 %v24147_v19  ;;  %v17977_v55 = vld [vmem:[%s28427_s14 + $0x538] sm:$0xf0]  ;;  %v16783_v26 = vld [vmem:[%s28427_s14 + $0x10d0] sm:$0xf]  ;;  %v15797_v0 = vld [vmem:[%s28427_s14 + $0x964] sm:$0xf0]  ;;  %v14656_v7 = vor.u32 %v17825_v42, %v14655_v36 }
 0x671   :  { %10500 = vmatpush.bf16.msra.mxu3 %v15188_v34  ;;  %10514 = vmatpush.bf16.msra.mxu1 %v15796_v52  ;;  %v16552_v34 = vor.u32 %v18290_v30, %v16549_v21  ;;  %v11412_v52 = vsel %vm26591_vm4, %v26517_v50, %v11408_v25  ;;  %v17011_v50 = vld [vmem:[%s28427_s14 + $0x1298] sm:$0xf]  ;;  %v15416_v30 = vor.u32 %v18015_v12, %v15415_v15  ;;  %v15339_v21 = vld [vmem:[%s28427_s14 + $0x588] sm:$0xf]  ;;  %v15263_v25 = vld [vmem:[%s28427_s14 + $0x4f0] sm:$0xf] }
 0x672   :  { %10476 = vmatpush.bf16.msrb.mxu2 %v16096_v51  ;;  %v11417_v43 = vsel %vm11414_vm5, %v11416_v33, %v11412_v52  ;;  %v10217_v51 = vpop.f32.mrf.mxu0  ;;  %v17012_v10 = vor.u32 %v18414_v6, %v17011_v50  ;;  %v15340_v22 = vor.u32 %v17996_v58, %v15339_v21  ;;  %v18205_v33 = vld [vmem:[%s28427_s14 + $0xc58] sm:$0xf0]  ;;  %v16707_v50 = vld [vmem:[%s28427_s14 + $0x1038] sm:$0xf]  ;;  %v18338_v6 = vld [vmem:[%s28427_s14 + $0x1080] sm:$0xf0] }
 0x673   :  { %10490 = vmatpush.bf16.msrb.mxu0 %v16704_v38  ;;  %11638 = vst [vmem:[%s28430_s16 + $0xc0] sm:$0xff] %v11417_v43  ;;  %v10218_v63 = vadd.f32 %v10217_v51, %v10204_v56  ;;  %v14807_v38 = vld [vmem:[%s28427_s14 + $0x160] sm:$0xf]  ;;  %v18482_v32 = vpop.eup %18481  ;;  %v10229_v41 = vpop.f32.mrf.mxu3  ;;  %v17949_v56 = vld [vmem:[%s28427_s14 + $0x45c] sm:$0xf]  ;;  %v16708_v58 = vor.u32 %v18338_v6, %v16707_v50 }
 0x674   :  { %v26637_v24 = vadd.f32 1.0, %v18482_v32  ;;  %v14808_v28 = vor.u32 %v17863_v13, %v14807_v38  ;;  %v26733_v43 = vld [vmem:[%s28427_s14 + $0xb78] sm:$0xf]  ;;  %v26738_v51 = vld [vmem:[%s28427_s14 + $0xbc0] sm:$0xf0]  ;;  %v16176_v38 = vor.u32 %v18205_v33, %v16175_v23 }
 0x675   :  { %10501 = vmatpush.bf16.msra.mxu3 %v15112_v3  ;;  %10515 = vmatpush.bf16.msra.mxu1 %v15720_v39  ;;  %v17062_v3 = vmul.f32 -1.442695, %v10218_v63  ;;  %v14884_v39 = vor.u32 %v17882_v11, %v14883_v60  ;;  %v18357_v60 = vld [vmem:[%s28427_s14 + $0x1118] sm:$0xf0]  ;;  %v15264_v63 = vor.u32 %v17977_v55, %v15263_v25  ;;  %v15721_v12 = vld [vmem:[%s28427_s14 + $0x8cc] sm:$0xf0] }
 0x676   :  { %10477 = vmatpush.bf16.msrb.mxu2 %v16020_v49  ;;  %v26658_v49 = vld [vmem:[%s28429_s15] sm:$0xff]  ;;  %v18101_v11 = vld [vmem:[%s28427_s14 + $0x91c] sm:$0xf]  ;;  %v16784_v32 = vor.u32 %v18357_v60, %v16783_v26  ;;  %v11143_v15 = vand.u32 2147483647, %v26637_v24  ;;  %vm11139_vm7 = vweird.f32 %v26637_v24 }
 0x677   :  { %10491 = vmatpush.bf16.msrb.mxu0 %v16628_v16  ;;  %18483 = vpow2.f32 %v17062_v3  ;;  %v6725_v59 = vperm.slane %v26658_v49, 7  ;;  %v17844_v16 = vld [vmem:[%s28427_s14 + $0x110] sm:$0xf0]  ;;  %v16555_v26 = vld [vmem:[%s28427_s14 + $0xf08] sm:$0xf] }
 0x678   :  { %18485 = vrcp.f32 %v26637_v24  ;;  %v14732_v4 = vor.u32 %v17844_v16, %v14731_v54  ;;  %v16631_v54 = vld [vmem:[%s28427_s14 + $0xfa0] sm:$0xf]  ;;  %v18319_v16 = vld [vmem:[%s28427_s14 + $0xfe8] sm:$0xf0]  ;;  %vm11144_vm9 = vcmp.eq.f32.partialorder %v11143_v15, 8.507059e+37 }
 0x679   :  { %10502 = vmatpush.bf16.msra.mxu3 %v15036_v61  ;;  %10516 = vmatpush.bf16.msra.mxu1 %v15644_v53  ;;  %v16328_v61 = vor.u32 %v18243_v1, %v16327_v27  ;;  %v16936_v53 = vor.u32 %v18395_v31, %v16935_v44  ;;  %v10230_v45 = vadd.f32 %v10229_v41, %v6725_v59  ;;  %v26767_v27 = vld [vmem:[%s28427_s14 + $0xae0] sm:$0xf]  ;;  %v15871_v6 = vld [vmem:[%s28427_s14 + $0x9b0] sm:$0xf]  ;;  %v17873_v15 = vld [vmem:[%s28427_s14 + $0x1fc] sm:$0xf] }
 0x67a   :  { %10478 = vmatpush.bf16.msrb.mxu2 %v15944_v5  ;;  %v16100_v31 = vor.u32 %v26738_v51, %v26733_v43  ;;  %v16632_v49 = vor.u32 %v18319_v16, %v16631_v54  ;;  %v14961_v51 = vld [vmem:[%s28427_s14 + $0x2dc] sm:$0xf0]  ;;  %v16405_v54 = vld [vmem:[%s28427_s14 + $0xe24] sm:$0xf0] }
 0x67b   :  { %10492 = vmatpush.bf16.msrb.mxu0 %v16552_v34  ;;  %v10231_v44 = vpop.f32.mrf.mxu3 }
 0x67c   :  { %v10232_v23 = vadd.f32 %v10231_v44, %v6725_v59 }
 0x67d   :  { %10503 = vmatpush.bf16.msra.mxu3 %v14960_v2  ;;  %10517 = vmatpush.bf16.msra.mxu1 %v15568_v57  ;;  %v18484_v37 = vpop.eup %18483  ;;  %v16860_v2 = vor.u32 %v18376_v48, %v16859_v40  ;;  %v15189_v57 = vld [vmem:[%s28427_s14 + $0x4a4] sm:$0xf0]  ;;  %v17911_v40 = vld [vmem:[%s28427_s14 + $0x32c] sm:$0xf]  ;;  %v15037_v48 = vld [vmem:[%s28427_s14 + $0x374] sm:$0xf0] }
 0x67e   :  { %10479 = vmatpush.bf16.msrb.mxu2 %v15868_v17  ;;  %v26705_v5 = vpop.eup %18485  ;;  %v26707_v34 = vadd.f32 1.0, %v18484_v37  ;;  %v11145_v17 = vand.u32 2147483648, %v26637_v24  ;;  %v15192_v3 = vor.u32 %v17949_v56, %v15189_v57  ;;  %v18063_v37 = vld [vmem:[%s28427_s14 + $0x7ec] sm:$0xf]  ;;  %v15040_v59 = vor.u32 %v17911_v40, %v15037_v48  ;;  %v18300_v56 = vld [vmem:[%s28427_s14 + $0xf50] sm:$0xf0] }
 0x67f   :  { %10493 = vmatpush.bf16.msrb.mxu0 %v16476_v20  ;;  %v11135_v52 = vmul.f32 %v26705_v5, %v26637_v24  ;;  %v10243_v20 = vpop.f32.mrf.mxu1  ;;  %vm11140_vm6 = vweird.f32 %v26705_v5  ;;  %v10271_v21 = vpop.f32.mrf.mxu0  ;;  %v17892_v57 = vld [vmem:[%s28427_s14 + $0x294] sm:$0xf]  ;;  %v14809_v48 = vld [vmem:[%s28427_s14 + $0x1ac] sm:$0xf0] }
 0x680   :  { %18487 = vrcp.f32 %v26707_v34  ;;  %vm26786_vm8 = vmor %vm11139_vm7, %vm11140_vm6  ;;  %v11430_v60 = vand.u32 2147483648, %v26707_v34  ;;  %vm11424_vm11 = vweird.f32 %v26707_v34 }
 0x681   :  { %10504 = vmatpush.bf16.msra.mxu3 %v14884_v39  ;;  %10518 = vmatpush.bf16.msra.mxu1 %v15492_v29  ;;  %v11136_v18 = vsub.f32 1.0, %v11135_v52  ;;  %v17930_v39 = vld [vmem:[%s28427_s14 + $0x3c4] sm:$0xf]  ;;  %v15113_v29 = vld [vmem:[%s28427_s14 + $0x40c] sm:$0xf0] }
 0x682   :  { %10528 = vmatpush.bf16.msra.mxu2 %v16404_v46  ;;  %10494 = vmatmul.bf16.vlgmr.msrb.gmra.mxu0 %v24215_v8  ;;  %v15800_v46 = vor.u32 %v18101_v11, %v15797_v0  ;;  %v15116_v41 = vor.u32 %v17930_v39, %v15113_v29  ;;  %v11428_v0 = vand.u32 2147483647, %v26707_v34  ;;  %v14964_v29 = vor.u32 %v17892_v57, %v14961_v51  ;;  %v15341_v57 = vld [vmem:[%s28427_s14 + $0x5d4] sm:$0xf0]  ;;  %v18367_v51 = vld [vmem:[%s28427_s14 + $0x116c] sm:$0xf] }
 0x683   :  { %10542 = vmatpush.bf16.msra.mxu0 %v17012_v10  ;;  %10480 = vmatmul.bf16.vlgmr.msrb.gmra.mxu2 %v24207_v35  ;;  %v11137_v13 = vmul.f32 %v26705_v5, %v11136_v18  ;;  %v18082_v10 = vld [vmem:[%s28427_s14 + $0x884] sm:$0xf] }
 0x684   :  { %v15724_v14 = vor.u32 %v18082_v10, %v15721_v12  ;;  %vm11429_vm13 = vcmp.eq.f32.partialorder %v11428_v0, 8.507059e+37 }
 0x685   :  { %10505 = vmatpush.bf16.msra.mxu3 %v14808_v28  ;;  %10519 = vmatpush.bf16.msra.mxu1 %v15416_v30  ;;  %v11138_v1 = vadd.f32 %v26705_v5, %v11137_v13  ;;  %v10244_v28 = vadd.f32 %v10243_v20, %v10230_v45  ;;  %v18167_v30 = vld [vmem:[%s28427_s14 + $0xb28] sm:$0xf0]  ;;  %v18044_v45 = vld [vmem:[%s28427_s14 + $0x754] sm:$0xf]  ;;  %v16479_v20 = vld [vmem:[%s28427_s14 + $0xe70] sm:$0xf] }
 0x686   :  { %10529 = vmatpush.bf16.msra.mxu2 %v16328_v61  ;;  %v26782_v24 = vpop.eup %18487  ;;  %v10257_v47 = vpop.f32.mrf.mxu2  ;;  %v18281_v13 = vld [vmem:[%s28427_s14 + $0xeb8] sm:$0xf0]  ;;  %v17013_v61 = vld [vmem:[%s28427_s14 + $0x12e4] sm:$0xf0] }
 0x687   :  { %10543 = vmatpush.bf16.msra.mxu0 %v16936_v53  ;;  %v11146_v53 = vor.u32 1.1754944e-38, %v11145_v17  ;;  %v11142_v36 = vsel %vm26786_vm8, %v26705_v5, %v11138_v1  ;;  %v11420_v42 = vmul.f32 %v26782_v24, %v26707_v34  ;;  %v10258_v25 = vadd.f32 %v10257_v47, %v10244_v28  ;;  %v10245_v18 = vpop.f32.mrf.mxu1  ;;  %v18129_v17 = vld [vmem:[%s28427_s14 + $0x9f8] sm:$0xf0]  ;;  %v15493_v28 = vld [vmem:[%s28427_s14 + $0x704] sm:$0xf0] }
 0x688   :  { %v16024_v5 = vor.u32 %v18167_v30, %v26767_v27  ;;  %vm11425_vm10 = vweird.f32 %v26782_v24  ;;  %v10246_v50 = vadd.f32 %v10245_v18, %v10232_v23  ;;  %v11431_v34 = vor.u32 1.1754944e-38, %v11430_v60  ;;  %v14885_v27 = vld [vmem:[%s28427_s14 + $0x244] sm:$0xf0]  ;;  %v18025_v1 = vld [vmem:[%s28427_s14 + $0x6bc] sm:$0xf] }
 0x689   :  { %10506 = vmatpush.bf16.msra.mxu3 %v14732_v4  ;;  %10520 = vmatpush.bf16.msra.mxu1 %v15340_v22  ;;  %v15645_v4 = vld [vmem:[%s28427_s14 + $0x834] sm:$0xf0]  ;;  %v11147_v22 = vsel %vm11144_vm9, %v11146_v53, %v11142_v36  ;;  %v11421_v55 = vsub.f32 1.0, %v11420_v42  ;;  %v10272_v33 = vadd.f32 %v10271_v21, %v10258_v25  ;;  %vm26856_vm12 = vmor %vm11424_vm11, %vm11425_vm10  ;;  %v18253_v30 = vld [vmem:[%s28427_s14 + $0xddc] sm:$0xf]  ;;  %v15872_v53 = vor.u32 %v18129_v17, %v15871_v6 }
 0x68a   :  { %10530 = vmatpush.bf16.msra.mxu2 %v16252_v62  ;;  %11620 = vst [vmem:[%s28430_s16 + $0x30] sm:$0xff] %v11147_v22  ;;  %v15947_v62 = vld [vmem:[%s28427_s14 + $0xa48] sm:$0xf]  ;;  %v15648_v52 = vor.u32 %v18063_v37, %v15645_v4  ;;  %v16480_v21 = vor.u32 %v18281_v13, %v16479_v20  ;;  %v15496_v40 = vor.u32 %v18025_v1, %v15493_v28  ;;  %v18006_v36 = vld [vmem:[%s28427_s14 + $0x624] sm:$0xf] }
 0x68b   :  { %10544 = vmatpush.bf16.msra.mxu0 %v16860_v2  ;;  %v18148_v2 = vld [vmem:[%s28427_s14 + $0xa90] sm:$0xf0]  ;;  %v11422_v11 = vmul.f32 %v26782_v24, %v11421_v55  ;;  %v17044_v43 = vmul.f32 -1.442695, %v10272_v33  ;;  %v16408_v25 = vor.u32 %v18253_v30, %v16405_v54  ;;  %v26907_v4 = vld [vmem:[%s28429_s15 + $0x8] sm:$0xff] }
 0x68c   :  { %v15417_v22 = vld [vmem:[%s28427_s14 + $0x66c] sm:$0xf0]  ;;  %v18234_v55 = vld [vmem:[%s28427_s14 + $0xd44] sm:$0xf]  ;;  %v17835_v60 = vld [vmem:[%s28427_s14 + $0xcc] sm:$0xf] }
 0x68d   :  { %10507 = vmatpush.bf16.msra.mxu3 %v14656_v7  ;;  %10521 = vmatpush.bf16.msra.mxu1 %v15264_v63  ;;  %v15569_v7 = vld [vmem:[%s28427_s14 + $0x79c] sm:$0xf0]  ;;  %v11423_v63 = vadd.f32 %v26782_v24, %v11422_v11  ;;  %18489 = vpow2.f32 %v17044_v43  ;;  %v16329_v23 = vld [vmem:[%s28427_s14 + $0xd8c] sm:$0xf0]  ;;  %v18386_v33 = vld [vmem:[%s28427_s14 + $0x1204] sm:$0xf] }
 0x68e   :  { %10531 = vmatpush.bf16.msra.mxu2 %v16176_v38  ;;  %v10259_v39 = vpop.f32.mrf.mxu2  ;;  %v15572_v12 = vor.u32 %v18044_v45, %v15569_v7  ;;  %v18215_v11 = vld [vmem:[%s28427_s14 + $0xcac] sm:$0xf]  ;;  %v16253_v43 = vld [vmem:[%s28427_s14 + $0xcf4] sm:$0xf0]  ;;  %v17816_v45 = vld [vmem:[%s28427_s14 + $0x34] sm:$0xf] }
 0x68f   :  { %10545 = vmatpush.bf16.msra.mxu0 %v16784_v32  ;;  %v15948_v32 = vor.u32 %v18148_v2, %v15947_v62  ;;  %v10260_v10 = vadd.f32 %v10259_v39, %v10246_v50  ;;  %v6726_v62 = vperm.slane %v26907_v4, 0  ;;  %v16861_v18 = vld [vmem:[%s28427_s14 + $0x11b4] sm:$0xf0]  ;;  %v14657_v7 = vld [vmem:[%s28427_s14 + $0x7c] sm:$0xf0]  ;;  %v16256_v39 = vor.u32 %v18215_v11, %v16253_v43 }
 0x690   :  { %10508 = vmatmul.bf16.vlgmr.msra.gmra.mxu3 %v24139_v9  ;;  %10522 = vmatmul.bf16.vlgmr.msra.gmra.mxu1 %v24147_v19  ;;  %v15265_v20 = vld [vmem:[%s28427_s14 + $0x53c] sm:$0xf0]  ;;  %v18196_v38 = vld [vmem:[%s28427_s14 + $0xc14] sm:$0xf]  ;;  %v18111_v1 = vld [vmem:[%s28427_s14 + $0x968] sm:$0xf0]  ;;  %v14660_v54 = vor.u32 %v17816_v45, %v14657_v7 }
 0x691   :  { %10556 = vmatpush.bf16.msrb.mxu3 %v15192_v3  ;;  %10570 = vmatpush.bf16.msrb.mxu1 %v15800_v46  ;;  %v16556_v3 = vor.u32 %v18300_v56, %v16555_v26  ;;  %v11427_v46 = vsel %vm26856_vm12, %v26782_v24, %v11423_v63  ;;  %v18405_v24 = vld [vmem:[%s28427_s14 + $0x129c] sm:$0xf]  ;;  %v15420_v26 = vor.u32 %v18006_v36, %v15417_v22  ;;  %v17987_v56 = vld [vmem:[%s28427_s14 + $0x58c] sm:$0xf]  ;;  %v17968_v63 = vld [vmem:[%s28427_s14 + $0x4f4] sm:$0xf] }
 0x692   :  { %10532 = vmatpush.bf16.msra.mxu2 %v16100_v31  ;;  %v11432_v44 = vsel %vm11429_vm13, %v11431_v34, %v11427_v46  ;;  %v10273_v31 = vpop.f32.mrf.mxu0  ;;  %v17016_v37 = vor.u32 %v18405_v24, %v17013_v61  ;;  %v15344_v17 = vor.u32 %v17987_v56, %v15341_v57  ;;  %v16177_v34 = vld [vmem:[%s28427_s14 + $0xc5c] sm:$0xf0]  ;;  %v18348_v13 = vld [vmem:[%s28427_s14 + $0x10d4] sm:$0xf]  ;;  %v18329_v24 = vld [vmem:[%s28427_s14 + $0x103c] sm:$0xf] }
 0x693   :  { %10546 = vmatpush.bf16.msra.mxu0 %v16708_v58  ;;  %11639 = vst [vmem:[%s28430_s16 + $0xc8] sm:$0xff] %v11432_v44  ;;  %v10274_v16 = vadd.f32 %v10273_v31, %v10260_v10  ;;  %v17854_v58 = vld [vmem:[%s28427_s14 + $0x164] sm:$0xf]  ;;  %v18490_v47 = vpop.eup %18489  ;;  %v10285_v0 = vpop.f32.mrf.mxu3  ;;  %v15195_v10 = vld [vmem:[%s28427_s14 + $0x460] sm:$0xf] }
 0x694   :  { %v26902_v42 = vadd.f32 1.0, %v18490_v47  ;;  %v14812_v2 = vor.u32 %v17854_v58, %v14809_v48  ;;  %v26998_v44 = vld [vmem:[%s28427_s14 + $0xb7c] sm:$0xf]  ;;  %v27003_v31 = vld [vmem:[%s28427_s14 + $0xbc4] sm:$0xf0]  ;;  %v10286_v30 = vadd.f32 %v10285_v0, %v6726_v62  ;;  %v16180_v58 = vor.u32 %v18196_v38, %v16177_v34 }
 0x695   :  { %10557 = vmatpush.bf16.msrb.mxu3 %v15116_v41  ;;  %10571 = vmatpush.bf16.msrb.mxu1 %v15724_v14  ;;  %v17063_v41 = vmul.f32 -1.442695, %v10274_v16  ;;  %v14888_v14 = vor.u32 %v17873_v15, %v14885_v27  ;;  %v16785_v15 = vld [vmem:[%s28427_s14 + $0x111c] sm:$0xf0]  ;;  %v15268_v16 = vor.u32 %v17968_v63, %v15265_v20  ;;  %v16709_v61 = vld [vmem:[%s28427_s14 + $0x1084] sm:$0xf0] }
 0x696   :  { %10533 = vmatpush.bf16.msra.mxu2 %v16024_v5  ;;  %v16937_v5 = vld [vmem:[%s28427_s14 + $0x124c] sm:$0xf0]  ;;  %v15803_v27 = vld [vmem:[%s28427_s14 + $0x920] sm:$0xf]  ;;  %v16788_v47 = vor.u32 %v18348_v13, %v16785_v15  ;;  %v11158_v36 = vand.u32 2147483647, %v26902_v42  ;;  %vm11154_vm15 = vweird.f32 %v26902_v42  ;;  %v16712_v57 = vor.u32 %v18329_v24, %v16709_v61 }
 0x697   :  { %10547 = vmatpush.bf16.msra.mxu0 %v16632_v49  ;;  %18491 = vpow2.f32 %v17063_v41  ;;  %v14733_v49 = vld [vmem:[%s28427_s14 + $0x114] sm:$0xf0]  ;;  %v18092_v22 = vld [vmem:[%s28427_s14 + $0x8d0] sm:$0xf0]  ;;  %v18291_v13 = vld [vmem:[%s28427_s14 + $0xf0c] sm:$0xf] }
 0x698   :  { %18493 = vrcp.f32 %v26902_v42  ;;  %v14736_v6 = vor.u32 %v17835_v60, %v14733_v49  ;;  %v18310_v60 = vld [vmem:[%s28427_s14 + $0xfa4] sm:$0xf]  ;;  %v16633_v49 = vld [vmem:[%s28427_s14 + $0xfec] sm:$0xf0]  ;;  %vm11159_vm2 = vcmp.eq.f32.partialorder %v11158_v36, 8.507059e+37 }
 0x699   :  { %10558 = vmatpush.bf16.msrb.mxu3 %v15040_v59  ;;  %10572 = vmatpush.bf16.msrb.mxu1 %v15648_v52  ;;  %v16332_v59 = vor.u32 %v18234_v55, %v16329_v23  ;;  %v16940_v52 = vor.u32 %v18386_v33, %v16937_v5  ;;  %v27032_v55 = vld [vmem:[%s28427_s14 + $0xae4] sm:$0xf]  ;;  %v16104_v5 = vor.u32 %v26998_v44, %v27003_v31  ;;  %v16481_v36 = vld [vmem:[%s28427_s14 + $0xebc] sm:$0xf0] }
 0x69a   :  { %10534 = vmatpush.bf16.msra.mxu2 %v15948_v32 }
 0x69b   :  { %10548 = vmatpush.bf16.msra.mxu0 %v16556_v3  ;;  %v10287_v33 = vpop.f32.mrf.mxu3 }
 0x69c   :  { %v10288_v38 = vadd.f32 %v10287_v33, %v6726_v62  ;;  %v16636_v62 = vor.u32 %v18310_v60, %v16633_v49  ;;  %v15499_v33 = vld [vmem:[%s28427_s14 + $0x6c0] sm:$0xf]  ;;  %v18263_v49 = vld [vmem:[%s28427_s14 + $0xe28] sm:$0xf0] }
 0x69d   :  { %10559 = vmatpush.bf16.msrb.mxu3 %v14964_v29  ;;  %10573 = vmatpush.bf16.msrb.mxu1 %v15572_v12  ;;  %v18492_v50 = vpop.eup %18491  ;;  %v16864_v29 = vor.u32 %v18367_v51, %v16861_v18  ;;  %v17959_v12 = vld [vmem:[%s28427_s14 + $0x4a8] sm:$0xf0]  ;;  %v15043_v51 = vld [vmem:[%s28427_s14 + $0x330] sm:$0xf]  ;;  %v17921_v18 = vld [vmem:[%s28427_s14 + $0x378] sm:$0xf0] }
 0x69e   :  { %10535 = vmatpush.bf16.msra.mxu2 %v15872_v53  ;;  %v26970_v32 = vpop.eup %18493  ;;  %v26972_v3 = vadd.f32 1.0, %v18492_v50  ;;  %v11160_v53 = vand.u32 2147483648, %v26902_v42  ;;  %v15196_v41 = vor.u32 %v17959_v12, %v15195_v10  ;;  %v15651_v50 = vld [vmem:[%s28427_s14 + $0x7f0] sm:$0xf]  ;;  %v16557_v12 = vld [vmem:[%s28427_s14 + $0xf54] sm:$0xf0] }
 0x69f   :  { %10549 = vmatpush.bf16.msra.mxu0 %v16480_v21  ;;  %v11150_v46 = vmul.f32 %v26970_v32, %v26902_v42  ;;  %v10299_v21 = vpop.f32.mrf.mxu1  ;;  %vm11155_vm14 = vweird.f32 %v26970_v32  ;;  %v10327_v56 = vpop.f32.mrf.mxu0  ;;  %v16411_v60 = vld [vmem:[%s28427_s14 + $0xde0] sm:$0xf] }
 0x6a0   :  { %18495 = vrcp.f32 %v26972_v3  ;;  %vm27051_vm1 = vmor %vm11154_vm15, %vm11155_vm14  ;;  %v11445_v15 = vand.u32 2147483648, %v26972_v3  ;;  %v11443_v44 = vand.u32 2147483647, %v26972_v3  ;;  %vm11439_vm4 = vweird.f32 %v26972_v3 }
 0x6a1   :  { %10560 = vmatpush.bf16.msrb.mxu3 %v14888_v14  ;;  %10574 = vmatpush.bf16.msrb.mxu1 %v15496_v40  ;;  %v11151_v28 = vsub.f32 1.0, %v11150_v46  ;;  %v15119_v14 = vld [vmem:[%s28427_s14 + $0x3c8] sm:$0xf]  ;;  %v17940_v40 = vld [vmem:[%s28427_s14 + $0x410] sm:$0xf0]  ;;  %v15044_v46 = vor.u32 %v17921_v18, %v15043_v51 }
 0x6a2   :  { %10584 = vmatpush.bf16.msrb.mxu2 %v16408_v25  ;;  %10550 = vmatmul.bf16.vlgmr.msra.gmra.mxu0 %v24215_v8  ;;  %v15804_v25 = vor.u32 %v18111_v1, %v15803_v27  ;;  %v15120_v0 = vor.u32 %v17940_v40, %v15119_v14  ;;  %v14967_v27 = vld [vmem:[%s28427_s14 + $0x298] sm:$0xf]  ;;  %v16560_v14 = vor.u32 %v18291_v13, %v16557_v12  ;;  %vm11444_vm6 = vcmp.eq.f32.partialorder %v11443_v44, 8.507059e+37  ;;  %v15347_v12 = vld [vmem:[%s28427_s14 + $0x590] sm:$0xf] }
 0x6a3   :  { %10598 = vmatpush.bf16.msrb.mxu0 %v17016_v37  ;;  %10536 = vmatmul.bf16.vlgmr.msra.gmra.mxu2 %v24207_v35  ;;  %v11152_v48 = vmul.f32 %v26970_v32, %v11151_v28  ;;  %v15727_v37 = vld [vmem:[%s28427_s14 + $0x888] sm:$0xf]  ;;  %v17902_v28 = vld [vmem:[%s28427_s14 + $0x2e0] sm:$0xf0] }
 0x6a4   :  { %v15728_v43 = vor.u32 %v18092_v22, %v15727_v37 }
 0x6a5   :  { %10561 = vmatpush.bf16.msrb.mxu3 %v14812_v2  ;;  %10575 = vmatpush.bf16.msrb.mxu1 %v15420_v26  ;;  %v11153_v23 = vadd.f32 %v26970_v32, %v11152_v48  ;;  %v10300_v2 = vadd.f32 %v10299_v21, %v10286_v30  ;;  %v16025_v26 = vld [vmem:[%s28427_s14 + $0xb2c] sm:$0xf0]  ;;  %v15873_v21 = vld [vmem:[%s28427_s14 + $0x9fc] sm:$0xf0]  ;;  %v14968_v48 = vor.u32 %v17902_v28, %v14967_v27  ;;  %v17997_v27 = vld [vmem:[%s28427_s14 + $0x5d8] sm:$0xf0] }
 0x6a6   :  { %10585 = vmatpush.bf16.msrb.mxu2 %v16332_v59  ;;  %v27047_v42 = vpop.eup %18495  ;;  %v10313_v11 = vpop.f32.mrf.mxu2  ;;  %v17019_v59 = vld [vmem:[%s28427_s14 + $0x12a0] sm:$0xf]  ;;  %v16867_v28 = vld [vmem:[%s28427_s14 + $0x1170] sm:$0xf] }
 0x6a7   :  { %10599 = vmatpush.bf16.msrb.mxu0 %v16940_v52  ;;  %v11161_v52 = vor.u32 1.1754944e-38, %v11160_v53  ;;  %v11157_v45 = vsel %vm27051_vm1, %v26970_v32, %v11153_v23  ;;  %v11435_v7 = vmul.f32 %v27047_v42, %v26972_v3  ;;  %v10314_v63 = vadd.f32 %v10313_v11, %v10300_v2  ;;  %v10301_v30 = vpop.f32.mrf.mxu1  ;;  %v18120_v53 = vld [vmem:[%s28427_s14 + $0x9b4] sm:$0xf]  ;;  %v17883_v23 = vld [vmem:[%s28427_s14 + $0x248] sm:$0xf0]  ;;  %v10329_v2 = vpop.f32.mrf.mxu0 }
 0x6a8   :  { %v16028_v32 = vor.u32 %v27032_v55, %v16025_v26  ;;  %vm11440_vm3 = vweird.f32 %v27047_v42  ;;  %v10302_v61 = vadd.f32 %v10301_v30, %v10288_v38  ;;  %v11446_v3 = vor.u32 1.1754944e-38, %v11445_v15  ;;  %v18035_v26 = vld [vmem:[%s28427_s14 + $0x708] sm:$0xf0]  ;;  %v14815_v11 = vld [vmem:[%s28427_s14 + $0x168] sm:$0xf] }
 0x6a9   :  { %10562 = vmatpush.bf16.msrb.mxu3 %v14736_v6  ;;  %10576 = vmatpush.bf16.msrb.mxu1 %v15344_v17  ;;  %v18073_v6 = vld [vmem:[%s28427_s14 + $0x838] sm:$0xf0]  ;;  %v11162_v17 = vsel %vm11159_vm2, %v11161_v52, %v11157_v45  ;;  %v11436_v20 = vsub.f32 1.0, %v11435_v7  ;;  %v10328_v34 = vadd.f32 %v10327_v56, %v10314_v63  ;;  %vm27121_vm5 = vmor %vm11439_vm4, %vm11440_vm3  ;;  %v18415_v52 = vld [vmem:[%s28427_s14 + $0x12e8] sm:$0xf0]  ;;  %v15876_v56 = vor.u32 %v18120_v53, %v15873_v21 }
 0x6aa   :  { %10586 = vmatpush.bf16.msrb.mxu2 %v16256_v39  ;;  %11621 = vst [vmem:[%s28430_s16 + $0x38] sm:$0xff] %v11162_v17  ;;  %v18139_v39 = vld [vmem:[%s28427_s14 + $0xa4c] sm:$0xf]  ;;  %v15652_v10 = vor.u32 %v18073_v6, %v15651_v50  ;;  %v15500_v18 = vor.u32 %v18035_v26, %v15499_v33  ;;  %v17864_v45 = vld [vmem:[%s28427_s14 + $0x1b0] sm:$0xf0]  ;;  %v16412_v50 = vor.u32 %v18263_v49, %v16411_v60 }
 0x6ab   :  { %10600 = vmatpush.bf16.msrb.mxu0 %v16864_v29  ;;  %v15949_v29 = vld [vmem:[%s28427_s14 + $0xa94] sm:$0xf0]  ;;  %v11437_v1 = vmul.f32 %v27047_v42, %v11436_v20  ;;  %v17045_v31 = vmul.f32 -1.442695, %v10328_v34  ;;  %v15423_v7 = vld [vmem:[%s28427_s14 + $0x628] sm:$0xf]  ;;  %v17020_v6 = vor.u32 %v18415_v52, %v17019_v59  ;;  %v15348_v21 = vor.u32 %v17997_v27, %v15347_v12 }
 0x6ac   :  { %v18016_v17 = vld [vmem:[%s28427_s14 + $0x670] sm:$0xf0]  ;;  %v16335_v20 = vld [vmem:[%s28427_s14 + $0xd48] sm:$0xf]  ;;  %v14739_v15 = vld [vmem:[%s28427_s14 + $0xd0] sm:$0xf] }
 0x6ad   :  { %10563 = vmatpush.bf16.msrb.mxu3 %v14660_v54  ;;  %10577 = vmatpush.bf16.msrb.mxu1 %v15268_v16  ;;  %v15575_v54 = vld [vmem:[%s28427_s14 + $0x758] sm:$0xf]  ;;  %v18054_v16 = vld [vmem:[%s28427_s14 + $0x7a0] sm:$0xf0]  ;;  %v11438_v24 = vadd.f32 %v27047_v42, %v11437_v1  ;;  %18497 = vpow2.f32 %v17045_v31  ;;  %v18244_v38 = vld [vmem:[%s28427_s14 + $0xd90] sm:$0xf0]  ;;  %v15424_v13 = vor.u32 %v18016_v17, %v15423_v7 }
 0x6ae   :  { %10587 = vmatpush.bf16.msrb.mxu2 %v16180_v58  ;;  %v18272_v58 = vld [vmem:[%s28427_s14 + $0xe74] sm:$0xf]  ;;  %v10315_v40 = vpop.f32.mrf.mxu2  ;;  %v15576_v55 = vor.u32 %v18054_v16, %v15575_v54  ;;  %v16943_v34 = vld [vmem:[%s28427_s14 + $0x1208] sm:$0xf]  ;;  %v16259_v1 = vld [vmem:[%s28427_s14 + $0xcb0] sm:$0xf] }
 0x6af   :  { %10601 = vmatpush.bf16.msrb.mxu0 %v16788_v47  ;;  %v11442_v37 = vsel %vm27121_vm5, %v27047_v42, %v11438_v24  ;;  %v10316_v22 = vadd.f32 %v10315_v40, %v10302_v61  ;;  %v18225_v31 = vld [vmem:[%s28427_s14 + $0xcf8] sm:$0xf0]  ;;  %v14663_v54 = vld [vmem:[%s28427_s14 + $0x38] sm:$0xf]  ;;  %v17826_v16 = vld [vmem:[%s28427_s14 + $0x80] sm:$0xf0] }
 0x6b0   :  { %10564 = vmatmul.bf16.vlgmr.msrb.gmra.mxu3 %v24139_v9  ;;  %10578 = vmatmul.bf16.vlgmr.msrb.gmra.mxu1 %v24147_v19  ;;  %v18377_v30 = vld [vmem:[%s28427_s14 + $0x11b8] sm:$0xf0]  ;;  %v15271_v24 = vld [vmem:[%s28427_s14 + $0x4f8] sm:$0xf]  ;;  %v16260_v40 = vor.u32 %v18225_v31, %v16259_v1  ;;  %v15805_v33 = vld [vmem:[%s28427_s14 + $0x96c] sm:$0xf0]  ;;  %v14664_v49 = vor.u32 %v17826_v16, %v14663_v54 }
 0x6b1   :  { %10612 = vmatpush.bf16.msra.mxu3 %v15196_v41  ;;  %10626 = vmatpush.bf16.msra.mxu1 %v15804_v25  ;;  %v15952_v41 = vor.u32 %v18139_v39, %v15949_v29  ;;  %v14891_v25 = vld [vmem:[%s28427_s14 + $0x200] sm:$0xf]  ;;  %v10330_v42 = vadd.f32 %v10329_v2, %v10316_v22  ;;  %v6727_v39 = vperm.slane %v26907_v4, 1  ;;  %v14816_v29 = vor.u32 %v17864_v45, %v14815_v11  ;;  %v16183_v47 = vld [vmem:[%s28427_s14 + $0xc18] sm:$0xf] }
 0x6b2   :  { %10588 = vmatpush.bf16.msrb.mxu2 %v16104_v5  ;;  %v11447_v5 = vsel %vm11444_vm6, %v11446_v3, %v11442_v37  ;;  %v14892_v51 = vor.u32 %v17883_v23, %v14891_v25  ;;  %v18206_v3 = vld [vmem:[%s28427_s14 + $0xc60] sm:$0xf0]  ;;  %v27263_v2 = vld [vmem:[%s28427_s14 + $0xbc8] sm:$0xf0]  ;;  %v16715_v59 = vld [vmem:[%s28427_s14 + $0x1040] sm:$0xf] }
 0x6b3   :  { %10602 = vmatpush.bf16.msrb.mxu0 %v16712_v57  ;;  %11640 = vst [vmem:[%s28430_s16 + $0xd0] sm:$0xff] %v11447_v5  ;;  %v16484_v57 = vor.u32 %v18272_v58, %v16481_v36  ;;  %v10341_v44 = vpop.f32.mrf.mxu3  ;;  %v17978_v58 = vld [vmem:[%s28427_s14 + $0x540] sm:$0xf0]  ;;  %v16791_v36 = vld [vmem:[%s28427_s14 + $0x10d8] sm:$0xf]  ;;  %v16184_v11 = vor.u32 %v18206_v3, %v16183_v47 }
 0x6b4   :  { %v18358_v25 = vld [vmem:[%s28427_s14 + $0x1120] sm:$0xf0]  ;;  %v27258_v5 = vld [vmem:[%s28427_s14 + $0xb80] sm:$0xf]  ;;  %v10342_v60 = vadd.f32 %v10341_v44, %v6727_v39  ;;  %v18339_v52 = vld [vmem:[%s28427_s14 + $0x1088] sm:$0xf0] }
 0x6b5   :  { %10613 = vmatpush.bf16.msra.mxu3 %v15120_v0  ;;  %10627 = vmatpush.bf16.msra.mxu1 %v15728_v43  ;;  %v18498_v0 = vpop.eup %18497  ;;  %v17064_v43 = vmul.f32 -1.442695, %v10330_v42  ;;  %v17950_v22 = vld [vmem:[%s28427_s14 + $0x464] sm:$0xf]  ;;  %v15272_v42 = vor.u32 %v17978_v58, %v15271_v24  ;;  %v15729_v17 = vld [vmem:[%s28427_s14 + $0x8d4] sm:$0xf0]  ;;  %v16716_v27 = vor.u32 %v18339_v52, %v16715_v59 }
 0x6b6   :  { %10589 = vmatpush.bf16.msrb.mxu2 %v16028_v32  ;;  %v27167_v63 = vadd.f32 1.0, %v18498_v0  ;;  %v18396_v32 = vld [vmem:[%s28427_s14 + $0x1250] sm:$0xf0]  ;;  %v18102_v23 = vld [vmem:[%s28427_s14 + $0x924] sm:$0xf]  ;;  %v16792_v0 = vor.u32 %v18358_v25, %v16791_v36 }
 0x6b7   :  { %10603 = vmatpush.bf16.msrb.mxu0 %v16636_v62  ;;  %18499 = vpow2.f32 %v17064_v43  ;;  %v17845_v62 = vld [vmem:[%s28427_s14 + $0x118] sm:$0xf0]  ;;  %v16563_v36 = vld [vmem:[%s28427_s14 + $0xf10] sm:$0xf] }
 0x6b8   :  { %18501 = vrcp.f32 %v27167_v63  ;;  %v14740_v53 = vor.u32 %v17845_v62, %v14739_v15  ;;  %v11173_v7 = vand.u32 2147483647, %v27167_v63  ;;  %vm11169_vm8 = vweird.f32 %v27167_v63  ;;  %v16639_v15 = vld [vmem:[%s28427_s14 + $0xfa8] sm:$0xf]  ;;  %v18320_v62 = vld [vmem:[%s28427_s14 + $0xff0] sm:$0xf0] }
 0x6b9   :  { %10614 = vmatpush.bf16.msra.mxu3 %v15044_v46  ;;  %10628 = vmatpush.bf16.msra.mxu1 %v15652_v10  ;;  %v16336_v46 = vor.u32 %v18244_v38, %v16335_v20  ;;  %v16944_v10 = vor.u32 %v18396_v32, %v16943_v34  ;;  %v27292_v20 = vld [vmem:[%s28427_s14 + $0xae8] sm:$0xf]  ;;  %v16108_v32 = vor.u32 %v27263_v2, %v27258_v5 }
 0x6ba   :  { %10590 = vmatpush.bf16.msrb.mxu2 %v15952_v41  ;;  %vm11174_vm10 = vcmp.eq.f32.partialorder %v11173_v7, 8.507059e+37  ;;  %v18282_v7 = vld [vmem:[%s28427_s14 + $0xec0] sm:$0xf0] }
 0x6bb   :  { %10604 = vmatpush.bf16.msrb.mxu0 %v16560_v14  ;;  %v10343_v34 = vpop.f32.mrf.mxu3 }
 0x6bc   :  { %v10344_v47 = vadd.f32 %v10343_v34, %v6727_v39  ;;  %v16640_v39 = vor.u32 %v18320_v62, %v16639_v15  ;;  %v18026_v34 = vld [vmem:[%s28427_s14 + $0x6c4] sm:$0xf]  ;;  %v16413_v62 = vld [vmem:[%s28427_s14 + $0xe2c] sm:$0xf0] }
 0x6bd   :  { %10615 = vmatpush.bf16.msra.mxu3 %v14968_v48  ;;  %10629 = vmatpush.bf16.msra.mxu1 %v15576_v55  ;;  %v18500_v61 = vpop.eup %18499  ;;  %v16868_v48 = vor.u32 %v18377_v30, %v16867_v28  ;;  %v15197_v55 = vld [vmem:[%s28427_s14 + $0x4ac] sm:$0xf0]  ;;  %v17912_v28 = vld [vmem:[%s28427_s14 + $0x334] sm:$0xf]  ;;  %v15045_v30 = vld [vmem:[%s28427_s14 + $0x37c] sm:$0xf0] }
 0x6be   :  { %10591 = vmatpush.bf16.msrb.mxu2 %v15876_v56  ;;  %v27230_v41 = vpop.eup %18501  ;;  %v27232_v14 = vadd.f32 1.0, %v18500_v61  ;;  %v11175_v56 = vand.u32 2147483648, %v27167_v63  ;;  %v15200_v43 = vor.u32 %v17950_v22, %v15197_v55  ;;  %v18064_v61 = vld [vmem:[%s28427_s14 + $0x7f4] sm:$0xf]  ;;  %v18301_v55 = vld [vmem:[%s28427_s14 + $0xf58] sm:$0xf0] }
 0x6bf   :  { %10605 = vmatpush.bf16.msrb.mxu0 %v16484_v57  ;;  %v11165_v37 = vmul.f32 %v27230_v41, %v27167_v63  ;;  %v10355_v57 = vpop.f32.mrf.mxu1  ;;  %vm11170_vm7 = vweird.f32 %v27230_v41  ;;  %v10383_v12 = vpop.f32.mrf.mxu0  ;;  %v18254_v15 = vld [vmem:[%s28427_s14 + $0xde4] sm:$0xf] }
 0x6c0   :  { %18503 = vrcp.f32 %v27232_v14  ;;  %vm27311_vm9 = vmor %vm11169_vm8, %vm11170_vm7  ;;  %v11460_v25 = vand.u32 2147483648, %v27232_v14  ;;  %v11458_v5 = vand.u32 2147483647, %v27232_v14  ;;  %vm11454_vm12 = vweird.f32 %v27232_v14 }
 0x6c1   :  { %10616 = vmatpush.bf16.msra.mxu3 %v14892_v51  ;;  %10630 = vmatpush.bf16.msra.mxu1 %v15500_v18  ;;  %v11166_v26 = vsub.f32 1.0, %v11165_v37  ;;  %v17931_v51 = vld [vmem:[%s28427_s14 + $0x3cc] sm:$0xf]  ;;  %v15121_v18 = vld [vmem:[%s28427_s14 + $0x414] sm:$0xf0]  ;;  %v15048_v37 = vor.u32 %v17912_v28, %v15045_v30 }
 0x6c2   :  { %10640 = vmatpush.bf16.msra.mxu2 %v16412_v50  ;;  %10606 = vmatmul.bf16.vlgmr.msrb.gmra.mxu0 %v24215_v8  ;;  %v15808_v50 = vor.u32 %v18102_v23, %v15805_v33  ;;  %v15124_v44 = vor.u32 %v17931_v51, %v15121_v18  ;;  %v17893_v23 = vld [vmem:[%s28427_s14 + $0x29c] sm:$0xf]  ;;  %v16564_v51 = vor.u32 %v18301_v55, %v16563_v36  ;;  %vm11459_vm14 = vcmp.eq.f32.partialorder %v11458_v5, 8.507059e+37  ;;  %v17988_v55 = vld [vmem:[%s28427_s14 + $0x594] sm:$0xf] }
 0x6c3   :  { %10654 = vmatpush.bf16.msra.mxu0 %v17020_v6  ;;  %10592 = vmatmul.bf16.vlgmr.msrb.gmra.mxu2 %v24207_v35  ;;  %v11167_v45 = vmul.f32 %v27230_v41, %v11166_v26  ;;  %v18083_v6 = vld [vmem:[%s28427_s14 + $0x88c] sm:$0xf]  ;;  %v14969_v26 = vld [vmem:[%s28427_s14 + $0x2e4] sm:$0xf0] }
 0x6c4   :  { %v15732_v31 = vor.u32 %v18083_v6, %v15729_v17 }
 0x6c5   :  { %10617 = vmatpush.bf16.msra.mxu3 %v14816_v29  ;;  %10631 = vmatpush.bf16.msra.mxu1 %v15424_v13  ;;  %v11168_v38 = vadd.f32 %v27230_v41, %v11167_v45  ;;  %v10356_v29 = vadd.f32 %v10355_v57, %v10342_v60  ;;  %v18168_v13 = vld [vmem:[%s28427_s14 + $0xb30] sm:$0xf0]  ;;  %v18130_v57 = vld [vmem:[%s28427_s14 + $0xa00] sm:$0xf0]  ;;  %v14972_v45 = vor.u32 %v17893_v23, %v14969_v26  ;;  %v15349_v23 = vld [vmem:[%s28427_s14 + $0x5dc] sm:$0xf0] }
 0x6c6   :  { %10641 = vmatpush.bf16.msra.mxu2 %v16336_v46  ;;  %v27307_v63 = vpop.eup %18503  ;;  %v10369_v1 = vpop.f32.mrf.mxu2  ;;  %v18406_v46 = vld [vmem:[%s28427_s14 + $0x12a4] sm:$0xf]  ;;  %v18368_v26 = vld [vmem:[%s28427_s14 + $0x1174] sm:$0xf] }
 0x6c7   :  { %10655 = vmatpush.bf16.msra.mxu0 %v16944_v10  ;;  %v11176_v10 = vor.u32 1.1754944e-38, %v11175_v56  ;;  %v11172_v54 = vsel %vm27311_vm9, %v27230_v41, %v11168_v38  ;;  %v11450_v16 = vmul.f32 %v27307_v63, %v27232_v14  ;;  %v10370_v24 = vadd.f32 %v10369_v1, %v10356_v29  ;;  %v10357_v60 = vpop.f32.mrf.mxu1  ;;  %v15879_v56 = vld [vmem:[%s28427_s14 + $0x9b8] sm:$0xf]  ;;  %v14893_v38 = vld [vmem:[%s28427_s14 + $0x24c] sm:$0xf0]  ;;  %v10385_v29 = vpop.f32.mrf.mxu0 }
 0x6c8   :  { %v16032_v41 = vor.u32 %v18168_v13, %v27292_v20  ;;  %vm11455_vm11 = vweird.f32 %v27307_v63  ;;  %v10358_v52 = vadd.f32 %v10357_v60, %v10344_v47  ;;  %v11461_v14 = vor.u32 1.1754944e-38, %v11460_v25  ;;  %v15501_v13 = vld [vmem:[%s28427_s14 + $0x70c] sm:$0xf0]  ;;  %v17855_v1 = vld [vmem:[%s28427_s14 + $0x16c] sm:$0xf] }
 0x6c9   :  { %10618 = vmatpush.bf16.msra.mxu3 %v14740_v53  ;;  %10632 = vmatpush.bf16.msra.mxu1 %v15348_v21  ;;  %v15653_v53 = vld [vmem:[%s28427_s14 + $0x83c] sm:$0xf0]  ;;  %v11177_v21 = vsel %vm11174_vm10, %v11176_v10, %v11172_v54  ;;  %v11451_v58 = vsub.f32 1.0, %v11450_v16  ;;  %v10384_v3 = vadd.f32 %v10383_v12, %v10370_v24  ;;  %vm27381_vm13 = vmor %vm11454_vm12, %vm11455_vm11  ;;  %v17021_v10 = vld [vmem:[%s28427_s14 + $0x12ec] sm:$0xf0]  ;;  %v15880_v12 = vor.u32 %v18130_v57, %v15879_v56 }
 0x6ca   :  { %10642 = vmatpush.bf16.msra.mxu2 %v16260_v40  ;;  %11622 = vst [vmem:[%s28430_s16 + $0x40] sm:$0xff] %v11177_v21  ;;  %v15955_v40 = vld [vmem:[%s28427_s14 + $0xa50] sm:$0xf]  ;;  %v15656_v22 = vor.u32 %v18064_v61, %v15653_v53  ;;  %v15504_v30 = vor.u32 %v18026_v34, %v15501_v13  ;;  %v14817_v54 = vld [vmem:[%s28427_s14 + $0x1b4] sm:$0xf0]  ;;  %v16416_v61 = vor.u32 %v18254_v15, %v16413_v62 }
 0x6cb   :  { %10656 = vmatpush.bf16.msra.mxu0 %v16868_v48  ;;  %v18149_v48 = vld [vmem:[%s28427_s14 + $0xa98] sm:$0xf0]  ;;  %v11452_v33 = vmul.f32 %v27307_v63, %v11451_v58  ;;  %v17046_v2 = vmul.f32 -1.442695, %v10384_v3  ;;  %v18007_v16 = vld [vmem:[%s28427_s14 + $0x62c] sm:$0xf]  ;;  %v17024_v53 = vor.u32 %v18406_v46, %v17021_v10  ;;  %v15352_v57 = vor.u32 %v17988_v55, %v15349_v23 }
 0x6cc   :  { %v15425_v21 = vld [vmem:[%s28427_s14 + $0x674] sm:$0xf0]  ;;  %v18235_v58 = vld [vmem:[%s28427_s14 + $0xd4c] sm:$0xf]  ;;  %v17836_v25 = vld [vmem:[%s28427_s14 + $0xd4] sm:$0xf] }
 0x6cd   :  { %10619 = vmatpush.bf16.msra.mxu3 %v14664_v49  ;;  %10633 = vmatpush.bf16.msra.mxu1 %v15272_v42  ;;  %v18045_v49 = vld [vmem:[%s28427_s14 + $0x75c] sm:$0xf]  ;;  %v15577_v42 = vld [vmem:[%s28427_s14 + $0x7a4] sm:$0xf0]  ;;  %v11453_v59 = vadd.f32 %v27307_v63, %v11452_v33  ;;  %18505 = vpow2.f32 %v17046_v2  ;;  %v16337_v47 = vld [vmem:[%s28427_s14 + $0xd94] sm:$0xf0]  ;;  %v15428_v36 = vor.u32 %v18007_v16, %v15425_v21 }
 0x6ce   :  { %10643 = vmatpush.bf16.msra.mxu2 %v16184_v11  ;;  %v16487_v11 = vld [vmem:[%s28427_s14 + $0xe78] sm:$0xf]  ;;  %v10371_v18 = vpop.f32.mrf.mxu2  ;;  %v15580_v20 = vor.u32 %v18045_v49, %v15577_v42  ;;  %v18387_v3 = vld [vmem:[%s28427_s14 + $0x120c] sm:$0xf]  ;;  %v18216_v33 = vld [vmem:[%s28427_s14 + $0xcb4] sm:$0xf] }
 0x6cf   :  { %10657 = vmatpush.bf16.msra.mxu0 %v16792_v0  ;;  %v11457_v6 = vsel %vm27381_vm13, %v27307_v63, %v11453_v59  ;;  %v10372_v17 = vadd.f32 %v10371_v18, %v10358_v52  ;;  %v16261_v2 = vld [vmem:[%s28427_s14 + $0xcfc] sm:$0xf0]  ;;  %v17817_v49 = vld [vmem:[%s28427_s14 + $0x3c] sm:$0xf]  ;;  %v14665_v42 = vld [vmem:[%s28427_s14 + $0x84] sm:$0xf0] }
 0x6d0   :  { %10620 = vmatmul.bf16.vlgmr.msra.gmra.mxu3 %v24139_v9  ;;  %10634 = vmatmul.bf16.vlgmr.msra.gmra.mxu1 %v24147_v19  ;;  %v16869_v60 = vld [vmem:[%s28427_s14 + $0x11bc] sm:$0xf0]  ;;  %v17969_v59 = vld [vmem:[%s28427_s14 + $0x4fc] sm:$0xf]  ;;  %v16264_v18 = vor.u32 %v18216_v33, %v16261_v2  ;;  %v18112_v34 = vld [vmem:[%s28427_s14 + $0x970] sm:$0xf0]  ;;  %v14668_v62 = vor.u32 %v17817_v49, %v14665_v42 }
 0x6d1   :  { %10668 = vmatpush.bf16.msrb.mxu3 %v15200_v43  ;;  %10682 = vmatpush.bf16.msrb.mxu1 %v15808_v50  ;;  %v15956_v43 = vor.u32 %v18149_v48, %v15955_v40  ;;  %v17874_v50 = vld [vmem:[%s28427_s14 + $0x204] sm:$0xf]  ;;  %v10386_v63 = vadd.f32 %v10385_v29, %v10372_v17  ;;  %v6728_v40 = vperm.slane %v26907_v4, 2  ;;  %v14820_v48 = vor.u32 %v17855_v1, %v14817_v54  ;;  %v18197_v0 = vld [vmem:[%s28427_s14 + $0xc1c] sm:$0xf] }
 0x6d2   :  { %10644 = vmatpush.bf16.msra.mxu2 %v16108_v32  ;;  %v11462_v32 = vsel %vm11459_vm14, %v11461_v14, %v11457_v6  ;;  %v14896_v28 = vor.u32 %v17874_v50, %v14893_v38  ;;  %v16185_v14 = vld [vmem:[%s28427_s14 + $0xc64] sm:$0xf0]  ;;  %v27523_v29 = vld [vmem:[%s28427_s14 + $0xbcc] sm:$0xf0]  ;;  %v18330_v46 = vld [vmem:[%s28427_s14 + $0x1044] sm:$0xf] }
 0x6d3   :  { %10658 = vmatpush.bf16.msra.mxu0 %v16716_v27  ;;  %11641 = vst [vmem:[%s28430_s16 + $0xd8] sm:$0xff] %v11462_v32  ;;  %v16488_v27 = vor.u32 %v18282_v7, %v16487_v11  ;;  %v10397_v5 = vpop.f32.mrf.mxu3  ;;  %v15273_v11 = vld [vmem:[%s28427_s14 + $0x544] sm:$0xf0]  ;;  %v18349_v7 = vld [vmem:[%s28427_s14 + $0x10dc] sm:$0xf]  ;;  %v16188_v1 = vor.u32 %v18197_v0, %v16185_v14 }
 0x6d4   :  { %v16793_v50 = vld [vmem:[%s28427_s14 + $0x1124] sm:$0xf0]  ;;  %v27518_v32 = vld [vmem:[%s28427_s14 + $0xb84] sm:$0xf]  ;;  %v10398_v15 = vadd.f32 %v10397_v5, %v6728_v40  ;;  %v16717_v10 = vld [vmem:[%s28427_s14 + $0x108c] sm:$0xf0] }
 0x6d5   :  { %10669 = vmatpush.bf16.msrb.mxu3 %v15124_v44  ;;  %10683 = vmatpush.bf16.msrb.mxu1 %v15732_v31  ;;  %v18506_v44 = vpop.eup %18505  ;;  %v17065_v31 = vmul.f32 -1.442695, %v10386_v63  ;;  %v15203_v17 = vld [vmem:[%s28427_s14 + $0x468] sm:$0xf]  ;;  %v15276_v63 = vor.u32 %v17969_v59, %v15273_v11  ;;  %v18093_v21 = vld [vmem:[%s28427_s14 + $0x8d8] sm:$0xf0]  ;;  %v16720_v23 = vor.u32 %v18330_v46, %v16717_v10 }
 0x6d6   :  { %10645 = vmatpush.bf16.msra.mxu2 %v16032_v41  ;;  %v27427_v24 = vadd.f32 1.0, %v18506_v44  ;;  %v16945_v41 = vld [vmem:[%s28427_s14 + $0x1254] sm:$0xf0]  ;;  %v15811_v38 = vld [vmem:[%s28427_s14 + $0x928] sm:$0xf]  ;;  %v16796_v44 = vor.u32 %v18349_v7, %v16793_v50 }
 0x6d7   :  { %10659 = vmatpush.bf16.msra.mxu0 %v16640_v39  ;;  %18507 = vpow2.f32 %v17065_v31  ;;  %v14741_v39 = vld [vmem:[%s28427_s14 + $0x11c] sm:$0xf0]  ;;  %v18292_v7 = vld [vmem:[%s28427_s14 + $0xf14] sm:$0xf]  ;;  %v18121_v10 = vld [vmem:[%s28427_s14 + $0x9bc] sm:$0xf] }
 0x6d8   :  { %18509 = vrcp.f32 %v27427_v24  ;;  %v14744_v56 = vor.u32 %v17836_v25, %v14741_v39  ;;  %v11188_v16 = vand.u32 2147483647, %v27427_v24  ;;  %vm11184_vm1 = vweird.f32 %v27427_v24  ;;  %v18311_v25 = vld [vmem:[%s28427_s14 + $0xfac] sm:$0xf]  ;;  %v16641_v39 = vld [vmem:[%s28427_s14 + $0xff4] sm:$0xf0] }
 0x6d9   :  { %10670 = vmatpush.bf16.msrb.mxu3 %v15048_v37  ;;  %10684 = vmatpush.bf16.msrb.mxu1 %v15656_v22  ;;  %v16340_v37 = vor.u32 %v18235_v58, %v16337_v47  ;;  %v16948_v22 = vor.u32 %v18387_v3, %v16945_v41  ;;  %v27552_v58 = vld [vmem:[%s28427_s14 + $0xaec] sm:$0xf]  ;;  %v16112_v41 = vor.u32 %v27518_v32, %v27523_v29 }
 0x6da   :  { %10646 = vmatpush.bf16.msra.mxu2 %v15956_v43  ;;  %vm11189_vm3 = vcmp.eq.f32.partialorder %v11188_v16, 8.507059e+37  ;;  %v16644_v4 = vor.u32 %v18311_v25, %v16641_v39  ;;  %v17903_v29 = vld [vmem:[%s28427_s14 + $0x2e8] sm:$0xf0]  ;;  %v14899_v16 = vld [vmem:[%s28427_s14 + $0x208] sm:$0xf] }
 0x6db   :  { %10660 = vmatpush.bf16.msra.mxu0 %v16564_v51  ;;  %v10399_v3 = vpop.f32.mrf.mxu3  ;;  %v18264_v25 = vld [vmem:[%s28427_s14 + $0xe30] sm:$0xf0] }
 0x6dc   :  { %v10400_v0 = vadd.f32 %v10399_v3, %v6728_v40 }
 0x6dd   :  { %10671 = vmatpush.bf16.msrb.mxu3 %v14972_v45  ;;  %10685 = vmatpush.bf16.msrb.mxu1 %v15580_v20  ;;  %v18508_v52 = vpop.eup %18507  ;;  %v16872_v45 = vor.u32 %v18368_v26, %v16869_v60  ;;  %v17960_v20 = vld [vmem:[%s28427_s14 + $0x4b0] sm:$0xf0]  ;;  %v15051_v26 = vld [vmem:[%s28427_s14 + $0x338] sm:$0xf]  ;;  %v17922_v60 = vld [vmem:[%s28427_s14 + $0x380] sm:$0xf0] }
 0x6de   :  { %10647 = vmatpush.bf16.msra.mxu2 %v15880_v12  ;;  %v27490_v43 = vpop.eup %18509  ;;  %v27492_v51 = vadd.f32 1.0, %v18508_v52  ;;  %v11190_v12 = vand.u32 2147483648, %v27427_v24  ;;  %v15204_v31 = vor.u32 %v17960_v20, %v15203_v17  ;;  %v15659_v52 = vld [vmem:[%s28427_s14 + $0x7f8] sm:$0xf]  ;;  %v15052_v40 = vor.u32 %v17922_v60, %v15051_v26  ;;  %v16565_v17 = vld [vmem:[%s28427_s14 + $0xf5c] sm:$0xf0] }
 0x6df   :  { %10661 = vmatpush.bf16.msra.mxu0 %v16488_v27  ;;  %v11180_v6 = vmul.f32 %v27490_v43, %v27427_v24  ;;  %v10411_v27 = vpop.f32.mrf.mxu1  ;;  %vm11185_vm15 = vweird.f32 %v27490_v43  ;;  %v10439_v55 = vpop.f32.mrf.mxu0  ;;  %v14975_v20 = vld [vmem:[%s28427_s14 + $0x2a0] sm:$0xf]  ;;  %v17865_v60 = vld [vmem:[%s28427_s14 + $0x1b8] sm:$0xf0] }
 0x6e0   :  { %18511 = vrcp.f32 %v27492_v51  ;;  %vm27571_vm2 = vmor %vm11184_vm1, %vm11185_vm15  ;;  %v11475_v50 = vand.u32 2147483648, %v27492_v51  ;;  %vm11469_vm5 = vweird.f32 %v27492_v51 }
 0x6e1   :  { %10672 = vmatpush.bf16.msrb.mxu3 %v14896_v28  ;;  %10686 = vmatpush.bf16.msrb.mxu1 %v15504_v30  ;;  %v11181_v13 = vsub.f32 1.0, %v11180_v6  ;;  %v15127_v28 = vld [vmem:[%s28427_s14 + $0x3d0] sm:$0xf]  ;;  %v17941_v30 = vld [vmem:[%s28427_s14 + $0x418] sm:$0xf0] }
 0x6e2   :  { %10696 = vmatpush.bf16.msrb.mxu2 %v16416_v61  ;;  %10662 = vmatmul.bf16.vlgmr.msra.gmra.mxu0 %v24215_v8  ;;  %v15812_v61 = vor.u32 %v18112_v34, %v15811_v38  ;;  %v15128_v5 = vor.u32 %v17941_v30, %v15127_v28  ;;  %v11473_v34 = vand.u32 2147483647, %v27492_v51  ;;  %v14976_v30 = vor.u32 %v17903_v29, %v14975_v20  ;;  %v17998_v20 = vld [vmem:[%s28427_s14 + $0x5e0] sm:$0xf0]  ;;  %v16875_v29 = vld [vmem:[%s28427_s14 + $0x1178] sm:$0xf] }
 0x6e3   :  { %10710 = vmatpush.bf16.msrb.mxu0 %v17024_v53  ;;  %10648 = vmatmul.bf16.vlgmr.msra.gmra.mxu2 %v24207_v35  ;;  %v11182_v54 = vmul.f32 %v27490_v43, %v11181_v13  ;;  %v15735_v53 = vld [vmem:[%s28427_s14 + $0x890] sm:$0xf] }
 0x6e4   :  { %v15736_v2 = vor.u32 %v18093_v21, %v15735_v53  ;;  %vm11474_vm7 = vcmp.eq.f32.partialorder %v11473_v34, 8.507059e+37 }
 0x6e5   :  { %10673 = vmatpush.bf16.msrb.mxu3 %v14820_v48  ;;  %10687 = vmatpush.bf16.msrb.mxu1 %v15428_v36  ;;  %v11183_v47 = vadd.f32 %v27490_v43, %v11182_v54  ;;  %v10412_v48 = vadd.f32 %v10411_v27, %v10398_v15  ;;  %v16033_v36 = vld [vmem:[%s28427_s14 + $0xb34] sm:$0xf0]  ;;  %v15583_v15 = vld [vmem:[%s28427_s14 + $0x760] sm:$0xf]  ;;  %v18273_v27 = vld [vmem:[%s28427_s14 + $0xe7c] sm:$0xf] }
 0x6e6   :  { %10697 = vmatpush.bf16.msrb.mxu2 %v16340_v37  ;;  %v27567_v24 = vpop.eup %18511  ;;  %v10425_v33 = vpop.f32.mrf.mxu2  ;;  %v16489_v54 = vld [vmem:[%s28427_s14 + $0xec4] sm:$0xf0]  ;;  %v18416_v37 = vld [vmem:[%s28427_s14 + $0x12f0] sm:$0xf0] }
 0x6e7   :  { %10711 = vmatpush.bf16.msrb.mxu0 %v16948_v22  ;;  %v11191_v22 = vor.u32 1.1754944e-38, %v11190_v12  ;;  %v11187_v49 = vsel %vm27571_vm2, %v27490_v43, %v11183_v47  ;;  %v11465_v42 = vmul.f32 %v27567_v24, %v27492_v51  ;;  %v10426_v59 = vadd.f32 %v10425_v33, %v10412_v48  ;;  %v10413_v13 = vpop.f32.mrf.mxu1  ;;  %v15881_v12 = vld [vmem:[%s28427_s14 + $0xa04] sm:$0xf0]  ;;  %v18036_v48 = vld [vmem:[%s28427_s14 + $0x710] sm:$0xf0] }
 0x6e8   :  { %v16036_v43 = vor.u32 %v27552_v58, %v16033_v36  ;;  %vm11470_vm4 = vweird.f32 %v27567_v24  ;;  %v10414_v46 = vadd.f32 %v10413_v13, %v10400_v0  ;;  %v11476_v51 = vor.u32 1.1754944e-38, %v11475_v50  ;;  %v17884_v58 = vld [vmem:[%s28427_s14 + $0x250] sm:$0xf0]  ;;  %v15507_v47 = vld [vmem:[%s28427_s14 + $0x6c8] sm:$0xf] }
 0x6e9   :  { %10674 = vmatpush.bf16.msrb.mxu3 %v14744_v56  ;;  %10688 = vmatpush.bf16.msrb.mxu1 %v15352_v57  ;;  %v18074_v56 = vld [vmem:[%s28427_s14 + $0x840] sm:$0xf0]  ;;  %v11192_v57 = vsel %vm11189_vm3, %v11191_v22, %v11187_v49  ;;  %v11466_v11 = vsub.f32 1.0, %v11465_v42  ;;  %v10440_v14 = vadd.f32 %v10439_v55, %v10426_v59  ;;  %vm27641_vm6 = vmor %vm11469_vm5, %vm11470_vm4  ;;  %v16419_v36 = vld [vmem:[%s28427_s14 + $0xde8] sm:$0xf]  ;;  %v15884_v22 = vor.u32 %v18121_v10, %v15881_v12 }
 0x6ea   :  { %10698 = vmatpush.bf16.msrb.mxu2 %v16264_v18  ;;  %11623 = vst [vmem:[%s28430_s16 + $0x48] sm:$0xff] %v11192_v57  ;;  %v18140_v18 = vld [vmem:[%s28427_s14 + $0xa54] sm:$0xf]  ;;  %v15660_v6 = vor.u32 %v18074_v56, %v15659_v52  ;;  %v16492_v55 = vor.u32 %v18273_v27, %v16489_v54  ;;  %v15508_v26 = vor.u32 %v18036_v48, %v15507_v47  ;;  %v15431_v49 = vld [vmem:[%s28427_s14 + $0x630] sm:$0xf] }
 0x6eb   :  { %10712 = vmatpush.bf16.msrb.mxu0 %v16872_v45  ;;  %v15957_v45 = vld [vmem:[%s28427_s14 + $0xa9c] sm:$0xf0]  ;;  %v11467_v38 = vmul.f32 %v27567_v24, %v11466_v11  ;;  %v17047_v32 = vmul.f32 -1.442695, %v10440_v14  ;;  %v16420_v59 = vor.u32 %v18264_v25, %v16419_v36  ;;  %v18017_v56 = vld [vmem:[%s28427_s14 + $0x678] sm:$0xf0] }
 0x6ec   :  { %v16343_v57 = vld [vmem:[%s28427_s14 + $0xd50] sm:$0xf]  ;;  %v18245_v11 = vld [vmem:[%s28427_s14 + $0xd98] sm:$0xf0]  ;;  %v14747_v50 = vld [vmem:[%s28427_s14 + $0xd8] sm:$0xf] }
 0x6ed   :  { %10675 = vmatpush.bf16.msrb.mxu3 %v14668_v62  ;;  %10689 = vmatpush.bf16.msrb.mxu1 %v15276_v63  ;;  %v18055_v62 = vld [vmem:[%s28427_s14 + $0x7a8] sm:$0xf0]  ;;  %v11468_v63 = vadd.f32 %v27567_v24, %v11467_v38  ;;  %18513 = vpow2.f32 %v17047_v32  ;;  %v16951_v0 = vld [vmem:[%s28427_s14 + $0x1210] sm:$0xf]  ;;  %v18397_v14 = vld [vmem:[%s28427_s14 + $0x1258] sm:$0xf0] }
 0x6ee   :  { %10699 = vmatpush.bf16.msrb.mxu2 %v16188_v1  ;;  %v10427_v28 = vpop.f32.mrf.mxu2  ;;  %v15584_v21 = vor.u32 %v18055_v62, %v15583_v15  ;;  %v16267_v38 = vld [vmem:[%s28427_s14 + $0xcb8] sm:$0xf]  ;;  %v18226_v32 = vld [vmem:[%s28427_s14 + $0xd00] sm:$0xf0]  ;;  %v14671_v15 = vld [vmem:[%s28427_s14 + $0x40] sm:$0xf] }
 0x6ef   :  { %10713 = vmatpush.bf16.msrb.mxu0 %v16796_v44  ;;  %v15960_v44 = vor.u32 %v18140_v18, %v15957_v45  ;;  %v10428_v53 = vadd.f32 %v10427_v28, %v10414_v46  ;;  %v18378_v13 = vld [vmem:[%s28427_s14 + $0x11c0] sm:$0xf0]  ;;  %v17827_v62 = vld [vmem:[%s28427_s14 + $0x88] sm:$0xf0]  ;;  %v16191_v1 = vld [vmem:[%s28427_s14 + $0xc20] sm:$0xf]  ;;  %v16268_v28 = vor.u32 %v18226_v32, %v16267_v38 }
 0x6f0   :  { %10676 = vmatmul.bf16.vlgmr.msrb.gmra.mxu3 %v24139_v9  ;;  %10690 = vmatmul.bf16.vlgmr.msrb.gmra.mxu1 %v24147_v19  ;;  %v17979_v27 = vld [vmem:[%s28427_s14 + $0x548] sm:$0xf0]  ;;  %v16799_v54 = vld [vmem:[%s28427_s14 + $0x10e0] sm:$0xf]  ;;  %v15813_v47 = vld [vmem:[%s28427_s14 + $0x974] sm:$0xf0]  ;;  %v14672_v25 = vor.u32 %v17827_v62, %v14671_v15 }
 0x6f1   :  { %10724 = vmatpush.bf16.msra.mxu3 %v15204_v31  ;;  %10738 = vmatpush.bf16.msra.mxu1 %v15812_v61  ;;  %v16568_v31 = vor.u32 %v18292_v7, %v16565_v17  ;;  %v11472_v61 = vsel %vm27641_vm6, %v27567_v24, %v11468_v63  ;;  %v17027_v24 = vld [vmem:[%s28427_s14 + $0x12a8] sm:$0xf]  ;;  %v15432_v7 = vor.u32 %v18017_v56, %v15431_v49  ;;  %v15355_v17 = vld [vmem:[%s28427_s14 + $0x598] sm:$0xf]  ;;  %v15279_v63 = vld [vmem:[%s28427_s14 + $0x500] sm:$0xf] }
 0x6f2   :  { %10700 = vmatpush.bf16.msrb.mxu2 %v16112_v41  ;;  %v11477_v3 = vsel %vm11474_vm7, %v11476_v51, %v11472_v61  ;;  %v10441_v41 = vpop.f32.mrf.mxu0  ;;  %v17028_v52 = vor.u32 %v18416_v37, %v17027_v24  ;;  %v15356_v12 = vor.u32 %v17998_v20, %v15355_v17  ;;  %v18207_v51 = vld [vmem:[%s28427_s14 + $0xc68] sm:$0xf0]  ;;  %v16723_v24 = vld [vmem:[%s28427_s14 + $0x1048] sm:$0xf]  ;;  %v18340_v37 = vld [vmem:[%s28427_s14 + $0x1090] sm:$0xf0] }
 0x6f3   :  { %10714 = vmatpush.bf16.msrb.mxu0 %v16720_v23  ;;  %11642 = vst [vmem:[%s28430_s16 + $0xe0] sm:$0xff] %v11477_v3  ;;  %v10442_v39 = vadd.f32 %v10441_v41, %v10428_v53  ;;  %v14823_v23 = vld [vmem:[%s28427_s14 + $0x170] sm:$0xf]  ;;  %v18514_v33 = vpop.eup %18513  ;;  %v10453_v34 = vpop.f32.mrf.mxu3  ;;  %v17951_v53 = vld [vmem:[%s28427_s14 + $0x46c] sm:$0xf]  ;;  %v16724_v20 = vor.u32 %v18340_v37, %v16723_v24 }
 0x6f4   :  { %v27687_v42 = vadd.f32 1.0, %v18514_v33  ;;  %v14824_v45 = vor.u32 %v17865_v60, %v14823_v23  ;;  %v27783_v3 = vld [vmem:[%s28427_s14 + $0xb88] sm:$0xf]  ;;  %v27788_v41 = vld [vmem:[%s28427_s14 + $0xbd0] sm:$0xf0]  ;;  %v16192_v23 = vor.u32 %v18207_v51, %v16191_v1 }
 0x6f5   :  { %10725 = vmatpush.bf16.msra.mxu3 %v15128_v5  ;;  %10739 = vmatpush.bf16.msra.mxu1 %v15736_v2  ;;  %v17066_v5 = vmul.f32 -1.442695, %v10442_v39  ;;  %v14900_v2 = vor.u32 %v17884_v58, %v14899_v16  ;;  %v18359_v16 = vld [vmem:[%s28427_s14 + $0x1128] sm:$0xf0]  ;;  %v15280_v39 = vor.u32 %v17979_v27, %v15279_v63  ;;  %v15737_v56 = vld [vmem:[%s28427_s14 + $0x8dc] sm:$0xf0] }
 0x6f6   :  { %10701 = vmatpush.bf16.msrb.mxu2 %v16036_v43  ;;  %v27708_v43 = vld [vmem:[%s28429_s15 + $0x8] sm:$0xff]  ;;  %v16800_v33 = vor.u32 %v18359_v16, %v16799_v54  ;;  %v11203_v49 = vand.u32 2147483647, %v27687_v42  ;;  %vm11199_vm9 = vweird.f32 %v27687_v42  ;;  %v16571_v54 = vld [vmem:[%s28427_s14 + $0xf18] sm:$0xf] }
 0x6f7   :  { %10715 = vmatpush.bf16.msrb.mxu0 %v16644_v4  ;;  %18515 = vpow2.f32 %v17066_v5  ;;  %v6729_v18 = vperm.slane %v27708_v43, 3  ;;  %v17846_v4 = vld [vmem:[%s28427_s14 + $0x120] sm:$0xf0]  ;;  %v18103_v58 = vld [vmem:[%s28427_s14 + $0x92c] sm:$0xf] }
 0x6f8   :  { %18517 = vrcp.f32 %v27687_v42  ;;  %v14748_v10 = vor.u32 %v17846_v4, %v14747_v50  ;;  %v16647_v50 = vld [vmem:[%s28427_s14 + $0xfb0] sm:$0xf]  ;;  %v18321_v4 = vld [vmem:[%s28427_s14 + $0xff8] sm:$0xf0]  ;;  %vm11204_vm11 = vcmp.eq.f32.partialorder %v11203_v49, 8.507059e+37 }
 0x6f9   :  { %10726 = vmatpush.bf16.msra.mxu3 %v15052_v40  ;;  %10740 = vmatpush.bf16.msra.mxu1 %v15660_v6  ;;  %v16344_v40 = vor.u32 %v18245_v11, %v16343_v57  ;;  %v16952_v6 = vor.u32 %v18397_v14, %v16951_v0  ;;  %v10454_v36 = vadd.f32 %v10453_v34, %v6729_v18  ;;  %v27817_v57 = vld [vmem:[%s28427_s14 + $0xaf0] sm:$0xf]  ;;  %v18283_v49 = vld [vmem:[%s28427_s14 + $0xec8] sm:$0xf0] }
 0x6fa   :  { %10702 = vmatpush.bf16.msrb.mxu2 %v15960_v44  ;;  %v16116_v14 = vor.u32 %v27788_v41, %v27783_v3 }
 0x6fb   :  { %10716 = vmatpush.bf16.msrb.mxu0 %v16568_v31  ;;  %v10455_v0 = vpop.f32.mrf.mxu3 }
 0x6fc   :  { %v10456_v1 = vadd.f32 %v10455_v0, %v6729_v18  ;;  %v16648_v18 = vor.u32 %v18321_v4, %v16647_v50  ;;  %v18027_v0 = vld [vmem:[%s28427_s14 + $0x6cc] sm:$0xf]  ;;  %v16421_v4 = vld [vmem:[%s28427_s14 + $0xe34] sm:$0xf0] }
 0x6fd   :  { %10727 = vmatpush.bf16.msra.mxu3 %v14976_v30  ;;  %10741 = vmatpush.bf16.msra.mxu1 %v15584_v21  ;;  %v18516_v46 = vpop.eup %18515  ;;  %v16876_v30 = vor.u32 %v18378_v13, %v16875_v29  ;;  %v15205_v21 = vld [vmem:[%s28427_s14 + $0x4b4] sm:$0xf0]  ;;  %v17913_v29 = vld [vmem:[%s28427_s14 + $0x33c] sm:$0xf]  ;;  %v15053_v13 = vld [vmem:[%s28427_s14 + $0x384] sm:$0xf0] }
 0x6fe   :  { %10703 = vmatpush.bf16.msrb.mxu2 %v15884_v22  ;;  %v27755_v44 = vpop.eup %18517  ;;  %v27757_v31 = vadd.f32 1.0, %v18516_v46  ;;  %v11205_v22 = vand.u32 2147483648, %v27687_v42  ;;  %v15208_v5 = vor.u32 %v17951_v53, %v15205_v21  ;;  %v18065_v46 = vld [vmem:[%s28427_s14 + $0x7fc] sm:$0xf]  ;;  %v18302_v21 = vld [vmem:[%s28427_s14 + $0xf60] sm:$0xf0] }
 0x6ff   :  { %10717 = vmatpush.bf16.msrb.mxu0 %v16492_v55  ;;  %v11195_v61 = vmul.f32 %v27755_v44, %v27687_v42  ;;  %v10467_v55 = vpop.f32.mrf.mxu1  ;;  %vm11200_vm8 = vweird.f32 %v27755_v44  ;;  %v10495_v17 = vpop.f32.mrf.mxu0  ;;  %v18255_v50 = vld [vmem:[%s28427_s14 + $0xdec] sm:$0xf] }
 0x700   :  { %18519 = vrcp.f32 %v27757_v31  ;;  %vm27836_vm10 = vmor %vm11199_vm9, %vm11200_vm8  ;;  %v11490_v16 = vand.u32 2147483648, %v27757_v31  ;;  %v11488_v3 = vand.u32 2147483647, %v27757_v31  ;;  %vm11484_vm13 = vweird.f32 %v27757_v31 }
 0x701   :  { %10728 = vmatpush.bf16.msra.mxu3 %v14900_v2  ;;  %10742 = vmatpush.bf16.msra.mxu1 %v15508_v26  ;;  %v11196_v48 = vsub.f32 1.0, %v11195_v61  ;;  %v17932_v2 = vld [vmem:[%s28427_s14 + $0x3d4] sm:$0xf]  ;;  %v15129_v26 = vld [vmem:[%s28427_s14 + $0x41c] sm:$0xf0]  ;;  %v15056_v61 = vor.u32 %v17913_v29, %v15053_v13 }
 0x702   :  { %10752 = vmatpush.bf16.msra.mxu2 %v16420_v59  ;;  %10718 = vmatmul.bf16.vlgmr.msrb.gmra.mxu0 %v24215_v8  ;;  %v15816_v59 = vor.u32 %v18103_v58, %v15813_v47  ;;  %v15132_v34 = vor.u32 %v17932_v2, %v15129_v26  ;;  %v17894_v58 = vld [vmem:[%s28427_s14 + $0x2a4] sm:$0xf]  ;;  %v16572_v2 = vor.u32 %v18302_v21, %v16571_v54  ;;  %vm11489_vm15 = vcmp.eq.f32.partialorder %v11488_v3, 8.507059e+37  ;;  %v17989_v21 = vld [vmem:[%s28427_s14 + $0x59c] sm:$0xf] }
 0x703   :  { %10766 = vmatpush.bf16.msra.mxu0 %v17028_v52  ;;  %10704 = vmatmul.bf16.vlgmr.msrb.gmra.mxu2 %v24207_v35  ;;  %v11197_v60 = vmul.f32 %v27755_v44, %v11196_v48  ;;  %v18084_v52 = vld [vmem:[%s28427_s14 + $0x894] sm:$0xf]  ;;  %v14977_v48 = vld [vmem:[%s28427_s14 + $0x2ec] sm:$0xf0] }
 0x704   :  { %v15740_v32 = vor.u32 %v18084_v52, %v15737_v56 }
 0x705   :  { %10729 = vmatpush.bf16.msra.mxu3 %v14824_v45  ;;  %10743 = vmatpush.bf16.msra.mxu1 %v15432_v7  ;;  %v11198_v11 = vadd.f32 %v27755_v44, %v11197_v60  ;;  %v10468_v45 = vadd.f32 %v10467_v55, %v10454_v36  ;;  %v18169_v7 = vld [vmem:[%s28427_s14 + $0xb38] sm:$0xf0]  ;;  %v18131_v55 = vld [vmem:[%s28427_s14 + $0xa08] sm:$0xf0]  ;;  %v14980_v60 = vor.u32 %v17894_v58, %v14977_v48  ;;  %v15357_v58 = vld [vmem:[%s28427_s14 + $0x5e4] sm:$0xf0] }
 0x706   :  { %10753 = vmatpush.bf16.msra.mxu2 %v16344_v40  ;;  %v27832_v42 = vpop.eup %18519  ;;  %v10481_v38 = vpop.f32.mrf.mxu2  ;;  %v18407_v40 = vld [vmem:[%s28427_s14 + $0x12ac] sm:$0xf]  ;;  %v18369_v48 = vld [vmem:[%s28427_s14 + $0x117c] sm:$0xf] }
 0x707   :  { %10767 = vmatpush.bf16.msra.mxu0 %v16952_v6  ;;  %v11206_v6 = vor.u32 1.1754944e-38, %v11205_v22  ;;  %v11202_v15 = vsel %vm27836_vm10, %v27755_v44, %v11198_v11  ;;  %v11480_v62 = vmul.f32 %v27832_v42, %v27757_v31  ;;  %v10482_v63 = vadd.f32 %v10481_v38, %v10468_v45  ;;  %v10469_v36 = vpop.f32.mrf.mxu1  ;;  %v15887_v22 = vld [vmem:[%s28427_s14 + $0x9c0] sm:$0xf]  ;;  %v14901_v11 = vld [vmem:[%s28427_s14 + $0x254] sm:$0xf0]  ;;  %v10497_v45 = vpop.f32.mrf.mxu0 }
 0x708   :  { %v16040_v44 = vor.u32 %v18169_v7, %v27817_v57  ;;  %vm11485_vm12 = vweird.f32 %v27832_v42  ;;  %v10470_v37 = vadd.f32 %v10469_v36, %v10456_v1  ;;  %v11491_v31 = vor.u32 1.1754944e-38, %v11490_v16  ;;  %v15509_v7 = vld [vmem:[%s28427_s14 + $0x714] sm:$0xf0]  ;;  %v17856_v38 = vld [vmem:[%s28427_s14 + $0x174] sm:$0xf] }
 0x709   :  { %10730 = vmatpush.bf16.msra.mxu3 %v14748_v10  ;;  %10744 = vmatpush.bf16.msra.mxu1 %v15356_v12  ;;  %v15661_v10 = vld [vmem:[%s28427_s14 + $0x844] sm:$0xf0]  ;;  %v11207_v12 = vsel %vm11204_vm11, %v11206_v6, %v11202_v15  ;;  %v11481_v27 = vsub.f32 1.0, %v11480_v62  ;;  %v10496_v51 = vadd.f32 %v10495_v17, %v10482_v63  ;;  %vm27906_vm14 = vmor %vm11484_vm13, %vm11485_vm12  ;;  %v17029_v6 = vld [vmem:[%s28427_s14 + $0x12f4] sm:$0xf0]  ;;  %v15888_v17 = vor.u32 %v18131_v55, %v15887_v22 }
 0x70a   :  { %10754 = vmatpush.bf16.msra.mxu2 %v16268_v28  ;;  %11624 = vst [vmem:[%s28430_s16 + $0x50] sm:$0xff] %v11207_v12  ;;  %v15963_v28 = vld [vmem:[%s28427_s14 + $0xa58] sm:$0xf]  ;;  %v15664_v53 = vor.u32 %v18065_v46, %v15661_v10  ;;  %v15512_v13 = vor.u32 %v18027_v0, %v15509_v7  ;;  %v14825_v15 = vld [vmem:[%s28427_s14 + $0x1bc] sm:$0xf0]  ;;  %v16424_v46 = vor.u32 %v18255_v50, %v16421_v4 }
 0x70b   :  { %10768 = vmatpush.bf16.msra.mxu0 %v16876_v30  ;;  %v18150_v30 = vld [vmem:[%s28427_s14 + $0xaa0] sm:$0xf0]  ;;  %v11482_v47 = vmul.f32 %v27832_v42, %v11481_v27  ;;  %v17048_v41 = vmul.f32 -1.442695, %v10496_v51  ;;  %v18008_v62 = vld [vmem:[%s28427_s14 + $0x634] sm:$0xf]  ;;  %v17032_v10 = vor.u32 %v18407_v40, %v17029_v6  ;;  %v15360_v55 = vor.u32 %v17989_v21, %v15357_v58 }
 0x70c   :  { %v15433_v12 = vld [vmem:[%s28427_s14 + $0x67c] sm:$0xf0]  ;;  %v18236_v27 = vld [vmem:[%s28427_s14 + $0xd54] sm:$0xf]  ;;  %v17837_v16 = vld [vmem:[%s28427_s14 + $0xdc] sm:$0xf] }
 0x70d   :  { %10731 = vmatpush.bf16.msra.mxu3 %v14672_v25  ;;  %10745 = vmatpush.bf16.msra.mxu1 %v15280_v39  ;;  %v18046_v25 = vld [vmem:[%s28427_s14 + $0x764] sm:$0xf]  ;;  %v15585_v39 = vld [vmem:[%s28427_s14 + $0x7ac] sm:$0xf0]  ;;  %v11483_v24 = vadd.f32 %v27832_v42, %v11482_v47  ;;  %18521 = vpow2.f32 %v17048_v41  ;;  %v16345_v1 = vld [vmem:[%s28427_s14 + $0xd9c] sm:$0xf0]  ;;  %v15436_v54 = vor.u32 %v18008_v62, %v15433_v12 }
 0x70e   :  { %10755 = vmatpush.bf16.msra.mxu2 %v16192_v23  ;;  %v16495_v23 = vld [vmem:[%s28427_s14 + $0xe80] sm:$0xf]  ;;  %v10483_v26 = vpop.f32.mrf.mxu2  ;;  %v15588_v57 = vor.u32 %v18046_v25, %v15585_v39  ;;  %v18388_v51 = vld [vmem:[%s28427_s14 + $0x1214] sm:$0xf]  ;;  %v18217_v47 = vld [vmem:[%s28427_s14 + $0xcbc] sm:$0xf] }
 0x70f   :  { %10769 = vmatpush.bf16.msra.mxu0 %v16800_v33  ;;  %v11487_v52 = vsel %vm27906_vm14, %v27832_v42, %v11483_v24  ;;  %v10484_v56 = vadd.f32 %v10483_v26, %v10470_v37  ;;  %v16269_v41 = vld [vmem:[%s28427_s14 + $0xd04] sm:$0xf0]  ;;  %v17818_v25 = vld [vmem:[%s28427_s14 + $0x44] sm:$0xf]  ;;  %v14673_v39 = vld [vmem:[%s28427_s14 + $0x8c] sm:$0xf0] }
 0x710   :  { %10732 = vmatmul.bf16.vlgmr.msra.gmra.mxu3 %v24139_v9  ;;  %10746 = vmatmul.bf16.vlgmr.msra.gmra.mxu1 %v24147_v19  ;;  %v16877_v36 = vld [vmem:[%s28427_s14 + $0x11c4] sm:$0xf0]  ;;  %v17970_v24 = vld [vmem:[%s28427_s14 + $0x504] sm:$0xf]  ;;  %v16272_v26 = vor.u32 %v18217_v47, %v16269_v41  ;;  %v18113_v0 = vld [vmem:[%s28427_s14 + $0x978] sm:$0xf0]  ;;  %v14676_v4 = vor.u32 %v17818_v25, %v14673_v39 }
 0x711   :  { %10780 = vmatpush.bf16.msrb.mxu3 %v15208_v5  ;;  %10794 = vmatpush.bf16.msrb.mxu1 %v15816_v59  ;;  %v15964_v5 = vor.u32 %v18150_v30, %v15963_v28  ;;  %v17875_v59 = vld [vmem:[%s28427_s14 + $0x20c] sm:$0xf]  ;;  %v10498_v42 = vadd.f32 %v10497_v45, %v10484_v56  ;;  %v6730_v28 = vperm.slane %v27708_v43, 4  ;;  %v14828_v30 = vor.u32 %v17856_v38, %v14825_v15  ;;  %v18198_v33 = vld [vmem:[%s28427_s14 + $0xc24] sm:$0xf] }
 0x712   :  { %10756 = vmatpush.bf16.msra.mxu2 %v16116_v14  ;;  %v11492_v14 = vsel %vm11489_vm15, %v11491_v31, %v11487_v52  ;;  %v14904_v29 = vor.u32 %v17875_v59, %v14901_v11  ;;  %v16193_v31 = vld [vmem:[%s28427_s14 + $0xc6c] sm:$0xf0]  ;;  %v28048_v45 = vld [vmem:[%s28427_s14 + $0xbd4] sm:$0xf0]  ;;  %v18331_v40 = vld [vmem:[%s28427_s14 + $0x104c] sm:$0xf] }
 0x713   :  { %10770 = vmatpush.bf16.msra.mxu0 %v16724_v20  ;;  %11643 = vst [vmem:[%s28430_s16 + $0xe8] sm:$0xff] %v11492_v14  ;;  %v16496_v20 = vor.u32 %v18283_v49, %v16495_v23  ;;  %v10509_v3 = vpop.f32.mrf.mxu3  ;;  %v15281_v23 = vld [vmem:[%s28427_s14 + $0x54c] sm:$0xf0]  ;;  %v18350_v49 = vld [vmem:[%s28427_s14 + $0x10e4] sm:$0xf]  ;;  %v16196_v38 = vor.u32 %v18198_v33, %v16193_v31 }
 0x714   :  { %v16801_v59 = vld [vmem:[%s28427_s14 + $0x112c] sm:$0xf0]  ;;  %v28043_v14 = vld [vmem:[%s28427_s14 + $0xb8c] sm:$0xf]  ;;  %v10510_v50 = vadd.f32 %v10509_v3, %v6730_v28  ;;  %v16725_v6 = vld [vmem:[%s28427_s14 + $0x1094] sm:$0xf0] }
 0x715   :  { %10781 = vmatpush.bf16.msrb.mxu3 %v15132_v34  ;;  %10795 = vmatpush.bf16.msrb.mxu1 %v15740_v32  ;;  %v18522_v34 = vpop.eup %18521  ;;  %v17067_v32 = vmul.f32 -1.442695, %v10498_v42  ;;  %v15211_v56 = vld [vmem:[%s28427_s14 + $0x470] sm:$0xf]  ;;  %v15284_v42 = vor.u32 %v17970_v24, %v15281_v23  ;;  %v18094_v12 = vld [vmem:[%s28427_s14 + $0x8e0] sm:$0xf0]  ;;  %v16728_v58 = vor.u32 %v18331_v40, %v16725_v6 }
 0x716   :  { %10757 = vmatpush.bf16.msra.mxu2 %v16040_v44  ;;  %v27952_v63 = vadd.f32 1.0, %v18522_v34  ;;  %v16953_v44 = vld [vmem:[%s28427_s14 + $0x125c] sm:$0xf0]  ;;  %v15819_v11 = vld [vmem:[%s28427_s14 + $0x930] sm:$0xf]  ;;  %v16804_v34 = vor.u32 %v18350_v49, %v16801_v59 }
 0x717   :  { %10771 = vmatpush.bf16.msra.mxu0 %v16648_v18  ;;  %18523 = vpow2.f32 %v17067_v32  ;;  %v14749_v18 = vld [vmem:[%s28427_s14 + $0x124] sm:$0xf0]  ;;  %v18293_v49 = vld [vmem:[%s28427_s14 + $0xf1c] sm:$0xf] }
 0x718   :  { %18525 = vrcp.f32 %v27952_v63  ;;  %v14752_v22 = vor.u32 %v17837_v16, %v14749_v18  ;;  %v11218_v62 = vand.u32 2147483647, %v27952_v63  ;;  %vm11214_vm2 = vweird.f32 %v27952_v63  ;;  %v18312_v16 = vld [vmem:[%s28427_s14 + $0xfb4] sm:$0xf]  ;;  %v16649_v18 = vld [vmem:[%s28427_s14 + $0xffc] sm:$0xf0] }
 0x719   :  { %10782 = vmatpush.bf16.msrb.mxu3 %v15056_v61  ;;  %10796 = vmatpush.bf16.msrb.mxu1 %v15664_v53  ;;  %v16348_v61 = vor.u32 %v18236_v27, %v16345_v1  ;;  %v16956_v53 = vor.u32 %v18388_v51, %v16953_v44  ;;  %v28077_v27 = vld [vmem:[%s28427_s14 + $0xaf4] sm:$0xf]  ;;  %v16120_v44 = vor.u32 %v28043_v14, %v28048_v45 }
 0x71a   :  { %10758 = vmatpush.bf16.msra.mxu2 %v15964_v5  ;;  %vm11219_vm4 = vcmp.eq.f32.partialorder %v11218_v62, 8.507059e+37  ;;  %v16497_v62 = vld [vmem:[%s28427_s14 + $0xecc] sm:$0xf0] }
 0x71b   :  { %10772 = vmatpush.bf16.msra.mxu0 %v16572_v2  ;;  %v10511_v51 = vpop.f32.mrf.mxu3 }
 0x71c   :  { %v10512_v33 = vadd.f32 %v10511_v51, %v6730_v28  ;;  %v16652_v28 = vor.u32 %v18312_v16, %v16649_v18  ;;  %v15515_v51 = vld [vmem:[%s28427_s14 + $0x6d0] sm:$0xf]  ;;  %v18265_v18 = vld [vmem:[%s28427_s14 + $0xe38] sm:$0xf0] }
 0x71d   :  { %10783 = vmatpush.bf16.msrb.mxu3 %v14980_v60  ;;  %10797 = vmatpush.bf16.msrb.mxu1 %v15588_v57  ;;  %v18524_v37 = vpop.eup %18523  ;;  %v16880_v60 = vor.u32 %v18369_v48, %v16877_v36  ;;  %v17961_v57 = vld [vmem:[%s28427_s14 + $0x4b8] sm:$0xf0]  ;;  %v15059_v48 = vld [vmem:[%s28427_s14 + $0x340] sm:$0xf]  ;;  %v17923_v36 = vld [vmem:[%s28427_s14 + $0x388] sm:$0xf0] }
 0x71e   :  { %10759 = vmatpush.bf16.msra.mxu2 %v15888_v17  ;;  %v28015_v5 = vpop.eup %18525  ;;  %v28017_v2 = vadd.f32 1.0, %v18524_v37  ;;  %v11220_v17 = vand.u32 2147483648, %v27952_v63  ;;  %v15212_v32 = vor.u32 %v17961_v57, %v15211_v56  ;;  %v15667_v37 = vld [vmem:[%s28427_s14 + $0x800] sm:$0xf]  ;;  %v16573_v57 = vld [vmem:[%s28427_s14 + $0xf64] sm:$0xf0] }
 0x71f   :  { %10773 = vmatpush.bf16.msra.mxu0 %v16496_v20  ;;  %v11210_v52 = vmul.f32 %v28015_v5, %v27952_v63  ;;  %v10523_v20 = vpop.f32.mrf.mxu1  ;;  %vm11215_vm1 = vweird.f32 %v28015_v5  ;;  %v10551_v21 = vpop.f32.mrf.mxu0  ;;  %v16427_v16 = vld [vmem:[%s28427_s14 + $0xdf0] sm:$0xf] }
 0x720   :  { %18527 = vrcp.f32 %v28017_v2  ;;  %vm28096_vm3 = vmor %vm11214_vm2, %vm11215_vm1  ;;  %v11505_v59 = vand.u32 2147483648, %v28017_v2  ;;  %v11503_v14 = vand.u32 2147483647, %v28017_v2  ;;  %vm11499_vm6 = vweird.f32 %v28017_v2 }
 0x721   :  { %10784 = vmatpush.bf16.msrb.mxu3 %v14904_v29  ;;  %10798 = vmatpush.bf16.msrb.mxu1 %v15512_v13  ;;  %v11211_v7 = vsub.f32 1.0, %v11210_v52  ;;  %v15135_v29 = vld [vmem:[%s28427_s14 + $0x3d8] sm:$0xf]  ;;  %v17942_v13 = vld [vmem:[%s28427_s14 + $0x420] sm:$0xf0]  ;;  %v15060_v52 = vor.u32 %v17923_v36, %v15059_v48 }
 0x722   :  { %10808 = vmatpush.bf16.msrb.mxu2 %v16424_v46  ;;  %10774 = vmatmul.bf16.vlgmr.msra.gmra.mxu0 %v24215_v8  ;;  %v15820_v46 = vor.u32 %v18113_v0, %v15819_v11  ;;  %v15136_v3 = vor.u32 %v17942_v13, %v15135_v29  ;;  %v14983_v11 = vld [vmem:[%s28427_s14 + $0x2a8] sm:$0xf]  ;;  %v16576_v29 = vor.u32 %v18293_v49, %v16573_v57  ;;  %vm11504_vm8 = vcmp.eq.f32.partialorder %v11503_v14, 8.507059e+37  ;;  %v14755_v49 = vld [vmem:[%s28427_s14 + $0xe0] sm:$0xf] }
 0x723   :  { %10822 = vmatpush.bf16.msrb.mxu0 %v17032_v10  ;;  %10760 = vmatmul.bf16.vlgmr.msra.gmra.mxu2 %v24207_v35  ;;  %v11212_v15 = vmul.f32 %v28015_v5, %v11211_v7  ;;  %v15743_v10 = vld [vmem:[%s28427_s14 + $0x898] sm:$0xf]  ;;  %v17904_v7 = vld [vmem:[%s28427_s14 + $0x2f0] sm:$0xf0]  ;;  %v17999_v57 = vld [vmem:[%s28427_s14 + $0x5e8] sm:$0xf0] }
 0x724   :  { %v15744_v41 = vor.u32 %v18094_v12, %v15743_v10  ;;  %v18227_v14 = vld [vmem:[%s28427_s14 + $0xd08] sm:$0xf0] }
 0x725   :  { %10785 = vmatpush.bf16.msrb.mxu3 %v14828_v30  ;;  %10799 = vmatpush.bf16.msrb.mxu1 %v15436_v54  ;;  %v11213_v1 = vadd.f32 %v28015_v5, %v11212_v15  ;;  %v10524_v30 = vadd.f32 %v10523_v20, %v10510_v50  ;;  %v16041_v54 = vld [vmem:[%s28427_s14 + $0xb3c] sm:$0xf0]  ;;  %v15889_v20 = vld [vmem:[%s28427_s14 + $0xa0c] sm:$0xf0]  ;;  %v14984_v15 = vor.u32 %v17904_v7, %v14983_v11  ;;  %v18379_v7 = vld [vmem:[%s28427_s14 + $0x11c8] sm:$0xf0] }
 0x726   :  { %10809 = vmatpush.bf16.msrb.mxu2 %v16348_v61  ;;  %v28092_v63 = vpop.eup %18527  ;;  %v10537_v47 = vpop.f32.mrf.mxu2  ;;  %v17035_v61 = vld [vmem:[%s28427_s14 + $0x12b0] sm:$0xf]  ;;  %v16275_v11 = vld [vmem:[%s28427_s14 + $0xcc0] sm:$0xf] }
 0x727   :  { %10823 = vmatpush.bf16.msrb.mxu0 %v16956_v53  ;;  %v11221_v53 = vor.u32 1.1754944e-38, %v11220_v17  ;;  %v11217_v25 = vsel %vm28096_vm3, %v28015_v5, %v11213_v1  ;;  %v11495_v39 = vmul.f32 %v28092_v63, %v28017_v2  ;;  %v10538_v24 = vadd.f32 %v10537_v47, %v10524_v30  ;;  %v10525_v50 = vpop.f32.mrf.mxu1  ;;  %v18122_v17 = vld [vmem:[%s28427_s14 + $0x9c4] sm:$0xf]  ;;  %v17885_v1 = vld [vmem:[%s28427_s14 + $0x258] sm:$0xf0]  ;;  %v10553_v30 = vpop.f32.mrf.mxu0 }
 0x728   :  { %v16044_v5 = vor.u32 %v28077_v27, %v16041_v54  ;;  %vm11500_vm5 = vweird.f32 %v28092_v63  ;;  %v10526_v6 = vadd.f32 %v10525_v50, %v10512_v33  ;;  %v11506_v2 = vor.u32 1.1754944e-38, %v11505_v59  ;;  %v18037_v54 = vld [vmem:[%s28427_s14 + $0x718] sm:$0xf0]  ;;  %v14831_v47 = vld [vmem:[%s28427_s14 + $0x178] sm:$0xf] }
 0x729   :  { %10786 = vmatpush.bf16.msrb.mxu3 %v14752_v22  ;;  %10800 = vmatpush.bf16.msrb.mxu1 %v15360_v55  ;;  %v18075_v22 = vld [vmem:[%s28427_s14 + $0x848] sm:$0xf0]  ;;  %v11222_v55 = vsel %vm11219_vm4, %v11221_v53, %v11217_v25  ;;  %v11496_v23 = vsub.f32 1.0, %v11495_v39  ;;  %v10552_v31 = vadd.f32 %v10551_v21, %v10538_v24  ;;  %vm28166_vm7 = vmor %vm11499_vm6, %vm11500_vm5  ;;  %v18417_v53 = vld [vmem:[%s28427_s14 + $0x12f8] sm:$0xf0]  ;;  %v15892_v21 = vor.u32 %v18122_v17, %v15889_v20 }
 0x72a   :  { %10810 = vmatpush.bf16.msrb.mxu2 %v16272_v26  ;;  %11625 = vst [vmem:[%s28430_s16 + $0x58] sm:$0xff] %v11222_v55  ;;  %v18141_v26 = vld [vmem:[%s28427_s14 + $0xa5c] sm:$0xf]  ;;  %v15668_v56 = vor.u32 %v18075_v22, %v15667_v37  ;;  %v15516_v36 = vor.u32 %v18037_v54, %v15515_v51  ;;  %v17866_v25 = vld [vmem:[%s28427_s14 + $0x1c0] sm:$0xf0]  ;;  %v16428_v37 = vor.u32 %v18265_v18, %v16427_v16  ;;  %v6731_v50 = vperm.slane %v27708_v43, 5 }
 0x72b   :  { %10824 = vmatpush.bf16.msrb.mxu0 %v16880_v60  ;;  %v15965_v60 = vld [vmem:[%s28427_s14 + $0xaa4] sm:$0xf0]  ;;  %v11497_v0 = vmul.f32 %v28092_v63, %v11496_v23  ;;  %v17049_v45 = vmul.f32 -1.442695, %v10552_v31  ;;  %v15439_v39 = vld [vmem:[%s28427_s14 + $0x638] sm:$0xf]  ;;  %v17036_v22 = vor.u32 %v18417_v53, %v17035_v61 }
 0x72c   :  { %v18018_v55 = vld [vmem:[%s28427_s14 + $0x680] sm:$0xf0]  ;;  %v16351_v23 = vld [vmem:[%s28427_s14 + $0xd58] sm:$0xf]  ;;  %v17847_v59 = vld [vmem:[%s28427_s14 + $0x128] sm:$0xf0] }
 0x72d   :  { %10787 = vmatpush.bf16.msrb.mxu3 %v14676_v4  ;;  %10801 = vmatpush.bf16.msrb.mxu1 %v15284_v42  ;;  %v15591_v4 = vld [vmem:[%s28427_s14 + $0x768] sm:$0xf]  ;;  %v18056_v42 = vld [vmem:[%s28427_s14 + $0x7b0] sm:$0xf0]  ;;  %v11498_v40 = vadd.f32 %v28092_v63, %v11497_v0  ;;  %18529 = vpow2.f32 %v17049_v45  ;;  %v18246_v33 = vld [vmem:[%s28427_s14 + $0xda0] sm:$0xf0] }
 0x72e   :  { %10811 = vmatpush.bf16.msrb.mxu2 %v16196_v38  ;;  %v18274_v38 = vld [vmem:[%s28427_s14 + $0xe84] sm:$0xf]  ;;  %v10539_v13 = vpop.f32.mrf.mxu2  ;;  %v15592_v27 = vor.u32 %v18056_v42, %v15591_v4  ;;  %v16959_v31 = vld [vmem:[%s28427_s14 + $0x1218] sm:$0xf]  ;;  %v16883_v45 = vld [vmem:[%s28427_s14 + $0x1180] sm:$0xf]  ;;  %v14756_v42 = vor.u32 %v17847_v59, %v14755_v49 }
 0x72f   :  { %10825 = vmatpush.bf16.msrb.mxu0 %v16804_v34  ;;  %v11502_v10 = vsel %vm28166_vm7, %v28092_v63, %v11498_v40  ;;  %v10540_v12 = vadd.f32 %v10539_v13, %v10526_v6  ;;  %v14679_v6 = vld [vmem:[%s28427_s14 + $0x48] sm:$0xf]  ;;  %v17828_v17 = vld [vmem:[%s28427_s14 + $0x90] sm:$0xf0]  ;;  %v16123_v18 = vld [vmem:[%s28427_s14 + $0xb90] sm:$0xf] }
 0x730   :  { %10788 = vmatmul.bf16.vlgmr.msrb.gmra.mxu3 %v24139_v9  ;;  %10802 = vmatmul.bf16.vlgmr.msrb.gmra.mxu1 %v24147_v19  ;;  %v15287_v20 = vld [vmem:[%s28427_s14 + $0x508] sm:$0xf]  ;;  %v16579_v43 = vld [vmem:[%s28427_s14 + $0xf20] sm:$0xf] }
 0x731   :  { %10836 = vmatpush.bf16.msra.mxu3 %v15212_v32  ;;  %10850 = vmatpush.bf16.msra.mxu1 %v15820_v46  ;;  %v15968_v32 = vor.u32 %v18141_v26, %v15965_v60  ;;  %v14907_v46 = vld [vmem:[%s28427_s14 + $0x210] sm:$0xf]  ;;  %v10554_v63 = vadd.f32 %v10553_v30, %v10540_v12  ;;  %v14832_v26 = vor.u32 %v17866_v25, %v14831_v47  ;;  %v16199_v13 = vld [vmem:[%s28427_s14 + $0xc28] sm:$0xf]  ;;  %v10579_v30 = vpop.f32.mrf.mxu1 }
 0x732   :  { %10812 = vmatpush.bf16.msrb.mxu2 %v16120_v44  ;;  %v11507_v44 = vsel %vm11504_vm8, %v11506_v2, %v11502_v10  ;;  %v14908_v48 = vor.u32 %v17885_v1, %v14907_v46  ;;  %v15440_v60 = vor.u32 %v18018_v55, %v15439_v39  ;;  %v16276_v2 = vor.u32 %v18227_v14, %v16275_v11  ;;  %v16807_v46 = vld [vmem:[%s28427_s14 + $0x10e8] sm:$0xf]  ;;  %v18360_v10 = vld [vmem:[%s28427_s14 + $0x1130] sm:$0xf0] }
 0x733   :  { %10826 = vmatpush.bf16.msrb.mxu0 %v16728_v58  ;;  %11644 = vst [vmem:[%s28430_s16 + $0xf0] sm:$0xff] %v11507_v44  ;;  %v16500_v58 = vor.u32 %v18274_v38, %v16497_v62  ;;  %v10565_v0 = vpop.f32.mrf.mxu3  ;;  %v18208_v62 = vld [vmem:[%s28427_s14 + $0xc70] sm:$0xf0]  ;;  %v14680_v1 = vor.u32 %v17828_v17, %v14679_v6  ;;  %v16808_v16 = vor.u32 %v18360_v10, %v16807_v46 }
 0x734   :  { %v16200_v54 = vor.u32 %v18208_v62, %v16199_v13  ;;  %v18284_v13 = vld [vmem:[%s28427_s14 + $0xed0] sm:$0xf0] }
 0x735   :  { %10837 = vmatpush.bf16.msra.mxu3 %v15136_v3  ;;  %10851 = vmatpush.bf16.msra.mxu1 %v15744_v41  ;;  %v18530_v3 = vpop.eup %18529  ;;  %v17068_v41 = vmul.f32 -1.442695, %v10554_v63  ;;  %v18189_v63 = vld [vmem:[%s28427_s14 + $0xbd8] sm:$0xf0] }
 0x736   :  { %10813 = vmatpush.bf16.msrb.mxu2 %v16044_v5  ;;  %v28212_v24 = vadd.f32 1.0, %v18530_v3  ;;  %v18398_v5 = vld [vmem:[%s28427_s14 + $0x1260] sm:$0xf0] }
 0x737   :  { %10827 = vmatpush.bf16.msrb.mxu0 %v16652_v28  ;;  %18531 = vpow2.f32 %v17068_v41  ;;  %v16352_v28 = vor.u32 %v18246_v33, %v16351_v23  ;;  %v18170_v23 = vld [vmem:[%s28427_s14 + $0xb40] sm:$0xf0] }
 0x738   :  { %18533 = vrcp.f32 %v28212_v24  ;;  %v11235_v44 = vand.u32 2147483648, %v28212_v24  ;;  %v11233_v53 = vand.u32 2147483647, %v28212_v24  ;;  %vm11229_vm10 = vweird.f32 %v28212_v24 }
 0x739   :  { %10838 = vmatpush.bf16.msra.mxu3 %v15060_v52  ;;  %10852 = vmatpush.bf16.msra.mxu1 %v15668_v56  ;;  %v16960_v52 = vor.u32 %v18398_v5, %v16959_v31  ;;  %v15363_v56 = vld [vmem:[%s28427_s14 + $0x5a0] sm:$0xf] }
 0x73a   :  { %10814 = vmatpush.bf16.msrb.mxu2 %v15968_v32  ;;  %v15364_v40 = vor.u32 %v17999_v57, %v15363_v56  ;;  %v16884_v32 = vor.u32 %v18379_v7, %v16883_v45  ;;  %v11236_v25 = vor.u32 1.1754944e-38, %v11235_v44  ;;  %vm11234_vm12 = vcmp.eq.f32.partialorder %v11233_v53, 8.507059e+37  ;;  %v15971_v56 = vld [vmem:[%s28427_s14 + $0xa60] sm:$0xf]  ;;  %v18303_v7 = vld [vmem:[%s28427_s14 + $0xf68] sm:$0xf0] }
 0x73b   :  { %10828 = vmatpush.bf16.msrb.mxu0 %v16576_v29  ;;  %v17980_v29 = vld [vmem:[%s28427_s14 + $0x550] sm:$0xf0]  ;;  %v10567_v3 = vpop.f32.mrf.mxu3  ;;  %v16580_v17 = vor.u32 %v18303_v7, %v16579_v43 }
 0x73c   :  { %v15288_v51 = vor.u32 %v17980_v29, %v15287_v20  ;;  %v16503_v29 = vld [vmem:[%s28427_s14 + $0xe88] sm:$0xf] }
 0x73d   :  { %10839 = vmatpush.bf16.msra.mxu3 %v14984_v15  ;;  %10853 = vmatpush.bf16.msra.mxu1 %v15592_v27  ;;  %v18532_v4 = vpop.eup %18531  ;;  %v10566_v27 = vadd.f32 %v10565_v0, %v6731_v50 }
 0x73e   :  { %10815 = vmatpush.bf16.msrb.mxu2 %v15892_v21  ;;  %v18534_v38 = vpop.eup %18533  ;;  %v28266_v34 = vadd.f32 1.0, %v18532_v4  ;;  %v16731_v21 = vld [vmem:[%s28427_s14 + $0x1050] sm:$0xf] }
 0x73f   :  { %10829 = vmatpush.bf16.msrb.mxu0 %v16500_v58  ;;  %v11225_v15 = vmul.f32 %v18534_v38, %v28212_v24  ;;  %vm11230_vm9 = vweird.f32 %v18534_v38  ;;  %v18341_v58 = vld [vmem:[%s28427_s14 + $0x1098] sm:$0xf0]  ;;  %v10580_v41 = vadd.f32 %v10579_v30, %v10566_v27  ;;  %v10607_v39 = vpop.f32.mrf.mxu0  ;;  %v16047_v24 = vld [vmem:[%s28427_s14 + $0xaf8] sm:$0xf] }
 0x740   :  { %18535 = vrcp.f32 %v28266_v34  ;;  %vm28302_vm11 = vmor %vm11229_vm10, %vm11230_vm9  ;;  %v11520_v57 = vand.u32 2147483648, %v28266_v34  ;;  %v11518_v14 = vand.u32 2147483647, %v28266_v34  ;;  %vm11514_vm14 = vweird.f32 %v28266_v34 }
 0x741   :  { %10840 = vmatpush.bf16.msra.mxu3 %v14908_v48  ;;  %10854 = vmatpush.bf16.msra.mxu1 %v15516_v36  ;;  %v11226_v12 = vsub.f32 1.0, %v11225_v15 }
 0x742   :  { %10864 = vmatpush.bf16.msra.mxu2 %v16428_v37  ;;  %10830 = vmatmul.bf16.vlgmr.msrb.gmra.mxu0 %v24215_v8  ;;  %v16124_v37 = vor.u32 %v18189_v63, %v16123_v18  ;;  %vm11519_vm1 = vcmp.eq.f32.partialorder %v11518_v14, 8.507059e+37 }
 0x743   :  { %10878 = vmatpush.bf16.msra.mxu0 %v17036_v22  ;;  %10816 = vmatmul.bf16.vlgmr.msrb.gmra.mxu2 %v24207_v35  ;;  %v11227_v61 = vmul.f32 %v18534_v38, %v11226_v12  ;;  %v16732_v22 = vor.u32 %v18341_v58, %v16731_v21  ;;  %v16504_v12 = vor.u32 %v18284_v13, %v16503_v29 }
 0x745   :  { %10841 = vmatpush.bf16.msra.mxu3 %v14832_v26  ;;  %10855 = vmatpush.bf16.msra.mxu1 %v15440_v60  ;;  %v11228_v47 = vadd.f32 %v18534_v38, %v11227_v61  ;;  %v16655_v26 = vld [vmem:[%s28427_s14 + $0xfb8] sm:$0xf]  ;;  %v18322_v60 = vld [vmem:[%s28427_s14 + $0x1000] sm:$0xf0] }
 0x746   :  { %10865 = vmatpush.bf16.msra.mxu2 %v16352_v28  ;;  %v18536_v48 = vpop.eup %18535  ;;  %v10593_v55 = vpop.f32.mrf.mxu2  ;;  %v10568_v28 = vadd.f32 %v10567_v3, %v6731_v50  ;;  %v16656_v11 = vor.u32 %v18322_v60, %v16655_v26 }
 0x747   :  { %10879 = vmatpush.bf16.msra.mxu0 %v16960_v52  ;;  %v11232_v33 = vsel %vm28302_vm11, %v18534_v38, %v11228_v47  ;;  %v11510_v31 = vmul.f32 %v18536_v48, %v28266_v34  ;;  %v10594_v5 = vadd.f32 %v10593_v55, %v10580_v41  ;;  %vm11515_vm13 = vweird.f32 %v18536_v48  ;;  %v10581_v50 = vpop.f32.mrf.mxu1  ;;  %v15895_v38 = vld [vmem:[%s28427_s14 + $0x9c8] sm:$0xf]  ;;  %v10609_v62 = vpop.f32.mrf.mxu0 }
 0x748   :  { %v11237_v49 = vsel %vm11234_vm12, %v11236_v25, %v11232_v33  ;;  %vm11516_vm15 = vmor %vm11514_vm14, %vm11515_vm13 }
 0x749   :  { %10842 = vmatpush.bf16.msra.mxu3 %v14756_v42  ;;  %10856 = vmatpush.bf16.msra.mxu1 %v15364_v40  ;;  %11626 = vst [vmem:[%s28430_s16 + $0x60] sm:$0xff] %v11237_v49  ;;  %v11511_v59 = vsub.f32 1.0, %v11510_v31  ;;  %v10608_v52 = vadd.f32 %v10607_v39, %v10594_v5  ;;  %v10582_v42 = vadd.f32 %v10581_v50, %v10568_v28  ;;  %v11521_v40 = vor.u32 1.1754944e-38, %v11520_v57 }
 0x74a   :  { %10866 = vmatpush.bf16.msra.mxu2 %v16276_v2  ;;  %v18132_v2 = vld [vmem:[%s28427_s14 + $0xa10] sm:$0xf0] }
 0x74b   :  { %10880 = vmatpush.bf16.msra.mxu0 %v16884_v32  ;;  %v11512_v0 = vmul.f32 %v18536_v48, %v11511_v59  ;;  %v17050_v45 = vmul.f32 -1.442695, %v10608_v52  ;;  %v15896_v10 = vor.u32 %v18132_v2, %v15895_v38 }
 0x74d   :  { %10843 = vmatpush.bf16.msra.mxu3 %v14680_v1  ;;  %10857 = vmatpush.bf16.msra.mxu1 %v15288_v51  ;;  %v11513_v4 = vadd.f32 %v18536_v48, %v11512_v0  ;;  %18537 = vpow2.f32 %v17050_v45 }
 0x74e   :  { %10867 = vmatpush.bf16.msra.mxu2 %v16200_v54  ;;  %v10595_v20 = vpop.f32.mrf.mxu2  ;;  %v28363_v54 = vld [vmem:[%s28429_s15 + $0x8] sm:$0xff] }
 0x74f   :  { %10881 = vmatpush.bf16.msra.mxu0 %v16808_v16  ;;  %v11517_v32 = vsel %vm11516_vm15, %v18536_v48, %v11513_v4  ;;  %v10596_v34 = vadd.f32 %v10595_v20, %v10582_v42  ;;  %v6732_v16 = vperm.slane %v28363_v54, 6  ;;  %v10635_v47 = vpop.f32.mrf.mxu1 }
 0x750   :  { %10844 = vmatmul.bf16.vlgmr.msra.gmra.mxu3 %v24139_v9  ;;  %10858 = vmatmul.bf16.vlgmr.msra.gmra.mxu1 %v24147_v19  ;;  %v16048_v9 = vor.u32 %v18170_v23, %v16047_v24  ;;  %v18151_v19 = vld [vmem:[%s28427_s14 + $0xaa8] sm:$0xf0]  ;;  %v11522_v15 = vsel %vm11519_vm1, %v11521_v40, %v11517_v32  ;;  %v6733_v40 = vperm.slane %v28363_v54, 7 }
 0x751   :  { %v15972_v6 = vor.u32 %v18151_v19, %v15971_v56  ;;  %11645 = vst [vmem:[%s28430_s16 + $0xf8] sm:$0xff] %v11522_v15  ;;  %v10610_v46 = vadd.f32 %v10609_v62, %v10596_v34 }
 0x752   :  { %10868 = vmatpush.bf16.msra.mxu2 %v16124_v37 }
 0x753   :  { %10882 = vmatpush.bf16.msra.mxu0 %v16732_v22  ;;  %v18538_v27 = vpop.eup %18537  ;;  %v17069_v1 = vmul.f32 -1.442695, %v10610_v46  ;;  %v10621_v44 = vpop.f32.mrf.mxu3 }
 0x754   :  { %v11019_v51 = vadd.f32 1.0, %v18538_v27  ;;  %v10622_v21 = vadd.f32 %v10621_v44, %v6732_v16 }
 0x755   :  { %18539 = vpow2.f32 %v17069_v1 }
 0x756   :  { %10869 = vmatpush.bf16.msra.mxu2 %v16048_v9  ;;  %18541 = vrcp.f32 %v11019_v51  ;;  %v11250_v58 = vand.u32 2147483648, %v11019_v51  ;;  %vm11244_vm3 = vweird.f32 %v11019_v51  ;;  %v10636_v48 = vadd.f32 %v10635_v47, %v10622_v21 }
 0x757   :  { %10883 = vmatpush.bf16.msra.mxu0 %v16656_v11  ;;  %v10637_v28 = vpop.f32.mrf.mxu1 }
 0x758   :  { %v11251_v25 = vor.u32 1.1754944e-38, %v11250_v58 }
 0x75a   :  { %10870 = vmatpush.bf16.msra.mxu2 %v15972_v6 }
 0x75b   :  { %10884 = vmatpush.bf16.msra.mxu0 %v16580_v17  ;;  %v18540_v30 = vpop.eup %18539  ;;  %v10623_v41 = vpop.f32.mrf.mxu3 }
 0x75c   :  { %v18542_v18 = vpop.eup %18541  ;;  %v11038_v63 = vadd.f32 1.0, %v18540_v30  ;;  %v10624_v31 = vadd.f32 %v10623_v41, %v6732_v16 }
 0x75d   :  { %v11240_v61 = vmul.f32 %v18542_v18, %v11019_v51  ;;  %vm11245_vm2 = vweird.f32 %v18542_v18 }
 0x75e   :  { %10871 = vmatpush.bf16.msra.mxu2 %v15896_v10  ;;  %18543 = vrcp.f32 %v11038_v63  ;;  %vm11246_vm4 = vmor %vm11244_vm3, %vm11245_vm2  ;;  %v11535_v26 = vand.u32 2147483648, %v11038_v63  ;;  %v11533_v49 = vand.u32 2147483647, %v11038_v63  ;;  %vm11529_vm7 = vweird.f32 %v11038_v63 }
 0x75f   :  { %10885 = vmatpush.bf16.msra.mxu0 %v16504_v12  ;;  %v11241_v53 = vsub.f32 1.0, %v11240_v61  ;;  %v10663_v39 = vpop.f32.mrf.mxu0  ;;  %v10638_v56 = vadd.f32 %v10637_v28, %v10624_v31 }
 0x760   :  { %v11536_v57 = vor.u32 1.1754944e-38, %v11535_v26  ;;  %vm11534_vm9 = vcmp.eq.f32.partialorder %v11533_v49, 8.507059e+37 }
 0x761   :  { %10872 = vmatmul.bf16.vlgmr.msra.gmra.mxu2 %v24207_v35  ;;  %v11242_v3 = vmul.f32 %v18542_v18, %v11241_v53  ;;  %v11248_v35 = vand.u32 2147483647, %v11019_v51 }
 0x762   :  { %10886 = vmatmul.bf16.vlgmr.msra.gmra.mxu0 %v24215_v8 }
 0x763   :  { %v11243_v8 = vadd.f32 %v18542_v18, %v11242_v3  ;;  %vm11249_vm5 = vcmp.eq.f32.partialorder %v11248_v35, 8.507059e+37 }
 0x764   :  { %v18544_v36 = vpop.eup %18543 }
 0x765   :  { %v11247_v22 = vsel %vm11246_vm4, %v18542_v18, %v11243_v8  ;;  %v11525_v55 = vmul.f32 %v18544_v36, %v11038_v63  ;;  %vm11530_vm6 = vweird.f32 %v18544_v36 }
 0x766   :  { %v10649_v37 = vpop.f32.mrf.mxu2  ;;  %v11252_v23 = vsel %vm11249_vm5, %v11251_v25, %v11247_v22  ;;  %vm11531_vm8 = vmor %vm11529_vm7, %vm11530_vm6 }
 0x767   :  { %v10650_v24 = vadd.f32 %v10649_v37, %v10636_v48  ;;  %11627 = vst [vmem:[%s28430_s16 + $0x68] sm:$0xff] %v11252_v23  ;;  %v11526_v33 = vsub.f32 1.0, %v11525_v55  ;;  %v10665_v0 = vpop.f32.mrf.mxu0  ;;  %v28382_v23 = vld [vmem:[%s28429_s15 + $0x10] sm:$0x7] }
 0x769   :  { %v10664_v5 = vadd.f32 %v10663_v39, %v10650_v24  ;;  %v11527_v60 = vmul.f32 %v18544_v36, %v11526_v33 }
 0x76b   :  { %v17051_v59 = vmul.f32 -1.442695, %v10664_v5  ;;  %v11528_v52 = vadd.f32 %v18544_v36, %v11527_v60  ;;  %v6734_v5 = vperm.slane %v28382_v23, 0 }
 0x76d   :  { %18545 = vpow2.f32 %v17051_v59  ;;  %v11532_v11 = vsel %vm11531_vm8, %v18544_v36, %v11528_v52  ;;  %v10691_v34 = vpop.f32.mrf.mxu1 }
 0x76e   :  { %v10651_v9 = vpop.f32.mrf.mxu2  ;;  %v11537_v43 = vsel %vm11534_vm9, %v11536_v57, %v11532_v11 }
 0x76f   :  { %v10652_v19 = vadd.f32 %v10651_v9, %v10638_v56  ;;  %11646 = vst [vmem:[%s28430_s16 + $0x100] sm:$0xff] %v11537_v43 }
 0x771   :  { %v10666_v14 = vadd.f32 %v10665_v0, %v10652_v19 }
 0x773   :  { %v18546_v45 = vpop.eup %18545  ;;  %v17070_v7 = vmul.f32 -1.442695, %v10666_v14  ;;  %v10677_v4 = vpop.f32.mrf.mxu3 }
 0x774   :  { %v11020_v50 = vadd.f32 1.0, %v18546_v45  ;;  %v10678_v2 = vadd.f32 %v10677_v4, %v6733_v40 }
 0x775   :  { %18547 = vpow2.f32 %v17070_v7  ;;  %v10693_v47 = vpop.f32.mrf.mxu1 }
 0x776   :  { %18549 = vrcp.f32 %v11020_v50  ;;  %v11265_v32 = vand.u32 2147483648, %v11020_v50  ;;  %v11263_v13 = vand.u32 2147483647, %v11020_v50  ;;  %vm11259_vm11 = vweird.f32 %v11020_v50 }
 0x777   :  { %v10692_v46 = vadd.f32 %v10691_v34, %v10678_v2 }
 0x778   :  { %v11266_v12 = vor.u32 1.1754944e-38, %v11265_v32  ;;  %vm11264_vm13 = vcmp.eq.f32.partialorder %v11263_v13, 8.507059e+37 }
 0x77b   :  { %v18548_v42 = vpop.eup %18547  ;;  %v10679_v62 = vpop.f32.mrf.mxu3 }
 0x77c   :  { %v18550_v6 = vpop.eup %18549  ;;  %v11039_v17 = vadd.f32 1.0, %v18548_v42  ;;  %v10680_v18 = vadd.f32 %v10679_v62, %v6733_v40 }
 0x77d   :  { %v11255_v20 = vmul.f32 %v18550_v6, %v11020_v50  ;;  %vm11260_vm10 = vweird.f32 %v18550_v6 }
 0x77e   :  { %18551 = vrcp.f32 %v11039_v17  ;;  %vm11261_vm12 = vmor %vm11259_vm11, %vm11260_vm10  ;;  %v11550_v61 = vand.u32 2147483648, %v11039_v17  ;;  %v11548_v21 = vand.u32 2147483647, %v11039_v17  ;;  %vm11544_vm15 = vweird.f32 %v11039_v17 }
 0x77f   :  { %v11256_v38 = vsub.f32 1.0, %v11255_v20  ;;  %v10719_v27 = vpop.f32.mrf.mxu0  ;;  %v10694_v35 = vadd.f32 %v10693_v47, %v10680_v18 }
 0x780   :  { %v11551_v8 = vor.u32 1.1754944e-38, %v11550_v61  ;;  %vm11549_vm2 = vcmp.eq.f32.partialorder %v11548_v21, 8.507059e+37 }
 0x781   :  { %v11257_v29 = vmul.f32 %v18550_v6, %v11256_v38 }
 0x783   :  { %v11258_v15 = vadd.f32 %v18550_v6, %v11257_v29 }
 0x784   :  { %v18552_v10 = vpop.eup %18551 }
 0x785   :  { %v11262_v51 = vsel %vm11261_vm12, %v18550_v6, %v11258_v15  ;;  %v11540_v44 = vmul.f32 %v18552_v10, %v11039_v17  ;;  %vm11545_vm14 = vweird.f32 %v18552_v10 }
 0x786   :  { %v10705_v1 = vpop.f32.mrf.mxu2  ;;  %v11267_v54 = vsel %vm11264_vm13, %v11266_v12, %v11262_v51  ;;  %vm11546_vm1 = vmor %vm11544_vm15, %vm11545_vm14 }
 0x787   :  { %v10706_v30 = vadd.f32 %v10705_v1, %v10692_v46  ;;  %11628 = vst [vmem:[%s28430_s16 + $0x70] sm:$0xff] %v11267_v54  ;;  %v11541_v16 = vsub.f32 1.0, %v11540_v44  ;;  %v10721_v39 = vpop.f32.mrf.mxu0 }
 0x789   :  { %v10720_v63 = vadd.f32 %v10719_v27, %v10706_v30  ;;  %v11542_v53 = vmul.f32 %v18552_v10, %v11541_v16 }
 0x78b   :  { %v17052_v58 = vmul.f32 -1.442695, %v10720_v63  ;;  %v11543_v3 = vadd.f32 %v18552_v10, %v11542_v53  ;;  %v6735_v63 = vperm.slane %v28382_v23, 1 }
 0x78d   :  { %18553 = vpow2.f32 %v17052_v58  ;;  %v11547_v48 = vsel %vm11546_vm1, %v18552_v10, %v11543_v3  ;;  %v10747_v56 = vpop.f32.mrf.mxu1 }
 0x78e   :  { %v10707_v41 = vpop.f32.mrf.mxu2  ;;  %v11552_v25 = vsel %vm11549_vm2, %v11551_v8, %v11547_v48 }
 0x78f   :  { %v10708_v36 = vadd.f32 %v10707_v41, %v10694_v35  ;;  %11647 = vst [vmem:[%s28430_s16 + $0x108] sm:$0xff] %v11552_v25 }
 0x791   :  { %v10722_v37 = vadd.f32 %v10721_v39, %v10708_v36 }
 0x793   :  { %v18554_v22 = vpop.eup %18553  ;;  %v17071_v55 = vmul.f32 -1.442695, %v10722_v37  ;;  %v10733_v33 = vpop.f32.mrf.mxu3 }
 0x794   :  { %v11021_v24 = vadd.f32 1.0, %v18554_v22  ;;  %v10734_v28 = vadd.f32 %v10733_v33, %v6734_v5 }
 0x795   :  { %18555 = vpow2.f32 %v17071_v55  ;;  %v10749_v29 = vpop.f32.mrf.mxu1 }
 0x796   :  { %18557 = vrcp.f32 %v11021_v24  ;;  %v11280_v52 = vand.u32 2147483648, %v11021_v24  ;;  %v11278_v9 = vand.u32 2147483647, %v11021_v24  ;;  %vm11274_vm4 = vweird.f32 %v11021_v24 }
 0x797   :  { %v10748_v43 = vadd.f32 %v10747_v56, %v10734_v28 }
 0x798   :  { %v11281_v14 = vor.u32 1.1754944e-38, %v11280_v52  ;;  %vm11279_vm6 = vcmp.eq.f32.partialorder %v11278_v9, 8.507059e+37 }
 0x79b   :  { %v18556_v31 = vpop.eup %18555  ;;  %v10735_v19 = vpop.f32.mrf.mxu3 }
 0x79c   :  { %v18558_v26 = vpop.eup %18557  ;;  %v11040_v60 = vadd.f32 1.0, %v18556_v31  ;;  %v10736_v17 = vadd.f32 %v10735_v19, %v6734_v5 }
 0x79d   :  { %v11270_v49 = vmul.f32 %v18558_v26, %v11021_v24  ;;  %vm11275_vm3 = vweird.f32 %v18558_v26 }
 0x79e   :  { %18559 = vrcp.f32 %v11040_v60  ;;  %vm11276_vm5 = vmor %vm11274_vm4, %vm11275_vm3  ;;  %v11565_v38 = vand.u32 2147483648, %v11040_v60  ;;  %v11563_v32 = vand.u32 2147483647, %v11040_v60  ;;  %vm11559_vm8 = vweird.f32 %v11040_v60 }
 0x79f   :  { %v11271_v59 = vsub.f32 1.0, %v11270_v49  ;;  %v10775_v45 = vpop.f32.mrf.mxu0  ;;  %v10750_v15 = vadd.f32 %v10749_v29, %v10736_v17 }
 0x7a0   :  { %v11566_v62 = vor.u32 1.1754944e-38, %v11565_v38  ;;  %vm11564_vm10 = vcmp.eq.f32.partialorder %v11563_v32, 8.507059e+37 }
 0x7a1   :  { %v11272_v57 = vmul.f32 %v18558_v26, %v11271_v59 }
 0x7a3   :  { %v11273_v11 = vadd.f32 %v18558_v26, %v11272_v57 }
 0x7a4   :  { %v18560_v0 = vpop.eup %18559 }
 0x7a5   :  { %v11277_v50 = vsel %vm11276_vm5, %v18558_v26, %v11273_v11  ;;  %v11555_v4 = vmul.f32 %v18560_v0, %v11040_v60  ;;  %vm11560_vm7 = vweird.f32 %v18560_v0 }
 0x7a6   :  { %v10761_v7 = vpop.f32.mrf.mxu2  ;;  %v11282_v40 = vsel %vm11279_vm6, %v11281_v14, %v11277_v50  ;;  %vm11561_vm9 = vmor %vm11559_vm8, %vm11560_vm7 }
 0x7a7   :  { %v10762_v42 = vadd.f32 %v10761_v7, %v10748_v43  ;;  %11629 = vst [vmem:[%s28430_s16 + $0x78] sm:$0xff] %v11282_v40  ;;  %v11556_v6 = vsub.f32 1.0, %v11555_v4  ;;  %v10777_v1 = vpop.f32.mrf.mxu0 }
 0x7a9   :  { %v10776_v20 = vadd.f32 %v10775_v45, %v10762_v42  ;;  %v11557_v2 = vmul.f32 %v18560_v0, %v11556_v6 }
 0x7ab   :  { %v17053_v34 = vmul.f32 -1.442695, %v10776_v20  ;;  %v11558_v13 = vadd.f32 %v18560_v0, %v11557_v2  ;;  %v6736_v20 = vperm.slane %v28382_v23, 2 }
 0x7ad   :  { %18561 = vpow2.f32 %v17053_v34  ;;  %v11562_v10 = vsel %vm11561_vm9, %v18560_v0, %v11558_v13  ;;  %v10803_v35 = vpop.f32.mrf.mxu1 }
 0x7ae   :  { %v10763_v46 = vpop.f32.mrf.mxu2  ;;  %v11567_v27 = vsel %vm11564_vm10, %v11566_v62, %v11562_v10 }
 0x7af   :  { %v10764_v12 = vadd.f32 %v10763_v46, %v10750_v15  ;;  %11648 = vst [vmem:[%s28430_s16 + $0x110] sm:$0xff] %v11567_v27 }
 0x7b1   :  { %v10778_v51 = vadd.f32 %v10777_v1, %v10764_v12 }
 0x7b3   :  { %v18562_v44 = vpop.eup %18561  ;;  %v17072_v30 = vmul.f32 -1.442695, %v10778_v51  ;;  %v10789_v16 = vpop.f32.mrf.mxu3 }
 0x7b4   :  { %v11022_v54 = vadd.f32 1.0, %v18562_v44  ;;  %v10790_v47 = vadd.f32 %v10789_v16, %v6735_v63 }
 0x7b5   :  { %18563 = vpow2.f32 %v17072_v30  ;;  %v10805_v57 = vpop.f32.mrf.mxu1 }
 0x7b6   :  { %18565 = vrcp.f32 %v11022_v54  ;;  %v11295_v3 = vand.u32 2147483648, %v11022_v54  ;;  %v11293_v41 = vand.u32 2147483647, %v11022_v54  ;;  %vm11289_vm12 = vweird.f32 %v11022_v54 }
 0x7b7   :  { %v10804_v25 = vadd.f32 %v10803_v35, %v10790_v47 }
 0x7b8   :  { %v11296_v37 = vor.u32 1.1754944e-38, %v11295_v3  ;;  %vm11294_vm14 = vcmp.eq.f32.partialorder %v11293_v41, 8.507059e+37 }
 0x7bb   :  { %v18564_v18 = vpop.eup %18563  ;;  %v10791_v36 = vpop.f32.mrf.mxu3 }
 0x7bc   :  { %v18566_v61 = vpop.eup %18565  ;;  %v11041_v53 = vadd.f32 1.0, %v18564_v18  ;;  %v10792_v60 = vadd.f32 %v10791_v36, %v6735_v63 }
 0x7bd   :  { %v11285_v21 = vmul.f32 %v18566_v61, %v11022_v54  ;;  %vm11290_vm11 = vweird.f32 %v18566_v61 }
 0x7be   :  { %18567 = vrcp.f32 %v11041_v53  ;;  %vm11291_vm13 = vmor %vm11289_vm12, %vm11290_vm11  ;;  %v11580_v59 = vand.u32 2147483648, %v11041_v53  ;;  %v11578_v52 = vand.u32 2147483647, %v11041_v53  ;;  %vm11574_vm1 = vweird.f32 %v11041_v53 }
 0x7bf   :  { %v11286_v58 = vsub.f32 1.0, %v11285_v21  ;;  %v10831_v22 = vpop.f32.mrf.mxu0  ;;  %v10806_v11 = vadd.f32 %v10805_v57, %v10792_v60 }
 0x7c0   :  { %v11581_v19 = vor.u32 1.1754944e-38, %v11580_v59  ;;  %vm11579_vm3 = vcmp.eq.f32.partialorder %v11578_v52, 8.507059e+37 }
 0x7c1   :  { %v11287_v8 = vmul.f32 %v18566_v61, %v11286_v58 }
 0x7c3   :  { %v11288_v48 = vadd.f32 %v18566_v61, %v11287_v8 }
 0x7c4   :  { %v18568_v39 = vpop.eup %18567 }
 0x7c5   :  { %v11292_v24 = vsel %vm11291_vm13, %v18566_v61, %v11288_v48  ;;  %v11570_v33 = vmul.f32 %v18568_v39, %v11041_v53  ;;  %vm11575_vm15 = vweird.f32 %v18568_v39 }
 0x7c6   :  { %v10817_v55 = vpop.f32.mrf.mxu2  ;;  %v11297_v5 = vsel %vm11294_vm14, %v11296_v37, %v11292_v24  ;;  %vm11576_vm2 = vmor %vm11574_vm1, %vm11575_vm15 }
 0x7c7   :  { %v10818_v31 = vadd.f32 %v10817_v55, %v10804_v25  ;;  %11630 = vst [vmem:[%s28430_s16 + $0x80] sm:$0xff] %v11297_v5  ;;  %v11571_v26 = vsub.f32 1.0, %v11570_v33  ;;  %v10833_v7 = vpop.f32.mrf.mxu0 }
 0x7c9   :  { %v10832_v49 = vadd.f32 %v10831_v22, %v10818_v31  ;;  %v11572_v28 = vmul.f32 %v18568_v39, %v11571_v26 }
 0x7cb   :  { %v17054_v56 = vmul.f32 -1.442695, %v10832_v49  ;;  %v11573_v9 = vadd.f32 %v18568_v39, %v11572_v28 }
 0x7cd   :  { %18569 = vpow2.f32 %v17054_v56  ;;  %v11577_v0 = vsel %vm11576_vm2, %v18568_v39, %v11573_v9  ;;  %v10859_v15 = vpop.f32.mrf.mxu1 }
 0x7ce   :  { %v10819_v43 = vpop.f32.mrf.mxu2  ;;  %v11582_v45 = vsel %vm11579_vm3, %v11581_v19, %v11577_v0 }
 0x7cf   :  { %v10820_v14 = vadd.f32 %v10819_v43, %v10806_v11  ;;  %11649 = vst [vmem:[%s28430_s16 + $0x118] sm:$0xff] %v11582_v45 }
 0x7d1   :  { %v10834_v50 = vadd.f32 %v10833_v7, %v10820_v14 }
 0x7d3   :  { %v18570_v4 = vpop.eup %18569  ;;  %v17073_v42 = vmul.f32 -1.442695, %v10834_v50  ;;  %v10845_v6 = vpop.f32.mrf.mxu3 }
 0x7d4   :  { %v11023_v40 = vadd.f32 1.0, %v18570_v4  ;;  %v10846_v29 = vadd.f32 %v10845_v6, %v6736_v20 }
 0x7d5   :  { %18571 = vpow2.f32 %v17073_v42  ;;  %v10861_v35 = vpop.f32.mrf.mxu1 }
 0x7d6   :  { %18573 = vrcp.f32 %v11023_v40  ;;  %v11310_v13 = vand.u32 2147483648, %v11023_v40  ;;  %v11308_v46 = vand.u32 2147483647, %v11023_v40  ;;  %vm11304_vm5 = vweird.f32 %v11023_v40 }
 0x7d7   :  { %v10860_v27 = vadd.f32 %v10859_v15, %v10846_v29 }
 0x7d8   :  { %v11311_v51 = vor.u32 1.1754944e-38, %v11310_v13  ;;  %vm11309_vm7 = vcmp.eq.f32.partialorder %v11308_v46, 8.507059e+37 }
 0x7db   :  { %v18572_v17 = vpop.eup %18571  ;;  %v10847_v12 = vpop.f32.mrf.mxu3 }
 0x7dc   :  { %v18574_v38 = vpop.eup %18573  ;;  %v11042_v2 = vadd.f32 1.0, %v18572_v17  ;;  %v10848_v61 = vadd.f32 %v10847_v12, %v6736_v20 }
 0x7dd   :  { %v11300_v32 = vmul.f32 %v18574_v38, %v11023_v40  ;;  %vm11305_vm4 = vweird.f32 %v18574_v38 }
 0x7de   :  { %18575 = vrcp.f32 %v11042_v2  ;;  %vm11306_vm6 = vmor %vm11304_vm5, %vm11305_vm4  ;;  %v11595_v21 = vand.u32 2147483648, %v11042_v2  ;;  %v11593_v47 = vand.u32 2147483647, %v11042_v2  ;;  %vm11589_vm9 = vweird.f32 %v11042_v2 }
 0x7df   :  { %v11301_v34 = vsub.f32 1.0, %v11300_v32  ;;  %v10887_v44 = vpop.f32.mrf.mxu0  ;;  %v10862_v41 = vadd.f32 %v10861_v35, %v10848_v61 }
 0x7e0   :  { %v11596_v48 = vor.u32 1.1754944e-38, %v11595_v21  ;;  %vm11594_vm11 = vcmp.eq.f32.partialorder %v11593_v47, 8.507059e+37 }
 0x7e1   :  { %v11302_v62 = vmul.f32 %v18574_v38, %v11301_v34 }
 0x7e3   :  { %v11303_v10 = vadd.f32 %v18574_v38, %v11302_v62 }
 0x7e4   :  { %v18576_v1 = vpop.eup %18575  ;;  %v10873_v23 = vpop.f32.mrf.mxu2 }
 0x7e5   :  { %v11307_v30 = vsel %vm11306_vm6, %v18574_v38, %v11303_v10  ;;  %v11585_v54 = vmul.f32 %v18576_v1, %v11042_v2  ;;  %v10874_v16 = vadd.f32 %v10873_v23, %v10860_v27  ;;  %vm11590_vm8 = vweird.f32 %v18576_v1 }
 0x7e6   :  { %v11312_v18 = vsel %vm11309_vm7, %v11311_v51, %v11307_v30  ;;  %vm11591_vm10 = vmor %vm11589_vm9, %vm11590_vm8 }
 0x7e7   :  { %11631 = vst [vmem:[%s28430_s16 + $0x88] sm:$0xff] %v11312_v18  ;;  %v11586_v63 = vsub.f32 1.0, %v11585_v54  ;;  %v10888_v53 = vadd.f32 %v10887_v44, %v10874_v16  ;;  %v10889_v22 = vpop.f32.mrf.mxu0 }
 0x7e9   :  { %v11587_v58 = vmul.f32 %v18576_v1, %v11586_v63  ;;  %v17055_v3 = vmul.f32 -1.442695, %v10888_v53 }
 0x7eb   :  { %v11588_v8 = vadd.f32 %v18576_v1, %v11587_v58  ;;  %18577 = vpow2.f32 %v17055_v3 }
 0x7ec   :  { %v10875_v36 = vpop.f32.mrf.mxu2 }
 0x7ed   :  { %v11592_v25 = vsel %vm11591_vm10, %v18576_v1, %v11588_v8  ;;  %v10876_v39 = vadd.f32 %v10875_v36, %v10862_v41 }
 0x7ee   :  { %v11597_v37 = vsel %vm11594_vm11, %v11596_v48, %v11592_v25 }
 0x7ef   :  { %11650 = vst [vmem:[%s28430_s16 + $0x120] sm:$0xff] %v11597_v37  ;;  %v10890_v55 = vadd.f32 %v10889_v22, %v10876_v39 }
 0x7f1   :  { %v18578_v24 = vpop.eup %18577  ;;  %v17074_v33 = vmul.f32 -1.442695, %v10890_v55 }
 0x7f2   :  { %v11024_v31 = vadd.f32 1.0, %v18578_v24 }
 0x7f3   :  { %18579 = vpow2.f32 %v17074_v33 }
 0x7f4   :  { %18581 = vrcp.f32 %v11024_v31  ;;  %v11325_v28 = vand.u32 2147483648, %v11024_v31  ;;  %v11323_v56 = vand.u32 2147483647, %v11024_v31  ;;  %vm11319_vm13 = vweird.f32 %v11024_v31 }
 0x7f6   :  { %v11326_v11 = vor.u32 1.1754944e-38, %v11325_v28  ;;  %vm11324_vm15 = vcmp.eq.f32.partialorder %v11323_v56, 8.507059e+37 }
 0x7f9   :  { %v18580_v5 = vpop.eup %18579 }
 0x7fa   :  { %v18582_v26 = vpop.eup %18581  ;;  %v11043_v60 = vadd.f32 1.0, %v18580_v5 }
 0x7fb   :  { %v11315_v49 = vmul.f32 %v18582_v26, %v11024_v31  ;;  %vm11320_vm12 = vweird.f32 %v18582_v26 }
 0x7fc   :  { %18583 = vrcp.f32 %v11043_v60  ;;  %vm11321_vm14 = vmor %vm11319_vm13, %vm11320_vm12  ;;  %v11610_v45 = vand.u32 2147483648, %v11043_v60  ;;  %v11608_v50 = vand.u32 2147483647, %v11043_v60  ;;  %vm11604_vm2 = vweird.f32 %v11043_v60 }
 0x7fd   :  { %v11316_v59 = vsub.f32 1.0, %v11315_v49 }
 0x7fe   :  { %v11611_v42 = vor.u32 1.1754944e-38, %v11610_v45  ;;  %vm11609_vm4 = vcmp.eq.f32.partialorder %v11608_v50, 8.507059e+37 }
 0x7ff   :  { %v11317_v52 = vmul.f32 %v18582_v26, %v11316_v59 }
 0x801   :  { %v11318_v57 = vadd.f32 %v18582_v26, %v11317_v52 }
 0x802   :  { %v18584_v9 = vpop.eup %18583 }
 0x803   :  { %v11322_v19 = vsel %vm11321_vm14, %v18582_v26, %v11318_v57  ;;  %v11600_v43 = vmul.f32 %v18584_v9, %v11043_v60  ;;  %vm11605_vm1 = vweird.f32 %v18584_v9 }
 0x804   :  { %v11327_v0 = vsel %vm11324_vm15, %v11326_v11, %v11322_v19  ;;  %vm11606_vm3 = vmor %vm11604_vm2, %vm11605_vm1 }
 0x805   :  { %11632 = vst.msk [vmem:[%s28430_s16 + $0x90] sm:$0xff] %vm3709_vm0, %v11327_v0  ;;  %v11601_v14 = vsub.f32 1.0, %v11600_v43 }
 0x807   :  { %v11602_v7 = vmul.f32 %v18584_v9, %v11601_v14 }
 0x809   :  { %v11603_v4 = vadd.f32 %v18584_v9, %v11602_v7 }
 0x80b   :  { %v11607_v40 = vsel %vm11606_vm3, %v18584_v9, %v11603_v4 }
 0x80c   :  { %v11612_v6 = vsel %vm11609_vm4, %v11611_v42, %v11607_v40 }
 0x80d   :  { %11651 = vst.msk [vmem:[%s28430_s16 + $0x128] sm:$0xff] %vm3709_vm0, %v11612_v6 }

</bundles_post_ra>
